<compile_context>
chip_gen: v5e
topology: v5e:2x2
jax: 0.10.0
libtpu: 0.0.40
codegen_flags: <defaults>
</compile_context>

<pallas_src>
import functools

import jax
import jax.numpy as jnp
import numpy as np
from jax import lax
from jax.experimental import pallas as pl
from jax.experimental.pallas import tpu as pltpu

IN_DIM = 2
CLASS_COUNT = 2
TAU = 1.0
LANE = 128   # TPU lane width: pad the neuron dim to a multiple of this


def _round_up(n, m):
    return ((n + m - 1) // m) * m


def _truth_table():
    # tt[f, r]: output of binary function f on corner r, corners ordered
    # (a,b) = (0,0),(0,1),(1,0),(1,1). Any consistent 16-function ordering gives the same
    # forward math since the soft ops are exactly the multilinear interpolation of the corners.
    tt = np.zeros((16, 4), dtype=np.float32)
    for f in range(16):
        for r in range(4):
            tt[f, r] = (f >> (3 - r)) & 1
    return tt


def make_raw_params(key, num_neurons, num_layers):
    """Synthetic parameters in the module's natural form: raw 16-way logits + connection indices."""
    k = num_neurons
    keys = jax.random.split(key, 2 * num_layers)
    layers = []
    in_dim = IN_DIM
    for li in range(num_layers):
        kw, kc = keys[2 * li], keys[2 * li + 1]
        w = jax.random.normal(kw, (k, 16), dtype=jnp.float32)     # LogicLayer.weights (pre-softmax)
        idx = jax.random.randint(kc, (2, k), 0, in_dim)           # 'random' connections a/b
        layers.append((w, idx))
        in_dim = k
    return layers


def pack_params(raw_layers, *, lane=LANE):
    """softmax -> truth-table blend -> multilinear coeffs; fuse a/b one-hot selections; layer-1 LUT."""
    tt = jnp.asarray(_truth_table())                              # (16, 4)
    num_layers = len(raw_layers)
    k = raw_layers[0][0].shape[0]
    k_pad = _round_up(k, lane)

    def q_of(w):
        return (jax.nn.softmax(w, axis=-1) @ tt).T                # (4, k)

    def coeffs(w):
        q = jnp.pad(q_of(w), ((0, 0), (0, k_pad - k)))
        q0, q1, q2, q3 = q[0], q[1], q[2], q[3]
        # multilinear coefficients [c0, ca, cb, cab]
        return jnp.stack([q0, q2 - q0, q1 - q0, q0 - q1 - q2 + q3]).astype(jnp.float32)

    def fused_sel(idx):
        sa = jax.nn.one_hot(idx[0], k_pad, dtype=jnp.float32).T   # (k_pad, k)
        sb = jax.nn.one_hot(idx[1], k_pad, dtype=jnp.float32).T
        sa = jnp.pad(sa, ((0, 0), (0, k_pad - k)))
        sb = jnp.pad(sb, ((0, 0), (0, k_pad - k)))
        return jnp.concatenate([sa, sb], axis=1)                  # (k_pad, 2*k_pad)

    # --- layer 1 folded into a 2^IN_DIM-entry LUT (exact: a, b in {0,1}) ---
    w1, idx1 = raw_layers[0]
    q1 = q_of(w1)
    t_all = jnp.asarray([[0., 0.], [0., 1.], [1., 0.], [1., 1.]], jnp.float32)   # (4, IN_DIM)
    a = t_all[:, idx1[0]]                                         # (4, k)
    b = t_all[:, idx1[1]]
    h1 = ((1 - a) * (1 - b)) * q1[0] + ((1 - a) * b) * q1[1] \
        + (a * (1 - b)) * q1[2] + (a * b) * q1[3]
    lut = jnp.pad(h1, ((0, 0), (0, k_pad - k))).astype(jnp.float32)              # (4, k_pad)

    # --- hidden layers (stacked) ---
    if num_layers > 1:
        s = jnp.stack([fused_sel(idx) for _, idx in raw_layers[1:]])             # (L-1, k_pad, 2k_pad)
        c = jnp.stack([coeffs(w) for w, _ in raw_layers[1:]])                    # (L-1, 4, k_pad)
    else:
        s = jnp.zeros((1, k_pad, 2 * k_pad), jnp.float32)         # dummy, never read
        c = jnp.zeros((1, 4, k_pad), jnp.float32)

    # --- GroupSum(class_count, tau): (k_pad, CLASS_COUNT) matrix, 1/tau folded in (exact, f32) ---
    gsz = k // CLASS_COUNT
    g = np.zeros((k_pad, CLASS_COUNT), np.float32)
    for cls_i in range(CLASS_COUNT):
        g[cls_i * gsz:(cls_i + 1) * gsz, cls_i] = 1.0 / TAU
    return lut, s, c, jnp.asarray(g)


def logic_net_kernel(x_ref, lut_ref, s_ref, c_ref, g_ref, out_ref, *,
                     num_hidden_layers, k_pad):
    x = x_ref[...]                                                # (tile_b, IN_DIM)

    # Layer 1: binarize the 2-d input and select from the precomputed 4-row LUT (exact).
    t0 = x[:, 0:1] > 0.0                                          # (tile_b, 1) bool
    t1 = x[:, 1:2] > 0.0
    lut = lut_ref[...]                                            # (4, k_pad)
    hi = jnp.where(t1, lut[3:4, :], lut[2:3, :])                  # (tile_b, k_pad)
    lo = jnp.where(t1, lut[1:2, :], lut[0:1, :])
    h = jnp.where(t0, hi, lo)

    def combine(a, b, c):
        # soft-logic blend, Horner multilinear form: c0 + b*cb + a*(ca + b*cab)
        return c[0:1, :] + b * c[2:3, :] + a * (c[1:2, :] + b * c[3:4, :])

    # Hidden layers: one fused (a|b) one-hot gather matmul per layer (static unroll; L is small).
    for li in range(num_hidden_layers):
        ab = jnp.dot(h, s_ref[li], preferred_element_type=jnp.float32,
                     precision=lax.Precision.HIGHEST)             # (tile_b, 2*k_pad)
        h = combine(ab[:, :k_pad], ab[:, k_pad:], c_ref[li])

    # GroupSum(class_count, tau): narrow output (only CLASS_COUNT useful lanes go back to HBM).
    out_ref[...] = jnp.dot(h, g_ref[...], preferred_element_type=jnp.float32,
                           precision=lax.Precision.HIGHEST)


def _vmem_budget_bytes(tile_b, k_pad, num_hidden):
    f32 = 4
    params = (4 * k_pad
              + max(num_hidden, 1) * (k_pad * 2 * k_pad + 4 * k_pad)
              + k_pad * CLASS_COUNT) * f32
    io = (tile_b * IN_DIM + tile_b * CLASS_COUNT) * f32
    act = tile_b * k_pad * 4 * f32                                # h, ab, live temporaries
    # grid-invariant params and i/o tiles are double-buffered by the auto-pipeline
    return 2 * params + 2 * io + act


def ptf_logic_classifier(x, packed, *, num_layers, tile_b=2048):
    lut, s, c, g = packed
    k_pad = lut.shape[-1]
    B = x.shape[0]
    num_hidden = num_layers - 1

    # Batch tiling: large tiles to amortize the ~0.35 us grid-step overhead, but keep >= 2 grid
    # steps when the batch allows so ("parallel",) can shard across v7x's two TensorCores.
    B8 = _round_up(B, 8)
    half = _round_up((B8 + 1) // 2, 8)
    tb = _round_up(min(tile_b, max(half, 8)), 8)
    B_pad = _round_up(B8, tb)
    if B_pad != B:
        x = jnp.pad(x, ((0, B_pad - B), (0, 0)))
    grid = (B_pad // tb,)

    def resident(shape):
        ndim = len(shape)
        return pl.BlockSpec(shape, lambda i, _n=ndim: (0,) * _n)

    flops_per_row = (
        3 * k_pad                                                 # layer-1 LUT selects
        + num_hidden * (2 * k_pad * (2 * k_pad) + 6 * k_pad)      # fused gathers + combines
        + 2 * k_pad * CLASS_COUNT                                 # GroupSum
    )
    param_bytes = sum(int(p.size) * p.dtype.itemsize for p in (lut, s, c, g))
    cost = pl.CostEstimate(
        flops=int(B_pad) * int(flops_per_row),
        transcendentals=0,
        bytes_accessed=int(B_pad) * IN_DIM * 4 + param_bytes + int(B_pad) * CLASS_COUNT * 4,
    )

    vmem_limit = int(min(max(2 * _vmem_budget_bytes(tb, k_pad, num_hidden), 16 << 20), 60 << 20))

    kernel = functools.partial(logic_net_kernel,
                               num_hidden_layers=num_hidden, k_pad=k_pad)
    out = pl.pallas_call(
        kernel,
        out_shape=jax.ShapeDtypeStruct((B_pad, CLASS_COUNT), jnp.float32),
        grid=grid,
        in_specs=[
            pl.BlockSpec((tb, IN_DIM), lambda i: (i, 0)),         # batch-tiled input
            resident(lut.shape),                                  # layer-1 LUT
            resident(s.shape), resident(c.shape),                 # stacked hidden-layer params
            resident(g.shape),                                    # GroupSum matrix (1/tau folded)
        ],
        out_specs=pl.BlockSpec((tb, CLASS_COUNT), lambda i: (i, 0)),
        compiler_params=pltpu.CompilerParams(
            dimension_semantics=("parallel",),
            vmem_limit_bytes=vmem_limit,
        ),
        cost_estimate=cost,
    )(x, lut, s, c, g)

    return out[:B]


def reference(x, raw_layers):
    """Pure-JAX reference of the original module's forward pass (unpadded, unfused)."""
    tt = jnp.asarray(_truth_table())
    h = (x > 0.0).astype(jnp.float32)
    for w, idx in raw_layers:
        q = (jax.nn.softmax(w, axis=-1) @ tt).T                   # (4, k)
        a = h[:, idx[0]]
        b = h[:, idx[1]]
        h = ((1 - a) * (1 - b)) * q[0] + ((1 - a) * b) * q[1] \
            + (a * (1 - b)) * q[2] + (a * b) * q[3]
    k = h.shape[-1]
    return h.reshape(h.shape[0], CLASS_COUNT, k // CLASS_COUNT).sum(-1) / TAU


if __name__ == "__main__":
    # module hyper-params (small, consistent with the PyTorch __init__)
    param = dict(num_neurons=32, num_layers=3, grad_factor=1.0,
                 connections="random", fan_in=2)

    key = jax.random.PRNGKey(0)
    kx, kp = jax.random.split(key)
    B = 512
    x = jax.random.normal(kx, (B, IN_DIM), dtype=jnp.float32)     # (batch, in_dim=2)

    raw = make_raw_params(kp, param["num_neurons"], param["num_layers"])
    packed = pack_params(raw)

    out = ptf_logic_classifier(x, packed, num_layers=param["num_layers"])
    out = jax.block_until_ready(out)

    ref = reference(x, raw)
    assert out.shape == (B, CLASS_COUNT)
    assert bool(jnp.allclose(out, ref, atol=1e-5, rtol=1e-5)), "mismatch vs pure-JAX reference"
    print("KERNEL_OK")
</pallas_src>

<mosaic_0001>
module attributes {stable_mosaic.version = 11 : i64} {
  func.func @logic_net_kernel(%arg0: i32, %arg1: memref<256x2xf32, #tpu.memory_space<vmem>>, %arg2: memref<4x128xf32, #tpu.memory_space<vmem>>, %arg3: memref<2x128x256xf32, #tpu.memory_space<vmem>>, %arg4: memref<2x4x128xf32, #tpu.memory_space<vmem>>, %arg5: memref<128x2xf32, #tpu.memory_space<vmem>>, %arg6: memref<256x2xf32, #tpu.memory_space<vmem>>) attributes {dimension_semantics = [#tpu.dimension_semantics<parallel>], iteration_bounds = array<i64: 2>, scalar_prefetch = 0 : i64, scratch_operands = 0 : i64, tpu.core_type = #tpu.core_type<tc>, window_params = [{transform_indices = @transform_0, window_bounds = array<i64: 256, 2>}, {pipeline_mode = #tpu.pipeline_mode<synchronous>, transform_indices = @transform_1, window_bounds = array<i64: 4, 128>}, {pipeline_mode = #tpu.pipeline_mode<synchronous>, transform_indices = @transform_2, window_bounds = array<i64: 2, 128, 256>}, {pipeline_mode = #tpu.pipeline_mode<synchronous>, transform_indices = @transform_3, window_bounds = array<i64: 2, 4, 128>}, {pipeline_mode = #tpu.pipeline_mode<synchronous>, transform_indices = @transform_4, window_bounds = array<i64: 128, 2>}, {transform_indices = @transform_5, window_bounds = array<i64: 256, 2>}]} {
    %c0 = arith.constant 0 : index
    %c0_0 = arith.constant 0 : index
    %0 = vector.load %arg1[%c0, %c0_0] : memref<256x2xf32, #tpu.memory_space<vmem>>, vector<256x2xf32>
    %1 = vector.extract_strided_slice %0 {offsets = [0, 0], sizes = [256, 1], strides = [1, 1]} : vector<256x2xf32> to vector<256x1xf32>
    %cst = arith.constant 0.000000e+00 : f32
    %2 = vector.broadcast %cst : f32 to vector<256x1xf32>
    %3 = arith.cmpf ogt, %1, %2 : vector<256x1xf32>
    %4 = vector.extract_strided_slice %0 {offsets = [0, 1], sizes = [256, 1], strides = [1, 1]} : vector<256x2xf32> to vector<256x1xf32>
    %cst_1 = arith.constant 0.000000e+00 : f32
    %5 = vector.broadcast %cst_1 : f32 to vector<256x1xf32>
    %6 = arith.cmpf ogt, %4, %5 : vector<256x1xf32>
    %c0_2 = arith.constant 0 : index
    %c0_3 = arith.constant 0 : index
    %7 = vector.load %arg2[%c0_2, %c0_3] : memref<4x128xf32, #tpu.memory_space<vmem>>, vector<4x128xf32>
    %8 = vector.extract_strided_slice %7 {offsets = [3, 0], sizes = [1, 128], strides = [1, 1]} : vector<4x128xf32> to vector<1x128xf32>
    %9 = vector.extract_strided_slice %7 {offsets = [2, 0], sizes = [1, 128], strides = [1, 1]} : vector<4x128xf32> to vector<1x128xf32>
    %10 = vector.shape_cast %6 : vector<256x1xi1> to vector<256x1xi1>
    %11 = vector.broadcast %10 : vector<256x1xi1> to vector<256x128xi1>
    %12 = vector.shape_cast %8 : vector<1x128xf32> to vector<1x128xf32>
    %13 = vector.broadcast %12 : vector<1x128xf32> to vector<256x128xf32>
    %14 = vector.shape_cast %9 : vector<1x128xf32> to vector<1x128xf32>
    %15 = vector.broadcast %14 : vector<1x128xf32> to vector<256x128xf32>
    %16 = arith.select %11, %13, %15 : vector<256x128xi1>, vector<256x128xf32>
    %17 = vector.extract_strided_slice %7 {offsets = [1, 0], sizes = [1, 128], strides = [1, 1]} : vector<4x128xf32> to vector<1x128xf32>
    %18 = vector.extract_strided_slice %7 {offsets = [0, 0], sizes = [1, 128], strides = [1, 1]} : vector<4x128xf32> to vector<1x128xf32>
    %19 = vector.shape_cast %6 : vector<256x1xi1> to vector<256x1xi1>
    %20 = vector.broadcast %19 : vector<256x1xi1> to vector<256x128xi1>
    %21 = vector.shape_cast %17 : vector<1x128xf32> to vector<1x128xf32>
    %22 = vector.broadcast %21 : vector<1x128xf32> to vector<256x128xf32>
    %23 = vector.shape_cast %18 : vector<1x128xf32> to vector<1x128xf32>
    %24 = vector.broadcast %23 : vector<1x128xf32> to vector<256x128xf32>
    %25 = arith.select %20, %22, %24 : vector<256x128xi1>, vector<256x128xf32>
    %26 = vector.shape_cast %3 : vector<256x1xi1> to vector<256x1xi1>
    %27 = vector.broadcast %26 : vector<256x1xi1> to vector<256x128xi1>
    %28 = arith.select %27, %16, %25 : vector<256x128xi1>, vector<256x128xf32>
    %c0_4 = arith.constant 0 : index
    %c0_5 = arith.constant 0 : index
    %c0_6 = arith.constant 0 : index
    %29 = vector.load %arg3[%c0_4, %c0_5, %c0_6] : memref<2x128x256xf32, #tpu.memory_space<vmem>>, vector<1x128x256xf32>
    %30 = vector.shape_cast %29 : vector<1x128x256xf32> to vector<128x256xf32>
    %cst_7 = arith.constant dense<0.000000e+00> : vector<256x256xf32>
    %31 = tpu.matmul %28, %30, %cst_7 {dimension_numbers = #tpu.dot_dimension_numbers<[1], [0], [0], [1], [0, 0, 1, 1], [], []>, precision = #tpu.contract_precision<fp32>} : vector<256x128xf32>, vector<128x256xf32>, vector<256x256xf32> -> vector<256x256xf32>
    %32 = vector.extract_strided_slice %31 {offsets = [0, 0], sizes = [256, 128], strides = [1, 1]} : vector<256x256xf32> to vector<256x128xf32>
    %33 = vector.extract_strided_slice %31 {offsets = [0, 128], sizes = [256, 128], strides = [1, 1]} : vector<256x256xf32> to vector<256x128xf32>
    %c0_8 = arith.constant 0 : index
    %c0_9 = arith.constant 0 : index
    %c0_10 = arith.constant 0 : index
    %34 = vector.load %arg4[%c0_8, %c0_9, %c0_10] : memref<2x4x128xf32, #tpu.memory_space<vmem>>, vector<1x4x128xf32>
    %35 = vector.shape_cast %34 : vector<1x4x128xf32> to vector<4x128xf32>
    %36 = vector.extract_strided_slice %35 {offsets = [0, 0], sizes = [1, 128], strides = [1, 1]} : vector<4x128xf32> to vector<1x128xf32>
    %37 = vector.extract_strided_slice %35 {offsets = [2, 0], sizes = [1, 128], strides = [1, 1]} : vector<4x128xf32> to vector<1x128xf32>
    %38 = vector.broadcast %37 : vector<1x128xf32> to vector<256x128xf32>
    %39 = arith.mulf %33, %38 : vector<256x128xf32>
    %40 = vector.broadcast %36 : vector<1x128xf32> to vector<256x128xf32>
    %41 = arith.addf %40, %39 : vector<256x128xf32>
    %42 = vector.extract_strided_slice %35 {offsets = [1, 0], sizes = [1, 128], strides = [1, 1]} : vector<4x128xf32> to vector<1x128xf32>
    %43 = vector.extract_strided_slice %35 {offsets = [3, 0], sizes = [1, 128], strides = [1, 1]} : vector<4x128xf32> to vector<1x128xf32>
    %44 = vector.broadcast %43 : vector<1x128xf32> to vector<256x128xf32>
    %45 = arith.mulf %33, %44 : vector<256x128xf32>
    %46 = vector.broadcast %42 : vector<1x128xf32> to vector<256x128xf32>
    %47 = arith.addf %46, %45 : vector<256x128xf32>
    %48 = arith.mulf %32, %47 : vector<256x128xf32>
    %49 = arith.addf %41, %48 : vector<256x128xf32>
    %c1 = arith.constant 1 : index
    %c0_11 = arith.constant 0 : index
    %c0_12 = arith.constant 0 : index
    %50 = vector.load %arg3[%c1, %c0_11, %c0_12] : memref<2x128x256xf32, #tpu.memory_space<vmem>>, vector<1x128x256xf32>
    %51 = vector.shape_cast %50 : vector<1x128x256xf32> to vector<128x256xf32>
    %cst_13 = arith.constant dense<0.000000e+00> : vector<256x256xf32>
    %52 = tpu.matmul %49, %51, %cst_13 {dimension_numbers = #tpu.dot_dimension_numbers<[1], [0], [0], [1], [0, 0, 1, 1], [], []>, precision = #tpu.contract_precision<fp32>} : vector<256x128xf32>, vector<128x256xf32>, vector<256x256xf32> -> vector<256x256xf32>
    %53 = vector.extract_strided_slice %52 {offsets = [0, 0], sizes = [256, 128], strides = [1, 1]} : vector<256x256xf32> to vector<256x128xf32>
    %54 = vector.extract_strided_slice %52 {offsets = [0, 128], sizes = [256, 128], strides = [1, 1]} : vector<256x256xf32> to vector<256x128xf32>
    %c1_14 = arith.constant 1 : index
    %c0_15 = arith.constant 0 : index
    %c0_16 = arith.constant 0 : index
    %55 = vector.load %arg4[%c1_14, %c0_15, %c0_16] : memref<2x4x128xf32, #tpu.memory_space<vmem>>, vector<1x4x128xf32>
    %56 = vector.shape_cast %55 : vector<1x4x128xf32> to vector<4x128xf32>
    %57 = vector.extract_strided_slice %56 {offsets = [0, 0], sizes = [1, 128], strides = [1, 1]} : vector<4x128xf32> to vector<1x128xf32>
    %58 = vector.extract_strided_slice %56 {offsets = [2, 0], sizes = [1, 128], strides = [1, 1]} : vector<4x128xf32> to vector<1x128xf32>
    %59 = vector.broadcast %58 : vector<1x128xf32> to vector<256x128xf32>
    %60 = arith.mulf %54, %59 : vector<256x128xf32>
    %61 = vector.broadcast %57 : vector<1x128xf32> to vector<256x128xf32>
    %62 = arith.addf %61, %60 : vector<256x128xf32>
    %63 = vector.extract_strided_slice %56 {offsets = [1, 0], sizes = [1, 128], strides = [1, 1]} : vector<4x128xf32> to vector<1x128xf32>
    %64 = vector.extract_strided_slice %56 {offsets = [3, 0], sizes = [1, 128], strides = [1, 1]} : vector<4x128xf32> to vector<1x128xf32>
    %65 = vector.broadcast %64 : vector<1x128xf32> to vector<256x128xf32>
    %66 = arith.mulf %54, %65 : vector<256x128xf32>
    %67 = vector.broadcast %63 : vector<1x128xf32> to vector<256x128xf32>
    %68 = arith.addf %67, %66 : vector<256x128xf32>
    %69 = arith.mulf %53, %68 : vector<256x128xf32>
    %70 = arith.addf %62, %69 : vector<256x128xf32>
    %c0_17 = arith.constant 0 : index
    %c0_18 = arith.constant 0 : index
    %71 = vector.load %arg5[%c0_17, %c0_18] : memref<128x2xf32, #tpu.memory_space<vmem>>, vector<128x2xf32>
    %cst_19 = arith.constant dense<0.000000e+00> : vector<256x2xf32>
    %72 = tpu.matmul %70, %71, %cst_19 {dimension_numbers = #tpu.dot_dimension_numbers<[1], [0], [0], [1], [0, 0, 1, 1], [], []>, precision = #tpu.contract_precision<fp32>} : vector<256x128xf32>, vector<128x2xf32>, vector<256x2xf32> -> vector<256x2xf32>
    %c0_20 = arith.constant 0 : index
    %c0_21 = arith.constant 0 : index
    %73 = vector.load %arg6[%c0_20, %c0_21] : memref<256x2xf32, #tpu.memory_space<vmem>>, vector<256x2xf32>
    tpu.vector_store %arg6[%c0_20, %c0_21], %72 {strides = array<i32>} : memref<256x2xf32, #tpu.memory_space<vmem>>, vector<256x2xf32>,
    return
  }
  func.func @transform_0(%arg0: i32) -> (i32, i32) {
    %c0_i32 = arith.constant 0 : i32
    %c0_i32_0 = arith.constant 0 : i32
    return %arg0, %c0_i32 : i32, i32
  }
  func.func @transform_1(%arg0: i32) -> (i32, i32) {
    %c0_i32 = arith.constant 0 : i32
    %c0_i32_0 = arith.constant 0 : i32
    %c0_i32_1 = arith.constant 0 : i32
    return %c0_i32, %c0_i32_0 : i32, i32
  }
  func.func @transform_2(%arg0: i32) -> (i32, i32, i32) {
    %c0_i32 = arith.constant 0 : i32
    %c0_i32_0 = arith.constant 0 : i32
    %c0_i32_1 = arith.constant 0 : i32
    %c0_i32_2 = arith.constant 0 : i32
    return %c0_i32, %c0_i32_0, %c0_i32_1 : i32, i32, i32
  }
  func.func @transform_3(%arg0: i32) -> (i32, i32, i32) {
    %c0_i32 = arith.constant 0 : i32
    %c0_i32_0 = arith.constant 0 : i32
    %c0_i32_1 = arith.constant 0 : i32
    %c0_i32_2 = arith.constant 0 : i32
    return %c0_i32, %c0_i32_0, %c0_i32_1 : i32, i32, i32
  }
  func.func @transform_4(%arg0: i32) -> (i32, i32) {
    %c0_i32 = arith.constant 0 : i32
    %c0_i32_0 = arith.constant 0 : i32
    %c0_i32_1 = arith.constant 0 : i32
    return %c0_i32, %c0_i32_0 : i32, i32
  }
  func.func @transform_5(%arg0: i32) -> (i32, i32) {
    %c0_i32 = arith.constant 0 : i32
    %c0_i32_0 = arith.constant 0 : i32
    return %arg0, %c0_i32 : i32, i32
  }
}

</mosaic_0001>

<bundles_post_ra>
// kernel: tpu_custom_call.1
= control target key start
LH: loop header
LB: loop body
LE: loop exit
PB: predicated region body
PF: predicated region fallthrough
CT: control target
= control target key end

     0   :  { %s7923_s18 = smov 0   ;;  %s13473_s0 = inlined_call_operand.vmem [shape: f32[512,2], index: 0, kind: input, shape index: {}]   ;;  %s13474_s1 = inlined_call_operand.vmem [shape: f32[4,128], index: 1, kind: input, shape index: {}]   ;;  %s13475_s2 = inlined_call_operand.vmem [shape: f32[2,128,256], index: 2, kind: input, shape index: {}]   ;;  %s13476_s3 = inlined_call_operand.vmem [shape: f32[2,4,128], index: 3, kind: input, shape index: {}]   ;;  %s13477_s4 = inlined_call_operand.vmem [shape: f32[128,2], index: 4, kind: input, shape index: {}]   ;;  %s13478_s5 = inlined_call_operand.vmem [shape: f32[512,2], index: 5, kind: output, shape index: {}]  }
   0x1 LB: > { %s7756_s19 = sadd.s32 4294967295, %s7889_s18   ;;  %p7760_p0 = scmp.ge.s32.totalorder %s7889_s18, 1  ;;  %s7889_s18 = sphi %s7923_s18, %s15_s18  }
   0x2   : > { %p188_p1 = scmp.lt.s32.totalorder %s7889_s18, 3 }
   0x4   : > { %p189_p2 = pnand %p7760_p0, %p188_p1 }
   0x6   : > { %192 = sbr.rel (%p189_p2) target bundleno = 2354 (0x932), region = 40 }
   0xb   : > { %s7761_s20 = sshll.u32 %s7756_s19, 5  ;;  %v7891_v0 = vmov 1   ;;  %v7892_v4 = vmov 0   ;;  %v711_v24 = vld [vmem:[%s13475_s2 + $0xf0] sm:$0xff]  ;;  %v709_v27 = vld [vmem:[%s13475_s2 + $0xe0] sm:$0xff] }
   0xc   : > { %7844 = vset.pattern.permute.xlu1 %v7891_v0  ;;  %7842 = vset.pattern.permute.xlu0 %v7891_v0  ;;  %p217_p3 = scmp.lt.s32.totalorder %s7761_s20, 63  ;;  %v7984_v25 = vand.u32 4294901760, %v711_v24  ;;  %v7994_v29 = vand.u32 4294901760, %v709_v27  ;;  %v707_v30 = vld [vmem:[%s13475_s2 + $0xd0] sm:$0xff]  ;;  %v705_v35 = vld [vmem:[%s13475_s2 + $0xc0] sm:$0xff] }
   0xd   : > { %7846 = vset.pattern.permute.xlu2 %v7891_v0  ;;  %v8005_v33 = vand.u32 4294901760, %v707_v30  ;;  %v8027_v41 = vand.u32 4294901760, %v705_v35  ;;  %v703_v42 = vld [vmem:[%s13475_s2 + $0xb0] sm:$0xff]  ;;  %v701_v48 = vld [vmem:[%s13475_s2 + $0xa0] sm:$0xff] }
   0xe   : > { %s15105_s20 = smov (!%p217_p3, %s7761_s20), 63  ;;  %v7992_v28 = vsub.f32 %v711_v24, %v7984_v25  ;;  %7800 = vmatpush.msra.mxu2 %v7984_v25  ;;  %714 = vmatpush.msra.mxu0 %v7984_v25  ;;  %v8003_v32 = vsub.f32 %v709_v27, %v7994_v29  ;;  %v8038_v46 = vand.u32 4294901760, %v703_v42  ;;  %v8055_v53 = vand.u32 4294901760, %v701_v48  ;;  %v699_v54 = vld [vmem:[%s13475_s2 + $0x90] sm:$0xff]  ;;  %v697_v61 = vld [vmem:[%s13475_s2 + $0x80] sm:$0xff] }
   0xf   : > { %s7762_s21 = sshll.u32 %s15105_s20, 3  ;;  %v8019_v38 = vsub.f32 %v707_v30, %v8005_v33  ;;  %v8041_v47 = vsub.f32 %v705_v35, %v8027_v41  ;;  %v8064_v58 = vand.u32 4294901760, %v699_v54  ;;  %v689_v27 = vld [vmem:[%s13475_s2 + $0x40] sm:$0xff] }
  0x10   : > { %s7942_s24 = scalar_lea.vmem %s13473_s0, %s7762_s21  ;;  %v1004_v31 = vand.u32 4294901760, %v7992_v28  ;;  %7801 = vmatpush.msra.mxu2 %v7994_v29  ;;  %716 = vmatpush.msra.mxu0 %v7994_v29  ;;  %v1010_v37 = vand.u32 4294901760, %v8003_v32  ;;  %v8052_v51 = vsub.f32 %v703_v42, %v8038_v46  ;;  %v8070_v60 = vsub.f32 %v701_v48, %v8055_v53  ;;  %s13318_s14 = scalar_lea.vmem %s13478_s5, %s7762_s21 }
  0x11   : > { %v245_v1 = vld [vmem:[%s7942_s24 + $0x88] sm:$0xff]  ;;  %v244_v2 = vld [vmem:[%s7942_s24 + $0x80] sm:$0xff]  ;;  %v246_v3 = vld [vmem:[%s7942_s24 + $0x90] sm:$0xff]  ;;  %v1016_v45 = vand.u32 4294901760, %v8019_v38  ;;  %v1022_v52 = vand.u32 4294901760, %v8041_v47  ;;  %v8081_v63 = vsub.f32 %v699_v54, %v8064_v58 }
  0x12   : > { %vm277_vm0 = vcmp.gt.f32.partialorder %v245_v1, 0.0  ;;  %vm276_vm1 = vcmp.gt.f32.partialorder %v244_v2, 0.0  ;;  %vm278_vm2 = vcmp.gt.f32.partialorder %v246_v3, 0.0  ;;  %v247_v8 = vld [vmem:[%s7942_s24 + $0x98] sm:$0xff]  ;;  %v248_v9 = vld [vmem:[%s7942_s24 + $0xa0] sm:$0xff]  ;;  %v250_v12 = vld [vmem:[%s7942_s24 + $0xb0] sm:$0xff]  ;;  %v1005_v36 = vsub.f32 %v7992_v28, %v1004_v31  ;;  %7802 = vmatpush.msra.mxu2 %v8005_v33  ;;  %718 = vmatpush.msra.mxu0 %v8005_v33 }
  0x13   : > { %v310_v5 = vsel %vm277_vm0, 1, %v7892_v4  ;;  %v309_v6 = vsel %vm276_vm1, 1, %v7892_v4  ;;  %v311_v7 = vsel %vm278_vm2, 1, %v7892_v4  ;;  %vm279_vm3 = vcmp.gt.f32.partialorder %v247_v8, 0.0  ;;  %v249_v13 = vld [vmem:[%s7942_s24 + $0xa8] sm:$0xff]  ;;  %v251_v17 = vld [vmem:[%s7942_s24 + $0xb8] sm:$0xff] }
  0x14   : > { %377 = vperm.xlu1 %7844, %v310_v5   ;;  %374 = vperm.xlu0 %7842, %v309_v6   ;;  %vm280_vm4 = vcmp.gt.f32.partialorder %v248_v9, 0.0  ;;  %v312_v10 = vsel %vm279_vm3, 1, %v7892_v4  ;;  %vm282_vm5 = vcmp.gt.f32.partialorder %v250_v12, 0.0  ;;  %vm281_vm6 = vcmp.gt.f32.partialorder %v249_v13, 0.0  ;;  %v253_v16 = vld [vmem:[%s7942_s24 + $0xc8] sm:$0xff]  ;;  %v252_v20 = vld [vmem:[%s7942_s24 + $0xc0] sm:$0xff] }
  0x15   : > { %380 = vperm.xlu2 %7846, %v311_v7   ;;  %v313_v11 = vsel %vm280_vm4, 1, %v7892_v4  ;;  %v315_v14 = vsel %vm282_vm5, 1, %v7892_v4  ;;  %v314_v15 = vsel %vm281_vm6, 1, %v7892_v4  ;;  %vm285_vm7 = vcmp.gt.f32.partialorder %v253_v16, 0.0  ;;  %v255_v21 = vld [vmem:[%s7942_s24 + $0xd8] sm:$0xff]  ;;  %v254_v26 = vld [vmem:[%s7942_s24 + $0xd0] sm:$0xff]  ;;  %7803 = vmatpush.msra.mxu2 %v8027_v41 }
  0x16   : > { %v318_v18 = vsel %vm285_vm7, 1, %v7892_v4  ;;  %vm283_vm8 = vcmp.gt.f32.partialorder %v251_v17, 0.0  ;;  %vm284_vm9 = vcmp.gt.f32.partialorder %v252_v20, 0.0  ;;  %vm287_vm10 = vcmp.gt.f32.partialorder %v255_v21, 0.0  ;;  %v258_v34 = vld [vmem:[%s7942_s24 + $0xf0] sm:$0xff]  ;;  %720 = vmatpush.msra.mxu0 %v8027_v41  ;;  %v256_v55 = vld [vmem:[%s7942_s24 + $0xe0] sm:$0xff] }
  0x17   : > { %v316_v19 = vsel %vm283_vm8, 1, %v7892_v4  ;;  %v7977_v22 = vsel %vm287_vm10, 1, %v7892_v4  ;;  %v317_v23 = vsel %vm284_vm9, 1, %v7892_v4  ;;  %vm286_vm11 = vcmp.gt.f32.partialorder %v254_v26, 0.0  ;;  %7804 = vmatpush.msra.mxu2 %v8038_v46  ;;  %v228_v3 = vld [vmem:[%s7942_s24] sm:$0xff]  ;;  %v691_v20 = vld [vmem:[%s13475_s2 + $0x50] sm:$0xff] }
  0x18   : > { %vm290_vm12 = vcmp.gt.f32.partialorder %v258_v34, 0.0  ;;  %v319_v39 = vsel %vm286_vm11, 1, %v7892_v4  ;;  %v1006_v43 = vand.u32 4294901760, %v1005_v36  ;;  %v1011_v44 = vsub.f32 %v8003_v32, %v1010_v37  ;;  %722 = vmatpush.msra.mxu0 %v8038_v46  ;;  %v693_v13 = vld [vmem:[%s13475_s2 + $0x60] sm:$0xff]  ;;  %v257_v30 = vld [vmem:[%s7942_s24 + $0xe8] sm:$0xff] }
  0x19   : > { %v8025_v40 = vsel %vm290_vm12, 1, %v7892_v4  ;;  %v1017_v50 = vsub.f32 %v8019_v38, %v1016_v45  ;;  %v1028_v57 = vand.u32 4294901760, %v8052_v51  ;;  %v1023_v59 = vsub.f32 %v8041_v47, %v1022_v52  ;;  %7805 = vmatpush.msra.mxu2 %v8055_v53 }
  0x1a   : > { %7816 = vmatpush.msra.mxu3 %v1006_v43  ;;  %v1012_v49 = vand.u32 4294901760, %v1011_v44  ;;  %1007 = vmatpush.msra.mxu1 %v1006_v43  ;;  %v8083_v1 = vand.u32 4294901760, %v697_v61  ;;  %vm288_vm13 = vcmp.gt.f32.partialorder %v256_v55, 0.0  ;;  %vm260_vm14 = vcmp.gt.f32.partialorder %v228_v3, 0.0  ;;  %v687_v43 = vld [vmem:[%s13475_s2 + $0x30] sm:$0xff]  ;;  %v685_v55 = vld [vmem:[%s13475_s2 + $0x20] sm:$0xff] }
  0x1b   : > { %v1018_v56 = vand.u32 4294901760, %v1017_v50  ;;  %724 = vmatpush.msra.mxu0 %v8055_v53  ;;  %v1029_v62 = vsub.f32 %v8052_v51, %v1028_v57  ;;  %v1024_v2 = vand.u32 4294901760, %v1023_v59  ;;  %7806 = vmatpush.msra.mxu2 %v8064_v58  ;;  %v1040_v8 = vand.u32 4294901760, %v8081_v63 }
  0x1c   : > { %7845 = vset.pattern.permute.xlu1 %v7892_v4  ;;  %7843 = vset.pattern.permute.xlu0 %v7892_v4  ;;  %v8095_v9 = vsub.f32 %v697_v61, %v8083_v1  ;;  %v8114_v16 = vand.u32 4294901760, %v693_v13  ;;  %v321_v17 = vsel %vm288_vm13, 1, %v7892_v4  ;;  %v8131_v24 = vand.u32 4294901760, %v691_v20 }
  0x1d   : > { %573 = vperm.xlu1 %7845, %v310_v5   ;;  %570 = vperm.xlu0 %7843, %v309_v6   ;;  %v1034_v5 = vand.u32 4294901760, %v8070_v60  ;;  %v695_v6 = vld [vmem:[%s13475_s2 + $0x70] sm:$0xff]  ;;  %vm289_vm15 = vcmp.gt.f32.partialorder %v257_v30, 0.0  ;;  %v8162_v54 = vand.u32 4294901760, %v687_v43 }
  0x1e   : > { %7847 = vset.pattern.permute.xlu2 %v7892_v4  ;;  %7817 = vmatpush.msra.mxu3 %v1012_v49  ;;  %v8103_v12 = vand.u32 4294901760, %v695_v6  ;;  %v8143_v36 = vsub.f32 %v691_v20, %v8131_v24  ;;  %v322_v3 = vsel %vm289_vm15, 1, %v7892_v4 }
  0x1f   : > { %576 = vperm.xlu2 %7847, %v311_v7   ;;  %1013 = vmatpush.msra.mxu1 %v1012_v49  ;;  %v1030_v7 = vand.u32 4294901760, %v1029_v62  ;;  %v8174_v62 = vsub.f32 %v687_v43, %v8162_v54 }
  0x20   : > { %7818 = vmatpush.msra.mxu3 %v1018_v56  ;;  %7807 = vmatpush.msra.mxu2 %v8083_v1  ;;  %v1064_v48 = vand.u32 4294901760, %v8143_v36 }
  0x21   : > { %1019 = vmatpush.msra.mxu1 %v1018_v56  ;;  %726 = vmatpush.msra.mxu0 %v8064_v58 }
  0x22   : > { %7819 = vmatpush.msra.mxu3 %v1024_v2  ;;  %7808 = vmatpush.msra.mxu2 %v8103_v12  ;;  %v1065_v59 = vsub.f32 %v8143_v36, %v1064_v48 }
  0x23   : > { %1025 = vmatpush.msra.mxu1 %v1024_v2  ;;  %v683_v2 = vld [vmem:[%s13475_s2 + $0x10] sm:$0xff]  ;;  %728 = vmatpush.msra.mxu0 %v8083_v1 }
  0x24   : > { %7820 = vmatpush.msra.mxu3 %v1030_v7  ;;  %7809 = vmatpush.msra.mxu2 %v8114_v16 }
  0x25   : > { %7848 = vset.pattern.permute.xlu1 %v7891_v0  ;;  %7849 = vset.pattern.permute.xlu0 %v7891_v0 }
  0x26   : > { %383 = vperm.xlu1 %7848, %v312_v10   ;;  %386 = vperm.xlu0 %7849, %v313_v11  }
  0x27   : > { %579 = vperm.xlu2 %7847, %v312_v10   ;;  %v8098_v10 = vsel %vm260_vm14, 1, %v7892_v4  ;;  %1031 = vmatpush.msra.mxu1 %v1030_v7  ;;  %v8182_v7 = vand.u32 4294901760, %v683_v2 }
  0x28   : > { %7810 = vmatpush.msra.mxu2 %v8131_v24  ;;  %730 = vmatpush.msra.mxu0 %v8103_v12 }
  0x29   : > { %v8197_v20 = vsub.f32 %v683_v2, %v8182_v7  ;;  %v259_v2 = vld [vmem:[%s7942_s24 + $0xf8] sm:$0xff] }
  0x2a   : > { %732 = vmatpush.msra.mxu0 %v8114_v16  ;;  %vm291_vm0 = vcmp.gt.f32.partialorder %v259_v2, 0.0 }
  0x2c   : > { %734 = vmatpush.msra.mxu0 %v8131_v24 }
  0x2e   : > { %7850 = vset.pattern.permute.xlu1 %v7892_v4  ;;  %7852 = vset.pattern.permute.xlu0 %v7892_v4 }
  0x2f   : > { %582 = vperm.xlu1 %7850, %v313_v11   ;;  %588 = vperm.xlu0 %7852, %v315_v14   ;;  %v1035_v11 = vsub.f32 %v8070_v60, %v1034_v5 }
  0x30   : > { %7851 = vset.pattern.permute.xlu2 %v7891_v0 }
  0x31   : > { %389 = vperm.xlu2 %7851, %v314_v15  }
  0x37   : > { %585 = vperm.xlu1 %7850, %v314_v15   ;;  %7855 = vset.pattern.permute.xlu0 %v7891_v0  ;;  %v1046_v15 = vand.u32 4294901760, %v8095_v9 }
  0x38   : > { %401 = vperm.xlu0 %7855, %v318_v18  }
  0x39   : > { %392 = vperm.xlu2 %7851, %v315_v14   ;;  %v1041_v14 = vsub.f32 %v8081_v63, %v1040_v8 }
  0x3b   : > { %v1042_v21 = vand.u32 4294901760, %v1041_v14  ;;  %v1076_v14 = vand.u32 4294901760, %v8174_v62 }
  0x3f   : > { %7853 = vset.pattern.permute.xlu1 %v7891_v0 }
  0x40   : > { %395 = vperm.xlu1 %7853, %v316_v19   ;;  %7858 = vset.pattern.permute.xlu0 %v7892_v4 }
  0x41   : > { %7854 = vset.pattern.permute.xlu2 %v7892_v4  ;;  %603 = vperm.xlu0 %7858, %v7977_v22  }
  0x42   : > { %591 = vperm.xlu2 %7854, %v316_v19   ;;  %v8119_v19 = vsub.f32 %v695_v6, %v8103_v12  ;;  %v8180_v6 = vand.u32 4294901760, %v685_v55 }
  0x44   : > { %v1052_v26 = vand.u32 4294901760, %v8119_v19 }
  0x46   : > { %v1053_v42 = vsub.f32 %v8119_v19, %v1052_v26 }
  0x48   : > { %398 = vperm.xlu1 %7853, %v317_v23   ;;  %v1054_v50 = vand.u32 4294901760, %v1053_v42 }
  0x49   : > { %7861 = vset.pattern.permute.xlu0 %v7891_v0 }
  0x4a   : > { %594 = vperm.xlu2 %7854, %v317_v23   ;;  %416 = vperm.xlu0 %7861, %v8025_v40   ;;  %v8129_v23 = vsub.f32 %v693_v13, %v8114_v16 }
  0x4c   : > { %v1058_v35 = vand.u32 4294901760, %v8129_v23 }
  0x4e   : > { %v1059_v44 = vsub.f32 %v8129_v23, %v1058_v35 }
  0x50   : > { %7856 = vset.pattern.permute.xlu1 %v7892_v4  ;;  %v1060_v56 = vand.u32 4294901760, %v1059_v44 }
  0x51   : > { %597 = vperm.xlu1 %7856, %v318_v18   ;;  %v1036_v18 = vand.u32 4294901760, %v1035_v11  ;;  %v1066_v11 = vand.u32 4294901760, %v1065_v59 }
  0x52   : > { %7857 = vset.pattern.permute.xlu2 %v7891_v0  ;;  %7864 = vset.pattern.permute.xlu0 %v7892_v4 }
  0x53   : > { %404 = vperm.xlu2 %7857, %v319_v39   ;;  %522 = vperm.xlu0 %7864, %v8098_v10  }
  0x54   : > { %7821 = vmatpush.msra.mxu3 %v1036_v18  ;;  %1037 = vmatpush.msra.mxu1 %v1036_v18  ;;  %v8194_v18 = vsub.f32 %v685_v55, %v8180_v6 }
  0x56   : > { %7822 = vmatpush.msra.mxu3 %v1042_v21  ;;  %1043 = vmatpush.msra.mxu1 %v1042_v21  ;;  %v1082_v30 = vand.u32 4294901760, %v8194_v18 }
  0x58   : > { %v1083_v44 = vsub.f32 %v8194_v18, %v1082_v30 }
  0x59   : > { %600 = vperm.xlu1 %7856, %v319_v39   ;;  %v8145_v39 = vand.u32 4294901760, %v689_v27 }
  0x5b   : > { %407 = vperm.xlu2 %7857, %v7977_v22   ;;  %v1047_v22 = vsub.f32 %v8095_v9, %v1046_v15  ;;  %v8159_v49 = vsub.f32 %v689_v27, %v8145_v39  ;;  %7811 = vmatpush.msra.mxu2 %v8145_v39  ;;  %v1077_v27 = vsub.f32 %v8174_v62, %v1076_v14 }
  0x5c   : > { %7867 = vset.pattern.permute.xlu0 %v7891_v0  ;;  %736 = vmatpush.msra.mxu0 %v8145_v39 }
  0x5d   : > { %v1048_v34 = vand.u32 4294901760, %v1047_v22  ;;  %v1070_v61 = vand.u32 4294901760, %v8159_v49  ;;  %7812 = vmatpush.msra.mxu2 %v8162_v54  ;;  %v1078_v43 = vand.u32 4294901760, %v1077_v27  ;;  %v231_v27 = vld [vmem:[%s7942_s24 + $0x18] sm:$0xff] }
  0x5e   : > { %vm263_vm1 = vcmp.gt.f32.partialorder %v231_v27, 0.0  ;;  %738 = vmatpush.msra.mxu0 %v8162_v54 }
  0x5f   : > { %7823 = vmatpush.msra.mxu3 %v1048_v34  ;;  %v1071_v13 = vsub.f32 %v8159_v49, %v1070_v61  ;;  %1049 = vmatpush.msra.mxu1 %v1048_v34  ;;  %v1088_v34 = vand.u32 4294901760, %v8197_v20 }
  0x60   : > { %7813 = vmatpush.msra.mxu2 %v8180_v6  ;;  %740 = vmatpush.msra.mxu0 %v8180_v6 }
  0x61   : > { %7859 = vset.pattern.permute.xlu1 %v7891_v0  ;;  %7824 = vmatpush.msra.mxu3 %v1054_v50  ;;  %v1072_v22 = vand.u32 4294901760, %v1071_v13  ;;  %v1089_v55 = vsub.f32 %v8197_v20, %v1088_v34 }
  0x62   : > { %410 = vperm.xlu1 %7859, %v321_v17   ;;  %7814 = vmatpush.msra.mxu2 %v8182_v7 }
  0x63   : > { %7860 = vset.pattern.permute.xlu2 %v7892_v4  ;;  %7825 = vmatpush.msra.mxu3 %v1060_v56  ;;  %v1090_v13 = vand.u32 4294901760, %v1089_v55  ;;  %v230_v55 = vld [vmem:[%s7942_s24 + $0x10] sm:$0xff] }
  0x64   : > { %606 = vperm.xlu2 %7860, %v321_v17   ;;  %v681_v17 = vld [vmem:[%s13475_s2] sm:$0xff]  ;;  %1055 = vmatpush.msra.mxu1 %v1054_v50  ;;  %vm262_vm4 = vcmp.gt.f32.partialorder %v230_v55, 0.0 }
  0x65   : > { %v8199_v21 = vand.u32 4294901760, %v681_v17  ;;  %7826 = vmatpush.msra.mxu3 %v1066_v11  ;;  %742 = vmatpush.msra.mxu0 %v8182_v7 }
  0x66   : > { %1061 = vmatpush.msra.mxu1 %v1060_v56 }
  0x67   : > { %v8209_v42 = vsub.f32 %v681_v17, %v8199_v21  ;;  %7827 = vmatpush.msra.mxu3 %v1072_v22  ;;  %7815 = vmatpush.msra.mxu2 %v8199_v21 }
  0x68   : > { %1067 = vmatpush.msra.mxu1 %v1066_v11  ;;  %v324_v11 = vsel %vm291_vm0, 1, %v7892_v4  ;;  %744 = vmatpush.msra.mxu0 %v8199_v21 }
  0x69   : > { %v1094_v59 = vand.u32 4294901760, %v8209_v42  ;;  %7828 = vmatpush.msra.mxu3 %v1078_v43  ;;  %1229 = vmatpush.msrb.mxu2 %v7992_v28 }
  0x6a   : > { %413 = vperm.xlu1 %7859, %v322_v3   ;;  %1073 = vmatpush.msra.mxu1 %v1072_v22  ;;  %v229_v22 = vld [vmem:[%s7942_s24 + $0x8] sm:$0xff] }
  0x6b   : > { %v1095_v17 = vsub.f32 %v8209_v42, %v1094_v59  ;;  %1232 = vmatpush.msrb.mxu2 %v8003_v32  ;;  %vm261_vm2 = vcmp.gt.f32.partialorder %v229_v22, 0.0  ;;  %1664 = vmatpush.msrb.mxu0 %v1004_v31 }
  0x6c   : > { %609 = vperm.xlu2 %7860, %v322_v3   ;;  %v1084_v3 = vand.u32 4294901760, %v1083_v44  ;;  %v8234_v44 = vsel %vm263_vm1, 1, %v7892_v4  ;;  %1079 = vmatpush.msra.mxu1 %v1078_v43  ;;  %v294_v43 = vsel %vm261_vm2, 1, %v7892_v4 }
  0x6d   : > { %v1096_v56 = vand.u32 4294901760, %v1095_v17  ;;  %1235 = vmatpush.msrb.mxu2 %v8019_v38  ;;  %335 = vperm.xlu0 %7867, %v8234_v44   ;;  %v295_v17 = vsel %vm262_vm4, 1, %v7892_v4 }
  0x6e   : > { %7829 = vmatpush.msra.mxu3 %v1084_v3  ;;  %1085 = vmatpush.msra.mxu1 %v1084_v3 }
  0x6f   : > { %v8222_v50 = vpop.permute.xlu2 %380  ;;  %1238 = vmatpush.msrb.mxu2 %v8041_v47  ;;  %1668 = vmatpush.msrb.mxu0 %v1010_v37 }
  0x70   : > { %7830 = vmatpush.msra.mxu3 %v1090_v13  ;;  %1091 = vmatpush.msra.mxu1 %v1090_v13  ;;  %v292_v13 = vld [vmem:[%s13474_s1] sm:$0xf]  ;;  %vm439_vm9 = vcmp.eq.s32.totalorder %v8222_v50, 1 }
  0x71   : > { %1241 = vmatpush.msrb.mxu2 %v8052_v51  ;;  %v8293_v27 = vperm.slane %v292_v13, 3  ;;  %v8297_v22 = vperm.slane %v292_v13, 1  ;;  %1672 = vmatpush.msrb.mxu0 %v1016_v45 }
  0x72   : > { %7862 = vset.pattern.permute.xlu1 %v7892_v4  ;;  %7831 = vmatpush.msra.mxu3 %v1096_v56 }
  0x73   : > { %612 = vperm.xlu1 %7862, %v8025_v40   ;;  %1244 = vmatpush.msrb.mxu2 %v8070_v60 }
  0x74   : > { %7863 = vset.pattern.permute.xlu2 %v7891_v0  ;;  %1437 = vmatpush.msrb.mxu3 %v7984_v25 }
  0x75   : > { %419 = vperm.xlu2 %7863, %v324_v11   ;;  %7870 = vset.pattern.permute.xlu0 %v7892_v4 }
  0x76   : > { %1439 = vmatpush.msrb.mxu3 %v7994_v29  ;;  %1247 = vmatpush.msrb.mxu2 %v8081_v63 }
  0x77   : > { %1097 = vmatpush.msra.mxu1 %v1096_v56  ;;  %1676 = vmatpush.msrb.mxu0 %v1022_v52 }
  0x78   : > { %1441 = vmatpush.msrb.mxu3 %v8005_v33  ;;  %1250 = vmatpush.msrb.mxu2 %v8095_v9 }
  0x79   : > { %v8244_v40 = vpop.permute.xlu2 %576  ;;  %1855 = vmatpush.msrb.mxu1 %v7984_v25  ;;  %1680 = vmatpush.msrb.mxu0 %v1028_v57 }
  0x7a   : > { %1443 = vmatpush.msrb.mxu3 %v8027_v41  ;;  %1253 = vmatpush.msrb.mxu2 %v8119_v19  ;;  %vm635_vm11 = vcmp.eq.s32.totalorder %v8244_v40, 1 }
  0x7b   : > { %615 = vperm.xlu1 %7862, %v324_v11   ;;  %1857 = vmatpush.msrb.mxu1 %v7994_v29  ;;  %v8295_v11 = vperm.slane %v292_v13, 2 }
  0x7c   : > { %1445 = vmatpush.msrb.mxu3 %v8038_v46  ;;  %1256 = vmatpush.msrb.mxu2 %v8129_v23 }
  0x7d   : > { %326 = vperm.xlu2 %7863, %v8098_v10   ;;  %v233_v10 = vld [vmem:[%s7942_s24 + $0x28] sm:$0xff]  ;;  %1859 = vmatpush.msrb.mxu1 %v8005_v33 }
  0x7e   : > { %1447 = vmatpush.msrb.mxu3 %v8055_v53  ;;  %vm265_vm3 = vcmp.gt.f32.partialorder %v233_v10, 0.0  ;;  %1259 = vmatpush.msrb.mxu2 %v8143_v36 }
  0x7f   : > { %v8271_v25 = vsel %vm265_vm3, 1, %v7892_v4  ;;  %1861 = vmatpush.msrb.mxu1 %v8027_v41  ;;  %v473_v41 = vsel %vm439_vm9, %v8293_v27, %v8295_v11  ;;  %1684 = vmatpush.msrb.mxu0 %v1034_v5  ;;  %v234_v5 = vld [vmem:[%s7942_s24 + $0x30] sm:$0xff] }
  0x80   : > { %1449 = vmatpush.msrb.mxu3 %v8064_v58  ;;  %537 = vperm.xlu0 %7870, %v8271_v25   ;;  %vm266_vm15 = vcmp.gt.f32.partialorder %v234_v5, 0.0 }
  0x81   : > { %v8267_v2 = vpop.permute.xlu2 %579  ;;  %1262 = vmatpush.msrb.mxu2 %v8159_v49  ;;  %1863 = vmatpush.msrb.mxu1 %v8038_v46  ;;  %v299_v9 = vsel %vm266_vm15, 1, %v7892_v4 }
  0x82   : > { %1451 = vmatpush.msrb.mxu3 %v8083_v1  ;;  %1688 = vmatpush.msrb.mxu0 %v1040_v8  ;;  %vm636_vm14 = vcmp.eq.s32.totalorder %v8267_v2, 1 }
  0x83   : > { %7865 = vset.pattern.permute.xlu1 %v7891_v0  ;;  %1265 = vmatpush.msrb.mxu2 %v8174_v62 }
  0x84   : > { %329 = vperm.xlu1 %7865, %v294_v43   ;;  %1453 = vmatpush.msrb.mxu3 %v8103_v12 }
  0x85   : > { %7866 = vset.pattern.permute.xlu2 %v7892_v4  ;;  %1268 = vmatpush.msrb.mxu2 %v8194_v18  ;;  %v237_v18 = vld [vmem:[%s7942_s24 + $0x48] sm:$0xff] }
  0x86   : > { %v375_v3 = vpop.permute.xlu0 %374  ;;  %v378_v29 = vpop.permute.xlu1 %377  ;;  %525 = vperm.xlu2 %7866, %v294_v43   ;;  %1455 = vmatpush.msrb.mxu3 %v8114_v16  ;;  %v8299_v43 = vperm.slane %v292_v13, 0 }
  0x87   : > { %vm438_vm5 = vcmp.eq.s32.totalorder %v378_v29, 1  ;;  %vm437_vm6 = vcmp.eq.s32.totalorder %v375_v3, 1  ;;  %1271 = vmatpush.msrb.mxu2 %v8197_v20  ;;  %v232_v29 = vld [vmem:[%s7942_s24 + $0x20] sm:$0xff]  ;;  %1865 = vmatpush.msrb.mxu1 %v8055_v53 }
  0x88   : > { %1457 = vmatpush.msrb.mxu3 %v8131_v24  ;;  %7873 = vset.pattern.permute.xlu0 %v7891_v0  ;;  %v472_v28 = vsel %vm438_vm5, %v8293_v27, %v8295_v11  ;;  %v506_v31 = vsel %vm438_vm5, %v8297_v22, %v8299_v43  ;;  %v471_v55 = vsel %vm437_vm6, %v8293_v27, %v8295_v11  ;;  %vm264_vm10 = vcmp.gt.f32.partialorder %v232_v29, 0.0 }
  0x89   : > { %v505_v3 = vsel %vm437_vm6, %v8297_v22, %v8299_v43  ;;  %1274 = vmatpush.msrb.mxu2 %v8209_v42  ;;  %v507_v38 = vsel %vm439_vm9, %v8297_v22, %v8299_v43  ;;  %v297_v52 = vsel %vm264_vm10, 1, %v7892_v4  ;;  %1867 = vmatpush.msrb.mxu1 %v8064_v58 }
  0x8a   : > { %1459 = vmatpush.msrb.mxu3 %v8145_v39  ;;  %v667_v50 = vsel %vm635_vm11, %v473_v41, %v507_v38  ;;  %1692 = vmatpush.msrb.mxu0 %v1046_v15  ;;  %v238_v41 = vld [vmem:[%s7942_s24 + $0x50] sm:$0xff] }
  0x8b   : > { %v8289_v56 = vpop.permute.xlu2 %389  ;;  %1869 = vmatpush.msrb.mxu1 %v8083_v1  ;;  %vm270_vm4 = vcmp.gt.f32.partialorder %v238_v41, 0.0 }
  0x8c   : > { %332 = vperm.xlu1 %7865, %v295_v17   ;;  %1461 = vmatpush.msrb.mxu3 %v8162_v54  ;;  %vm442_vm3 = vcmp.eq.s32.totalorder %v8289_v56, 1 }
  0x8d   : > { %1871 = vmatpush.msrb.mxu1 %v8103_v12  ;;  %1696 = vmatpush.msrb.mxu0 %v1052_v26  ;;  %v510_v49 = vsel %vm442_vm3, %v8297_v22, %v8299_v43 }
  0x8e   : > { %528 = vperm.xlu2 %7866, %v295_v17   ;;  %1463 = vmatpush.msrb.mxu3 %v8180_v6 }
  0x8f   : > { %v574_v33 = vpop.permute.xlu1 %573  ;;  %v571_v10 = vpop.permute.xlu0 %570  ;;  %1873 = vmatpush.msrb.mxu1 %v8114_v16  ;;  %1700 = vmatpush.msrb.mxu0 %v1058_v35 }
  0x90   : > { %vm634_vm7 = vcmp.eq.s32.totalorder %v574_v33, 1  ;;  %vm633_vm8 = vcmp.eq.s32.totalorder %v571_v10, 1  ;;  %1465 = vmatpush.msrb.mxu3 %v8182_v7 }
  0x91   : > { %v666_v13 = vsel %vm634_vm7, %v472_v28, %v506_v31  ;;  %v665_v17 = vsel %vm633_vm8, %v471_v55, %v505_v3  ;;  %v236_v28 = vld [vmem:[%s7942_s24 + $0x40] sm:$0xff]  ;;  %v8362_v31 = vand.u32 4294901760, %v667_v50  ;;  %1875 = vmatpush.msrb.mxu1 %v8131_v24  ;;  %v235_v24 = vld [vmem:[%s7942_s24 + $0x38] sm:$0xff]  ;;  %1704 = vmatpush.msrb.mxu0 %v1064_v48  ;;  %v476_v48 = vsel %vm442_vm3, %v8293_v27, %v8295_v11 }
  0x92   : > { %v8323_v32 = vand.u32 4294901760, %v666_v13  ;;  %v8325_v37 = vand.u32 4294901760, %v665_v17  ;;  %1467 = vmatpush.msrb.mxu3 %v8199_v21  ;;  %vm268_vm13 = vcmp.gt.f32.partialorder %v236_v28, 0.0  ;;  %vm267_vm2 = vcmp.gt.f32.partialorder %v235_v24, 0.0 }
  0x93   : > { %v8329_v33 = vpop.permute.xlu2 %392  ;;  %14013 = vst [vmem:[#allocation7_spill] sm:$0xff] %v8362_v31  ;;  %v8382_v63 = vsel %vm268_vm13, 1, %v7892_v4  ;;  %v8387_v1 = vsub.f32 %v667_v50, %v8362_v31  ;;  %1877 = vmatpush.msrb.mxu1 %v8145_v39  ;;  %1708 = vmatpush.msrb.mxu0 %v1070_v61  ;;  %v300_v36 = vsel %vm267_vm2, 1, %v7892_v4  ;;  %vm269_vm8 = vcmp.gt.f32.partialorder %v237_v18, 0.0 }
  0x94   : > { %14008 = vst [vmem:[#allocation2_spill] sm:$0xff] %v8323_v32  ;;  %v8338_v45 = vsub.f32 %v665_v17, %v8325_v37  ;;  %1163 = vmatmul.f32.vlgmr.msra.gmra.mxu3 %v8325_v37  ;;  %7868 = vset.pattern.permute.xlu1 %v7892_v4  ;;  %v8346_v46 = vsub.f32 %v666_v13, %v8323_v32  ;;  %vm443_vm6 = vcmp.eq.s32.totalorder %v8329_v33, 1  ;;  %v302_v33 = vsel %vm269_vm8, 1, %v7892_v4 }
  0x95   : > { %14009 = vst [vmem:[#allocation3_spill] sm:$0xff] %v8325_v37  ;;  %531 = vperm.xlu1 %7868, %v8234_v44   ;;  %350 = vperm.xlu0 %7873, %v8382_v63   ;;  %v8403_v12 = vand.u32 4294901760, %v8387_v1 }
  0x96   : > { %14010 = vst [vmem:[#allocation4_spill] sm:$0xff] %v8338_v45  ;;  %v8349_v47 = vand.u32 4294901760, %v8338_v45  ;;  %7869 = vset.pattern.permute.xlu2 %v7891_v0  ;;  %v8367_v57 = vand.u32 4294901760, %v8346_v46  ;;  %1879 = vmatpush.msrb.mxu1 %v8162_v54  ;;  %v303_v54 = vsel %vm270_vm4, 1, %v7892_v4 }
  0x97   : > { %14011 = vst [vmem:[#allocation5_spill] sm:$0xff] %v8346_v46  ;;  %338 = vperm.xlu2 %7869, %v297_v52   ;;  %v892_v26 = vsub.f32 %v8387_v1, %v8403_v12  ;;  %1712 = vmatpush.msrb.mxu0 %v1076_v14 }
  0x98   : > { %14012 = vst [vmem:[#allocation6_spill] sm:$0xff] %v8349_v47  ;;  %v384_v44 = vpop.permute.xlu1 %383  ;;  %v876_v40 = vsub.f32 %v8338_v45, %v8349_v47  ;;  %v884_v8 = vsub.f32 %v8346_v46, %v8367_v57  ;;  %v387_v2 = vpop.permute.xlu0 %386  ;;  %1881 = vmatpush.msrb.mxu1 %v8180_v6 }
  0x99   : > { %vm440_vm12 = vcmp.eq.s32.totalorder %v384_v44, 1  ;;  %14015 = vst [vmem:[#allocation9_spill] sm:$0xff] %v8367_v57  ;;  %vm441_vm0 = vcmp.eq.s32.totalorder %v387_v2, 1  ;;  %v8435_v17 = vand.u32 4294901760, %v892_v26  ;;  %1716 = vmatpush.msrb.mxu0 %v1082_v30  ;;  %v511_v30 = vsel %vm443_vm6, %v8297_v22, %v8299_v43 }
  0x9a   : > { %v8364_v51 = vand.u32 4294901760, %v876_v40  ;;  %v474_v53 = vsel %vm440_vm12, %v8293_v27, %v8295_v11  ;;  %v508_v60 = vsel %vm440_vm12, %v8297_v22, %v8299_v43  ;;  %14016 = vst [vmem:[#allocation10_spill] sm:$0xff] %v8387_v1  ;;  %v8400_v29 = vand.u32 4294901760, %v884_v8  ;;  %1883 = vmatpush.msrb.mxu1 %v8182_v7 }
  0x9b   : > { %v668_v10 = vsel %vm636_vm14, %v474_v53, %v508_v60  ;;  %14019 = vst [vmem:[#allocation13_spill] sm:$0xff] %v8403_v12  ;;  %v475_v15 = vsel %vm441_vm0, %v8293_v27, %v8295_v11  ;;  %v509_v16 = vsel %vm441_vm0, %v8297_v22, %v8299_v43  ;;  %1720 = vmatpush.msrb.mxu0 %v1088_v34 }
  0x9c   : > { %14014 = vst [vmem:[#allocation8_spill] sm:$0xff] %v8364_v51  ;;  %878 = vmatmul.f32.vlgmr.msra.gmra.mxu2 %v8364_v51  ;;  %1167 = vmatmul.f32.gmra.mxu3 %v8323_v32  ;;  %v8379_v58 = vpop.permute.xlu2 %591  ;;  %v8398_v3 = vand.u32 4294901760, %v668_v10 }
  0x9d   : > { %534 = vperm.xlu1 %7868, %v297_v52   ;;  %14018 = vst [vmem:[#allocation12_spill] sm:$0xff] %v8400_v29  ;;  %7876 = vset.pattern.permute.xlu0 %v7892_v4  ;;  %vm640_vm10 = vcmp.eq.s32.totalorder %v8379_v58, 1  ;;  %v239_v58 = vld [vmem:[%s7942_s24 + $0x58] sm:$0xff] }
  0x9e   : > { %14017 = vst [vmem:[#allocation11_spill] sm:$0xff] %v8398_v3  ;;  %v8421_v23 = vsub.f32 %v668_v10, %v8398_v3  ;;  %552 = vperm.xlu0 %7876, %v303_v54   ;;  %1885 = vmatpush.msrb.mxu1 %v8199_v21  ;;  %v477_v21 = vsel %vm443_vm6, %v8293_v27, %v8295_v11  ;;  %vm271_vm12 = vcmp.gt.f32.partialorder %v239_v58, 0.0 }
  0x9f   : > { %341 = vperm.xlu2 %7869, %v8271_v25   ;;  %14022 = vst [vmem:[#allocation16_spill] sm:$0xff] %v8435_v17  ;;  %1724 = vmatpush.msrb.mxu0 %v1094_v59 }
  0xa0   : > { %14020 = vst [vmem:[#allocation14_spill] sm:$0xff] %v8421_v23  ;;  %v8438_v39 = vand.u32 4294901760, %v8421_v23 }
  0xa1   : > { %v583_v55 = vpop.permute.xlu1 %582  ;;  %v589_v56 = vpop.permute.xlu0 %588 }
  0xa2   : > { %vm637_vm1 = vcmp.eq.s32.totalorder %v583_v55, 1  ;;  %14023 = vst [vmem:[#allocation17_spill] sm:$0xff] %v8438_v39  ;;  %v900_v6 = vsub.f32 %v8421_v23, %v8438_v39  ;;  %vm639_vm7 = vcmp.eq.s32.totalorder %v589_v56, 1 }
  0xa3   : > { %v669_v35 = vsel %vm637_vm1, %v475_v15, %v509_v16  ;;  %v671_v42 = vsel %vm639_vm7, %v477_v21, %v511_v30  ;;  %v241_v15 = vld [vmem:[%s7942_s24 + $0x68] sm:$0xff] }
  0xa4   : > { %886 = vmatmul.f32.gmra.mxu2 %v8400_v29  ;;  %1171 = vmatmul.f32.gmra.mxu3 %v8362_v31  ;;  %v8415_v19 = vpop.permute.xlu2 %594  ;;  %v8433_v13 = vand.u32 4294901760, %v669_v35  ;;  %v8468_v38 = vand.u32 4294901760, %v900_v6  ;;  %v8494_v40 = vand.u32 4294901760, %v671_v42  ;;  %vm273_vm13 = vcmp.gt.f32.partialorder %v241_v15, 0.0  ;;  %v243_v15 = vld [vmem:[%s7942_s24 + $0x78] sm:$0xff] }
  0xa5   : > { %7871 = vset.pattern.permute.xlu1 %v7891_v0  ;;  %vm641_vm14 = vcmp.eq.s32.totalorder %v8415_v19, 1  ;;  %vm275_vm3 = vcmp.gt.f32.partialorder %v243_v15, 0.0 }
  0xa6   : > { %344 = vperm.xlu1 %7871, %v299_v9   ;;  %14021 = vst [vmem:[#allocation15_spill] sm:$0xff] %v8433_v13  ;;  %v8456_v62 = vsub.f32 %v669_v35, %v8433_v13  ;;  %7879 = vset.pattern.permute.xlu0 %v7891_v0  ;;  %v8509_v8 = vsub.f32 %v671_v42, %v8494_v40 }
  0xa7   : > { %7872 = vset.pattern.permute.xlu2 %v7892_v4  ;;  %14026 = vst [vmem:[#allocation20_spill] sm:$0xff] %v8468_v38 }
  0xa8   : > { %540 = vperm.xlu2 %7872, %v299_v9   ;;  %14024 = vst [vmem:[#allocation18_spill] sm:$0xff] %v8456_v62  ;;  %v8471_v50 = vand.u32 4294901760, %v8456_v62  ;;  %v8517_v9 = vand.u32 4294901760, %v8509_v8 }
  0xa9   : > { %v586_v25 = vpop.permute.xlu1 %585  ;;  %14029 = vst [vmem:[#allocation23_spill] sm:$0xff] %v8494_v40 }
  0xaa   : > { %vm638_vm5 = vcmp.eq.s32.totalorder %v586_v25, 1  ;;  %14027 = vst [vmem:[#allocation21_spill] sm:$0xff] %v8471_v50  ;;  %v908_v59 = vsub.f32 %v8456_v62, %v8471_v50  ;;  %v402_v44 = vpop.permute.xlu0 %401 }
  0xab   : > { %v670_v14 = vsel %vm638_vm5, %v476_v48, %v510_v49  ;;  %14032 = vst [vmem:[#allocation26_spill] sm:$0xff] %v8509_v8  ;;  %v304_v48 = vsel %vm271_vm12, 1, %v7892_v4  ;;  %vm446_vm15 = vcmp.eq.s32.totalorder %v402_v44, 1 }
  0xac   : > { %894 = vmatmul.f32.gmra.mxu2 %v8435_v17  ;;  %1175 = vmatmul.f32.gmra.mxu3 %v8398_v3  ;;  %v8466_v7 = vand.u32 4294901760, %v670_v14  ;;  %v8496_v28 = vand.u32 4294901760, %v908_v59  ;;  %14033 = vst [vmem:[#allocation27_spill] sm:$0xff] %v8517_v9  ;;  %v480_v42 = vsel %vm446_vm15, %v8293_v27, %v8295_v11  ;;  %v514_v59 = vsel %vm446_vm15, %v8297_v22, %v8299_v43 }
  0xad   : > { %v8452_v61 = vpop.permute.xlu2 %404 }
  0xae   : > { %347 = vperm.xlu1 %7871, %v300_v36   ;;  %14025 = vst [vmem:[#allocation19_spill] sm:$0xff] %v8466_v7  ;;  %v8486_v34 = vsub.f32 %v670_v14, %v8466_v7  ;;  %v240_v14 = vld [vmem:[%s7942_s24 + $0x60] sm:$0xff]  ;;  %vm447_vm2 = vcmp.eq.s32.totalorder %v8452_v61, 1 }
  0xaf   : > { %14030 = vst [vmem:[#allocation24_spill] sm:$0xff] %v8496_v28  ;;  %vm272_vm0 = vcmp.gt.f32.partialorder %v240_v14, 0.0 }
  0xb0   : > { %543 = vperm.xlu2 %7872, %v300_v36   ;;  %14028 = vst [vmem:[#allocation22_spill] sm:$0xff] %v8486_v34  ;;  %v8499_v60 = vand.u32 4294901760, %v8486_v34  ;;  %v306_v36 = vsel %vm273_vm13, 1, %v7892_v4  ;;  %v305_v44 = vsel %vm272_vm0, 1, %v7892_v4 }
  0xb1   : > { %365 = vperm.xlu0 %7879, %v306_v36  }
  0xb2   : > { %v396_v52 = vpop.permute.xlu1 %395  ;;  %14031 = vst [vmem:[#allocation25_spill] sm:$0xff] %v8499_v60  ;;  %v916_v2 = vsub.f32 %v8486_v34, %v8499_v60 }
  0xb3   : > { %vm444_vm9 = vcmp.eq.s32.totalorder %v396_v52, 1  ;;  %v8524_v26 = vpop.permute.xlu0 %603 }
  0xb4   : > { %902 = vmatmul.f32.gmra.mxu2 %v8468_v38  ;;  %1179 = vmatmul.f32.gmra.mxu3 %v8433_v13  ;;  %v512_v5 = vsel %vm444_vm9, %v8297_v22, %v8299_v43  ;;  %v8522_v24 = vand.u32 4294901760, %v916_v2 }
  0xb5   : > { %v8482_v20 = vpop.permute.xlu2 %407 }
  0xb6   : > { %7874 = vset.pattern.permute.xlu1 %v7892_v4  ;;  %14035 = vst [vmem:[#allocation29_spill] sm:$0xff] %v8522_v24  ;;  %vm448_vm8 = vcmp.eq.s32.totalorder %v8482_v20, 1 }
  0xb7   : > { %546 = vperm.xlu1 %7874, %v8382_v63   ;;  %v478_v63 = vsel %vm444_vm9, %v8293_v27, %v8295_v11  ;;  %vm644_vm9 = vcmp.eq.s32.totalorder %v8524_v26, 1 }
  0xb8   : > { %7875 = vset.pattern.permute.xlu2 %v7891_v0  ;;  %v672_v55 = vsel %vm640_vm10, %v478_v63, %v512_v5 }
  0xb9   : > { %353 = vperm.xlu2 %7875, %v302_v33   ;;  %v8520_v16 = vand.u32 4294901760, %v672_v55  ;;  %7882 = vset.pattern.permute.xlu0 %v7892_v4 }
  0xba   : > { %v399_v53 = vpop.permute.xlu1 %398 }
  0xbb   : > { %vm445_vm11 = vcmp.eq.s32.totalorder %v399_v53, 1  ;;  %14034 = vst [vmem:[#allocation28_spill] sm:$0xff] %v8520_v16  ;;  %v8536_v49 = vsub.f32 %v672_v55, %v8520_v16 }
  0xbc   : > { %910 = vmatmul.f32.gmra.mxu2 %v8496_v28  ;;  %1183 = vmatmul.f32.gmra.mxu3 %v8466_v7  ;;  %v479_v35 = vsel %vm445_vm11, %v8293_v27, %v8295_v11  ;;  %v513_v25 = vsel %vm445_vm11, %v8297_v22, %v8299_v43  ;;  %v8552_v21 = vpop.permute.xlu0 %416 }
  0xbd   : > { %14036 = vst [vmem:[#allocation30_spill] sm:$0xff] %v8536_v49  ;;  %v673_v19 = vsel %vm641_vm14, %v479_v35, %v513_v25  ;;  %v8550_v18 = vand.u32 4294901760, %v8536_v49  ;;  %v481_v35 = vsel %vm447_vm2, %v8293_v27, %v8295_v11  ;;  %v515_v25 = vsel %vm447_vm2, %v8297_v22, %v8299_v43 }
  0xbe   : > { %v8513_v10 = vpop.permute.xlu2 %606  ;;  %v8544_v56 = vand.u32 4294901760, %v673_v19  ;;  %vm451_vm14 = vcmp.eq.s32.totalorder %v8552_v21, 1 }
  0xbf   : > { %549 = vperm.xlu1 %7874, %v302_v33   ;;  %14039 = vst [vmem:[#allocation33_spill] sm:$0xff] %v8550_v18  ;;  %v932_v53 = vsub.f32 %v8536_v49, %v8550_v18  ;;  %vm645_vm11 = vcmp.eq.s32.totalorder %v8513_v10, 1 }
  0xc0   : > { %14037 = vst [vmem:[#allocation31_spill] sm:$0xff] %v8544_v56  ;;  %v8561_v33 = vsub.f32 %v673_v19, %v8544_v56  ;;  %v308_v19 = vsel %vm275_vm3, 1, %v7892_v4 }
  0xc1   : > { %356 = vperm.xlu2 %7875, %v303_v54   ;;  %v924_v54 = vsub.f32 %v8509_v8, %v8517_v9  ;;  %v8575_v58 = vand.u32 4294901760, %v932_v53  ;;  %567 = vperm.xlu0 %7882, %v308_v19  }
  0xc2   : > { %14040 = vst [vmem:[#allocation34_spill] sm:$0xff] %v8561_v33  ;;  %v8571_v2 = vand.u32 4294901760, %v8561_v33 }
  0xc3   : > { %v598_v41 = vpop.permute.xlu1 %597  ;;  %v8547_v52 = vand.u32 4294901760, %v924_v54  ;;  %14043 = vst [vmem:[#allocation37_spill] sm:$0xff] %v8575_v58 }
  0xc4   : > { %918 = vmatmul.f32.gmra.mxu2 %v8522_v24  ;;  %1187 = vmatmul.f32.gmra.mxu3 %v8494_v40  ;;  %vm642_vm1 = vcmp.eq.s32.totalorder %v598_v41, 1  ;;  %14041 = vst [vmem:[#allocation35_spill] sm:$0xff] %v8571_v2  ;;  %v242_v41 = vld [vmem:[%s7942_s24 + $0x70] sm:$0xff]  ;;  %v940_v54 = vsub.f32 %v8561_v33, %v8571_v2  ;;  %v485_v24 = vsel %vm451_vm14, %v8293_v27, %v8295_v11 }
  0xc5   : > { %14038 = vst [vmem:[#allocation32_spill] sm:$0xff] %v8547_v52  ;;  %v674_v63 = vsel %vm642_vm1, %v480_v42, %v514_v59  ;;  %vm274_vm5 = vcmp.gt.f32.partialorder %v242_v41, 0.0  ;;  %v516_v41 = vsel %vm448_vm8, %v8297_v22, %v8299_v43 }
  0xc6   : > { %v8540_v6 = vpop.permute.xlu2 %609  ;;  %v8573_v55 = vand.u32 4294901760, %v674_v63 }
  0xc7   : > { %7877 = vset.pattern.permute.xlu1 %v7891_v0  ;;  %vm646_vm13 = vcmp.eq.s32.totalorder %v8540_v6, 1 }
  0xc8   : > { %359 = vperm.xlu1 %7877, %v304_v48   ;;  %14042 = vst [vmem:[#allocation36_spill] sm:$0xff] %v8573_v55  ;;  %v8589_v14 = vsub.f32 %v674_v63, %v8573_v55 }
  0xc9   : > { %7878 = vset.pattern.permute.xlu2 %v7892_v4 }
  0xca   : > { %555 = vperm.xlu2 %7878, %v304_v48   ;;  %v523_v48 = vpop.permute.xlu0 %522  ;;  %14044 = vst [vmem:[#allocation38_spill] sm:$0xff] %v8589_v14  ;;  %v8602_v15 = vand.u32 4294901760, %v8589_v14 }
  0xcb   : > { %v601_v30 = vpop.permute.xlu1 %600  ;;  %vm617_vm6 = vcmp.eq.s32.totalorder %v523_v48, 1 }
  0xcc   : > { %926 = vmatmul.f32.gmra.mxu2 %v8547_v52  ;;  %1191 = vmatmul.f32.gmra.mxu3 %v8520_v16  ;;  %vm643_vm4 = vcmp.eq.s32.totalorder %v601_v30, 1  ;;  %v8593_v30 = vand.u32 4294901760, %v940_v54  ;;  %14047 = vst [vmem:[#allocation41_spill] sm:$0xff] %v8602_v15  ;;  %v948_v54 = vsub.f32 %v8589_v14, %v8602_v15 }
  0xcd   : > { %v675_v42 = vsel %vm643_vm4, %v481_v35, %v515_v25  ;;  %v307_v35 = vsel %vm274_vm5, 1, %v7892_v4 }
  0xce   : > { %14045 = vst [vmem:[#allocation39_spill] sm:$0xff] %v8593_v30  ;;  %v8599_v63 = vand.u32 4294901760, %v675_v42 }
  0xcf   : > { %v8567_v5 = vpop.permute.xlu2 %419 }
  0xd0   : > { %362 = vperm.xlu1 %7877, %v305_v44   ;;  %14046 = vst [vmem:[#allocation40_spill] sm:$0xff] %v8599_v63  ;;  %vm452_vm2 = vcmp.eq.s32.totalorder %v8567_v5, 1 }
  0xd1   : > { %v486_v51 = vsel %vm452_vm2, %v8293_v27, %v8295_v11 }
  0xd2   : > { %558 = vperm.xlu2 %7878, %v305_v44  }
  0xd4   : > { %934 = vmatmul.f32.gmra.mxu2 %v8575_v58  ;;  %1195 = vmatmul.f32.gmra.mxu3 %v8544_v56  ;;  %v411_v61 = vpop.permute.xlu1 %410 }
  0xd5   : > { %vm449_vm10 = vcmp.eq.s32.totalorder %v411_v61, 1 }
  0xd6   : > { %v517_v61 = vsel %vm449_vm10, %v8297_v22, %v8299_v43 }
  0xd7   : > { %v327_v59 = vpop.permute.xlu2 %326 }
  0xd8   : > { %7880 = vset.pattern.permute.xlu1 %v7892_v4  ;;  %vm421_vm7 = vcmp.eq.s32.totalorder %v327_v59, 1 }
  0xd9   : > { %561 = vperm.xlu1 %7880, %v306_v36   ;;  %v455_v44 = vsel %vm421_vm7, %v8293_v27, %v8295_v11  ;;  %v489_v53 = vsel %vm421_vm7, %v8297_v22, %v8299_v43  ;;  %v482_v36 = vsel %vm448_vm8, %v8293_v27, %v8295_v11 }
  0xda   : > { %v649_v25 = vsel %vm617_vm6, %v455_v44, %v489_v53  ;;  %7881 = vset.pattern.permute.xlu2 %v7891_v0  ;;  %v8620_v0 = vsub.f32 %v675_v42, %v8599_v63  ;;  %v676_v59 = vsel %vm644_vm9, %v482_v36, %v516_v41  ;;  %v483_v36 = vsel %vm449_vm10, %v8293_v27, %v8295_v11 }
  0xdb   : > { %v8606_v20 = vand.u32 4294901760, %v649_v25  ;;  %368 = vperm.xlu2 %7881, %v307_v35   ;;  %v8629_v53 = vand.u32 4294901760, %v676_v59  ;;  %v677_v10 = vsel %vm645_vm11, %v483_v36, %v517_v61 }
  0xdc   : > { %942 = vmatmul.f32.gmra.mxu2 %v8593_v30  ;;  %1199 = vmatmul.f32.gmra.mxu3 %v8573_v55  ;;  %v414_v48 = vpop.permute.xlu1 %413  ;;  %14049 = vst [vmem:[#allocation43_spill] sm:$0xff] %v8620_v0  ;;  %v8634_v30 = vand.u32 4294901760, %v8620_v0 }
  0xdd   : > { %v8616_v4 = vsub.f32 %v649_v25, %v8606_v20  ;;  %1099 = vmatmul.f32.vlgmr.msra.gmra.mxu1 %v8606_v20  ;;  %14051 = vst [vmem:[#allocation45_spill] sm:$0xff] %v8629_v53  ;;  %v8631_v25 = vand.u32 4294901760, %v948_v54  ;;  %v8647_v41 = vsub.f32 %v676_v59, %v8629_v53  ;;  %vm450_vm12 = vcmp.eq.s32.totalorder %v414_v48, 1 }
  0xde   : > { %14053 = vst [vmem:[#allocation47_spill] sm:$0xff] %v8634_v30  ;;  %v484_v52 = vsel %vm450_vm12, %v8293_v27, %v8295_v11  ;;  %v518_v59 = vsel %vm450_vm12, %v8297_v22, %v8299_v43 }
  0xdf   : > { %14048 = vst [vmem:[#allocation42_spill] sm:$0xff] %v8616_v4  ;;  %v8625_v44 = vand.u32 4294901760, %v8616_v4  ;;  %v678_v61 = vsel %vm646_vm13, %v484_v52, %v518_v59 }
  0xe0   : > { %14052 = vst [vmem:[#allocation46_spill] sm:$0xff] %v8631_v25  ;;  %v526_v54 = vpop.permute.xlu2 %525 }
  0xe1   : > { %14050 = vst [vmem:[#allocation44_spill] sm:$0xff] %v8625_v44  ;;  %564 = vperm.xlu1 %7880, %v307_v35   ;;  %v748_v26 = vsub.f32 %v8616_v4, %v8625_v44  ;;  %vm618_vm0 = vcmp.eq.s32.totalorder %v526_v54, 1 }
  0xe2   : > { %14055 = vst [vmem:[#allocation49_spill] sm:$0xff] %v8647_v41 }
  0xe3   : > { %v8636_v42 = vand.u32 4294901760, %v748_v26  ;;  %371 = vperm.xlu2 %7881, %v308_v19   ;;  %v956_v19 = vsub.f32 %v8620_v0, %v8634_v30  ;;  %v8651_v26 = vand.u32 4294901760, %v677_v10 }
  0xe4   : > { %950 = vmatmul.f32.gmra.mxu2 %v8631_v25  ;;  %1203 = vmatmul.f32.gmra.mxu3 %v8599_v63  ;;  %v8656_v25 = vand.u32 4294901760, %v8647_v41 }
  0xe5   : > { %14054 = vst [vmem:[#allocation48_spill] sm:$0xff] %v8636_v42  ;;  %v613_v35 = vpop.permute.xlu1 %612  ;;  %750 = vmatmul.f32.vlgmr.msra.gmra.mxu0 %v8636_v42  ;;  %v8653_v58 = vand.u32 4294901760, %v956_v19  ;;  %v8666_v36 = vsub.f32 %v677_v10, %v8651_v26  ;;  %v8671_v19 = vand.u32 4294901760, %v678_v61 }
  0xe6   : > { %14056 = vst [vmem:[#allocation50_spill] sm:$0xff] %v8651_v26  ;;  %v964_v6 = vsub.f32 %v8647_v41, %v8656_v25  ;;  %vm647_vm15 = vcmp.eq.s32.totalorder %v613_v35, 1 }
  0xe7   : > { %14057 = vst [vmem:[#allocation51_spill] sm:$0xff] %v8653_v58  ;;  %v8680_v10 = vand.u32 4294901760, %v8666_v36  ;;  %v8685_v21 = vsub.f32 %v678_v61, %v8671_v19 }
  0xe8   : > { %14058 = vst [vmem:[#allocation52_spill] sm:$0xff] %v8656_v25  ;;  %v529_v28 = vpop.permute.xlu2 %528  ;;  %v8677_v38 = vand.u32 4294901760, %v964_v6 }
  0xe9   : > { %14059 = vst [vmem:[#allocation53_spill] sm:$0xff] %v8666_v36  ;;  %v972_v59 = vsub.f32 %v8666_v36, %v8680_v10  ;;  %v8697_v61 = vand.u32 4294901760, %v8685_v21  ;;  %vm619_vm4 = vcmp.eq.s32.totalorder %v529_v28, 1 }
  0xea   : > { %14060 = vst [vmem:[#allocation54_spill] sm:$0xff] %v8671_v19 }
  0xeb   : > { %14061 = vst [vmem:[#allocation55_spill] sm:$0xff] %v8677_v38  ;;  %v8703_v29 = vand.u32 4294901760, %v972_v59  ;;  %v712_v59 = vld [vmem:[%s13475_s2 + $0xf8] sm:$0xff] }
  0xec   : > { %958 = vmatmul.f32.gmra.mxu2 %v8653_v58  ;;  %1207 = vmatmul.f32.gmra.mxu3 %v8629_v53  ;;  %v519_v58 = vsel %vm451_vm14, %v8297_v22, %v8299_v43  ;;  %14062 = vst [vmem:[#allocation56_spill] sm:$0xff] %v8680_v10 }
  0xed   : > { %v616_v48 = vpop.permute.xlu1 %615  ;;  %v679_v52 = vsel %vm647_vm15, %v485_v24, %v519_v58  ;;  %14063 = vst [vmem:[#allocation57_spill] sm:$0xff] %v8685_v21 }
  0xee   : > { %v8689_v17 = vand.u32 4294901760, %v679_v52  ;;  %14065 = vst [vmem:[#allocation59_spill] sm:$0xff] %v8697_v61  ;;  %vm648_vm3 = vcmp.eq.s32.totalorder %v616_v48, 1 }
  0xef   : > { %14066 = vst [vmem:[#allocation60_spill] sm:$0xff] %v8703_v29 }
  0xf0   : > { %14064 = vst [vmem:[#allocation58_spill] sm:$0xff] %v8689_v17 }
  0xf4   : > { %966 = vmatmul.f32.gmra.mxu2 %v8677_v38  ;;  %1211 = vmatmul.f32.gmra.mxu3 %v8651_v26  ;;  %v8699_v38 = vpop.permute.xlu2 %338  ;;  %v520_v26 = vsel %vm452_vm2, %v8297_v22, %v8299_v43 }
  0xf5   : > { %vm425_vm10 = vcmp.eq.s32.totalorder %v8699_v38, 1  ;;  %v710_v38 = vld [vmem:[%s13475_s2 + $0xe8] sm:$0xff] }
  0xf6   : > { %v330_v35 = vpop.permute.xlu1 %329 }
  0xf7   : > { %vm422_vm1 = vcmp.eq.s32.totalorder %v330_v35, 1  ;;  %v8706_v35 = vsub.f32 %v679_v52, %v8689_v17  ;;  %v980_v52 = vsub.f32 %v8685_v21, %v8697_v61 }
  0xf8   : > { %v456_v6 = vsel %vm422_vm1, %v8293_v27, %v8295_v11  ;;  %v490_v24 = vsel %vm422_vm1, %v8297_v22, %v8299_v43 }
  0xf9   : > { %v650_v58 = vsel %vm618_vm0, %v456_v6, %v490_v24  ;;  %14067 = vst [vmem:[#allocation61_spill] sm:$0xff] %v8706_v35  ;;  %v336_v24 = vpop.permute.xlu0 %335  ;;  %v8729_v53 = vand.u32 4294901760, %v8706_v35 }
  0xfa   : > { %v8701_v54 = vand.u32 4294901760, %v650_v58  ;;  %vm424_vm6 = vcmp.eq.s32.totalorder %v336_v24, 1 }
  0xfb   : > { %14071 = vst [vmem:[#allocation65_spill] sm:$0xff] %v8729_v53 }
  0xfc   : > { %v8713_v5 = vsub.f32 %v650_v58, %v8701_v54  ;;  %974 = vmatmul.f32.gmra.mxu2 %v8703_v29  ;;  %1103 = vmatmul.f32.gmra.mxu1 %v8701_v54  ;;  %v8726_v58 = vand.u32 4294901760, %v712_v59  ;;  %v680_v29 = vsel %vm648_vm3, %v486_v51, %v520_v26  ;;  %v8741_v51 = vand.u32 4294901760, %v980_v52  ;;  %v342_v7 = vpop.permute.xlu2 %341 }
  0xfd   : > { %1215 = vmatmul.f32.gmra.mxu3 %v8671_v19  ;;  %v8744_v26 = vand.u32 4294901760, %v680_v29  ;;  %v492_v52 = vsel %vm424_vm6, %v8297_v22, %v8299_v43  ;;  %vm426_vm7 = vcmp.eq.s32.totalorder %v342_v7, 1 }
  0xfe   : > { %14068 = vst [vmem:[#allocation62_spill] sm:$0xff] %v8713_v5  ;;  %v333_v6 = vpop.permute.xlu1 %332  ;;  %v8724_v48 = vand.u32 4294901760, %v8713_v5  ;;  %2016 = vmatpush.msra.mxu2 %v8726_v58  ;;  %v8739_v55 = vsub.f32 %v712_v59, %v8726_v58  ;;  %2739 = vmatpush.msra.mxu1 %v8726_v58  ;;  %v460_v24 = vsel %vm426_vm7, %v8293_v27, %v8295_v11 }
  0xff   : > { %14070 = vst [vmem:[#allocation64_spill] sm:$0xff] %v8726_v58  ;;  %vm423_vm5 = vcmp.eq.s32.totalorder %v333_v6, 1 }
 0x100   : > { %14069 = vst [vmem:[#allocation63_spill] sm:$0xff] %v8724_v48  ;;  %v457_v19 = vsel %vm423_vm5, %v8293_v27, %v8295_v11  ;;  %v491_v63 = vsel %vm423_vm5, %v8297_v22, %v8299_v43  ;;  %v756_v28 = vsub.f32 %v8713_v5, %v8724_v48  ;;  %v13511_v40 = vand.u32 4294901760, %v8739_v55  ;;  %2531 = vmatpush.msra.mxu0 %v8739_v55 }
 0x101   : > { %14072 = vst [vmem:[#allocation66_spill] sm:$0xff] %v8739_v55  ;;  %v651_v56 = vsel %vm619_vm4, %v457_v19, %v491_v63  ;;  %v988_v63 = vsub.f32 %v8706_v35, %v8729_v53 }
 0x102   : > { %14073 = vst [vmem:[#allocation67_spill] sm:$0xff] %v8741_v51  ;;  %v8746_v6 = vand.u32 4294901760, %v651_v56  ;;  %v8748_v16 = vand.u32 4294901760, %v756_v28  ;;  %v2307_v19 = vsub.f32 %v8739_v55, %v13511_v40  ;;  %v8771_v28 = vsub.f32 %v680_v29, %v8744_v26  ;;  %v538_v40 = vpop.permute.xlu0 %537 }
 0x103   : > { %14074 = vst [vmem:[#allocation68_spill] sm:$0xff] %v8744_v26  ;;  %v8776_v42 = vand.u32 4294901760, %v988_v63  ;;  %v494_v29 = vsel %vm426_vm7, %v8297_v22, %v8299_v43  ;;  %vm622_vm9 = vcmp.eq.s32.totalorder %v538_v40, 1 }
 0x104   : > { %14075 = vst [vmem:[#allocation69_spill] sm:$0xff] %v8748_v16  ;;  %v8753_v59 = vsub.f32 %v651_v56, %v8746_v6  ;;  %982 = vmatmul.f32.gmra.mxu2 %v8741_v51  ;;  %758 = vmatmul.f32.gmra.mxu0 %v8748_v16  ;;  %v458_v56 = vsel %vm424_vm6, %v8293_v27, %v8295_v11  ;;  %v2308_v16 = vand.u32 4294901760, %v2307_v19 }
 0x105   : > { %1219 = vmatmul.f32.gmra.mxu3 %v8689_v17  ;;  %1107 = vmatmul.f32.gmra.mxu1 %v8746_v6  ;;  %14077 = vst [vmem:[#allocation71_spill] sm:$0xff] %v8771_v28 }
 0x106   : > { %14076 = vst [vmem:[#allocation70_spill] sm:$0xff] %v8753_v59  ;;  %v8774_v51 = vand.u32 4294901760, %v8753_v59  ;;  %2309 = vmatpush.msra.mxu3 %v2308_v16  ;;  %v654_v16 = vsel %vm622_vm9, %v460_v24, %v494_v29 }
 0x107   : > { %v532_v17 = vpop.permute.xlu1 %531  ;;  %14079 = vst [vmem:[#allocation73_spill] sm:$0xff] %v8776_v42  ;;  %v8813_v29 = vand.u32 4294901760, %v654_v16 }
 0x108   : > { %14078 = vst [vmem:[#allocation72_spill] sm:$0xff] %v8774_v51  ;;  %vm620_vm8 = vcmp.eq.s32.totalorder %v532_v17, 1  ;;  %v764_v13 = vsub.f32 %v8753_v59, %v8774_v51  ;;  %v8790_v17 = vand.u32 4294901760, %v8771_v28 }
 0x109   : > { %v652_v3 = vsel %vm620_vm8, %v458_v56, %v492_v52  ;;  %v541_v56 = vpop.permute.xlu2 %540  ;;  %v8811_v52 = vand.u32 4294901760, %v710_v38 }
 0x10a   : > { %v8784_v35 = vand.u32 4294901760, %v652_v3  ;;  %v8786_v7 = vand.u32 4294901760, %v764_v13  ;;  %14081 = vst [vmem:[#allocation75_spill] sm:$0xff] %v8790_v17  ;;  %v459_v13 = vsel %vm425_vm10, %v8293_v27, %v8295_v11  ;;  %v996_v19 = vsub.f32 %v8771_v28, %v8790_v17 }
 0x10b   : > { %14084 = vst [vmem:[#allocation78_spill] sm:$0xff] %v8811_v52  ;;  %2018 = vmatpush.msra.mxu2 %v8811_v52  ;;  %2741 = vmatpush.msra.mxu1 %v8811_v52  ;;  %vm623_vm12 = vcmp.eq.s32.totalorder %v541_v56, 1 }
 0x10c   : > { %14080 = vst [vmem:[#allocation74_spill] sm:$0xff] %v8786_v7  ;;  %v8793_v63 = vsub.f32 %v652_v3, %v8784_v35  ;;  %990 = vmatmul.f32.gmra.mxu2 %v8776_v42  ;;  %766 = vmatmul.f32.gmra.mxu0 %v8786_v7  ;;  %v493_v3 = vsel %vm425_vm10, %v8297_v22, %v8299_v43  ;;  %v8826_v17 = vand.u32 4294901760, %v996_v19 }
 0x10d   : > { %1223 = vmatmul.f32.gmra.mxu3 %v8744_v26  ;;  %1111 = vmatmul.f32.gmra.mxu1 %v8784_v35  ;;  %v8819_v26 = vsub.f32 %v710_v38, %v8811_v52 }
 0x10e   : > { %14082 = vst [vmem:[#allocation76_spill] sm:$0xff] %v8793_v63  ;;  %v8807_v40 = vand.u32 4294901760, %v8793_v63 }
 0x10f   : > { %v535_v24 = vpop.permute.xlu1 %534  ;;  %14085 = vst [vmem:[#allocation79_spill] sm:$0xff] %v8819_v26  ;;  %v13537_v53 = vand.u32 4294901760, %v8819_v26  ;;  %2534 = vmatpush.msra.mxu0 %v8819_v26 }
 0x110   : > { %14083 = vst [vmem:[#allocation77_spill] sm:$0xff] %v8807_v40  ;;  %vm621_vm11 = vcmp.eq.s32.totalorder %v535_v24, 1  ;;  %v772_v42 = vsub.f32 %v8793_v63, %v8807_v40  ;;  %v8831_v24 = vsub.f32 %v654_v16, %v8813_v29 }
 0x111   : > { %v653_v7 = vsel %vm621_vm11, %v459_v13, %v493_v3  ;;  %14087 = vst [vmem:[#allocation81_spill] sm:$0xff] %v8826_v17 }
 0x112   : > { %v8822_v31 = vand.u32 4294901760, %v653_v7  ;;  %v8824_v28 = vand.u32 4294901760, %v772_v42  ;;  %14088 = vst [vmem:[#allocation82_spill] sm:$0xff] %v8831_v24  ;;  %v2313_v42 = vsub.f32 %v8819_v26, %v13537_v53 }
 0x114   : > { %14086 = vst [vmem:[#allocation80_spill] sm:$0xff] %v8824_v28  ;;  %v8834_v21 = vsub.f32 %v653_v7, %v8822_v31  ;;  %774 = vmatmul.f32.gmra.mxu0 %v8824_v28  ;;  %998 = vmatmul.f32.gmra.mxu2 %v8826_v17  ;;  %v2314_v16 = vand.u32 4294901760, %v2313_v42  ;;  %v8847_v7 = vand.u32 4294901760, %v8831_v24  ;;  %v544_v17 = vpop.permute.xlu2 %543 }
 0x115   : > { %1115 = vmatmul.f32.gmra.mxu1 %v8822_v31  ;;  %1471 = vmatmul.f32.vlgmr.msrb.gmra.mxu3 %v8625_v44  ;;  %vm624_vm14 = vcmp.eq.s32.totalorder %v544_v17, 1 }
 0x116   : > { %14089 = vst [vmem:[#allocation83_spill] sm:$0xff] %v8834_v21  ;;  %v8844_v13 = vand.u32 4294901760, %v8834_v21  ;;  %2315 = vmatpush.msra.mxu3 %v2314_v16  ;;  %v788_v32 = vsub.f32 %v8831_v24, %v8847_v7  ;;  %v708_v16 = vld [vmem:[%s13475_s2 + $0xd8] sm:$0xff] }
 0x117   : > { %v1164_v38 = vpop.f32.mrf.mxu3  ;;  %14091 = vst [vmem:[#allocation85_spill] sm:$0xff] %v8847_v7 }
 0x118   : > { %14090 = vst [vmem:[#allocation84_spill] sm:$0xff] %v8844_v13  ;;  %v780_v3 = vsub.f32 %v8834_v21, %v8844_v13  ;;  %v345_v19 = vpop.permute.xlu1 %344 }
 0x119   : > { %vm427_vm13 = vcmp.eq.s32.totalorder %v345_v19, 1 }
 0x11a   : > { %v8851_v53 = vand.u32 4294901760, %v780_v3  ;;  %v461_v44 = vsel %vm427_vm13, %v8293_v27, %v8295_v11  ;;  %v495_v42 = vsel %vm427_vm13, %v8297_v22, %v8299_v43 }
 0x11b   : > { %v655_v28 = vsel %vm623_vm12, %v461_v44, %v495_v42  ;;  %v8871_v44 = vand.u32 4294901760, %v708_v16 }
 0x11c   : > { %14092 = vst [vmem:[#allocation86_spill] sm:$0xff] %v8851_v53  ;;  %782 = vmatmul.f32.gmra.mxu0 %v8851_v53  ;;  %1277 = vmatmul.f32.vlgmr.msrb.gmra.mxu2 %v8616_v4  ;;  %v8861_v56 = vand.u32 4294901760, %v655_v28  ;;  %v8873_v53 = vand.u32 4294901760, %v788_v32 }
 0x11d   : > { %1119 = vmatmul.f32.gmra.mxu1 %v8813_v29  ;;  %1477 = vmatmul.f32.gmra.mxu3 %v8724_v48  ;;  %14095 = vst [vmem:[#allocation89_spill] sm:$0xff] %v8871_v44  ;;  %v354_v48 = vpop.permute.xlu2 %353  ;;  %v8882_v52 = vsub.f32 %v708_v16, %v8871_v44 }
 0x11e   : > { %14093 = vst [vmem:[#allocation87_spill] sm:$0xff] %v8861_v56  ;;  %v8869_v3 = vsub.f32 %v655_v28, %v8861_v56  ;;  %2020 = vmatpush.msra.mxu2 %v8871_v44  ;;  %2743 = vmatpush.msra.mxu1 %v8871_v44  ;;  %v351_v28 = vpop.permute.xlu0 %350  ;;  %vm430_vm2 = vcmp.eq.s32.totalorder %v354_v48, 1 }
 0x11f   : > { %v879_v19 = vpop.f32.mrf.mxu2  ;;  %v1168_v42 = vpop.f32.mrf.mxu3  ;;  %14096 = vst [vmem:[#allocation90_spill] sm:$0xff] %v8873_v53  ;;  %v13554_v17 = vand.u32 4294901760, %v8882_v52  ;;  %2537 = vmatpush.msra.mxu0 %v8882_v52  ;;  %vm429_vm0 = vcmp.eq.s32.totalorder %v351_v28, 1  ;;  %v464_v48 = vsel %vm430_vm2, %v8293_v27, %v8295_v11 }
 0x120   : > { %14094 = vst [vmem:[#allocation88_spill] sm:$0xff] %v8869_v3  ;;  %v8875_v4 = vadd.f32 %v1164_v38, %v879_v19  ;;  %v348_v61 = vpop.permute.xlu1 %347  ;;  %v8878_v36 = vand.u32 4294901760, %v8869_v3  ;;  %v463_v44 = vsel %vm429_vm0, %v8293_v27, %v8295_v11 }
 0x121   : > { %14099 = vst [vmem:[#allocation93_spill] sm:$0xff] %v8882_v52  ;;  %vm428_vm15 = vcmp.eq.s32.totalorder %v348_v61, 1 }
 0x122   : > { %14097 = vst [vmem:[#allocation91_spill] sm:$0xff] %v8875_v4  ;;  %v462_v32 = vsel %vm428_vm15, %v8293_v27, %v8295_v11  ;;  %v496_v38 = vsel %vm428_vm15, %v8297_v22, %v8299_v43  ;;  %v796_v61 = vsub.f32 %v8869_v3, %v8878_v36  ;;  %v2319_v4 = vsub.f32 %v8882_v52, %v13554_v17 }
 0x123   : > { %14098 = vst [vmem:[#allocation92_spill] sm:$0xff] %v8878_v36  ;;  %v656_v19 = vsel %vm624_vm14, %v462_v32, %v496_v38  ;;  %v497_v17 = vsel %vm429_vm0, %v8297_v22, %v8299_v43  ;;  %vm7667_vm0 = vcmask 15360  }
 0x124   : > { %790 = vmatmul.f32.gmra.mxu0 %v8873_v53  ;;  %1282 = vmatmul.f32.gmra.mxu2 %v8713_v5  ;;  %v8893_v16 = vand.u32 4294901760, %v656_v19  ;;  %v2320_v38 = vand.u32 4294901760, %v2319_v4  ;;  %v8909_v28 = vand.u32 4294901760, %v796_v61 }
 0x125   : > { %1123 = vmatmul.f32.gmra.mxu1 %v8861_v56  ;;  %1483 = vmatmul.f32.gmra.mxu3 %v8774_v51 }
 0x126   : > { %14100 = vst [vmem:[#allocation94_spill] sm:$0xff] %v8893_v16  ;;  %v8903_v32 = vsub.f32 %v656_v19, %v8893_v16  ;;  %2321 = vmatpush.msra.mxu3 %v2320_v38  ;;  %v357_v19 = vpop.permute.xlu2 %356 }
 0x127   : > { %v887_v53 = vpop.f32.mrf.mxu2  ;;  %v1172_v5 = vpop.f32.mrf.mxu3  ;;  %14103 = vst [vmem:[#allocation97_spill] sm:$0xff] %v8909_v28  ;;  %vm431_vm3 = vcmp.eq.s32.totalorder %v357_v19, 1 }
 0x128   : > { %14101 = vst [vmem:[#allocation95_spill] sm:$0xff] %v8903_v32  ;;  %v8907_v58 = vadd.f32 %v1168_v42, %v887_v53  ;;  %v8914_v37 = vand.u32 4294901760, %v8903_v32  ;;  %v553_v42 = vpop.permute.xlu0 %552  ;;  %v465_v41 = vsel %vm431_vm3, %v8293_v27, %v8295_v11 }
 0x129   : > { %v547_v51 = vpop.permute.xlu1 %546  ;;  %vm627_vm4 = vcmp.eq.s32.totalorder %v553_v42, 1 }
 0x12a   : > { %14102 = vst [vmem:[#allocation96_spill] sm:$0xff] %v8907_v58  ;;  %vm625_vm1 = vcmp.eq.s32.totalorder %v547_v51, 1  ;;  %v804_v53 = vsub.f32 %v8903_v32, %v8914_v37  ;;  %v706_v51 = vld [vmem:[%s13475_s2 + $0xc8] sm:$0xff] }
 0x12b   : > { %14104 = vst [vmem:[#allocation98_spill] sm:$0xff] %v8914_v37  ;;  %v657_v4 = vsel %vm625_vm1, %v463_v44, %v497_v17  ;;  %v8930_v17 = vand.u32 4294901760, %v706_v51 }
 0x12c   : > { %798 = vmatmul.f32.gmra.mxu0 %v8909_v28  ;;  %1287 = vmatmul.f32.gmra.mxu2 %v8753_v59  ;;  %v8918_v10 = vand.u32 4294901760, %v657_v4  ;;  %v498_v59 = vsel %vm430_vm2, %v8297_v22, %v8299_v43  ;;  %v8938_v28 = vand.u32 4294901760, %v804_v53 }
 0x12d   : > { %1127 = vmatmul.f32.gmra.mxu1 %v8893_v16  ;;  %1489 = vmatmul.f32.gmra.mxu3 %v8807_v40  ;;  %14107 = vst [vmem:[#allocation101_spill] sm:$0xff] %v8930_v17  ;;  %v8945_v19 = vsub.f32 %v706_v51, %v8930_v17 }
 0x12e   : > { %14105 = vst [vmem:[#allocation99_spill] sm:$0xff] %v8918_v10  ;;  %v8928_v44 = vsub.f32 %v657_v4, %v8918_v10  ;;  %2022 = vmatpush.msra.mxu2 %v8930_v17  ;;  %2745 = vmatpush.msra.mxu1 %v8930_v17  ;;  %v556_v52 = vpop.permute.xlu2 %555 }
 0x12f   : > { %v895_v61 = vpop.f32.mrf.mxu2  ;;  %v1176_v38 = vpop.f32.mrf.mxu3  ;;  %14109 = vst [vmem:[#allocation103_spill] sm:$0xff] %v8938_v28  ;;  %v13570_v53 = vand.u32 4294901760, %v8945_v19  ;;  %2540 = vmatpush.msra.mxu0 %v8945_v19  ;;  %vm628_vm6 = vcmp.eq.s32.totalorder %v556_v52, 1 }
 0x130   : > { %14106 = vst [vmem:[#allocation100_spill] sm:$0xff] %v8928_v44  ;;  %v8936_v40 = vadd.f32 %v1172_v5, %v895_v61  ;;  %v8941_v58 = vand.u32 4294901760, %v8928_v44  ;;  %v499_v5 = vsel %vm431_vm3, %v8297_v22, %v8299_v43 }
 0x131   : > { %14111 = vst [vmem:[#allocation105_spill] sm:$0xff] %v8945_v19  ;;  %v550_v4 = vpop.permute.xlu1 %549  ;;  %v659_v17 = vsel %vm627_vm4, %v465_v41, %v499_v5  ;;  %v2325_v42 = vsub.f32 %v8945_v19, %v13570_v53 }
 0x132   : > { %14108 = vst [vmem:[#allocation102_spill] sm:$0xff] %v8936_v40  ;;  %vm626_vm5 = vcmp.eq.s32.totalorder %v550_v4, 1  ;;  %v812_v40 = vsub.f32 %v8928_v44, %v8941_v58 }
 0x133   : > { %14110 = vst [vmem:[#allocation104_spill] sm:$0xff] %v8941_v58  ;;  %v658_v61 = vsel %vm626_vm5, %v464_v48, %v498_v59  ;;  %v2326_v48 = vand.u32 4294901760, %v2325_v42 }
 0x134   : > { %806 = vmatmul.f32.gmra.mxu0 %v8938_v28  ;;  %1292 = vmatmul.f32.gmra.mxu2 %v8793_v63  ;;  %v8956_v51 = vand.u32 4294901760, %v658_v61  ;;  %v8968_v28 = vand.u32 4294901760, %v659_v17  ;;  %v8972_v41 = vand.u32 4294901760, %v812_v40 }
 0x135   : > { %1131 = vmatmul.f32.gmra.mxu1 %v8918_v10  ;;  %1495 = vmatmul.f32.gmra.mxu3 %v8844_v13 }
 0x136   : > { %14112 = vst [vmem:[#allocation106_spill] sm:$0xff] %v8956_v51  ;;  %v8966_v59 = vsub.f32 %v658_v61, %v8956_v51  ;;  %2327 = vmatpush.msra.mxu3 %v2326_v48  ;;  %v8978_v13 = vsub.f32 %v659_v17, %v8968_v28  ;;  %v704_v17 = vld [vmem:[%s13475_s2 + $0xb8] sm:$0xff] }
 0x137   : > { %v903_v4 = vpop.f32.mrf.mxu2  ;;  %v1180_v63 = vpop.f32.mrf.mxu3  ;;  %14114 = vst [vmem:[#allocation108_spill] sm:$0xff] %v8968_v28  ;;  %v8993_v42 = vand.u32 4294901760, %v704_v17 }
 0x138   : > { %14113 = vst [vmem:[#allocation107_spill] sm:$0xff] %v8966_v59  ;;  %v8970_v26 = vadd.f32 %v1176_v38, %v903_v4  ;;  %v8975_v5 = vand.u32 4294901760, %v8966_v59  ;;  %v9002_v19 = vand.u32 4294901760, %v8978_v13 }
 0x139   : > { %14116 = vst [vmem:[#allocation110_spill] sm:$0xff] %v8972_v41  ;;  %2024 = vmatpush.msra.mxu2 %v8993_v42  ;;  %2747 = vmatpush.msra.mxu1 %v8993_v42 }
 0x13a   : > { %14115 = vst [vmem:[#allocation109_spill] sm:$0xff] %v8970_v26  ;;  %v360_v53 = vpop.permute.xlu1 %359  ;;  %v820_v38 = vsub.f32 %v8966_v59, %v8975_v5 }
 0x13b   : > { %14117 = vst [vmem:[#allocation111_spill] sm:$0xff] %v8975_v5  ;;  %vm432_vm7 = vcmp.eq.s32.totalorder %v360_v53, 1  ;;  %v559_v53 = vpop.permute.xlu2 %558 }
 0x13c   : > { %14118 = vst [vmem:[#allocation112_spill] sm:$0xff] %v8978_v13  ;;  %814 = vmatmul.f32.gmra.mxu0 %v8972_v41  ;;  %1297 = vmatmul.f32.gmra.mxu2 %v8834_v21  ;;  %v466_v40 = vsel %vm432_vm7, %v8293_v27, %v8295_v11  ;;  %v500_v61 = vsel %vm432_vm7, %v8297_v22, %v8299_v43  ;;  %v8999_v26 = vand.u32 4294901760, %v820_v38  ;;  %vm629_vm8 = vcmp.eq.s32.totalorder %v559_v53, 1 }
 0x13d   : > { %1135 = vmatmul.f32.gmra.mxu1 %v8956_v51  ;;  %1501 = vmatmul.f32.gmra.mxu3 %v8847_v7  ;;  %v660_v52 = vsel %vm628_vm6, %v466_v40, %v500_v61  ;;  %14119 = vst [vmem:[#allocation113_spill] sm:$0xff] %v8993_v42  ;;  %v9006_v40 = vsub.f32 %v704_v17, %v8993_v42 }
 0x13e   : > { %v8995_v21 = vand.u32 4294901760, %v660_v52  ;;  %14122 = vst [vmem:[#allocation116_spill] sm:$0xff] %v8999_v26  ;;  %v828_v38 = vsub.f32 %v8978_v13, %v9002_v19 }
 0x13f   : > { %v911_v48 = vpop.f32.mrf.mxu2  ;;  %v1184_v4 = vpop.f32.mrf.mxu3  ;;  %14123 = vst [vmem:[#allocation117_spill] sm:$0xff] %v9002_v19  ;;  %v13585_v7 = vand.u32 4294901760, %v9006_v40  ;;  %2543 = vmatpush.msra.mxu0 %v9006_v40 }
 0x140   : > { %14120 = vst [vmem:[#allocation114_spill] sm:$0xff] %v8995_v21  ;;  %v8997_v41 = vadd.f32 %v1180_v63, %v911_v48  ;;  %v9012_v63 = vsub.f32 %v660_v52, %v8995_v21  ;;  %v366_v48 = vpop.permute.xlu0 %365  ;;  %v9032_v25 = vand.u32 4294901760, %v828_v38 }
 0x141   : > { %14124 = vst [vmem:[#allocation118_spill] sm:$0xff] %v9006_v40  ;;  %vm434_vm10 = vcmp.eq.s32.totalorder %v366_v48, 1 }
 0x142   : > { %14121 = vst [vmem:[#allocation115_spill] sm:$0xff] %v8997_v41  ;;  %v363_v61 = vpop.permute.xlu1 %362  ;;  %v9028_v41 = vand.u32 4294901760, %v9012_v63 }
 0x143   : > { %14125 = vst [vmem:[#allocation119_spill] sm:$0xff] %v9012_v63  ;;  %vm433_vm9 = vcmp.eq.s32.totalorder %v363_v61, 1  ;;  %v2331_v61 = vsub.f32 %v9006_v40, %v13585_v7 }
 0x144   : > { %822 = vmatmul.f32.gmra.mxu0 %v8999_v26  ;;  %1302 = vmatmul.f32.gmra.mxu2 %v8831_v24  ;;  %v467_v17 = vsel %vm433_vm9, %v8293_v27, %v8295_v11  ;;  %v501_v53 = vsel %vm433_vm9, %v8297_v22, %v8299_v43  ;;  %14126 = vst [vmem:[#allocation120_spill] sm:$0xff] %v9028_v41 }
 0x145   : > { %1139 = vmatmul.f32.gmra.mxu1 %v8968_v28  ;;  %1507 = vmatmul.f32.gmra.mxu3 %v8878_v36  ;;  %v661_v52 = vsel %vm629_vm8, %v467_v17, %v501_v53  ;;  %v2332_v42 = vand.u32 4294901760, %v2331_v61  ;;  %14128 = vst [vmem:[#allocation122_spill] sm:$0xff] %v9032_v25  ;;  %v369_v36 = vpop.permute.xlu2 %368  ;;  %v468_v17 = vsel %vm434_vm10, %v8293_v27, %v8295_v11 }
 0x146   : > { %v9034_v0 = vand.u32 4294901760, %v661_v52  ;;  %v502_v53 = vsel %vm434_vm10, %v8297_v22, %v8299_v43  ;;  %v836_v7 = vsub.f32 %v9012_v63, %v9028_v41  ;;  %vm435_vm12 = vcmp.eq.s32.totalorder %v369_v36, 1 }
 0x147   : > { %v919_v24 = vpop.f32.mrf.mxu2  ;;  %v1188_v26 = vpop.f32.mrf.mxu3  ;;  %2333 = vmatpush.msra.mxu3 %v2332_v42  ;;  %v503_v36 = vsel %vm435_vm12, %v8297_v22, %v8299_v43 }
 0x148   : > { %v9030_v55 = vadd.f32 %v1184_v4, %v919_v24  ;;  %14129 = vst [vmem:[#allocation123_spill] sm:$0xff] %v9034_v0  ;;  %v9045_v24 = vsub.f32 %v661_v52, %v9034_v0  ;;  %v702_v4 = vld [vmem:[%s13475_s2 + $0xa8] sm:$0xff] }
 0x149   : > { %v9052_v38 = vand.u32 4294901760, %v702_v4 }
 0x14a   : > { %14127 = vst [vmem:[#allocation121_spill] sm:$0xff] %v9030_v55 }
 0x14b   : > { %v562_v40 = vpop.permute.xlu1 %561  ;;  %14130 = vst [vmem:[#allocation124_spill] sm:$0xff] %v9045_v24  ;;  %2026 = vmatpush.msra.mxu2 %v9052_v38  ;;  %2749 = vmatpush.msra.mxu1 %v9052_v38 }
 0x14c   : > { %830 = vmatmul.f32.gmra.mxu0 %v9032_v25  ;;  %1307 = vmatmul.f32.gmra.mxu2 %v8869_v3  ;;  %vm630_vm11 = vcmp.eq.s32.totalorder %v562_v40, 1  ;;  %14131 = vst [vmem:[#allocation125_spill] sm:$0xff] %v9052_v38  ;;  %v9054_v25 = vand.u32 4294901760, %v836_v7  ;;  %v9061_v40 = vand.u32 4294901760, %v9045_v24 }
 0x14d   : > { %1143 = vmatmul.f32.gmra.mxu1 %v8995_v21  ;;  %1513 = vmatmul.f32.gmra.mxu3 %v8914_v37  ;;  %v662_v42 = vsel %vm630_vm11, %v468_v17, %v502_v53  ;;  %v9065_v17 = vsub.f32 %v702_v4, %v9052_v38  ;;  %v469_v53 = vsel %vm435_vm12, %v8293_v27, %v8295_v11 }
 0x14e   : > { %14132 = vst [vmem:[#allocation126_spill] sm:$0xff] %v9054_v25  ;;  %v9058_v52 = vand.u32 4294901760, %v662_v42  ;;  %v844_v37 = vsub.f32 %v9045_v24, %v9061_v40 }
 0x14f   : > { %v927_v48 = vpop.f32.mrf.mxu2  ;;  %v1192_v61 = vpop.f32.mrf.mxu3  ;;  %14135 = vst [vmem:[#allocation129_spill] sm:$0xff] %v9061_v40  ;;  %2546 = vmatpush.msra.mxu0 %v9065_v17 }
 0x150   : > { %v9056_v3 = vadd.f32 %v1188_v26, %v927_v48  ;;  %14134 = vst [vmem:[#allocation128_spill] sm:$0xff] %v9058_v52  ;;  %v13599_v26 = vand.u32 4294901760, %v9065_v17  ;;  %v372_v48 = vpop.permute.xlu2 %371  ;;  %v9077_v4 = vsub.f32 %v662_v42, %v9058_v52  ;;  %v9088_v14 = vand.u32 4294901760, %v844_v37 }
 0x151   : > { %vm436_vm14 = vcmp.eq.s32.totalorder %v372_v48, 1 }
 0x152   : > { %14133 = vst [vmem:[#allocation127_spill] sm:$0xff] %v9056_v3  ;;  %v2337_v3 = vsub.f32 %v9065_v17, %v13599_v26  ;;  %v470_v26 = vsel %vm436_vm14, %v8293_v27, %v8295_v11  ;;  %v700_v27 = vld [vmem:[%s13475_s2 + $0x98] sm:$0xff] }
 0x153   : > { %v565_v7 = vpop.permute.xlu1 %564  ;;  %14136 = vst [vmem:[#allocation130_spill] sm:$0xff] %v9077_v4  ;;  %v9111_v11 = vand.u32 4294901760, %v700_v27 }
 0x154   : > { %838 = vmatmul.f32.gmra.mxu0 %v9054_v25  ;;  %1312 = vmatmul.f32.gmra.mxu2 %v8903_v32  ;;  %vm631_vm13 = vcmp.eq.s32.totalorder %v565_v7, 1  ;;  %v568_v25 = vpop.permute.xlu0 %567  ;;  %v2338_v38 = vand.u32 4294901760, %v2337_v3  ;;  %14138 = vst [vmem:[#allocation132_spill] sm:$0xff] %v9088_v14  ;;  %v9093_v7 = vand.u32 4294901760, %v9077_v4 }
 0x155   : > { %1147 = vmatmul.f32.gmra.mxu1 %v9034_v0  ;;  %1519 = vmatmul.f32.gmra.mxu3 %v8941_v58  ;;  %v663_v55 = vsel %vm631_vm13, %v469_v53, %v503_v36  ;;  %v504_v53 = vsel %vm436_vm14, %v8297_v22, %v8299_v43  ;;  %vm632_vm15 = vcmp.eq.s32.totalorder %v568_v25, 1  ;;  %v9124_v36 = vsub.f32 %v700_v27, %v9111_v11 }
 0x156   : > { %v9090_v15 = vand.u32 4294901760, %v663_v55  ;;  %14140 = vst [vmem:[#allocation134_spill] sm:$0xff] %v9093_v7  ;;  %2339 = vmatpush.msra.mxu3 %v2338_v38  ;;  %v852_v3 = vsub.f32 %v9077_v4, %v9093_v7  ;;  %2028 = vmatpush.msra.mxu2 %v9111_v11 }
 0x157   : > { %v935_v32 = vpop.f32.mrf.mxu2  ;;  %v1196_v30 = vpop.f32.mrf.mxu3  ;;  %2751 = vmatpush.msra.mxu1 %v9111_v11  ;;  %2549 = vmatpush.msra.mxu0 %v9124_v36 }
 0x158   : > { %v9086_v42 = vadd.f32 %v1192_v61, %v935_v32  ;;  %14139 = vst [vmem:[#allocation133_spill] sm:$0xff] %v9090_v15  ;;  %v9102_v37 = vsub.f32 %v663_v55, %v9090_v15  ;;  %v664_v32 = vsel %vm632_vm15, %v470_v26, %v504_v53  ;;  %v9117_v38 = vand.u32 4294901760, %v852_v3 }
 0x159   : > { %v9113_v25 = vand.u32 4294901760, %v664_v32  ;;  %v13602_v26 = vand.u32 4294901760, %v9124_v36 }
 0x15a   : > { %14137 = vst [vmem:[#allocation131_spill] sm:$0xff] %v9086_v42  ;;  %v9120_v61 = vand.u32 4294901760, %v9102_v37 }
 0x15b   : > { %14141 = vst [vmem:[#allocation135_spill] sm:$0xff] %v9102_v37  ;;  %v2343_v53 = vsub.f32 %v9124_v36, %v13602_v26 }
 0x15c   : > { %846 = vmatmul.f32.gmra.mxu0 %v9088_v14  ;;  %1317 = vmatmul.f32.gmra.mxu2 %v8928_v44  ;;  %14142 = vst [vmem:[#allocation136_spill] sm:$0xff] %v9113_v25  ;;  %v860_v48 = vsub.f32 %v9102_v37, %v9120_v61 }
 0x15d   : > { %1151 = vmatmul.f32.gmra.mxu1 %v9058_v52  ;;  %1525 = vmatmul.f32.gmra.mxu3 %v8975_v5  ;;  %14144 = vst [vmem:[#allocation138_spill] sm:$0xff] %v9117_v38  ;;  %v2344_v3 = vand.u32 4294901760, %v2343_v53 }
 0x15e   : > { %14145 = vst [vmem:[#allocation139_spill] sm:$0xff] %v9120_v61 }
 0x15f   : > { %v943_v22 = vpop.f32.mrf.mxu2  ;;  %v1200_v43 = vpop.f32.mrf.mxu3  ;;  %2345 = vmatpush.msra.mxu3 %v2344_v3 }
 0x160   : > { %v9115_v55 = vadd.f32 %v1196_v30, %v943_v22  ;;  %v9132_v30 = vsub.f32 %v664_v32, %v9113_v25 }
 0x162   : > { %14143 = vst [vmem:[#allocation137_spill] sm:$0xff] %v9115_v55  ;;  %v9146_v32 = vand.u32 4294901760, %v9132_v30 }
 0x163   : > { %14146 = vst [vmem:[#allocation140_spill] sm:$0xff] %v9132_v30 }
 0x164   : > { %854 = vmatmul.f32.gmra.mxu0 %v9117_v38  ;;  %1322 = vmatmul.f32.gmra.mxu2 %v8966_v59  ;;  %v9143_v59 = vand.u32 4294901760, %v860_v48  ;;  %14149 = vst [vmem:[#allocation143_spill] sm:$0xff] %v9146_v32  ;;  %v868_v26 = vsub.f32 %v9132_v30, %v9146_v32  ;;  %v9157_v48 = vpop.f32.mrf.mxu1 }
 0x165   : > { %1155 = vmatmul.f32.gmra.mxu1 %v9090_v15  ;;  %1531 = vmatmul.f32.gmra.mxu3 %v9002_v19 }
 0x166   : > { %14148 = vst [vmem:[#allocation142_spill] sm:$0xff] %v9143_v59 }
 0x167   : > { %v951_v27 = vpop.f32.mrf.mxu2  ;;  %v1204_v22 = vpop.f32.mrf.mxu3 }
 0x168   : > { %v9141_v5 = vadd.f32 %v1200_v43, %v951_v27  ;;  %v698_v43 = vld [vmem:[%s13475_s2 + $0x88] sm:$0xff] }
 0x169   : > { %v9159_v53 = vand.u32 4294901760, %v698_v43 }
 0x16a   : > { %14147 = vst [vmem:[#allocation141_spill] sm:$0xff] %v9141_v5 }
 0x16b   : > { %2030 = vmatpush.msra.mxu2 %v9159_v53  ;;  %v9167_v44 = vsub.f32 %v698_v43, %v9159_v53  ;;  %2753 = vmatpush.msra.mxu1 %v9159_v53 }
 0x16c   : > { %862 = vmatmul.f32.gmra.mxu0 %v9143_v59  ;;  %1327 = vmatmul.f32.gmra.mxu2 %v8978_v13  ;;  %v9163_v13 = vand.u32 4294901760, %v868_v26 }
 0x16d   : > { %1159 = vmatmul.f32.gmra.mxu1 %v9113_v25  ;;  %1537 = vmatmul.f32.gmra.mxu3 %v9028_v41  ;;  %v13610_v41 = vand.u32 4294901760, %v9167_v44 }
 0x16e   : > { %14151 = vst [vmem:[#allocation145_spill] sm:$0xff] %v9163_v13  ;;  %2552 = vmatpush.msra.mxu0 %v9167_v44 }
 0x16f   : > { %v959_v3 = vpop.f32.mrf.mxu2  ;;  %v1208_v27 = vpop.f32.mrf.mxu3  ;;  %v2349_v26 = vsub.f32 %v9167_v44, %v13610_v41  ;;  %v696_v41 = vld [vmem:[%s13475_s2 + $0x78] sm:$0xff] }
 0x170   : > { %v9161_v19 = vadd.f32 %v1204_v22, %v959_v3  ;;  %v9179_v22 = vpop.f32.mrf.mxu0 }
 0x171   : > { %v2350_v43 = vand.u32 4294901760, %v2349_v26  ;;  %v9192_v26 = vand.u32 4294901760, %v696_v41 }
 0x172   : > { %14150 = vst [vmem:[#allocation144_spill] sm:$0xff] %v9161_v19 }
 0x173   : > { %2351 = vmatpush.msra.mxu3 %v2350_v43  ;;  %2032 = vmatpush.msra.mxu2 %v9192_v26 }
 0x174   : > { %870 = vmatmul.f32.gmra.mxu0 %v9163_v13  ;;  %1332 = vmatmul.f32.gmra.mxu2 %v9012_v63 }
 0x175   : > { %1543 = vmatmul.f32.gmra.mxu3 %v9061_v40  ;;  %1887 = vmatmul.f32.vlgmr.msrb.gmra.mxu1 %v8606_v20 }
 0x176   : > { %2755 = vmatpush.msra.mxu1 %v9192_v26 }
 0x177   : > { %v967_v3 = vpop.f32.mrf.mxu2  ;;  %v1212_v58 = vpop.f32.mrf.mxu3 }
 0x178   : > { %v9181_v59 = vadd.f32 %v1208_v27, %v967_v3  ;;  %v9198_v3 = vsub.f32 %v696_v41, %v9192_v26 }
 0x179   : > { %v9183_v38 = vpop.f32.mrf.mxu1 }
 0x17a   : > { %14152 = vst [vmem:[#allocation146_spill] sm:$0xff] %v9181_v59  ;;  %v13617_v63 = vand.u32 4294901760, %v9198_v3  ;;  %2555 = vmatpush.msra.mxu0 %v9198_v3 }
 0x17c   : > { %1337 = vmatmul.f32.gmra.mxu2 %v9045_v24  ;;  %1726 = vmatmul.f32.vlgmr.msrb.gmra.mxu0 %v8606_v20 }
 0x17d   : > { %1549 = vmatmul.f32.gmra.mxu3 %v9093_v7  ;;  %1891 = vmatmul.f32.gmra.mxu1 %v8701_v54 }
 0x17f   : > { %v975_v40 = vpop.f32.mrf.mxu2 }
 0x180   : > { %v9194_v27 = vadd.f32 %v1212_v58, %v975_v40  ;;  %v1216_v43 = vpop.f32.mrf.mxu3  ;;  %v2355_v58 = vsub.f32 %v9198_v3, %v13617_v63 }
 0x181   : > { %v9201_v7 = vpop.f32.mrf.mxu0 }
 0x182   : > { %14153 = vst [vmem:[#allocation147_spill] sm:$0xff] %v9194_v27  ;;  %v9203_v24 = vpop.f32.mrf.mxu1  ;;  %v2356_v41 = vand.u32 4294901760, %v2355_v58  ;;  %v694_v58 = vld [vmem:[%s13475_s2 + $0x68] sm:$0xff] }
 0x184   : > { %1342 = vmatmul.f32.gmra.mxu2 %v9077_v4  ;;  %1730 = vmatmul.f32.gmra.mxu0 %v8701_v54 }
 0x185   : > { %1555 = vmatmul.f32.gmra.mxu3 %v9120_v61  ;;  %1895 = vmatmul.f32.gmra.mxu1 %v8746_v6 }
 0x186   : > { %2357 = vmatpush.msra.mxu3 %v2356_v41 }
 0x187   : > { %v983_v40 = vpop.f32.mrf.mxu2 }
 0x188   : > { %v9214_v13 = vadd.f32 %v1216_v43, %v983_v40  ;;  %v1220_v27 = vpop.f32.mrf.mxu3  ;;  %v9227_v43 = vand.u32 4294901760, %v694_v58 }
 0x189   : > { %v9216_v14 = vpop.f32.mrf.mxu0 }
 0x18a   : > { %14154 = vst [vmem:[#allocation148_spill] sm:$0xff] %v9214_v13  ;;  %v9218_v59 = vpop.f32.mrf.mxu1  ;;  %2034 = vmatpush.msra.mxu2 %v9227_v43  ;;  %2757 = vmatpush.msra.mxu1 %v9227_v43 }
 0x18c   : > { %1347 = vmatmul.f32.gmra.mxu2 %v9102_v37  ;;  %1734 = vmatmul.f32.gmra.mxu0 %v8746_v6  ;;  %v9233_v37 = vsub.f32 %v694_v58, %v9227_v43 }
 0x18d   : > { %1561 = vmatmul.f32.gmra.mxu3 %v9146_v32  ;;  %1899 = vmatmul.f32.gmra.mxu1 %v8784_v35 }
 0x18e   : > { %v13622_v4 = vand.u32 4294901760, %v9233_v37  ;;  %2558 = vmatpush.msra.mxu0 %v9233_v37 }
 0x18f   : > { %v991_v40 = vpop.f32.mrf.mxu2 }
 0x190   : > { %v9229_v41 = vadd.f32 %v1220_v27, %v991_v40  ;;  %v1224_v63 = vpop.f32.mrf.mxu3  ;;  %v2361_v27 = vsub.f32 %v9233_v37, %v13622_v4 }
 0x191   : > { %v9236_v32 = vpop.f32.mrf.mxu0 }
 0x192   : > { %14155 = vst [vmem:[#allocation149_spill] sm:$0xff] %v9229_v41  ;;  %v9238_v61 = vpop.f32.mrf.mxu1  ;;  %v2362_v58 = vand.u32 4294901760, %v2361_v27  ;;  %v692_v27 = vld [vmem:[%s13475_s2 + $0x58] sm:$0xff] }
 0x194   : > { %1352 = vmatmul.f32.gmra.mxu2 %v9132_v30  ;;  %1738 = vmatmul.f32.gmra.mxu0 %v8784_v35 }
 0x195   : > { %1567 = vmatmul.f32.gmra.mxu3 %v8349_v47  ;;  %1903 = vmatmul.f32.gmra.mxu1 %v8822_v31 }
 0x196   : > { %2363 = vmatpush.msra.mxu3 %v2362_v58  ;;  %v9264_v58 = vand.u32 4294901760, %v692_v27 }
 0x197   : > { %v999_v40 = vpop.f32.mrf.mxu2 }
 0x198   : > { %v9249_v41 = vadd.f32 %v1224_v63, %v999_v40  ;;  %v1472_v13 = vpop.f32.mrf.mxu3  ;;  %v1101_v63 = vadd.f32 %v9157_v48, %v9179_v22  ;;  %2036 = vmatpush.msra.mxu2 %v9264_v58  ;;  %2759 = vmatpush.msra.mxu1 %v9264_v58  ;;  %v1105_v22 = vadd.f32 %v9183_v38, %v9201_v7  ;;  %v690_v7 = vld [vmem:[%s13475_s2 + $0x48] sm:$0xff] }
 0x199   : > { %v9251_v19 = vpop.f32.mrf.mxu0  ;;  %v1109_v38 = vadd.f32 %v9203_v24, %v9216_v14  ;;  %v1113_v24 = vadd.f32 %v9218_v59, %v9236_v32  ;;  %v688_v59 = vld [vmem:[%s13475_s2 + $0x38] sm:$0xff] }
 0x19a   : > { %14156 = vst [vmem:[#allocation150_spill] sm:$0xff] %v9249_v41  ;;  %v9253_v5 = vpop.f32.mrf.mxu1  ;;  %v1117_v32 = vadd.f32 %v9238_v61, %v9251_v19 }
 0x19c   : > { %1357 = vmatmul.f32.gmra.mxu2 %v8338_v45  ;;  %1742 = vmatmul.f32.gmra.mxu0 %v8822_v31  ;;  %v9268_v45 = vsub.f32 %v692_v27, %v9264_v58 }
 0x19d   : > { %1573 = vmatmul.f32.gmra.mxu3 %v8367_v57  ;;  %1907 = vmatmul.f32.gmra.mxu1 %v8813_v29 }
 0x19e   : > { %v13628_v41 = vand.u32 4294901760, %v9268_v45  ;;  %2561 = vmatpush.msra.mxu0 %v9268_v45 }
 0x19f   : > { %v1278_v40 = vpop.f32.mrf.mxu2 }
 0x1a0   : > { %v1279_v4 = vadd.f32 %v1278_v40, %v1101_v63  ;;  %v1478_v47 = vpop.f32.mrf.mxu3  ;;  %v2367_v48 = vsub.f32 %v9268_v45, %v13628_v41 }
 0x1a1   : > { %v9271_v57 = vpop.f32.mrf.mxu0 }
 0x1a2   : > { %v9273_v30 = vpop.f32.mrf.mxu1  ;;  %v9276_v55 = vadd.f32 %v1472_v13, %v1279_v4  ;;  %v2368_v27 = vand.u32 4294901760, %v2367_v48  ;;  %v9303_v48 = vand.u32 4294901760, %v690_v7  ;;  %v1121_v61 = vadd.f32 %v9253_v5, %v9271_v57  ;;  %v686_v57 = vld [vmem:[%s13475_s2 + $0x28] sm:$0xff] }
 0x1a4   : > { %1362 = vmatmul.f32.gmra.mxu2 %v8346_v46  ;;  %1746 = vmatmul.f32.gmra.mxu0 %v8813_v29 }
 0x1a5   : > { %1579 = vmatmul.f32.gmra.mxu3 %v8403_v12  ;;  %1911 = vmatmul.f32.gmra.mxu1 %v8861_v56 }
 0x1a6   : > { %2369 = vmatpush.msra.mxu3 %v2368_v27  ;;  %2038 = vmatpush.msra.mxu2 %v9303_v48 }
 0x1a7   : > { %v1283_v13 = vpop.f32.mrf.mxu2  ;;  %2761 = vmatpush.msra.mxu1 %v9303_v48 }
 0x1a8   : > { %v1284_v4 = vadd.f32 %v1283_v13, %v1105_v22  ;;  %v1484_v63 = vpop.f32.mrf.mxu3  ;;  %v9307_v13 = vsub.f32 %v690_v7, %v9303_v48 }
 0x1a9   : > { %v9288_v40 = vpop.f32.mrf.mxu0 }
 0x1aa   : > { %v9290_v46 = vpop.f32.mrf.mxu1  ;;  %v9292_v42 = vadd.f32 %v1478_v47, %v1284_v4  ;;  %2564 = vmatpush.msra.mxu0 %v9307_v13  ;;  %v1125_v5 = vadd.f32 %v9273_v30, %v9288_v40 }
 0x1ac   : > { %1367 = vmatmul.f32.gmra.mxu2 %v8387_v1  ;;  %1750 = vmatmul.f32.gmra.mxu0 %v8861_v56 }
 0x1ad   : > { %1585 = vmatmul.f32.gmra.mxu3 %v8438_v39  ;;  %1915 = vmatmul.f32.gmra.mxu1 %v8893_v16  ;;  %v13633_v39 = vand.u32 4294901760, %v9307_v13 }
 0x1af   : > { %v1288_v22 = vpop.f32.mrf.mxu2  ;;  %v2373_v14 = vsub.f32 %v9307_v13, %v13633_v39 }
 0x1b0   : > { %v1289_v47 = vadd.f32 %v1288_v22, %v1109_v38  ;;  %v1490_v27 = vpop.f32.mrf.mxu3 }
 0x1b1   : > { %v9310_v4 = vpop.f32.mrf.mxu0  ;;  %v2374_v7 = vand.u32 4294901760, %v2373_v14  ;;  %v9342_v14 = vand.u32 4294901760, %v688_v59 }
 0x1b2   : > { %v9312_v41 = vpop.f32.mrf.mxu1  ;;  %v9315_v1 = vadd.f32 %v1484_v63, %v1289_v47  ;;  %v1129_v40 = vadd.f32 %v9290_v46, %v9310_v4  ;;  %v684_v46 = vld [vmem:[%s13475_s2 + $0x18] sm:$0xff] }
 0x1b3   : > { %2375 = vmatpush.msra.mxu3 %v2374_v7  ;;  %2040 = vmatpush.msra.mxu2 %v9342_v14 }
 0x1b4   : > { %1372 = vmatmul.f32.gmra.mxu2 %v8421_v23  ;;  %1754 = vmatmul.f32.gmra.mxu0 %v8893_v16  ;;  %v14168_v16 = vld [vmem:[#allocation93_spill] sm:$0xff] }
 0x1b5   : > { %1591 = vmatmul.f32.gmra.mxu3 %v8471_v50  ;;  %1919 = vmatmul.f32.gmra.mxu1 %v8918_v10 }
 0x1b6   : > { %2763 = vmatpush.msra.mxu1 %v9342_v14 }
 0x1b7   : > { %v1293_v63 = vpop.f32.mrf.mxu2 }
 0x1b8   : > { %v1294_v38 = vadd.f32 %v1293_v63, %v1113_v24  ;;  %v1496_v22 = vpop.f32.mrf.mxu3  ;;  %v9346_v63 = vsub.f32 %v688_v59, %v9342_v14 }
 0x1b9   : > { %v9327_v47 = vpop.f32.mrf.mxu0 }
 0x1ba   : > { %v9329_v23 = vpop.f32.mrf.mxu1  ;;  %v9331_v12 = vadd.f32 %v1490_v27, %v1294_v38  ;;  %2567 = vmatpush.msra.mxu0 %v9346_v63  ;;  %v1133_v4 = vadd.f32 %v9312_v41, %v9327_v47  ;;  %v14158_v41 = vld [vmem:[#allocation38_spill] sm:$0xff] }
 0x1bc   : > { %1377 = vmatmul.f32.gmra.mxu2 %v8456_v62  ;;  %1758 = vmatmul.f32.gmra.mxu0 %v8918_v10 }
 0x1bd   : > { %1597 = vmatmul.f32.gmra.mxu3 %v8499_v60  ;;  %1923 = vmatmul.f32.gmra.mxu1 %v8956_v51  ;;  %v13638_v60 = vand.u32 4294901760, %v9346_v63 }
 0x1bf   : > { %v1298_v24 = vpop.f32.mrf.mxu2  ;;  %v2379_v19 = vsub.f32 %v9346_v63, %v13638_v60 }
 0x1c0   : > { %v1299_v27 = vadd.f32 %v1298_v24, %v1117_v32  ;;  %v1502_v7 = vpop.f32.mrf.mxu3 }
 0x1c1   : > { %v9349_v38 = vpop.f32.mrf.mxu0  ;;  %v2380_v59 = vand.u32 4294901760, %v2379_v19  ;;  %v9381_v19 = vand.u32 4294901760, %v686_v57 }
 0x1c2   : > { %v9351_v39 = vpop.f32.mrf.mxu1  ;;  %v9354_v62 = vadd.f32 %v1496_v22, %v1299_v27 }
 0x1c3   : > { %2381 = vmatpush.msra.mxu3 %v2380_v59  ;;  %2042 = vmatpush.msra.mxu2 %v9381_v19 }
 0x1c4   : > { %1382 = vmatmul.f32.gmra.mxu2 %v8486_v34  ;;  %1762 = vmatmul.f32.gmra.mxu0 %v8956_v51 }
 0x1c5   : > { %1603 = vmatmul.f32.gmra.mxu3 %v8517_v9  ;;  %1927 = vmatmul.f32.gmra.mxu1 %v8968_v28 }
 0x1c6   : > { %2765 = vmatpush.msra.mxu1 %v9381_v19 }
 0x1c7   : > { %v1303_v22 = vpop.f32.mrf.mxu2 }
 0x1c8   : > { %v1304_v32 = vadd.f32 %v1303_v22, %v1121_v61  ;;  %v1508_v24 = vpop.f32.mrf.mxu3  ;;  %v9385_v22 = vsub.f32 %v686_v57, %v9381_v19 }
 0x1c9   : > { %v9366_v27 = vpop.f32.mrf.mxu0 }
 0x1ca   : > { %v9368_v34 = vpop.f32.mrf.mxu1  ;;  %v9370_v50 = vadd.f32 %v1502_v7, %v1304_v32  ;;  %2570 = vmatpush.msra.mxu0 %v9385_v22 }
 0x1cc   : > { %1387 = vmatmul.f32.gmra.mxu2 %v8509_v8  ;;  %1766 = vmatmul.f32.gmra.mxu0 %v8968_v28  ;;  %v14161_v28 = vld [vmem:[#allocation43_spill] sm:$0xff] }
 0x1cd   : > { %1609 = vmatmul.f32.gmra.mxu3 %v8550_v18  ;;  %1931 = vmatmul.f32.gmra.mxu1 %v8995_v21  ;;  %v13643_v18 = vand.u32 4294901760, %v9385_v22 }
 0x1cf   : > { %v1308_v61 = vpop.f32.mrf.mxu2  ;;  %v2385_v30 = vsub.f32 %v9385_v22, %v13643_v18  ;;  %v14157_v18 = vld [vmem:[#allocation41_spill] sm:$0xff] }
 0x1d0   : > { %v1309_v7 = vadd.f32 %v1308_v61, %v1125_v5  ;;  %v1514_v59 = vpop.f32.mrf.mxu3 }
 0x1d1   : > { %v9388_v32 = vpop.f32.mrf.mxu0  ;;  %v2386_v57 = vand.u32 4294901760, %v2385_v30  ;;  %v9420_v30 = vand.u32 4294901760, %v684_v46 }
 0x1d2   : > { %v9390_v60 = vpop.f32.mrf.mxu1  ;;  %v9393_v8 = vadd.f32 %v1508_v24, %v1309_v7 }
 0x1d3   : > { %2387 = vmatpush.msra.mxu3 %v2386_v57  ;;  %2044 = vmatpush.msra.mxu2 %v9420_v30 }
 0x1d4   : > { %1392 = vmatmul.f32.gmra.mxu2 %v8536_v49  ;;  %1770 = vmatmul.f32.gmra.mxu0 %v8995_v21 }
 0x1d5   : > { %1615 = vmatmul.f32.gmra.mxu3 %v8571_v2  ;;  %1935 = vmatmul.f32.gmra.mxu1 %v9034_v0 }
 0x1d6   : > { %2767 = vmatpush.msra.mxu1 %v9420_v30 }
 0x1d7   : > { %v1313_v24 = vpop.f32.mrf.mxu2 }
 0x1d8   : > { %v1314_v5 = vadd.f32 %v1313_v24, %v1129_v40  ;;  %v1520_v61 = vpop.f32.mrf.mxu3  ;;  %v9424_v24 = vsub.f32 %v684_v46, %v9420_v30  ;;  %v14159_v46 = vld [vmem:[#allocation47_spill] sm:$0xff] }
 0x1d9   : > { %v9405_v7 = vpop.f32.mrf.mxu0 }
 0x1da   : > { %v9407_v49 = vpop.f32.mrf.mxu1  ;;  %v9409_v9 = vadd.f32 %v1514_v59, %v1314_v5  ;;  %2573 = vmatpush.msra.mxu0 %v9424_v24 }
 0x1dc   : > { %1397 = vmatmul.f32.gmra.mxu2 %v8561_v33  ;;  %1774 = vmatmul.f32.gmra.mxu0 %v9034_v0  ;;  %v13652_v33 = vand.u32 4294901760, %v9424_v24 }
 0x1dd   : > { %1621 = vmatmul.f32.gmra.mxu3 %v14157_v18  ;;  %1939 = vmatmul.f32.gmra.mxu1 %v9058_v52 }
 0x1de   : > { %v2391_v47 = vsub.f32 %v9424_v24, %v13652_v33 }
 0x1df   : > { %v1318_v40 = vpop.f32.mrf.mxu2 }
 0x1e0   : > { %v1319_v59 = vadd.f32 %v1318_v40, %v1133_v4  ;;  %v1526_v57 = vpop.f32.mrf.mxu3  ;;  %v1137_v4 = vadd.f32 %v9329_v23, %v9349_v38  ;;  %v2392_v40 = vand.u32 4294901760, %v2391_v47  ;;  %v14162_v38 = vld [vmem:[#allocation52_spill] sm:$0xff]  ;;  %v1141_v47 = vadd.f32 %v9351_v39, %v9366_v27  ;;  %v14165_v39 = vld [vmem:[#allocation79_spill] sm:$0xff] }
 0x1e1   : > { %v9427_v5 = vpop.f32.mrf.mxu0  ;;  %v14166_v27 = vand.u32 4294901760, %v14165_v39  ;;  %v14173_v39 = vld [vmem:[#allocation105_spill] sm:$0xff] }
 0x1e2   : > { %v9429_v18 = vpop.f32.mrf.mxu1  ;;  %v9432_v2 = vadd.f32 %v1520_v61, %v1319_v59  ;;  %2393 = vmatpush.msra.mxu3 %v2392_v40  ;;  %v14163_v40 = vld [vmem:[#allocation66_spill] sm:$0xff] }
 0x1e4   : > { %1402 = vmatmul.f32.gmra.mxu2 %v14158_v41  ;;  %1778 = vmatmul.f32.gmra.mxu0 %v9058_v52  ;;  %v682_v41 = vld [vmem:[%s13475_s2 + $0x8] sm:$0xff] }
 0x1e5   : > { %1627 = vmatmul.f32.gmra.mxu3 %v14159_v46  ;;  %1943 = vmatmul.f32.gmra.mxu1 %v9090_v15  ;;  %v9451_v33 = vand.u32 4294901760, %v682_v41 }
 0x1e7   : > { %v1323_v61 = vpop.f32.mrf.mxu2  ;;  %v9458_v23 = vsub.f32 %v682_v41, %v9451_v33  ;;  %2046 = vmatpush.msra.mxu2 %v9451_v33  ;;  %2769 = vmatpush.msra.mxu1 %v9451_v33 }
 0x1e8   : > { %v1324_v59 = vadd.f32 %v1323_v61, %v1137_v4  ;;  %v1532_v0 = vpop.f32.mrf.mxu3  ;;  %v14164_v61 = vand.u32 4294901760, %v14163_v40  ;;  %v14169_v40 = vand.u32 4294901760, %v14168_v16 }
 0x1e9   : > { %v9444_v21 = vpop.f32.mrf.mxu0  ;;  %v13663_v4 = vand.u32 4294901760, %v9458_v23  ;;  %2576 = vmatpush.msra.mxu0 %v9458_v23 }
 0x1ea   : > { %v9449_v52 = vpop.f32.mrf.mxu1  ;;  %v9453_v46 = vadd.f32 %v1526_v57, %v1324_v59  ;;  %2966 = vmatpush.msrb.mxu2 %v14164_v61  ;;  %v14170_v61 = vld [vmem:[#allocation49_spill] sm:$0xff] }
 0x1ec   : > { %14160 = vst [vmem:[#allocation151_spill] sm:$0xff] %v9453_v46  ;;  %1407 = vmatmul.f32.gmra.mxu2 %v14161_v28  ;;  %1782 = vmatmul.f32.gmra.mxu0 %v9090_v15 }
 0x1ed   : > { %1633 = vmatmul.f32.gmra.mxu3 %v14162_v38  ;;  %1947 = vmatmul.f32.gmra.mxu1 %v9113_v25  ;;  %v2397_v38 = vsub.f32 %v9458_v23, %v13663_v4  ;;  %v1145_v4 = vadd.f32 %v9368_v34, %v9388_v32  ;;  %v14179_v34 = vand.u32 4294901760, %v9065_v17  ;;  %v14186_v17 = vand.u32 4294901760, %v9124_v36 }
 0x1ee   : > { %2970 = vmatpush.msrb.mxu2 %v14166_v27  ;;  %v14174_v27 = vand.u32 4294901760, %v14173_v39  ;;  %v14184_v39 = vld [vmem:[#allocation2_spill] sm:$0xff] }
 0x1ef   : > { %v1328_v57 = vpop.f32.mrf.mxu2  ;;  %v2398_v51 = vand.u32 4294901760, %v2397_v38  ;;  %v14175_v38 = vld [vmem:[#allocation64_spill] sm:$0xff] }
 0x1f0   : > { %v1329_v41 = vadd.f32 %v1328_v57, %v1141_v47  ;;  %v1538_v59 = vpop.f32.mrf.mxu3  ;;  %2974 = vmatpush.msrb.mxu2 %v14169_v40  ;;  %v14171_v47 = vld [vmem:[#allocation56_spill] sm:$0xff]  ;;  %v14172_v57 = vld [vmem:[#allocation3_spill] sm:$0xff]  ;;  %v14176_v40 = vld [vmem:[#allocation118_spill] sm:$0xff] }
 0x1f1   : > { %v9473_v28 = vpop.f32.mrf.mxu0  ;;  %2399 = vmatpush.msra.mxu3 %v2398_v51  ;;  %v14180_v51 = vld [vmem:[#allocation89_spill] sm:$0xff] }
 0x1f2   : > { %v1888_v15 = vpop.f32.mrf.mxu1  ;;  %v9477_v10 = vadd.f32 %v1532_v0, %v1329_v41  ;;  %2978 = vmatpush.msrb.mxu2 %v14174_v27  ;;  %v14188_v27 = vand.u32 4294901760, %v9167_v44  ;;  %v14194_v44 = vld [vmem:[#allocation7_spill] sm:$0xff] }
 0x1f3   : > { %3157 = vmatpush.msrb.mxu3 %v14175_v38 }
 0x1f4   : > { %14167 = vst [vmem:[#allocation66_spill] sm:$0xff] %v9477_v10  ;;  %1412 = vmatmul.f32.gmra.mxu2 %v14170_v61  ;;  %1786 = vmatmul.f32.gmra.mxu0 %v9113_v25  ;;  %v14177_v61 = vand.u32 4294901760, %v14176_v40  ;;  %v14178_v10 = vld [vmem:[#allocation78_spill] sm:$0xff] }
 0x1f5   : > { %1639 = vmatmul.f32.gmra.mxu3 %v14171_v47  ;;  %1951 = vmatmul.f32.gmra.mxu1 %v14172_v57 }
 0x1f6   : > { %2982 = vmatpush.msrb.mxu2 %v14177_v61  ;;  %3159 = vmatpush.msrb.mxu3 %v14178_v10  ;;  %v14183_v61 = vld [vmem:[#allocation59_spill] sm:$0xff]  ;;  %v1149_v10 = vadd.f32 %v9390_v60, %v9405_v7  ;;  %v14189_v60 = vld [vmem:[#allocation125_spill] sm:$0xff]  ;;  %v14190_v7 = vand.u32 4294901760, %v9198_v3 }
 0x1f7   : > { %v1333_v0 = vpop.f32.mrf.mxu2 }
 0x1f8   : > { %v1334_v16 = vadd.f32 %v1333_v0, %v1145_v4  ;;  %v1544_v41 = vpop.f32.mrf.mxu3  ;;  %2986 = vmatpush.msrb.mxu2 %v14179_v34  ;;  %3161 = vmatpush.msrb.mxu3 %v14180_v51  ;;  %v14182_v4 = vld [vmem:[#allocation53_spill] sm:$0xff] }
 0x1f9   : > { %v1727_v25 = vpop.f32.mrf.mxu0  ;;  %v14192_v34 = vld [vmem:[#allocation57_spill] sm:$0xff] }
 0x1fa   : > { %v1728_v47 = vadd.f32 %v1727_v25, %v9276_v55  ;;  %v1892_v56 = vpop.f32.mrf.mxu1  ;;  %v9494_v46 = vadd.f32 %v1538_v59, %v1334_v16  ;;  %v14185_v25 = vld [vmem:[#allocation101_spill] sm:$0xff]  ;;  %2990 = vmatpush.msrb.mxu2 %v14186_v17 }
 0x1fb   : > { %3163 = vmatpush.msrb.mxu3 %v14185_v25  ;;  %v14193_v51 = vld [vmem:[#allocation65_spill] sm:$0xff]  ;;  %v14196_v25 = vand.u32 4294901760, %v9268_v45  ;;  %v14201_v45 = vld [vmem:[#allocation11_spill] sm:$0xff] }
 0x1fc   : > { %v9499_v32 = vadd.f32 %v1888_v15, %v1728_v47  ;;  %1417 = vmatmul.f32.gmra.mxu2 %v14182_v4  ;;  %1790 = vmatmul.f32.gmra.mxu0 %v14172_v57  ;;  %v14187_v47 = vld [vmem:[#allocation113_spill] sm:$0xff] }
 0x1fd   : > { %1645 = vmatmul.f32.gmra.mxu3 %v14183_v61  ;;  %1955 = vmatmul.f32.gmra.mxu1 %v14184_v39 }
 0x1fe   : > { %14181 = vst [vmem:[#allocation79_spill] sm:$0xff] %v9499_v32  ;;  %3165 = vmatpush.msrb.mxu3 %v14187_v47  ;;  %2994 = vmatpush.msrb.mxu2 %v14188_v27  ;;  %v14203_v27 = vand.u32 4294901760, %v9385_v22  ;;  %v14271_v32 = vld [vmem:[#allocation147_spill] sm:$0xff] }
 0x1ff   : > { %v1338_v55 = vpop.f32.mrf.mxu2 }
 0x200   : > { %v1339_v59 = vadd.f32 %v1338_v55, %v1149_v10  ;;  %v1550_v15 = vpop.f32.mrf.mxu3  ;;  %3167 = vmatpush.msrb.mxu3 %v14189_v60  ;;  %2998 = vmatpush.msrb.mxu2 %v14190_v7 }
 0x201   : > { %v1731_v0 = vpop.f32.mrf.mxu0 }
 0x202   : > { %v1732_v38 = vadd.f32 %v1731_v0, %v9292_v42  ;;  %v1896_v16 = vpop.f32.mrf.mxu1  ;;  %v9514_v40 = vadd.f32 %v1544_v41, %v1339_v59  ;;  %v1153_v42 = vadd.f32 %v9407_v49, %v9427_v5  ;;  %3169 = vmatpush.msrb.mxu3 %v9111_v11  ;;  %v14195_v41 = vand.u32 4294901760, %v9233_v37  ;;  %v14199_v11 = vld [vmem:[#allocation61_spill] sm:$0xff] }
 0x203   : > { %v14197_v49 = vand.u32 4294901760, %v9307_v13 }
 0x204   : > { %v9519_v36 = vadd.f32 %v1892_v56, %v1732_v38  ;;  %1422 = vmatmul.f32.gmra.mxu2 %v14192_v34  ;;  %1794 = vmatmul.f32.gmra.mxu0 %v14184_v39 }
 0x205   : > { %1651 = vmatmul.f32.gmra.mxu3 %v14193_v51  ;;  %1959 = vmatmul.f32.gmra.mxu1 %v14194_v44 }
 0x206   : > { %14191 = vst [vmem:[#allocation93_spill] sm:$0xff] %v9519_v36  ;;  %3002 = vmatpush.msrb.mxu2 %v14195_v41  ;;  %3171 = vmatpush.msrb.mxu3 %v9159_v53  ;;  %v14200_v53 = vld [vmem:[#allocation75_spill] sm:$0xff] }
 0x207   : > { %v1343_v3 = vpop.f32.mrf.mxu2 }
 0x208   : > { %v1344_v10 = vadd.f32 %v1343_v3, %v1153_v42  ;;  %v1556_v56 = vpop.f32.mrf.mxu3  ;;  %3006 = vmatpush.msrb.mxu2 %v14196_v25  ;;  %3173 = vmatpush.msrb.mxu3 %v9192_v26  ;;  %v14202_v26 = vand.u32 4294901760, %v9346_v63 }
 0x209   : > { %v1735_v17 = vpop.f32.mrf.mxu0 }
 0x20a   : > { %v1736_v55 = vadd.f32 %v1735_v17, %v9315_v1  ;;  %v1900_v59 = vpop.f32.mrf.mxu1  ;;  %v9534_v47 = vadd.f32 %v1550_v15, %v1344_v10  ;;  %3010 = vmatpush.msrb.mxu2 %v14197_v49  ;;  %v1157_v1 = vadd.f32 %v9429_v18, %v9444_v21  ;;  %3175 = vmatpush.msrb.mxu3 %v9227_v43  ;;  %v14204_v18 = vand.u32 4294901760, %v9424_v24  ;;  %v14206_v43 = vld [vmem:[#allocation71_spill] sm:$0xff] }
 0x20b   : > { %v14215_v49 = vld [vmem:[#allocation23_spill] sm:$0xff] }
 0x20c   : > { %v9539_v37 = vadd.f32 %v1896_v16, %v1736_v55  ;;  %1427 = vmatmul.f32.gmra.mxu2 %v14199_v11  ;;  %1798 = vmatmul.f32.gmra.mxu0 %v14194_v44 }
 0x20d   : > { %1657 = vmatmul.f32.gmra.mxu3 %v14200_v53  ;;  %1963 = vmatmul.f32.gmra.mxu1 %v14201_v45 }
 0x20e   : > { %14198 = vst [vmem:[#allocation3_spill] sm:$0xff] %v9539_v37  ;;  %3014 = vmatpush.msrb.mxu2 %v14202_v26  ;;  %3177 = vmatpush.msrb.mxu3 %v9264_v58  ;;  %v14207_v58 = vld [vmem:[#allocation15_spill] sm:$0xff]  ;;  %v14265_v37 = vld [vmem:[#allocation146_spill] sm:$0xff] }
 0x20f   : > { %v1348_v13 = vpop.f32.mrf.mxu2 }
 0x210   : > { %v1349_v5 = vadd.f32 %v1348_v13, %v1157_v1  ;;  %v1562_v15 = vpop.f32.mrf.mxu3  ;;  %3018 = vmatpush.msrb.mxu2 %v14203_v27  ;;  %3179 = vmatpush.msrb.mxu3 %v9303_v48  ;;  %v14208_v48 = vand.u32 4294901760, %v9458_v23  ;;  %v14216_v1 = vld [vmem:[#allocation96_spill] sm:$0xff] }
 0x211   : > { %v1739_v0 = vpop.f32.mrf.mxu0 }
 0x212   : > { %v1740_v38 = vadd.f32 %v1739_v0, %v9331_v12  ;;  %v1904_v16 = vpop.f32.mrf.mxu1  ;;  %v9554_v60 = vadd.f32 %v1556_v56, %v1349_v5  ;;  %3022 = vmatpush.msrb.mxu2 %v14204_v18  ;;  %v1161_v12 = vadd.f32 %v9449_v52, %v9473_v28  ;;  %3181 = vmatpush.msrb.mxu3 %v9342_v14  ;;  %v14210_v28 = vld [vmem:[#allocation48_spill] sm:$0xff]  ;;  %v14211_v52 = vld [vmem:[#allocation19_spill] sm:$0xff] }
 0x214   : > { %v9559_v21 = vadd.f32 %v1900_v59, %v1740_v38  ;;  %1432 = vmatmul.f32.gmra.mxu2 %v14206_v43  ;;  %1802 = vmatmul.f32.gmra.mxu0 %v14201_v45  ;;  %v14214_v59 = vld [vmem:[#allocation69_spill] sm:$0xff]  ;;  %v14218_v38 = vld [vmem:[#allocation74_spill] sm:$0xff] }
 0x215   : > { %1967 = vmatmul.f32.gmra.mxu1 %v14207_v58  ;;  %2401 = vmatmul.f32.vlgmr.msra.gmra.mxu3 %v8606_v20 }
 0x216   : > { %14205 = vst [vmem:[#allocation105_spill] sm:$0xff] %v9559_v21  ;;  %3026 = vmatpush.msrb.mxu2 %v14208_v48  ;;  %3183 = vmatpush.msrb.mxu3 %v9381_v19  ;;  %v14212_v19 = vld [vmem:[#allocation91_spill] sm:$0xff] }
 0x217   : > { %v1353_v63 = vpop.f32.mrf.mxu2 }
 0x218   : > { %v1354_v22 = vadd.f32 %v1353_v63, %v1161_v12  ;;  %v1568_v24 = vpop.f32.mrf.mxu3  ;;  %3185 = vmatpush.msrb.mxu3 %v9420_v30  ;;  %v14220_v12 = vld [vmem:[#allocation102_spill] sm:$0xff] }
 0x219   : > { %v1743_v7 = vpop.f32.mrf.mxu0 }
 0x21a   : > { %v1744_v42 = vadd.f32 %v1743_v7, %v9354_v62  ;;  %v1908_v41 = vpop.f32.mrf.mxu1  ;;  %v9572_v3 = vadd.f32 %v1562_v15, %v1354_v22  ;;  %3187 = vmatpush.msrb.mxu3 %v9451_v33 }
 0x21c   : > { %v9575_v10 = vadd.f32 %v1904_v16, %v1744_v42  ;;  %1806 = vmatmul.f32.gmra.mxu0 %v14207_v58  ;;  %2052 = vmatmul.f32.vlgmr.msra.gmra.mxu2 %v14210_v28  ;;  %v14219_v16 = vld [vmem:[#allocation28_spill] sm:$0xff]  ;;  %v14223_v28 = vld [vmem:[#allocation31_spill] sm:$0xff] }
 0x21d   : > { %1971 = vmatmul.f32.gmra.mxu1 %v14211_v52  ;;  %2405 = vmatmul.f32.gmra.mxu3 %v8701_v54 }
 0x21e   : > { %14209 = vst [vmem:[#allocation64_spill] sm:$0xff] %v9575_v10  ;;  %v14260_v10 = vld [vmem:[#allocation144_spill] sm:$0xff] }
 0x21f   : > { %v1358_v14 = vpop.f32.mrf.mxu2 }
 0x220   : > { %v1359_v62 = vadd.f32 %v1358_v14, %v14212_v19  ;;  %v1574_v23 = vpop.f32.mrf.mxu3  ;;  %v14224_v19 = vld [vmem:[#allocation109_spill] sm:$0xff] }
 0x221   : > { %v1747_v56 = vpop.f32.mrf.mxu0 }
 0x222   : > { %v1748_v25 = vadd.f32 %v1747_v56, %v9370_v50  ;;  %v1912_v30 = vpop.f32.mrf.mxu1  ;;  %v9584_v17 = vadd.f32 %v1568_v24, %v1359_v62 }
 0x224   : > { %v9586_v55 = vadd.f32 %v1908_v41, %v1748_v25  ;;  %1810 = vmatmul.f32.gmra.mxu0 %v14211_v52  ;;  %2060 = vmatmul.f32.gmra.mxu2 %v14214_v59  ;;  %v14222_v41 = vld [vmem:[#allocation80_spill] sm:$0xff] }
 0x225   : > { %1975 = vmatmul.f32.gmra.mxu1 %v14215_v49  ;;  %2409 = vmatmul.f32.gmra.mxu3 %v8746_v6 }
 0x226   : > { %14213 = vst [vmem:[#allocation118_spill] sm:$0xff] %v9586_v55 }
 0x227   : > { %v1363_v33 = vpop.f32.mrf.mxu2 }
 0x228   : > { %v1364_v26 = vadd.f32 %v1363_v33, %v14216_v1  ;;  %v1580_v13 = vpop.f32.mrf.mxu3  ;;  %v14226_v33 = vld [vmem:[#allocation86_spill] sm:$0xff]  ;;  %v14227_v1 = vld [vmem:[#allocation36_spill] sm:$0xff] }
 0x229   : > { %v1751_v5 = vpop.f32.mrf.mxu0 }
 0x22a   : > { %v1752_v50 = vadd.f32 %v1751_v5, %v9393_v8  ;;  %v1916_v15 = vpop.f32.mrf.mxu1  ;;  %v9594_v27 = vadd.f32 %v1574_v23, %v1364_v26 }
 0x22c   : > { %v9596_v0 = vadd.f32 %v1912_v30, %v1752_v50  ;;  %1814 = vmatmul.f32.gmra.mxu0 %v14215_v49  ;;  %2068 = vmatmul.f32.gmra.mxu2 %v14218_v38  ;;  %v14229_v38 = vld [vmem:[#allocation151_spill] sm:$0xff] }
 0x22d   : > { %1979 = vmatmul.f32.gmra.mxu1 %v14219_v16  ;;  %2413 = vmatmul.f32.gmra.mxu3 %v8784_v35 }
 0x22e   : > { %14217 = vst [vmem:[#allocation78_spill] sm:$0xff] %v9596_v0  ;;  %v14255_v0 = vld [vmem:[#allocation141_spill] sm:$0xff] }
 0x22f   : > { %v1368_v18 = vpop.f32.mrf.mxu2 }
 0x230   : > { %v1369_v48 = vadd.f32 %v1368_v18, %v14220_v12  ;;  %v1586_v63 = vpop.f32.mrf.mxu3 }
 0x231   : > { %v1755_v22 = vpop.f32.mrf.mxu0 }
 0x232   : > { %v1756_v8 = vadd.f32 %v1755_v22, %v9409_v9  ;;  %v1920_v24 = vpop.f32.mrf.mxu1  ;;  %v9604_v7 = vadd.f32 %v1580_v13, %v1369_v48  ;;  %v14228_v13 = vld [vmem:[#allocation115_spill] sm:$0xff]  ;;  %v14232_v22 = vld [vmem:[#allocation40_spill] sm:$0xff] }
 0x234   : > { %v9606_v42 = vadd.f32 %v1916_v15, %v1756_v8  ;;  %1818 = vmatmul.f32.gmra.mxu0 %v14219_v16  ;;  %2076 = vmatmul.f32.gmra.mxu2 %v14222_v41  ;;  %v14233_v8 = vld [vmem:[#allocation87_spill] sm:$0xff]  ;;  %v14234_v41 = vld [vmem:[#allocation121_spill] sm:$0xff] }
 0x235   : > { %1983 = vmatmul.f32.gmra.mxu1 %v14223_v28  ;;  %2417 = vmatmul.f32.gmra.mxu3 %v8822_v31 }
 0x236   : > { %14221 = vst [vmem:[#allocation89_spill] sm:$0xff] %v9606_v42 }
 0x237   : > { %v1373_v14 = vpop.f32.mrf.mxu2 }
 0x238   : > { %v1374_v62 = vadd.f32 %v1373_v14, %v14224_v19  ;;  %v1592_v23 = vpop.f32.mrf.mxu3 }
 0x239   : > { %v1759_v56 = vpop.f32.mrf.mxu0 }
 0x23a   : > { %v1760_v9 = vadd.f32 %v1759_v56, %v9432_v2  ;;  %v1924_v25 = vpop.f32.mrf.mxu1  ;;  %v9614_v30 = vadd.f32 %v1586_v63, %v1374_v62  ;;  %v14231_v63 = vld [vmem:[#allocation90_spill] sm:$0xff] }
 0x23b   : > { %v14235_v56 = vld [vmem:[#allocation66_spill] sm:$0xff] }
 0x23c   : > { %v9616_v59 = vadd.f32 %v1920_v24, %v1760_v9  ;;  %1822 = vmatmul.f32.gmra.mxu0 %v14223_v28  ;;  %2084 = vmatmul.f32.gmra.mxu2 %v14226_v33 }
 0x23d   : > { %1987 = vmatmul.f32.gmra.mxu1 %v14227_v1  ;;  %2421 = vmatmul.f32.gmra.mxu3 %v8813_v29 }
 0x23e   : > { %14225 = vst [vmem:[#allocation53_spill] sm:$0xff] %v9616_v59  ;;  %v14250_v59 = vld [vmem:[#allocation137_spill] sm:$0xff] }
 0x23f   : > { %v1378_v26 = vpop.f32.mrf.mxu2 }
 0x240   : > { %v1379_v5 = vadd.f32 %v1378_v26, %v14228_v13  ;;  %v1598_v50 = vpop.f32.mrf.mxu3  ;;  %v14237_v26 = vld [vmem:[#allocation97_spill] sm:$0xff] }
 0x241   : > { %v1763_v15 = vpop.f32.mrf.mxu0  ;;  %v14238_v13 = vld [vmem:[#allocation45_spill] sm:$0xff] }
 0x242   : > { %v1764_v2 = vadd.f32 %v1763_v15, %v14229_v38  ;;  %v1928_v18 = vpop.f32.mrf.mxu1  ;;  %v9624_v12 = vadd.f32 %v1592_v23, %v1379_v5  ;;  %v14239_v5 = vld [vmem:[#allocation94_spill] sm:$0xff]  ;;  %v14240_v38 = vld [vmem:[#allocation127_spill] sm:$0xff] }
 0x244   : > { %v9626_v48 = vadd.f32 %v1924_v25, %v1764_v2  ;;  %1826 = vmatmul.f32.gmra.mxu0 %v14227_v1  ;;  %2092 = vmatmul.f32.gmra.mxu2 %v14231_v63 }
 0x245   : > { %1991 = vmatmul.f32.gmra.mxu1 %v14232_v22  ;;  %2425 = vmatmul.f32.gmra.mxu3 %v14233_v8 }
 0x246   : > { %14230 = vst [vmem:[#allocation59_spill] sm:$0xff] %v9626_v48 }
 0x247   : > { %v1383_v24 = vpop.f32.mrf.mxu2 }
 0x248   : > { %v1384_v14 = vadd.f32 %v1383_v24, %v14234_v41  ;;  %v1604_v19 = vpop.f32.mrf.mxu3 }
 0x249   : > { %v1767_v62 = vpop.f32.mrf.mxu0 }
 0x24a   : > { %v1768_v9 = vadd.f32 %v1767_v62, %v14235_v56  ;;  %v1932_v33 = vpop.f32.mrf.mxu1  ;;  %v9634_v23 = vadd.f32 %v1598_v50, %v1384_v14  ;;  %v14242_v14 = vld [vmem:[#allocation103_spill] sm:$0xff]  ;;  %v14243_v56 = vld [vmem:[#allocation50_spill] sm:$0xff] }
 0x24c   : > { %v9636_v25 = vadd.f32 %v1928_v18, %v1768_v9  ;;  %1830 = vmatmul.f32.gmra.mxu0 %v14232_v22  ;;  %2100 = vmatmul.f32.gmra.mxu2 %v14237_v26  ;;  %v14244_v9 = vld [vmem:[#allocation99_spill] sm:$0xff] }
 0x24d   : > { %1995 = vmatmul.f32.gmra.mxu1 %v14238_v13  ;;  %2429 = vmatmul.f32.gmra.mxu3 %v14239_v5 }
 0x24e   : > { %14236 = vst [vmem:[#allocation101_spill] sm:$0xff] %v9636_v25  ;;  %v14245_v25 = vld [vmem:[#allocation131_spill] sm:$0xff] }
 0x24f   : > { %v1388_v15 = vpop.f32.mrf.mxu2 }
 0x250   : > { %v1389_v2 = vadd.f32 %v1388_v15, %v14240_v38  ;;  %v1610_v63 = vpop.f32.mrf.mxu3 }
 0x251   : > { %v1771_v24 = vpop.f32.mrf.mxu0 }
 0x252   : > { %v1772_v41 = vadd.f32 %v1771_v24, %v9494_v46  ;;  %v1936_v62 = vpop.f32.mrf.mxu1  ;;  %v9644_v50 = vadd.f32 %v1604_v19, %v1389_v2  ;;  %v14247_v2 = vld [vmem:[#allocation110_spill] sm:$0xff] }
 0x254   : > { %v9646_v18 = vadd.f32 %v1932_v33, %v1772_v41  ;;  %1834 = vmatmul.f32.gmra.mxu0 %v14238_v13  ;;  %2108 = vmatmul.f32.gmra.mxu2 %v14242_v14  ;;  %v14248_v41 = vld [vmem:[#allocation54_spill] sm:$0xff] }
 0x255   : > { %1999 = vmatmul.f32.gmra.mxu1 %v14243_v56  ;;  %2433 = vmatmul.f32.gmra.mxu3 %v14244_v9  ;;  %v14249_v14 = vld [vmem:[#allocation106_spill] sm:$0xff] }
 0x256   : > { %14241 = vst [vmem:[#allocation113_spill] sm:$0xff] %v9646_v18 }
 0x257   : > { %v1393_v26 = vpop.f32.mrf.mxu2 }
 0x258   : > { %v1394_v15 = vadd.f32 %v1393_v26, %v14245_v25  ;;  %v1616_v38 = vpop.f32.mrf.mxu3 }
 0x259   : > { %v1775_v48 = vpop.f32.mrf.mxu0 }
 0x25a   : > { %v1776_v46 = vadd.f32 %v1775_v48, %v9514_v40  ;;  %v1940_v24 = vpop.f32.mrf.mxu1  ;;  %v9654_v19 = vadd.f32 %v1610_v63, %v1394_v15  ;;  %v14252_v15 = vld [vmem:[#allocation116_spill] sm:$0xff] }
 0x25c   : > { %v9656_v33 = vadd.f32 %v1936_v62, %v1776_v46  ;;  %1838 = vmatmul.f32.gmra.mxu0 %v14243_v56  ;;  %2116 = vmatmul.f32.gmra.mxu2 %v14247_v2  ;;  %v14253_v46 = vld [vmem:[#allocation58_spill] sm:$0xff]  ;;  %v14254_v2 = vld [vmem:[#allocation108_spill] sm:$0xff] }
 0x25d   : > { %2003 = vmatmul.f32.gmra.mxu1 %v14248_v41  ;;  %2437 = vmatmul.f32.gmra.mxu3 %v14249_v14 }
 0x25e   : > { %14246 = vst [vmem:[#allocation125_spill] sm:$0xff] %v9656_v33 }
 0x25f   : > { %v1398_v18 = vpop.f32.mrf.mxu2 }
 0x260   : > { %v1399_v25 = vadd.f32 %v1398_v18, %v14250_v59  ;;  %v1622_v26 = vpop.f32.mrf.mxu3 }
 0x261   : > { %v1779_v42 = vpop.f32.mrf.mxu0 }
 0x262   : > { %v1780_v40 = vadd.f32 %v1779_v42, %v9534_v47  ;;  %v1944_v48 = vpop.f32.mrf.mxu1  ;;  %v9664_v63 = vadd.f32 %v1616_v38, %v1399_v25  ;;  %v14257_v25 = vld [vmem:[#allocation122_spill] sm:$0xff] }
 0x264   : > { %v9666_v62 = vadd.f32 %v1940_v24, %v1780_v40  ;;  %1842 = vmatmul.f32.gmra.mxu0 %v14248_v41  ;;  %2124 = vmatmul.f32.gmra.mxu2 %v14252_v15  ;;  %v14258_v40 = vld [vmem:[#allocation68_spill] sm:$0xff]  ;;  %v14259_v15 = vld [vmem:[#allocation114_spill] sm:$0xff] }
 0x265   : > { %2007 = vmatmul.f32.gmra.mxu1 %v14253_v46  ;;  %2441 = vmatmul.f32.gmra.mxu3 %v14254_v2 }
 0x266   : > { %14251 = vst [vmem:[#allocation57_spill] sm:$0xff] %v9666_v62 }
 0x267   : > { %v1403_v33 = vpop.f32.mrf.mxu2 }
 0x268   : > { %v1404_v59 = vadd.f32 %v1403_v33, %v14255_v0  ;;  %v1628_v18 = vpop.f32.mrf.mxu3 }
 0x269   : > { %v1783_v55 = vpop.f32.mrf.mxu0 }
 0x26a   : > { %v1784_v47 = vadd.f32 %v1783_v55, %v9554_v60  ;;  %v1948_v42 = vpop.f32.mrf.mxu1  ;;  %v9674_v38 = vadd.f32 %v1622_v26, %v1404_v59  ;;  %v14262_v59 = vld [vmem:[#allocation126_spill] sm:$0xff] }
 0x26c   : > { %v9676_v24 = vadd.f32 %v1944_v48, %v1784_v47  ;;  %1846 = vmatmul.f32.gmra.mxu0 %v14253_v46  ;;  %2132 = vmatmul.f32.gmra.mxu2 %v14257_v25  ;;  %v14263_v47 = vld [vmem:[#allocation123_spill] sm:$0xff]  ;;  %v14264_v25 = vld [vmem:[#allocation44_spill] sm:$0xff] }
 0x26d   : > { %2011 = vmatmul.f32.gmra.mxu1 %v14258_v40  ;;  %2445 = vmatmul.f32.gmra.mxu3 %v14259_v15 }
 0x26e   : > { %14256 = vst [vmem:[#allocation65_spill] sm:$0xff] %v9676_v24 }
 0x26f   : > { %v1408_v62 = vpop.f32.mrf.mxu2 }
 0x270   : > { %v1409_v0 = vadd.f32 %v1408_v62, %v14260_v10  ;;  %v1634_v33 = vpop.f32.mrf.mxu3 }
 0x271   : > { %v1787_v21 = vpop.f32.mrf.mxu0 }
 0x272   : > { %v1788_v60 = vadd.f32 %v1787_v21, %v9572_v3  ;;  %v1952_v55 = vpop.f32.mrf.mxu1  ;;  %v9684_v26 = vadd.f32 %v1628_v18, %v1409_v0  ;;  %v14267_v0 = vld [vmem:[#allocation132_spill] sm:$0xff] }
 0x274   : > { %v9686_v48 = vadd.f32 %v1948_v42, %v1788_v60  ;;  %1850 = vmatmul.f32.gmra.mxu0 %v14258_v40  ;;  %2140 = vmatmul.f32.gmra.mxu2 %v14262_v59  ;;  %v14268_v60 = vld [vmem:[#allocation42_spill] sm:$0xff]  ;;  %v14269_v59 = vld [vmem:[#allocation128_spill] sm:$0xff] }
 0x275   : > { %2449 = vmatmul.f32.gmra.mxu3 %v14263_v47  ;;  %2773 = vmatmul.f32.vlgmr.msra.gmra.mxu1 %v14264_v25 }
 0x276   : > { %14261 = vst [vmem:[#allocation61_spill] sm:$0xff] %v9686_v48  ;;  %v14270_v48 = vld [vmem:[#allocation63_spill] sm:$0xff] }
 0x277   : > { %v1413_v24 = vpop.f32.mrf.mxu2 }
 0x278   : > { %v1414_v10 = vadd.f32 %v1413_v24, %v14265_v37  ;;  %v1640_v62 = vpop.f32.mrf.mxu3 }
 0x279   : > { %v1791_v36 = vpop.f32.mrf.mxu0 }
 0x27a   : > { %v1792_v21 = vadd.f32 %v1791_v36, %v9584_v17  ;;  %v1956_v3 = vpop.f32.mrf.mxu1  ;;  %v9694_v18 = vadd.f32 %v1634_v33, %v1414_v10  ;;  %v14273_v10 = vld [vmem:[#allocation138_spill] sm:$0xff] }
 0x27c   : > { %v9696_v42 = vadd.f32 %v1952_v55, %v1792_v21  ;;  %2148 = vmatmul.f32.gmra.mxu2 %v14267_v0  ;;  %2579 = vmatmul.f32.vlgmr.msra.gmra.mxu0 %v14268_v60  ;;  %v14274_v21 = vld [vmem:[#allocation62_spill] sm:$0xff]  ;;  %v14275_v0 = vld [vmem:[#allocation133_spill] sm:$0xff]  ;;  %v14276_v60 = vld [vmem:[#allocation72_spill] sm:$0xff] }
 0x27d   : > { %2453 = vmatmul.f32.gmra.mxu3 %v14269_v59  ;;  %2779 = vmatmul.f32.gmra.mxu1 %v14270_v48 }
 0x27e   : > { %14266 = vst [vmem:[#allocation75_spill] sm:$0xff] %v9696_v42  ;;  %v14277_v42 = vld [vmem:[#allocation148_spill] sm:$0xff] }
 0x27f   : > { %v1418_v25 = vpop.f32.mrf.mxu2 }
 0x280   : > { %v1419_v37 = vadd.f32 %v1418_v25, %v14271_v32  ;;  %v1646_v24 = vpop.f32.mrf.mxu3 }
 0x281   : > { %v1795_v47 = vpop.f32.mrf.mxu0 }
 0x282   : > { %v1796_v36 = vadd.f32 %v1795_v47, %v9594_v27  ;;  %v1960_v17 = vpop.f32.mrf.mxu1  ;;  %v9704_v33 = vadd.f32 %v1640_v62, %v1419_v37  ;;  %v14279_v37 = vld [vmem:[#allocation142_spill] sm:$0xff] }
 0x284   : > { %v9706_v55 = vadd.f32 %v1956_v3, %v1796_v36  ;;  %2156 = vmatmul.f32.gmra.mxu2 %v14273_v10  ;;  %2584 = vmatmul.f32.gmra.mxu0 %v14274_v21  ;;  %v14280_v36 = vld [vmem:[#allocation70_spill] sm:$0xff]  ;;  %v14281_v10 = vld [vmem:[#allocation136_spill] sm:$0xff]  ;;  %v14282_v21 = vld [vmem:[#allocation77_spill] sm:$0xff] }
 0x285   : > { %2457 = vmatmul.f32.gmra.mxu3 %v14275_v0  ;;  %2785 = vmatmul.f32.gmra.mxu1 %v14276_v60 }
 0x286   : > { %14272 = vst [vmem:[#allocation71_spill] sm:$0xff] %v9706_v55  ;;  %v14283_v55 = vld [vmem:[#allocation149_spill] sm:$0xff] }
 0x287   : > { %v1423_v48 = vpop.f32.mrf.mxu2 }
 0x288   : > { %v1424_v32 = vadd.f32 %v1423_v48, %v14277_v42  ;;  %v1652_v25 = vpop.f32.mrf.mxu3 }
 0x289   : > { %v1799_v59 = vpop.f32.mrf.mxu0 }
 0x28a   : > { %v1800_v27 = vadd.f32 %v1799_v59, %v9604_v7  ;;  %v1964_v47 = vpop.f32.mrf.mxu1  ;;  %v9714_v62 = vadd.f32 %v1646_v24, %v1424_v32  ;;  %v14285_v32 = vld [vmem:[#allocation145_spill] sm:$0xff] }
 0x28c   : > { %v9716_v3 = vadd.f32 %v1960_v17, %v1800_v27  ;;  %2164 = vmatmul.f32.gmra.mxu2 %v14279_v37  ;;  %2589 = vmatmul.f32.gmra.mxu0 %v14280_v36  ;;  %v14286_v27 = vld [vmem:[#allocation76_spill] sm:$0xff] }
 0x28d   : > { %2461 = vmatmul.f32.gmra.mxu3 %v14281_v10  ;;  %2791 = vmatmul.f32.gmra.mxu1 %v14282_v21  ;;  %v14287_v37 = vld [vmem:[#allocation84_spill] sm:$0xff] }
 0x28e   : > { %14278 = vst [vmem:[#allocation48_spill] sm:$0xff] %v9716_v3  ;;  %v14295_v3 = vld [vmem:[#allocation82_spill] sm:$0xff] }
 0x28f   : > { %v1428_v60 = vpop.f32.mrf.mxu2 }
 0x290   : > { %v1429_v42 = vadd.f32 %v1428_v60, %v14283_v55  ;;  %v1658_v48 = vpop.f32.mrf.mxu3  ;;  %v7795_v55 = vld [vmem:[%s13475_s2 + $0x1f0] sm:$0xff] }
 0x291   : > { %v1803_v0 = vpop.f32.mrf.mxu0  ;;  %v9735_v36 = vand.u32 4294901760, %v7795_v55 }
 0x292   : > { %v1804_v7 = vadd.f32 %v1803_v0, %v9614_v30  ;;  %v1968_v59 = vpop.f32.mrf.mxu1  ;;  %v9724_v24 = vadd.f32 %v1652_v25, %v1429_v42  ;;  %v14288_v0 = vld [vmem:[#allocation150_spill] sm:$0xff] }
 0x293   : > { %3548 = vmatpush.msrb.mxu0 %v9735_v36  ;;  %4271 = vmatpush.msra.mxu3 %v9735_v36 }
 0x294   : > { %v9726_v17 = vadd.f32 %v1964_v47, %v1804_v7  ;;  %2172 = vmatmul.f32.gmra.mxu2 %v14285_v32  ;;  %2594 = vmatmul.f32.gmra.mxu0 %v14286_v27  ;;  %v9740_v47 = vsub.f32 %v7795_v55, %v9735_v36 }
 0x295   : > { %2465 = vmatmul.f32.gmra.mxu3 %v14172_v57  ;;  %2797 = vmatmul.f32.gmra.mxu1 %v14287_v37 }
 0x296   : > { %14284 = vst [vmem:[#allocation91_spill] sm:$0xff] %v9726_v17  ;;  %v13668_v32 = vand.u32 4294901760, %v9740_v47  ;;  %4063 = vmatpush.msra.mxu2 %v9740_v47 }
 0x297   : > { %v1433_v30 = vpop.f32.mrf.mxu2 }
 0x298   : > { %v1434_v25 = vadd.f32 %v1433_v30, %v14288_v0  ;;  %v2402_v21 = vpop.f32.mrf.mxu3  ;;  %v14290_v30 = vld [vmem:[#allocation8_spill] sm:$0xff]  ;;  %v14291_v0 = vld [vmem:[#allocation83_spill] sm:$0xff]  ;;  %v3839_v55 = vsub.f32 %v9740_v47, %v13668_v32 }
 0x299   : > { %v1807_v60 = vpop.f32.mrf.mxu0  ;;  %v14296_v32 = vld [vmem:[#allocation92_spill] sm:$0xff] }
 0x29a   : > { %v1808_v42 = vadd.f32 %v1807_v60, %v9624_v12  ;;  %v1972_v7 = vpop.f32.mrf.mxu1  ;;  %v9745_v27 = vadd.f32 %v1658_v48, %v1434_v25  ;;  %v14292_v12 = vld [vmem:[#allocation85_spill] sm:$0xff]  ;;  %v3840_v60 = vand.u32 4294901760, %v3839_v55 }
 0x29c   : > { %v9748_v37 = vadd.f32 %v1968_v59, %v1808_v42  ;;  %2180 = vmatmul.f32.gmra.mxu2 %v14290_v30  ;;  %2599 = vmatmul.f32.gmra.mxu0 %v14291_v0  ;;  %v14294_v0 = vld [vmem:[#allocation12_spill] sm:$0xff] }
 0x29d   : > { %2469 = vmatmul.f32.gmra.mxu3 %v14184_v39  ;;  %2803 = vmatmul.f32.gmra.mxu1 %v14292_v12  ;;  %v14303_v39 = vld [vmem:[#allocation95_spill] sm:$0xff] }
 0x29e   : > { %14289 = vst [vmem:[#allocation69_spill] sm:$0xff] %v9748_v37  ;;  %3841 = vmatpush.msrb.mxu1 %v3840_v60 }
 0x29f   : > { %v2053_v17 = vpop.f32.mrf.mxu2 }
 0x2a0   : > { %v9757_v48 = vadd.f32 %v2402_v21, %v2053_v17  ;;  %v2406_v25 = vpop.f32.mrf.mxu3  ;;  %v7793_v17 = vld [vmem:[%s13475_s2 + $0x1e0] sm:$0xff] }
 0x2a1   : > { %v1811_v59 = vpop.f32.mrf.mxu0  ;;  %v9769_v21 = vand.u32 4294901760, %v7793_v17 }
 0x2a2   : > { %v1812_v42 = vadd.f32 %v1811_v59, %v9634_v23  ;;  %v1976_v30 = vpop.f32.mrf.mxu1 }
 0x2a3   : > { %3550 = vmatpush.msrb.mxu0 %v9769_v21  ;;  %4273 = vmatpush.msra.mxu3 %v9769_v21 }
 0x2a4   : > { %v9760_v37 = vadd.f32 %v1972_v7, %v1812_v42  ;;  %2188 = vmatmul.f32.gmra.mxu2 %v14294_v0  ;;  %2604 = vmatmul.f32.gmra.mxu0 %v14295_v3  ;;  %v9775_v7 = vsub.f32 %v7793_v17, %v9769_v21  ;;  %v14299_v0 = vld [vmem:[#allocation88_spill] sm:$0xff] }
 0x2a5   : > { %2473 = vmatmul.f32.gmra.mxu3 %v14194_v44  ;;  %2809 = vmatmul.f32.gmra.mxu1 %v14296_v32 }
 0x2a6   : > { %14293 = vst [vmem:[#allocation96_spill] sm:$0xff] %v9760_v37  ;;  %v13671_v59 = vand.u32 4294901760, %v9775_v7  ;;  %4066 = vmatpush.msra.mxu2 %v9775_v7 }
 0x2a7   : > { %v2061_v55 = vpop.f32.mrf.mxu2 }
 0x2a8   : > { %v9771_v12 = vadd.f32 %v2406_v25, %v2061_v55  ;;  %v2410_v23 = vpop.f32.mrf.mxu3  ;;  %v14298_v25 = vld [vmem:[#allocation16_spill] sm:$0xff]  ;;  %v3845_v17 = vsub.f32 %v9775_v7, %v13671_v59  ;;  %v14300_v55 = vld [vmem:[#allocation98_spill] sm:$0xff] }
 0x2a9   : > { %v1815_v3 = vpop.f32.mrf.mxu0  ;;  %v14304_v59 = vld [vmem:[#allocation104_spill] sm:$0xff] }
 0x2aa   : > { %v1816_v32 = vadd.f32 %v1815_v3, %v9644_v50  ;;  %v1980_v60 = vpop.f32.mrf.mxu1  ;;  %v3846_v50 = vand.u32 4294901760, %v3845_v17 }
 0x2ac   : > { %v9781_v42 = vadd.f32 %v1976_v30, %v1816_v32  ;;  %2196 = vmatmul.f32.gmra.mxu2 %v14298_v25  ;;  %2609 = vmatmul.f32.gmra.mxu0 %v14299_v0  ;;  %v14302_v0 = vld [vmem:[#allocation20_spill] sm:$0xff] }
 0x2ad   : > { %2477 = vmatmul.f32.gmra.mxu3 %v14201_v45  ;;  %2815 = vmatmul.f32.gmra.mxu1 %v14300_v55  ;;  %v14311_v45 = vld [vmem:[#allocation107_spill] sm:$0xff] }
 0x2ae   : > { %14297 = vst [vmem:[#allocation74_spill] sm:$0xff] %v9781_v42  ;;  %3847 = vmatpush.msrb.mxu1 %v3846_v50 }
 0x2af   : > { %v2069_v3 = vpop.f32.mrf.mxu2 }
 0x2b0   : > { %v9790_v37 = vadd.f32 %v2410_v23, %v2069_v3  ;;  %v2414_v44 = vpop.f32.mrf.mxu3  ;;  %v7791_v23 = vld [vmem:[%s13475_s2 + $0x1d0] sm:$0xff] }
 0x2b1   : > { %v1819_v30 = vpop.f32.mrf.mxu0  ;;  %v9802_v17 = vand.u32 4294901760, %v7791_v23 }
 0x2b2   : > { %v1820_v32 = vadd.f32 %v1819_v30, %v9654_v19  ;;  %v1984_v25 = vpop.f32.mrf.mxu1 }
 0x2b3   : > { %3552 = vmatpush.msrb.mxu0 %v9802_v17  ;;  %4275 = vmatpush.msra.mxu3 %v9802_v17 }
 0x2b4   : > { %v9793_v42 = vadd.f32 %v1980_v60, %v1820_v32  ;;  %2204 = vmatmul.f32.gmra.mxu2 %v14302_v0  ;;  %2614 = vmatmul.f32.gmra.mxu0 %v14303_v39  ;;  %v9808_v60 = vsub.f32 %v7791_v23, %v9802_v17  ;;  %v14307_v0 = vld [vmem:[#allocation100_spill] sm:$0xff] }
 0x2b5   : > { %2481 = vmatmul.f32.gmra.mxu3 %v14207_v58  ;;  %2821 = vmatmul.f32.gmra.mxu1 %v14304_v59 }
 0x2b6   : > { %14301 = vst [vmem:[#allocation102_spill] sm:$0xff] %v9793_v42  ;;  %v13674_v30 = vand.u32 4294901760, %v9808_v60  ;;  %4069 = vmatpush.msra.mxu2 %v9808_v60 }
 0x2b7   : > { %v2077_v55 = vpop.f32.mrf.mxu2 }
 0x2b8   : > { %v9804_v50 = vadd.f32 %v2414_v44, %v2077_v55  ;;  %v2418_v19 = vpop.f32.mrf.mxu3  ;;  %v14306_v44 = vld [vmem:[#allocation24_spill] sm:$0xff]  ;;  %v3851_v23 = vsub.f32 %v9808_v60, %v13674_v30  ;;  %v14308_v55 = vld [vmem:[#allocation111_spill] sm:$0xff]  ;;  %v14312_v30 = vld [vmem:[#allocation117_spill] sm:$0xff] }
 0x2b9   : > { %v1823_v39 = vpop.f32.mrf.mxu0 }
 0x2ba   : > { %v1824_v59 = vadd.f32 %v1823_v39, %v9664_v63  ;;  %v1988_v3 = vpop.f32.mrf.mxu1  ;;  %v3852_v63 = vand.u32 4294901760, %v3851_v23 }
 0x2bc   : > { %v9814_v32 = vadd.f32 %v1984_v25, %v1824_v59  ;;  %2212 = vmatmul.f32.gmra.mxu2 %v14306_v44  ;;  %2619 = vmatmul.f32.gmra.mxu0 %v14307_v0  ;;  %v14310_v0 = vld [vmem:[#allocation29_spill] sm:$0xff] }
 0x2bd   : > { %2485 = vmatmul.f32.gmra.mxu3 %v14211_v52  ;;  %2827 = vmatmul.f32.gmra.mxu1 %v14308_v55  ;;  %v14319_v52 = vld [vmem:[#allocation119_spill] sm:$0xff] }
 0x2be   : > { %14305 = vst [vmem:[#allocation80_spill] sm:$0xff] %v9814_v32  ;;  %3853 = vmatpush.msrb.mxu1 %v3852_v63 }
 0x2bf   : > { %v2085_v39 = vpop.f32.mrf.mxu2 }
 0x2c0   : > { %v9823_v42 = vadd.f32 %v2418_v19, %v2085_v39  ;;  %v2422_v58 = vpop.f32.mrf.mxu3  ;;  %v7789_v19 = vld [vmem:[%s13475_s2 + $0x1c0] sm:$0xff] }
 0x2c1   : > { %v1827_v25 = vpop.f32.mrf.mxu0  ;;  %v9835_v23 = vand.u32 4294901760, %v7789_v19 }
 0x2c2   : > { %v1828_v59 = vadd.f32 %v1827_v25, %v9674_v38  ;;  %v1992_v44 = vpop.f32.mrf.mxu1 }
 0x2c3   : > { %3554 = vmatpush.msrb.mxu0 %v9835_v23  ;;  %4277 = vmatpush.msra.mxu3 %v9835_v23 }
 0x2c4   : > { %v9826_v32 = vadd.f32 %v1988_v3, %v1828_v59  ;;  %2220 = vmatmul.f32.gmra.mxu2 %v14310_v0  ;;  %2624 = vmatmul.f32.gmra.mxu0 %v14311_v45  ;;  %v9841_v3 = vsub.f32 %v7789_v19, %v9835_v23  ;;  %v14315_v0 = vld [vmem:[#allocation112_spill] sm:$0xff] }
 0x2c5   : > { %2489 = vmatmul.f32.gmra.mxu3 %v14215_v49  ;;  %2833 = vmatmul.f32.gmra.mxu1 %v14312_v30 }
 0x2c6   : > { %14309 = vst [vmem:[#allocation109_spill] sm:$0xff] %v9826_v32  ;;  %v13677_v25 = vand.u32 4294901760, %v9841_v3  ;;  %4072 = vmatpush.msra.mxu2 %v9841_v3 }
 0x2c7   : > { %v2093_v55 = vpop.f32.mrf.mxu2 }
 0x2c8   : > { %v9837_v63 = vadd.f32 %v2422_v58, %v2093_v55  ;;  %v2426_v38 = vpop.f32.mrf.mxu3  ;;  %v14314_v58 = vld [vmem:[#allocation32_spill] sm:$0xff]  ;;  %v3857_v19 = vsub.f32 %v9841_v3, %v13677_v25  ;;  %v14320_v25 = vld [vmem:[#allocation129_spill] sm:$0xff] }
 0x2c9   : > { %v1831_v45 = vpop.f32.mrf.mxu0  ;;  %v14316_v55 = vld [vmem:[#allocation120_spill] sm:$0xff] }
 0x2ca   : > { %v1832_v30 = vadd.f32 %v1831_v45, %v9684_v26  ;;  %v1996_v39 = vpop.f32.mrf.mxu1  ;;  %v3858_v26 = vand.u32 4294901760, %v3857_v19 }
 0x2cc   : > { %v9847_v59 = vadd.f32 %v1992_v44, %v1832_v30  ;;  %2228 = vmatmul.f32.gmra.mxu2 %v14314_v58  ;;  %2629 = vmatmul.f32.gmra.mxu0 %v14315_v0  ;;  %v14318_v0 = vld [vmem:[#allocation37_spill] sm:$0xff] }
 0x2cd   : > { %2493 = vmatmul.f32.gmra.mxu3 %v14219_v16  ;;  %2839 = vmatmul.f32.gmra.mxu1 %v14316_v55  ;;  %v14327_v16 = vld [vmem:[#allocation130_spill] sm:$0xff] }
 0x2ce   : > { %14313 = vst [vmem:[#allocation86_spill] sm:$0xff] %v9847_v59  ;;  %3859 = vmatpush.msrb.mxu1 %v3858_v26 }
 0x2cf   : > { %v2101_v45 = vpop.f32.mrf.mxu2 }
 0x2d0   : > { %v9856_v32 = vadd.f32 %v2426_v38, %v2101_v45  ;;  %v2430_v49 = vpop.f32.mrf.mxu3  ;;  %v7787_v38 = vld [vmem:[%s13475_s2 + $0x1b0] sm:$0xff] }
 0x2d1   : > { %v1835_v44 = vpop.f32.mrf.mxu0  ;;  %v9868_v19 = vand.u32 4294901760, %v7787_v38 }
 0x2d2   : > { %v1836_v30 = vadd.f32 %v1835_v44, %v9694_v18  ;;  %v2000_v58 = vpop.f32.mrf.mxu1 }
 0x2d3   : > { %3556 = vmatpush.msrb.mxu0 %v9868_v19  ;;  %4279 = vmatpush.msra.mxu3 %v9868_v19 }
 0x2d4   : > { %v9859_v59 = vadd.f32 %v1996_v39, %v1836_v30  ;;  %2236 = vmatmul.f32.gmra.mxu2 %v14318_v0  ;;  %2634 = vmatmul.f32.gmra.mxu0 %v14319_v52  ;;  %v9874_v39 = vsub.f32 %v7787_v38, %v9868_v19  ;;  %v14323_v0 = vld [vmem:[#allocation124_spill] sm:$0xff] }
 0x2d5   : > { %2497 = vmatmul.f32.gmra.mxu3 %v14223_v28  ;;  %2845 = vmatmul.f32.gmra.mxu1 %v14320_v25 }
 0x2d6   : > { %14317 = vst [vmem:[#allocation36_spill] sm:$0xff] %v9859_v59  ;;  %v13680_v44 = vand.u32 4294901760, %v9874_v39  ;;  %4075 = vmatpush.msra.mxu2 %v9874_v39 }
 0x2d7   : > { %v2109_v55 = vpop.f32.mrf.mxu2 }
 0x2d8   : > { %v9870_v26 = vadd.f32 %v2430_v49, %v2109_v55  ;;  %v2434_v18 = vpop.f32.mrf.mxu3  ;;  %v14322_v49 = vld [vmem:[#allocation39_spill] sm:$0xff]  ;;  %v3863_v38 = vsub.f32 %v9874_v39, %v13680_v44  ;;  %v14324_v55 = vld [vmem:[#allocation134_spill] sm:$0xff] }
 0x2d9   : > { %v1839_v52 = vpop.f32.mrf.mxu0  ;;  %v14328_v44 = vld [vmem:[#allocation139_spill] sm:$0xff] }
 0x2da   : > { %v1840_v25 = vadd.f32 %v1839_v52, %v9704_v33  ;;  %v2004_v45 = vpop.f32.mrf.mxu1  ;;  %v3864_v33 = vand.u32 4294901760, %v3863_v38 }
 0x2dc   : > { %v9880_v30 = vadd.f32 %v2000_v58, %v1840_v25  ;;  %2244 = vmatmul.f32.gmra.mxu2 %v14322_v49  ;;  %2639 = vmatmul.f32.gmra.mxu0 %v14323_v0  ;;  %v14326_v0 = vld [vmem:[#allocation46_spill] sm:$0xff] }
 0x2dd   : > { %2501 = vmatmul.f32.gmra.mxu3 %v14227_v1  ;;  %2851 = vmatmul.f32.gmra.mxu1 %v14324_v55 }
 0x2de   : > { %14321 = vst [vmem:[#allocation115_spill] sm:$0xff] %v9880_v30  ;;  %3865 = vmatpush.msrb.mxu1 %v3864_v33 }
 0x2df   : > { %v2117_v52 = vpop.f32.mrf.mxu2 }
 0x2e0   : > { %v9889_v59 = vadd.f32 %v2434_v18, %v2117_v52  ;;  %v2438_v28 = vpop.f32.mrf.mxu3  ;;  %v7785_v18 = vld [vmem:[%s13475_s2 + $0x1a0] sm:$0xff] }
 0x2e1   : > { %v1843_v58 = vpop.f32.mrf.mxu0  ;;  %v9901_v38 = vand.u32 4294901760, %v7785_v18 }
 0x2e2   : > { %v1844_v25 = vadd.f32 %v1843_v58, %v9714_v62  ;;  %v2008_v49 = vpop.f32.mrf.mxu1 }
 0x2e3   : > { %3558 = vmatpush.msrb.mxu0 %v9901_v38  ;;  %4281 = vmatpush.msra.mxu3 %v9901_v38 }
 0x2e4   : > { %v9892_v30 = vadd.f32 %v2004_v45, %v1844_v25  ;;  %2252 = vmatmul.f32.gmra.mxu2 %v14326_v0  ;;  %2644 = vmatmul.f32.gmra.mxu0 %v14327_v16  ;;  %v9907_v45 = vsub.f32 %v7785_v18, %v9901_v38  ;;  %v14332_v0 = vld [vmem:[#allocation135_spill] sm:$0xff] }
 0x2e5   : > { %2505 = vmatmul.f32.gmra.mxu3 %v14232_v22  ;;  %2857 = vmatmul.f32.gmra.mxu1 %v14328_v44 }
 0x2e6   : > { %14325 = vst [vmem:[#allocation151_spill] sm:$0xff] %v9892_v30  ;;  %v13682_v58 = vand.u32 4294901760, %v9907_v45  ;;  %4078 = vmatpush.msra.mxu2 %v9907_v45 }
 0x2e7   : > { %v2125_v55 = vpop.f32.mrf.mxu2 }
 0x2e8   : > { %v9903_v33 = vadd.f32 %v2438_v28, %v2125_v55  ;;  %v2442_v62 = vpop.f32.mrf.mxu3  ;;  %v14331_v28 = vld [vmem:[#allocation51_spill] sm:$0xff]  ;;  %v3869_v18 = vsub.f32 %v9907_v45, %v13682_v58  ;;  %v14338_v58 = vld [vmem:[#allocation6_spill] sm:$0xff] }
 0x2e9   : > { %v1847_v16 = vpop.f32.mrf.mxu0  ;;  %v14333_v55 = vld [vmem:[#allocation143_spill] sm:$0xff] }
 0x2ea   : > { %14329 = vst [vmem:[#allocation90_spill] sm:$0xff] %v9903_v33  ;;  %v1848_v44 = vadd.f32 %v1847_v16, %v9724_v24  ;;  %v2012_v52 = vpop.f32.mrf.mxu1  ;;  %v3870_v24 = vand.u32 4294901760, %v3869_v18  ;;  %v14337_v33 = vld [vmem:[#allocation140_spill] sm:$0xff] }
 0x2ec   : > { %v9913_v25 = vadd.f32 %v2008_v49, %v1848_v44  ;;  %2260 = vmatmul.f32.gmra.mxu2 %v14331_v28  ;;  %2649 = vmatmul.f32.gmra.mxu0 %v14332_v0  ;;  %v14336_v0 = vld [vmem:[#allocation55_spill] sm:$0xff] }
 0x2ed   : > { %2509 = vmatmul.f32.gmra.mxu3 %v14238_v13  ;;  %2863 = vmatmul.f32.gmra.mxu1 %v14333_v55  ;;  %v14344_v13 = vld [vmem:[#allocation67_spill] sm:$0xff] }
 0x2ee   : > { %14330 = vst [vmem:[#allocation87_spill] sm:$0xff] %v9913_v25  ;;  %3871 = vmatpush.msrb.mxu1 %v3870_v24 }
 0x2ef   : > { %v2133_v16 = vpop.f32.mrf.mxu2 }
 0x2f0   : > { %v9922_v30 = vadd.f32 %v2442_v62, %v2133_v16  ;;  %v2446_v22 = vpop.f32.mrf.mxu3  ;;  %v7783_v62 = vld [vmem:[%s13475_s2 + $0x190] sm:$0xff] }
 0x2f1   : > { %v1851_v49 = vpop.f32.mrf.mxu0  ;;  %v9934_v18 = vand.u32 4294901760, %v7783_v62 }
 0x2f2   : > { %14334 = vst [vmem:[#allocation121_spill] sm:$0xff] %v9922_v30  ;;  %v1852_v44 = vadd.f32 %v1851_v49, %v9745_v27  ;;  %v2774_v28 = vpop.f32.mrf.mxu1  ;;  %v14345_v30 = vld [vmem:[#allocation5_spill] sm:$0xff] }
 0x2f3   : > { %3560 = vmatpush.msrb.mxu0 %v9934_v18  ;;  %4283 = vmatpush.msra.mxu3 %v9934_v18 }
 0x2f4   : > { %v9925_v25 = vadd.f32 %v2012_v52, %v1852_v44  ;;  %2268 = vmatmul.f32.gmra.mxu2 %v14336_v0  ;;  %2654 = vmatmul.f32.gmra.mxu0 %v14337_v33  ;;  %v9940_v52 = vsub.f32 %v7783_v62, %v9934_v18  ;;  %v14340_v44 = vld [vmem:[#allocation60_spill] sm:$0xff] }
 0x2f5   : > { %2513 = vmatmul.f32.gmra.mxu3 %v14243_v56  ;;  %2869 = vmatmul.f32.gmra.mxu1 %v14338_v58 }
 0x2f6   : > { %14335 = vst [vmem:[#allocation66_spill] sm:$0xff] %v9925_v25  ;;  %v13685_v49 = vand.u32 4294901760, %v9940_v52  ;;  %4081 = vmatpush.msra.mxu2 %v9940_v52 }
 0x2f7   : > { %v2141_v55 = vpop.f32.mrf.mxu2 }
 0x2f8   : > { %v9936_v24 = vadd.f32 %v2446_v22, %v2141_v55  ;;  %v2450_v27 = vpop.f32.mrf.mxu3  ;;  %v14341_v22 = vld [vmem:[#allocation4_spill] sm:$0xff]  ;;  %v3875_v0 = vsub.f32 %v9940_v52, %v13685_v49  ;;  %v14342_v55 = vld [vmem:[#allocation9_spill] sm:$0xff] }
 0x2f9   : > { %v2580_v33 = vpop.f32.mrf.mxu0 }
 0x2fa   : > { %14339 = vst [vmem:[#allocation97_spill] sm:$0xff] %v9936_v24  ;;  %v2581_v58 = vadd.f32 %v2580_v33, %v9757_v48  ;;  %v2780_v16 = vpop.f32.mrf.mxu1  ;;  %v3876_v48 = vand.u32 4294901760, %v3875_v0 }
 0x2fc   : > { %2276 = vmatmul.f32.gmra.mxu2 %v14340_v44  ;;  %2659 = vmatmul.f32.gmra.mxu0 %v14341_v22  ;;  %v9951_v62 = vadd.f32 %v2774_v28, %v2581_v58  ;;  %v14346_v58 = vld [vmem:[#allocation13_spill] sm:$0xff] }
 0x2fd   : > { %2517 = vmatmul.f32.gmra.mxu3 %v14248_v41  ;;  %2875 = vmatmul.f32.gmra.mxu1 %v14342_v55  ;;  %v14353_v41 = vld [vmem:[#allocation14_spill] sm:$0xff] }
 0x2fe   : > { %3877 = vmatpush.msrb.mxu1 %v3876_v48 }
 0x2ff   : > { %v2149_v33 = vpop.f32.mrf.mxu2 }
 0x300   : > { %v9955_v25 = vadd.f32 %v2450_v27, %v2149_v33  ;;  %v2454_v56 = vpop.f32.mrf.mxu3  ;;  %v7781_v27 = vld [vmem:[%s13475_s2 + $0x180] sm:$0xff] }
 0x301   : > { %v2585_v24 = vpop.f32.mrf.mxu0  ;;  %v9967_v0 = vand.u32 4294901760, %v7781_v27 }
 0x302   : > { %14343 = vst [vmem:[#allocation94_spill] sm:$0xff] %v9955_v25  ;;  %v2586_v44 = vadd.f32 %v2585_v24, %v9771_v12  ;;  %v2786_v22 = vpop.f32.mrf.mxu1 }
 0x303   : > { %3562 = vmatpush.msrb.mxu0 %v9967_v0  ;;  %4285 = vmatpush.msra.mxu3 %v9967_v0 }
 0x304   : > { %2284 = vmatmul.f32.gmra.mxu2 %v14344_v13  ;;  %2664 = vmatmul.f32.gmra.mxu0 %v14345_v30  ;;  %v9960_v28 = vadd.f32 %v2780_v16, %v2586_v44  ;;  %v9973_v13 = vsub.f32 %v7781_v27, %v9967_v0  ;;  %v14348_v44 = vld [vmem:[#allocation73_spill] sm:$0xff] }
 0x305   : > { %2521 = vmatmul.f32.gmra.mxu3 %v14253_v46  ;;  %2881 = vmatmul.f32.gmra.mxu1 %v14346_v58 }
 0x306   : > { %v13688_v16 = vand.u32 4294901760, %v9973_v13  ;;  %4084 = vmatpush.msra.mxu2 %v9973_v13 }
 0x307   : > { %v2157_v55 = vpop.f32.mrf.mxu2 }
 0x308   : > { %v9969_v48 = vadd.f32 %v2454_v56, %v2157_v55  ;;  %v2458_v12 = vpop.f32.mrf.mxu3  ;;  %v14349_v56 = vld [vmem:[#allocation10_spill] sm:$0xff]  ;;  %v3881_v58 = vsub.f32 %v9973_v13, %v13688_v16  ;;  %v14350_v55 = vld [vmem:[#allocation17_spill] sm:$0xff] }
 0x309   : > { %v2590_v30 = vpop.f32.mrf.mxu0 }
 0x30a   : > { %14347 = vst [vmem:[#allocation127_spill] sm:$0xff] %v9969_v48  ;;  %v2591_v24 = vadd.f32 %v2590_v30, %v9790_v37  ;;  %v2792_v33 = vpop.f32.mrf.mxu1  ;;  %v3882_v37 = vand.u32 4294901760, %v3881_v58 }
 0x30c   : > { %2292 = vmatmul.f32.gmra.mxu2 %v14348_v44  ;;  %2669 = vmatmul.f32.gmra.mxu0 %v14349_v56  ;;  %v9984_v27 = vadd.f32 %v2786_v22, %v2591_v24  ;;  %v14352_v56 = vld [vmem:[#allocation81_spill] sm:$0xff] }
 0x30d   : > { %2525 = vmatmul.f32.gmra.mxu3 %v14258_v40  ;;  %2887 = vmatmul.f32.gmra.mxu1 %v14350_v55  ;;  %v14354_v24 = vld [vmem:[#allocation21_spill] sm:$0xff]  ;;  %v14359_v40 = vld [vmem:[#allocation22_spill] sm:$0xff] }
 0x30e   : > { %3883 = vmatpush.msrb.mxu1 %v3882_v37 }
 0x30f   : > { %v2165_v30 = vpop.f32.mrf.mxu2 }
 0x310   : > { %v9988_v49 = vadd.f32 %v2458_v12, %v2165_v30  ;;  %v2462_v46 = vpop.f32.mrf.mxu3  ;;  %v7779_v12 = vld [vmem:[%s13475_s2 + $0x170] sm:$0xff] }
 0x311   : > { %v2595_v48 = vpop.f32.mrf.mxu0  ;;  %v10000_v58 = vand.u32 4294901760, %v7779_v12 }
 0x312   : > { %14351 = vst [vmem:[#allocation103_spill] sm:$0xff] %v9988_v49  ;;  %v2596_v44 = vadd.f32 %v2595_v48, %v9804_v50  ;;  %v2798_v22 = vpop.f32.mrf.mxu1 }
 0x313   : > { %3564 = vmatpush.msrb.mxu0 %v10000_v58  ;;  %4287 = vmatpush.msra.mxu3 %v10000_v58 }
 0x314   : > { %2300 = vmatmul.f32.gmra.mxu2 %v14352_v56  ;;  %2674 = vmatmul.f32.gmra.mxu0 %v14353_v41  ;;  %v9993_v16 = vadd.f32 %v2792_v33, %v2596_v44  ;;  %v10006_v41 = vsub.f32 %v7779_v12, %v10000_v58  ;;  %v14356_v44 = vld [vmem:[#allocation18_spill] sm:$0xff] }
 0x315   : > { %2893 = vmatmul.f32.gmra.mxu1 %v14354_v24  ;;  %3189 = vmatmul.f32.vlgmr.msrb.gmra.mxu3 %v8606_v20  ;;  %v14357_v24 = vld [vmem:[#allocation25_spill] sm:$0xff] }
 0x316   : > { %v13690_v30 = vand.u32 4294901760, %v10006_v41  ;;  %4087 = vmatpush.msra.mxu2 %v10006_v41 }
 0x317   : > { %v2173_v55 = vpop.f32.mrf.mxu2 }
 0x318   : > { %v10002_v37 = vadd.f32 %v2462_v46, %v2173_v55  ;;  %v2466_v50 = vpop.f32.mrf.mxu3  ;;  %v3887_v46 = vsub.f32 %v10006_v41, %v13690_v30 }
 0x319   : > { %v2600_v48 = vpop.f32.mrf.mxu0 }
 0x31a   : > { %14355 = vst [vmem:[#allocation99_spill] sm:$0xff] %v10002_v37  ;;  %v2601_v33 = vadd.f32 %v2600_v48, %v9823_v42  ;;  %v3888_v12 = vand.u32 4294901760, %v3887_v46  ;;  %v2804_v42 = vpop.f32.mrf.mxu1 }
 0x31c   : > { %2679 = vmatmul.f32.gmra.mxu0 %v14356_v44  ;;  %3028 = vmatmul.f32.vlgmr.msrb.gmra.mxu2 %v8606_v20  ;;  %v10017_v56 = vadd.f32 %v2798_v22, %v2601_v33  ;;  %v14360_v33 = vld [vmem:[#allocation27_spill] sm:$0xff] }
 0x31d   : > { %2899 = vmatmul.f32.gmra.mxu1 %v14357_v24  ;;  %3193 = vmatmul.f32.gmra.mxu3 %v8701_v54 }
 0x31e   : > { %3889 = vmatpush.msrb.mxu1 %v3888_v12 }
 0x31f   : > { %v2181_v55 = vpop.f32.mrf.mxu2 }
 0x320   : > { %v10021_v48 = vadd.f32 %v2466_v50, %v2181_v55  ;;  %v2470_v37 = vpop.f32.mrf.mxu3  ;;  %v7777_v50 = vld [vmem:[%s13475_s2 + $0x160] sm:$0xff] }
 0x321   : > { %v2605_v44 = vpop.f32.mrf.mxu0  ;;  %v10033_v46 = vand.u32 4294901760, %v7777_v50 }
 0x322   : > { %14358 = vst [vmem:[#allocation131_spill] sm:$0xff] %v10021_v48  ;;  %v2606_v20 = vadd.f32 %v2605_v44, %v9837_v63  ;;  %v14365_v48 = vld [vmem:[#allocation30_spill] sm:$0xff] }
 0x323   : > { %3566 = vmatpush.msrb.mxu0 %v10033_v46  ;;  %4289 = vmatpush.msra.mxu3 %v10033_v46 }
 0x324   : > { %2684 = vmatmul.f32.gmra.mxu0 %v14359_v40  ;;  %3032 = vmatmul.f32.gmra.mxu2 %v8701_v54  ;;  %v10026_v22 = vadd.f32 %v2804_v42, %v2606_v20  ;;  %v10039_v54 = vsub.f32 %v7777_v50, %v10033_v46  ;;  %v2810_v40 = vpop.f32.mrf.mxu1  ;;  %v14362_v20 = vld [vmem:[#allocation26_spill] sm:$0xff]  ;;  %v14363_v50 = vld [vmem:[#allocation33_spill] sm:$0xff] }
 0x325   : > { %2905 = vmatmul.f32.gmra.mxu1 %v14360_v33  ;;  %3197 = vmatmul.f32.gmra.mxu3 %v8746_v6 }
 0x326   : > { %v13691_v44 = vand.u32 4294901760, %v10039_v54  ;;  %4090 = vmatpush.msra.mxu2 %v10039_v54 }
 0x327   : > { %v2189_v24 = vpop.f32.mrf.mxu2 }
 0x328   : > { %v10035_v12 = vadd.f32 %v2470_v37, %v2189_v24  ;;  %v2474_v63 = vpop.f32.mrf.mxu3  ;;  %v3893_v37 = vsub.f32 %v10039_v54, %v13691_v44  ;;  %v14371_v44 = vld [vmem:[#allocation38_spill] sm:$0xff] }
 0x329   : > { %v2610_v42 = vpop.f32.mrf.mxu0 }
 0x32a   : > { %14361 = vst [vmem:[#allocation110_spill] sm:$0xff] %v10035_v12  ;;  %v2611_v55 = vadd.f32 %v2610_v42, %v9856_v32  ;;  %v3894_v24 = vand.u32 4294901760, %v3893_v37 }
 0x32c   : > { %2689 = vmatmul.f32.gmra.mxu0 %v14362_v20  ;;  %3036 = vmatmul.f32.gmra.mxu2 %v8746_v6  ;;  %v10050_v33 = vadd.f32 %v2810_v40, %v2611_v55  ;;  %v2816_v6 = vpop.f32.mrf.mxu1  ;;  %v14366_v55 = vld [vmem:[#allocation35_spill] sm:$0xff] }
 0x32d   : > { %2911 = vmatmul.f32.gmra.mxu1 %v14363_v50  ;;  %3201 = vmatmul.f32.gmra.mxu3 %v8784_v35 }
 0x32e   : > { %3895 = vmatpush.msrb.mxu1 %v3894_v24 }
 0x32f   : > { %v2197_v32 = vpop.f32.mrf.mxu2 }
 0x330   : > { %v10054_v42 = vadd.f32 %v2474_v63, %v2197_v32  ;;  %v2478_v30 = vpop.f32.mrf.mxu3  ;;  %v7775_v63 = vld [vmem:[%s13475_s2 + $0x150] sm:$0xff] }
 0x331   : > { %v2615_v12 = vpop.f32.mrf.mxu0  ;;  %v10066_v37 = vand.u32 4294901760, %v7775_v63 }
 0x332   : > { %14364 = vst [vmem:[#allocation106_spill] sm:$0xff] %v10054_v42  ;;  %v2616_v20 = vadd.f32 %v2615_v12, %v9870_v26  ;;  %v14368_v12 = vld [vmem:[#allocation34_spill] sm:$0xff] }
 0x333   : > { %3568 = vmatpush.msrb.mxu0 %v10066_v37  ;;  %4291 = vmatpush.msra.mxu3 %v10066_v37 }
 0x334   : > { %2694 = vmatmul.f32.gmra.mxu0 %v14365_v48  ;;  %3040 = vmatmul.f32.gmra.mxu2 %v8784_v35  ;;  %v10059_v40 = vadd.f32 %v2816_v6, %v2616_v20  ;;  %v10072_v35 = vsub.f32 %v7775_v63, %v10066_v37  ;;  %v10082_v32 = vpop.f32.mrf.mxu1  ;;  %v14369_v20 = vld [vmem:[#allocation41_spill] sm:$0xff] }
 0x335   : > { %2917 = vmatmul.f32.gmra.mxu1 %v14366_v55  ;;  %3205 = vmatmul.f32.gmra.mxu3 %v8822_v31 }
 0x336   : > { %v13692_v48 = vand.u32 4294901760, %v10072_v35  ;;  %4093 = vmatpush.msra.mxu2 %v10072_v35 }
 0x337   : > { %v2205_v50 = vpop.f32.mrf.mxu2 }
 0x338   : > { %v10068_v24 = vadd.f32 %v2478_v30, %v2205_v50  ;;  %v2482_v26 = vpop.f32.mrf.mxu3  ;;  %v3899_v30 = vsub.f32 %v10072_v35, %v13692_v48  ;;  %v14374_v48 = vld [vmem:[#allocation43_spill] sm:$0xff] }
 0x33a   : > { %14367 = vst [vmem:[#allocation137_spill] sm:$0xff] %v10068_v24  ;;  %v3900_v6 = vand.u32 4294901760, %v3899_v30 }
 0x33c   : > { %2699 = vmatmul.f32.gmra.mxu0 %v14368_v12  ;;  %3044 = vmatmul.f32.gmra.mxu2 %v8822_v31  ;;  %v10090_v31 = vpop.f32.mrf.mxu0  ;;  %v14372_v12 = vld [vmem:[#allocation47_spill] sm:$0xff] }
 0x33d   : > { %2923 = vmatmul.f32.gmra.mxu1 %v14369_v20  ;;  %3209 = vmatmul.f32.gmra.mxu3 %v8813_v29  ;;  %v7773_v20 = vld [vmem:[%s13475_s2 + $0x140] sm:$0xff] }
 0x33e   : > { %3901 = vmatpush.msrb.mxu1 %v3900_v6  ;;  %v10097_v30 = vand.u32 4294901760, %v7773_v20 }
 0x33f   : > { %v2213_v55 = vpop.f32.mrf.mxu2 }
 0x340   : > { %v10086_v63 = vadd.f32 %v2482_v26, %v2213_v55  ;;  %v2486_v50 = vpop.f32.mrf.mxu3  ;;  %v10099_v26 = vpop.f32.mrf.mxu1  ;;  %3570 = vmatpush.msrb.mxu0 %v10097_v30  ;;  %4293 = vmatpush.msra.mxu3 %v10097_v30 }
 0x342   : > { %14370 = vst [vmem:[#allocation116_spill] sm:$0xff] %v10086_v63 }
 0x344   : > { %2704 = vmatmul.f32.gmra.mxu0 %v14371_v44  ;;  %3048 = vmatmul.f32.gmra.mxu2 %v8813_v29  ;;  %v10105_v29 = vsub.f32 %v7773_v20, %v10097_v30 }
 0x345   : > { %2929 = vmatmul.f32.gmra.mxu1 %v14372_v12  ;;  %3213 = vmatmul.f32.gmra.mxu3 %v14233_v8 }
 0x346   : > { %v13693_v12 = vand.u32 4294901760, %v10105_v29  ;;  %4096 = vmatpush.msra.mxu2 %v10105_v29 }
 0x347   : > { %v2221_v55 = vpop.f32.mrf.mxu2 }
 0x348   : > { %v10101_v6 = vadd.f32 %v2486_v50, %v2221_v55  ;;  %v2490_v44 = vpop.f32.mrf.mxu3  ;;  %v3905_v50 = vsub.f32 %v10105_v29, %v13693_v12  ;;  %v14375_v55 = vld [vmem:[#allocation52_spill] sm:$0xff]  ;;  %v10121_v49 = vpop.f32.mrf.mxu1 }
 0x34a   : > { %14373 = vst [vmem:[#allocation108_spill] sm:$0xff] %v10101_v6  ;;  %v3906_v20 = vand.u32 4294901760, %v3905_v50  ;;  %v10117_v6 = vpop.f32.mrf.mxu0  ;;  %v7771_v50 = vld [vmem:[%s13475_s2 + $0x130] sm:$0xff] }
 0x34c   : > { %2709 = vmatmul.f32.gmra.mxu0 %v14374_v48  ;;  %3052 = vmatmul.f32.gmra.mxu2 %v14233_v8  ;;  %v14377_v48 = vld [vmem:[#allocation49_spill] sm:$0xff]  ;;  %v14378_v8 = vld [vmem:[#allocation56_spill] sm:$0xff] }
 0x34d   : > { %2935 = vmatmul.f32.gmra.mxu1 %v14375_v55  ;;  %3217 = vmatmul.f32.gmra.mxu3 %v14239_v5  ;;  %v10130_v55 = vand.u32 4294901760, %v7771_v50 }
 0x34e   : > { %3907 = vmatpush.msrb.mxu1 %v3906_v20 }
 0x34f   : > { %v2229_v63 = vpop.f32.mrf.mxu2  ;;  %3572 = vmatpush.msrb.mxu0 %v10130_v55  ;;  %4295 = vmatpush.msra.mxu3 %v10130_v55 }
 0x350   : > { %v10119_v24 = vadd.f32 %v2490_v44, %v2229_v63  ;;  %v2494_v42 = vpop.f32.mrf.mxu3  ;;  %v10143_v12 = vpop.f32.mrf.mxu1 }
 0x352   : > { %14376 = vst [vmem:[#allocation141_spill] sm:$0xff] %v10119_v24 }
 0x354   : > { %2714 = vmatmul.f32.gmra.mxu0 %v14377_v48  ;;  %3056 = vmatmul.f32.gmra.mxu2 %v14239_v5  ;;  %v10136_v48 = vsub.f32 %v7771_v50, %v10130_v55  ;;  %v10139_v5 = vpop.f32.mrf.mxu0 }
 0x355   : > { %2941 = vmatmul.f32.gmra.mxu1 %v14378_v8  ;;  %3221 = vmatmul.f32.gmra.mxu3 %v14244_v9 }
 0x356   : > { %v13694_v8 = vand.u32 4294901760, %v10136_v48  ;;  %4099 = vmatpush.msra.mxu2 %v10136_v48 }
 0x357   : > { %v2237_v63 = vpop.f32.mrf.mxu2 }
 0x358   : > { %v10132_v44 = vadd.f32 %v2494_v42, %v2237_v63  ;;  %v2498_v20 = vpop.f32.mrf.mxu3  ;;  %v3911_v42 = vsub.f32 %v10136_v48, %v13694_v8 }
 0x35a   : > { %14379 = vst [vmem:[#allocation122_spill] sm:$0xff] %v10132_v44  ;;  %v3912_v50 = vand.u32 4294901760, %v3911_v42 }
 0x35c   : > { %2719 = vmatmul.f32.gmra.mxu0 %v14182_v4  ;;  %3060 = vmatmul.f32.gmra.mxu2 %v14244_v9  ;;  %v10154_v25 = vpop.f32.mrf.mxu0  ;;  %v10158_v4 = vpop.f32.mrf.mxu1 }
 0x35d   : > { %2947 = vmatmul.f32.gmra.mxu1 %v14183_v61  ;;  %3225 = vmatmul.f32.gmra.mxu3 %v14249_v14  ;;  %14381 = vst [vmem:[#allocation144_spill] sm:$0xff] %v10158_v4  ;;  %v7769_v61 = vld [vmem:[%s13475_s2 + $0x120] sm:$0xff]  ;;  %v14397_v4 = vand.u32 4294901760, %v9808_v60 }
 0x35e   : > { %3913 = vmatpush.msrb.mxu1 %v3912_v50  ;;  %v10165_v9 = vand.u32 4294901760, %v7769_v61 }
 0x35f   : > { %v2245_v63 = vpop.f32.mrf.mxu2 }
 0x360   : > { %v10152_v44 = vadd.f32 %v2498_v20, %v2245_v63  ;;  %v2502_v24 = vpop.f32.mrf.mxu3  ;;  %3574 = vmatpush.msrb.mxu0 %v10165_v9  ;;  %4297 = vmatpush.msra.mxu3 %v10165_v9 }
 0x362   : > { %14380 = vst [vmem:[#allocation114_spill] sm:$0xff] %v10152_v44 }
 0x364   : > { %2724 = vmatmul.f32.gmra.mxu0 %v14192_v34  ;;  %3064 = vmatmul.f32.gmra.mxu2 %v14249_v14  ;;  %v10171_v34 = vsub.f32 %v7769_v61, %v10165_v9  ;;  %v10185_v61 = vpop.f32.mrf.mxu1 }
 0x365   : > { %2953 = vmatmul.f32.gmra.mxu1 %v14193_v51  ;;  %3229 = vmatmul.f32.gmra.mxu3 %v14254_v2  ;;  %14383 = vst [vmem:[#allocation44_spill] sm:$0xff] %v10185_v61 }
 0x366   : > { %v13695_v51 = vand.u32 4294901760, %v10171_v34  ;;  %4102 = vmatpush.msra.mxu2 %v10171_v34 }
 0x367   : > { %v2253_v20 = vpop.f32.mrf.mxu2 }
 0x368   : > { %v10167_v42 = vadd.f32 %v2502_v24, %v2253_v20  ;;  %v2506_v50 = vpop.f32.mrf.mxu3  ;;  %v3917_v14 = vsub.f32 %v10171_v34, %v13695_v51  ;;  %v10181_v24 = vpop.f32.mrf.mxu0 }
 0x36a   : > { %14382 = vst [vmem:[#allocation126_spill] sm:$0xff] %v10167_v42  ;;  %v3918_v63 = vand.u32 4294901760, %v3917_v14 }
 0x36c   : > { %2729 = vmatmul.f32.gmra.mxu0 %v14199_v11  ;;  %3068 = vmatmul.f32.gmra.mxu2 %v14254_v2  ;;  %v14385_v11 = vld [vmem:[#allocation123_spill] sm:$0xff] }
 0x36d   : > { %2959 = vmatmul.f32.gmra.mxu1 %v14200_v53  ;;  %3233 = vmatmul.f32.gmra.mxu3 %v14259_v15  ;;  %v7767_v53 = vld [vmem:[%s13475_s2 + $0x110] sm:$0xff] }
 0x36e   : > { %3919 = vmatpush.msrb.mxu1 %v3918_v63  ;;  %v10195_v2 = vand.u32 4294901760, %v7767_v53 }
 0x36f   : > { %v2261_v20 = vpop.f32.mrf.mxu2 }
 0x370   : > { %v10187_v8 = vadd.f32 %v2506_v50, %v2261_v20  ;;  %v2510_v42 = vpop.f32.mrf.mxu3  ;;  %v10197_v14 = vpop.f32.mrf.mxu0  ;;  %3576 = vmatpush.msrb.mxu0 %v10195_v2  ;;  %4299 = vmatpush.msra.mxu3 %v10195_v2 }
 0x371   : > { %14386 = vst [vmem:[#allocation132_spill] sm:$0xff] %v10197_v14 }
 0x372   : > { %14384 = vst [vmem:[#allocation146_spill] sm:$0xff] %v10187_v8 }
 0x374   : > { %2734 = vmatmul.f32.gmra.mxu0 %v14206_v43  ;;  %3072 = vmatmul.f32.gmra.mxu2 %v14259_v15  ;;  %v10203_v43 = vsub.f32 %v7767_v53, %v10195_v2  ;;  %v10206_v15 = vpop.f32.mrf.mxu1 }
 0x375   : > { %3237 = vmatmul.f32.gmra.mxu3 %v14385_v11  ;;  %14388 = vst [vmem:[#allocation63_spill] sm:$0xff] %v10206_v15 }
 0x376   : > { %v13696_v63 = vand.u32 4294901760, %v10203_v43  ;;  %4105 = vmatpush.msra.mxu2 %v10203_v43 }
 0x377   : > { %v2269_v51 = vpop.f32.mrf.mxu2 }
 0x378   : > { %v10199_v44 = vadd.f32 %v2510_v42, %v2269_v51  ;;  %v2514_v50 = vpop.f32.mrf.mxu3  ;;  %v3923_v42 = vsub.f32 %v10203_v43, %v13696_v63  ;;  %v14389_v51 = vld [vmem:[#allocation128_spill] sm:$0xff]  ;;  %v10217_v61 = vpop.f32.mrf.mxu0  ;;  %v14393_v63 = vld [vmem:[#allocation133_spill] sm:$0xff] }
 0x379   : > { %14391 = vst [vmem:[#allocation138_spill] sm:$0xff] %v10217_v61 }
 0x37a   : > { %14387 = vst [vmem:[#allocation42_spill] sm:$0xff] %v10199_v44  ;;  %v3924_v20 = vand.u32 4294901760, %v3923_v42  ;;  %v14394_v42 = vand.u32 4294901760, %v9740_v47 }
 0x37c   : > { %3076 = vmatmul.f32.gmra.mxu2 %v14385_v11  ;;  %3925 = vmatpush.msrb.mxu1 %v3924_v20  ;;  %v10219_v15 = vpop.f32.mrf.mxu1  ;;  %v7765_v11 = vld [vmem:[%s13475_s2 + $0x100] sm:$0xff] }
 0x37d   : > { %3241 = vmatmul.f32.gmra.mxu3 %v14389_v51  ;;  %14392 = vst [vmem:[#allocation62_spill] sm:$0xff] %v10219_v15  ;;  %v10225_v14 = vand.u32 4294901760, %v7765_v11  ;;  %v14396_v15 = vand.u32 4294901760, %v9775_v7 }
 0x37f   : > { %v2277_v44 = vpop.f32.mrf.mxu2  ;;  %3578 = vmatpush.msrb.mxu0 %v10225_v14  ;;  %4301 = vmatpush.msra.mxu3 %v10225_v14 }
 0x380   : > { %v10215_v53 = vadd.f32 %v2514_v50, %v2277_v44  ;;  %v2518_v8 = vpop.f32.mrf.mxu3  ;;  %v10230_v44 = vsub.f32 %v7765_v11, %v10225_v14  ;;  %v10244_v61 = vpop.f32.mrf.mxu0 }
 0x381   : > { %4498 = vmatpush.msra.mxu0 %v14394_v42 }
 0x382   : > { %14390 = vst [vmem:[#allocation147_spill] sm:$0xff] %v10215_v53  ;;  %4108 = vmatpush.msra.mxu2 %v10230_v44 }
 0x383   : > { %4502 = vmatpush.msra.mxu0 %v14396_v15  ;;  %v14399_v15 = vand.u32 4294901760, %v9874_v39 }
 0x384   : > { %3080 = vmatmul.f32.gmra.mxu2 %v14389_v51  ;;  %v3928_v51 = vand.u32 4294901760, %v10230_v44 }
 0x385   : > { %3245 = vmatmul.f32.gmra.mxu3 %v14393_v63  ;;  %4506 = vmatpush.msra.mxu0 %v14397_v4  ;;  %v14401_v4 = vand.u32 4294901760, %v9907_v45 }
 0x386   : > { %v3929_v11 = vsub.f32 %v10230_v44, %v3928_v51 }
 0x387   : > { %v2285_v50 = vpop.f32.mrf.mxu2 }
 0x388   : > { %v10235_v20 = vadd.f32 %v2518_v8, %v2285_v50  ;;  %v2522_v53 = vpop.f32.mrf.mxu3  ;;  %v3930_v47 = vand.u32 4294901760, %v3929_v11  ;;  %v10249_v8 = vpop.f32.mrf.mxu1  ;;  %v14398_v50 = vand.u32 4294901760, %v9841_v3  ;;  %v14402_v3 = vand.u32 4294901760, %v9940_v52 }
 0x389   : > { %v14405_v52 = vand.u32 4294901760, %v10006_v41  ;;  %v14410_v11 = vand.u32 4294901760, %v10136_v48  ;;  %v14412_v48 = vand.u32 4294901760, %v10203_v43 }
 0x38a   : > { %14395 = vst [vmem:[#allocation72_spill] sm:$0xff] %v10235_v20  ;;  %4510 = vmatpush.msra.mxu0 %v14398_v50  ;;  %3931 = vmatpush.msrb.mxu1 %v3930_v47  ;;  %v14411_v50 = vand.u32 4294901760, %v10171_v34 }
 0x38c   : > { %3084 = vmatmul.f32.gmra.mxu2 %v14393_v63  ;;  %4689 = vmatpush.msra.mxu1 %v9735_v36  ;;  %v10266_v63 = vpop.f32.mrf.mxu0  ;;  %v14403_v36 = vand.u32 4294901760, %v9973_v13  ;;  %v14408_v13 = vld [vmem:[#allocation2_spill] sm:$0xff] }
 0x38d   : > { %3249 = vmatmul.f32.gmra.mxu3 %v14281_v10  ;;  %4514 = vmatpush.msra.mxu0 %v14399_v15 }
 0x38e   : > { %4691 = vmatpush.msra.mxu1 %v9769_v21 }
 0x38f   : > { %v2293_v7 = vpop.f32.mrf.mxu2  ;;  %4518 = vmatpush.msra.mxu0 %v14401_v4 }
 0x390   : > { %v10257_v42 = vadd.f32 %v2522_v53, %v2293_v7  ;;  %v2526_v60 = vpop.f32.mrf.mxu3  ;;  %4693 = vmatpush.msra.mxu1 %v9802_v17  ;;  %v10272_v21 = vpop.f32.mrf.mxu1 }
 0x391   : > { %4522 = vmatpush.msra.mxu0 %v14402_v3 }
 0x392   : > { %14400 = vst [vmem:[#allocation148_spill] sm:$0xff] %v10257_v42  ;;  %4695 = vmatpush.msra.mxu1 %v9835_v23  ;;  %v14407_v23 = vand.u32 4294901760, %v10072_v35 }
 0x393   : > { %4526 = vmatpush.msra.mxu0 %v14403_v36 }
 0x394   : > { %3088 = vmatmul.f32.gmra.mxu2 %v14281_v10  ;;  %4697 = vmatpush.msra.mxu1 %v9868_v19  ;;  %v14406_v10 = vand.u32 4294901760, %v10039_v54  ;;  %v3317_v19 = vld [vmem:[%s13476_s3] sm:$0xf]  ;;  %v10293_v41 = vpop.f32.mrf.mxu0 }
 0x395   : > { %3253 = vmatmul.f32.gmra.mxu3 %v14172_v57  ;;  %4530 = vmatpush.msra.mxu0 %v14405_v52  ;;  %v10299_v35 = vperm.slane %v3317_v19, 3 }
 0x396   : > { %4699 = vmatpush.msra.mxu1 %v9901_v38  ;;  %v14409_v38 = vand.u32 4294901760, %v10105_v29  ;;  %v10306_v29 = vperm.slane %v3317_v19, 1 }
 0x397   : > { %v2301_v39 = vpop.f32.mrf.mxu2  ;;  %4534 = vmatpush.msra.mxu0 %v14406_v10 }
 0x398   : > { %v10275_v17 = vadd.f32 %v2526_v60, %v2301_v39  ;;  %v3190_v45 = vpop.f32.mrf.mxu3  ;;  %4701 = vmatpush.msra.mxu1 %v9934_v18  ;;  %v10297_v18 = vperm.slane %v3317_v19, 2  ;;  %v10303_v47 = vpop.f32.mrf.mxu1  ;;  %v14414_v60 = vld [vmem:[#allocation79_spill] sm:$0xff] }
 0x399   : > { %4538 = vmatpush.msra.mxu0 %v14407_v23  ;;  %v14418_v23 = vld [vmem:[#allocation93_spill] sm:$0xff] }
 0x39a   : > { %14404 = vst [vmem:[#allocation142_spill] sm:$0xff] %v10275_v17  ;;  %4703 = vmatpush.msra.mxu1 %v9967_v0 }
 0x39b   : > { %4542 = vmatpush.msra.mxu0 %v14409_v38 }
 0x39c   : > { %3092 = vmatmul.f32.gmra.mxu2 %v14172_v57  ;;  %4705 = vmatpush.msra.mxu1 %v10000_v58  ;;  %v10312_v58 = vperm.slane %v3317_v19, 0  ;;  %v10327_v36 = vpop.f32.mrf.mxu0 }
 0x39d   : > { %3257 = vmatmul.f32.gmra.mxu3 %v14408_v13  ;;  %4546 = vmatpush.msra.mxu0 %v14410_v11 }
 0x39e   : > { %4707 = vmatpush.msra.mxu1 %v10033_v46  ;;  %v14413_v46 = vld [vmem:[#allocation7_spill] sm:$0xff] }
 0x39f   : > { %v3029_v54 = vpop.f32.mrf.mxu2  ;;  %4550 = vmatpush.msra.mxu0 %v14411_v50 }
 0x3a0   : > { %v3030_v57 = vadd.f32 %v3029_v54, %v9951_v62  ;;  %v3194_v53 = vpop.f32.mrf.mxu3  ;;  %4709 = vmatpush.msra.mxu1 %v10066_v37 }
 0x3a1   : > { %4554 = vmatpush.msra.mxu0 %v14412_v48  ;;  %v14422_v48 = vld [vmem:[#allocation15_spill] sm:$0xff] }
 0x3a2   : > { %v3191_v0 = vadd.f32 %v3190_v45, %v3030_v57  ;;  %4711 = vmatpush.msra.mxu1 %v10097_v30  ;;  %v10330_v45 = vpop.f32.mrf.mxu1 }
 0x3a3   : > { %4558 = vmatpush.msra.mxu0 %v3928_v51 }
 0x3a4   : > { %v3319_v62 = vmul.f32 %v10297_v18, %v3191_v0  ;;  %v3385_v7 = vmul.f32 %v10299_v35, %v3191_v0  ;;  %3096 = vmatmul.f32.gmra.mxu2 %v14408_v13  ;;  %4713 = vmatpush.msra.mxu1 %v10130_v55  ;;  %v10353_v11 = vpop.f32.mrf.mxu0 }
 0x3a5   : > { %3261 = vmatmul.f32.gmra.mxu3 %v14413_v46 }
 0x3a6   : > { %v3418_v34 = vadd.f32 %v10306_v29, %v3385_v7  ;;  %v3352_v15 = vadd.f32 %v10312_v58, %v3319_v62  ;;  %4715 = vmatpush.msra.mxu1 %v10165_v9 }
 0x3a7   : > { %v3033_v37 = vpop.f32.mrf.mxu2 }
 0x3a8   : > { %v3450_v4 = vmul.f32 %v3418_v34, %v14414_v60  ;;  %v3034_v3 = vadd.f32 %v3033_v37, %v9960_v28  ;;  %v3198_v43 = vpop.f32.mrf.mxu3  ;;  %4717 = vmatpush.msra.mxu1 %v10195_v2  ;;  %v14416_v28 = vld [vmem:[#allocation11_spill] sm:$0xff] }
 0x3a9   : > { %v14424_v60 = vld [vmem:[#allocation3_spill] sm:$0xff] }
 0x3aa   : > { %v3482_v30 = vadd.f32 %v3450_v4, %v3352_v15  ;;  %v3195_v39 = vadd.f32 %v3194_v53, %v3034_v3  ;;  %4719 = vmatpush.msra.mxu1 %v10225_v14  ;;  %v10362_v7 = vpop.f32.mrf.mxu1 }
 0x3ac   : > { %v10333_v44 = vand.u32 4294901760, %v3482_v30  ;;  %v3320_v55 = vmul.f32 %v10297_v18, %v3195_v39  ;;  %v3386_v51 = vmul.f32 %v10299_v35, %v3195_v39  ;;  %3100 = vmatmul.f32.gmra.mxu2 %v14413_v46 }
 0x3ad   : > { %3265 = vmatmul.f32.gmra.mxu3 %v14416_v28 }
 0x3ae   : > { %14415 = vst [vmem:[#allocation70_spill] sm:$0xff] %v10333_v44  ;;  %v10341_v9 = vsub.f32 %v3482_v30, %v10333_v44  ;;  %v3419_v52 = vadd.f32 %v10306_v29, %v3386_v51  ;;  %3933 = vmatmul.f32.vlgmr.msrb.gmra.mxu1 %v10333_v44  ;;  %v3353_v10 = vadd.f32 %v10312_v58, %v3320_v55 }
 0x3af   : > { %v3037_v2 = vpop.f32.mrf.mxu2 }
 0x3b0   : > { %14417 = vst [vmem:[#allocation136_spill] sm:$0xff] %v10341_v9  ;;  %v3451_v13 = vmul.f32 %v3419_v52, %v14418_v23  ;;  %v3038_v19 = vadd.f32 %v3037_v2, %v9984_v27  ;;  %v3202_v38 = vpop.f32.mrf.mxu3  ;;  %v10349_v54 = vand.u32 4294901760, %v10341_v9  ;;  %v14428_v23 = vld [vmem:[#allocation19_spill] sm:$0xff] }
 0x3b2   : > { %14419 = vst [vmem:[#allocation77_spill] sm:$0xff] %v10349_v54  ;;  %v3483_v57 = vadd.f32 %v3451_v13, %v3353_v10  ;;  %v3199_v14 = vadd.f32 %v3198_v43, %v3038_v19  ;;  %v3582_v53 = vsub.f32 %v10341_v9, %v10349_v54 }
 0x3b4   : > { %v10355_v0 = vand.u32 4294901760, %v3483_v57  ;;  %v3321_v50 = vmul.f32 %v10297_v18, %v3199_v14  ;;  %v3387_v62 = vmul.f32 %v10299_v35, %v3199_v14  ;;  %3104 = vmatmul.f32.gmra.mxu2 %v14416_v28  ;;  %v10360_v27 = vand.u32 4294901760, %v3582_v53  ;;  %v14430_v53 = vld [vmem:[#allocation105_spill] sm:$0xff] }
 0x3b5   : > { %3269 = vmatmul.f32.gmra.mxu3 %v14422_v48 }
 0x3b6   : > { %14420 = vst [vmem:[#allocation149_spill] sm:$0xff] %v10355_v0  ;;  %v10366_v46 = vsub.f32 %v3483_v57, %v10355_v0  ;;  %v3420_v34 = vadd.f32 %v10306_v29, %v3387_v62  ;;  %3584 = vmatmul.f32.vlgmr.msrb.gmra.mxu0 %v10360_v27  ;;  %3937 = vmatmul.f32.gmra.mxu1 %v10355_v0 }
 0x3b7   : > { %14421 = vst [vmem:[#allocation145_spill] sm:$0xff] %v10360_v27  ;;  %v3041_v37 = vpop.f32.mrf.mxu2  ;;  %v3354_v15 = vadd.f32 %v10312_v58, %v3321_v50 }
 0x3b8   : > { %14423 = vst [vmem:[#allocation76_spill] sm:$0xff] %v10366_v46  ;;  %v3452_v4 = vmul.f32 %v3420_v34, %v14424_v60  ;;  %v3042_v3 = vadd.f32 %v3041_v37, %v9993_v16  ;;  %v3206_v43 = vpop.f32.mrf.mxu3  ;;  %v10375_v30 = vand.u32 4294901760, %v10366_v46  ;;  %v10386_v16 = vpop.f32.mrf.mxu0 }
 0x3ba   : > { %14425 = vst [vmem:[#allocation84_spill] sm:$0xff] %v10375_v30  ;;  %v3484_v39 = vadd.f32 %v3452_v4, %v3354_v15  ;;  %v3203_v55 = vadd.f32 %v3202_v38, %v3042_v3  ;;  %v3590_v51 = vsub.f32 %v10366_v46, %v10375_v30  ;;  %v10395_v38 = vpop.f32.mrf.mxu1 }
 0x3bc   : > { %v10379_v28 = vand.u32 4294901760, %v3484_v39  ;;  %v3322_v52 = vmul.f32 %v10297_v18, %v3203_v55  ;;  %v3388_v2 = vmul.f32 %v10299_v35, %v3203_v55  ;;  %3108 = vmatmul.f32.gmra.mxu2 %v14422_v48  ;;  %v10384_v10 = vand.u32 4294901760, %v3590_v51 }
 0x3bd   : > { %3273 = vmatmul.f32.gmra.mxu3 %v14428_v23 }
 0x3be   : > { %14426 = vst [vmem:[#allocation150_spill] sm:$0xff] %v10379_v28  ;;  %v10390_v13 = vsub.f32 %v3484_v39, %v10379_v28  ;;  %v3421_v19 = vadd.f32 %v10306_v29, %v3388_v2  ;;  %3592 = vmatmul.f32.gmra.mxu0 %v10384_v10  ;;  %3941 = vmatmul.f32.gmra.mxu1 %v10379_v28 }
 0x3bf   : > { %14427 = vst [vmem:[#allocation8_spill] sm:$0xff] %v10384_v10  ;;  %v3045_v57 = vpop.f32.mrf.mxu2  ;;  %v3355_v14 = vadd.f32 %v10312_v58, %v3322_v52 }
 0x3c0   : > { %14429 = vst [vmem:[#allocation83_spill] sm:$0xff] %v10390_v13  ;;  %v3453_v50 = vmul.f32 %v3421_v19, %v14430_v53  ;;  %v3046_v62 = vadd.f32 %v3045_v57, %v10017_v56  ;;  %v3210_v48 = vpop.f32.mrf.mxu3  ;;  %v10401_v34 = vand.u32 4294901760, %v10390_v13  ;;  %v14434_v56 = vld [vmem:[#allocation23_spill] sm:$0xff]  ;;  %v10419_v52 = vpop.f32.mrf.mxu0  ;;  %v14436_v57 = vld [vmem:[#allocation64_spill] sm:$0xff] }
 0x3c2   : > { %14431 = vst [vmem:[#allocation85_spill] sm:$0xff] %v10401_v34  ;;  %v3485_v37 = vadd.f32 %v3453_v50, %v3355_v14  ;;  %v3207_v15 = vadd.f32 %v3206_v43, %v3046_v62  ;;  %v3598_v60 = vsub.f32 %v10390_v13, %v10401_v34  ;;  %v10427_v62 = vpop.f32.mrf.mxu1 }
 0x3c4   : > { %v10405_v4 = vand.u32 4294901760, %v3485_v37  ;;  %v3323_v3 = vmul.f32 %v10297_v18, %v3207_v15  ;;  %v3389_v39 = vmul.f32 %v10299_v35, %v3207_v15  ;;  %3112 = vmatmul.f32.gmra.mxu2 %v14428_v23  ;;  %v10410_v55 = vand.u32 4294901760, %v3598_v60 }
 0x3c5   : > { %3277 = vmatmul.f32.gmra.mxu3 %v14434_v56 }
 0x3c6   : > { %14432 = vst [vmem:[#allocation12_spill] sm:$0xff] %v10405_v4  ;;  %v10414_v51 = vsub.f32 %v3485_v37, %v10405_v4  ;;  %v3422_v43 = vadd.f32 %v10306_v29, %v3389_v39  ;;  %3600 = vmatmul.f32.gmra.mxu0 %v10410_v55  ;;  %3945 = vmatmul.f32.gmra.mxu1 %v10405_v4 }
 0x3c7   : > { %14433 = vst [vmem:[#allocation82_spill] sm:$0xff] %v10410_v55  ;;  %v3049_v2 = vpop.f32.mrf.mxu2  ;;  %v3356_v19 = vadd.f32 %v10312_v58, %v3323_v3 }
 0x3c8   : > { %14435 = vst [vmem:[#allocation92_spill] sm:$0xff] %v10414_v51  ;;  %v3454_v23 = vmul.f32 %v3422_v43, %v14436_v57  ;;  %v3050_v14 = vadd.f32 %v3049_v2, %v10026_v22  ;;  %v3214_v53 = vpop.f32.mrf.mxu3  ;;  %v10425_v50 = vand.u32 4294901760, %v10414_v51  ;;  %v14440_v43 = vld [vmem:[#allocation28_spill] sm:$0xff]  ;;  %v10451_v10 = vpop.f32.mrf.mxu0 }
 0x3ca   : > { %14437 = vst [vmem:[#allocation16_spill] sm:$0xff] %v10425_v50  ;;  %v3486_v37 = vadd.f32 %v3454_v23, %v3356_v19  ;;  %v3211_v15 = vadd.f32 %v3210_v48, %v3050_v14  ;;  %v3606_v60 = vsub.f32 %v10414_v51, %v10425_v50  ;;  %v14442_v23 = vld [vmem:[#allocation118_spill] sm:$0xff] }
 0x3cc   : > { %v10431_v39 = vand.u32 4294901760, %v3486_v37  ;;  %v3324_v55 = vmul.f32 %v10297_v18, %v3211_v15  ;;  %v3390_v3 = vmul.f32 %v10299_v35, %v3211_v15  ;;  %3116 = vmatmul.f32.gmra.mxu2 %v14434_v56  ;;  %v10436_v22 = vand.u32 4294901760, %v3606_v60 }
 0x3cd   : > { %3281 = vmatmul.f32.gmra.mxu3 %v14440_v43 }
 0x3ce   : > { %14438 = vst [vmem:[#allocation88_spill] sm:$0xff] %v10431_v39  ;;  %v10440_v2 = vsub.f32 %v3486_v37, %v10431_v39  ;;  %v3423_v48 = vadd.f32 %v10306_v29, %v3390_v3  ;;  %3608 = vmatmul.f32.gmra.mxu0 %v10436_v22  ;;  %3949 = vmatmul.f32.gmra.mxu1 %v10431_v39 }
 0x3cf   : > { %14439 = vst [vmem:[#allocation98_spill] sm:$0xff] %v10436_v22  ;;  %v3053_v19 = vpop.f32.mrf.mxu2  ;;  %v3357_v57 = vadd.f32 %v10312_v58, %v3324_v55  ;;  %v10455_v22 = vpop.f32.mrf.mxu1 }
 0x3d0   : > { %14441 = vst [vmem:[#allocation20_spill] sm:$0xff] %v10440_v2  ;;  %v3455_v14 = vmul.f32 %v3423_v48, %v14442_v23  ;;  %v3054_v56 = vadd.f32 %v3053_v19, %v10050_v33  ;;  %v3218_v15 = vpop.f32.mrf.mxu3  ;;  %v10449_v60 = vand.u32 4294901760, %v10440_v2  ;;  %v14446_v19 = vld [vmem:[#allocation31_spill] sm:$0xff] }
 0x3d2   : > { %14443 = vst [vmem:[#allocation95_spill] sm:$0xff] %v10449_v60  ;;  %v3487_v37 = vadd.f32 %v3455_v14, %v3357_v57  ;;  %v3215_v27 = vadd.f32 %v3214_v53, %v3054_v56  ;;  %v3614_v3 = vsub.f32 %v10440_v2, %v10449_v60  ;;  %v14448_v56 = vld [vmem:[#allocation78_spill] sm:$0xff] }
 0x3d4   : > { %v10457_v39 = vand.u32 4294901760, %v3487_v37  ;;  %v3325_v55 = vmul.f32 %v10297_v18, %v3215_v27  ;;  %v3391_v48 = vmul.f32 %v10299_v35, %v3215_v27  ;;  %3120 = vmatmul.f32.gmra.mxu2 %v14440_v43  ;;  %v10462_v33 = vand.u32 4294901760, %v3614_v3 }
 0x3d5   : > { %3285 = vmatmul.f32.gmra.mxu3 %v14446_v19 }
 0x3d6   : > { %14444 = vst [vmem:[#allocation104_spill] sm:$0xff] %v10457_v39  ;;  %v10466_v57 = vsub.f32 %v3487_v37, %v10457_v39  ;;  %v3424_v53 = vadd.f32 %v10306_v29, %v3391_v48  ;;  %3616 = vmatmul.f32.gmra.mxu0 %v10462_v33  ;;  %3953 = vmatmul.f32.gmra.mxu1 %v10457_v39  ;;  %v10481_v39 = vpop.f32.mrf.mxu0 }
 0x3d7   : > { %14445 = vst [vmem:[#allocation24_spill] sm:$0xff] %v10462_v33  ;;  %v3057_v23 = vpop.f32.mrf.mxu2  ;;  %v3358_v14 = vadd.f32 %v10312_v58, %v3325_v55  ;;  %v2621_v37 = vadd.f32 %v10090_v31, %v9889_v59 }
 0x3d8   : > { %14447 = vst [vmem:[#allocation100_spill] sm:$0xff] %v10466_v57  ;;  %v3456_v27 = vmul.f32 %v3424_v53, %v14448_v56  ;;  %v3058_v43 = vadd.f32 %v3057_v23, %v10059_v40  ;;  %v3222_v3 = vpop.f32.mrf.mxu3  ;;  %v10475_v4 = vand.u32 4294901760, %v10466_v57  ;;  %v10490_v23 = vpop.f32.mrf.mxu1 }
 0x3da   : > { %14449 = vst [vmem:[#allocation111_spill] sm:$0xff] %v10475_v4  ;;  %v3488_v28 = vadd.f32 %v3456_v27, %v3358_v14  ;;  %v3219_v48 = vadd.f32 %v3218_v15, %v3058_v43  ;;  %v3622_v33 = vsub.f32 %v10466_v57, %v10475_v4  ;;  %v2823_v15 = vadd.f32 %v10082_v32, %v2621_v37 }
 0x3dc   : > { %v10483_v0 = vand.u32 4294901760, %v3488_v28  ;;  %v3326_v55 = vmul.f32 %v10297_v18, %v3219_v48  ;;  %v3392_v40 = vmul.f32 %v10299_v35, %v3219_v48  ;;  %3124 = vmatmul.f32.gmra.mxu2 %v14446_v19  ;;  %v10488_v53 = vand.u32 4294901760, %v3622_v33  ;;  %v14453_v33 = vld [vmem:[#allocation89_spill] sm:$0xff] }
 0x3dd   : > { %3289 = vmatmul.f32.gmra.mxu3 %v14227_v1 }
 0x3de   : > { %14450 = vst [vmem:[#allocation29_spill] sm:$0xff] %v10483_v0  ;;  %v10494_v59 = vsub.f32 %v3488_v28, %v10483_v0  ;;  %v3425_v31 = vadd.f32 %v10306_v29, %v3392_v40  ;;  %3624 = vmatmul.f32.gmra.mxu0 %v10488_v53  ;;  %3957 = vmatmul.f32.gmra.mxu1 %v10483_v0  ;;  %v14455_v28 = vld [vmem:[#allocation90_spill] sm:$0xff] }
 0x3df   : > { %14451 = vst [vmem:[#allocation107_spill] sm:$0xff] %v10488_v53  ;;  %v3061_v14 = vpop.f32.mrf.mxu2  ;;  %v3359_v19 = vadd.f32 %v10312_v58, %v3326_v55  ;;  %v2626_v44 = vadd.f32 %v10117_v6, %v14455_v28 }
 0x3e0   : > { %14452 = vst [vmem:[#allocation117_spill] sm:$0xff] %v10494_v59  ;;  %v3457_v56 = vmul.f32 %v3425_v31, %v14453_v33  ;;  %v3062_v27 = vadd.f32 %v3061_v14, %v2823_v15  ;;  %v3226_v43 = vpop.f32.mrf.mxu3  ;;  %v10503_v48 = vand.u32 4294901760, %v10494_v59  ;;  %v10516_v31 = vpop.f32.mrf.mxu0  ;;  %v14458_v15 = vld [vmem:[#allocation40_spill] sm:$0xff] }
 0x3e1   : > { %v2829_v14 = vadd.f32 %v10099_v26, %v2626_v44 }
 0x3e2   : > { %14454 = vst [vmem:[#allocation32_spill] sm:$0xff] %v10503_v48  ;;  %v3489_v40 = vadd.f32 %v3457_v56, %v3359_v19  ;;  %v3223_v17 = vadd.f32 %v3222_v3, %v3062_v27  ;;  %v3630_v53 = vsub.f32 %v10494_v59, %v10503_v48  ;;  %v14461_v19 = vld [vmem:[#allocation53_spill] sm:$0xff] }
 0x3e4   : > { %v10509_v0 = vand.u32 4294901760, %v3489_v40  ;;  %v3327_v32 = vmul.f32 %v10297_v18, %v3223_v17  ;;  %v3393_v37 = vmul.f32 %v10299_v35, %v3223_v17  ;;  %3128 = vmatmul.f32.gmra.mxu2 %v14227_v1  ;;  %v10514_v55 = vand.u32 4294901760, %v3630_v53  ;;  %v10526_v17 = vpop.f32.mrf.mxu1 }
 0x3e5   : > { %3293 = vmatmul.f32.gmra.mxu3 %v14458_v15  ;;  %14460 = vst [vmem:[#allocation119_spill] sm:$0xff] %v10526_v17 }
 0x3e6   : > { %14456 = vst [vmem:[#allocation112_spill] sm:$0xff] %v10509_v0  ;;  %v10520_v6 = vsub.f32 %v3489_v40, %v10509_v0  ;;  %v3426_v3 = vadd.f32 %v10306_v29, %v3393_v37  ;;  %3632 = vmatmul.f32.gmra.mxu0 %v10514_v55  ;;  %3961 = vmatmul.f32.gmra.mxu1 %v10509_v0  ;;  %v14463_v40 = vld [vmem:[#allocation121_spill] sm:$0xff] }
 0x3e7   : > { %14457 = vst [vmem:[#allocation120_spill] sm:$0xff] %v10514_v55  ;;  %v3065_v1 = vpop.f32.mrf.mxu2  ;;  %v3360_v53 = vadd.f32 %v10312_v58, %v3327_v32  ;;  %v2631_v37 = vadd.f32 %v10139_v5, %v14463_v40 }
 0x3e8   : > { %14459 = vst [vmem:[#allocation37_spill] sm:$0xff] %v10520_v6  ;;  %v3458_v33 = vmul.f32 %v3426_v3, %v14461_v19  ;;  %v3066_v56 = vadd.f32 %v3065_v1, %v2829_v14  ;;  %v3230_v27 = vpop.f32.mrf.mxu3  ;;  %v10531_v28 = vand.u32 4294901760, %v10520_v6  ;;  %v14466_v14 = vld [vmem:[#allocation45_spill] sm:$0xff]  ;;  %v14469_v19 = vld [vmem:[#allocation59_spill] sm:$0xff] }
 0x3ea   : > { %14462 = vst [vmem:[#allocation129_spill] sm:$0xff] %v10531_v28  ;;  %v3490_v55 = vadd.f32 %v3458_v33, %v3360_v53  ;;  %v3227_v42 = vadd.f32 %v3226_v43, %v3066_v56  ;;  %v3638_v26 = vsub.f32 %v10520_v6, %v10531_v28  ;;  %v2835_v43 = vadd.f32 %v10121_v49, %v2631_v37  ;;  %v10552_v53 = vpop.f32.mrf.mxu0 }
 0x3eb   : > { %14468 = vst [vmem:[#allocation46_spill] sm:$0xff] %v10552_v53 }
 0x3ec   : > { %v10537_v44 = vand.u32 4294901760, %v3490_v55  ;;  %v3328_v0 = vmul.f32 %v10297_v18, %v3227_v42  ;;  %v3394_v32 = vmul.f32 %v10299_v35, %v3227_v42  ;;  %3132 = vmatmul.f32.gmra.mxu2 %v14458_v15  ;;  %v10542_v3 = vand.u32 4294901760, %v3638_v26  ;;  %v10559_v26 = vpop.f32.mrf.mxu1 }
 0x3ed   : > { %3297 = vmatmul.f32.gmra.mxu3 %v14466_v14  ;;  %14471 = vst [vmem:[#allocation139_spill] sm:$0xff] %v10559_v26  ;;  %v14480_v26 = vld [vmem:[#allocation94_spill] sm:$0xff] }
 0x3ee   : > { %14464 = vst [vmem:[#allocation39_spill] sm:$0xff] %v10537_v44  ;;  %v10546_v1 = vsub.f32 %v3490_v55, %v10537_v44  ;;  %v3427_v5 = vadd.f32 %v10306_v29, %v3394_v32  ;;  %3640 = vmatmul.f32.gmra.mxu0 %v10542_v3  ;;  %3965 = vmatmul.f32.gmra.mxu1 %v10537_v44  ;;  %v14472_v32 = vld [vmem:[#allocation97_spill] sm:$0xff] }
 0x3ef   : > { %14465 = vst [vmem:[#allocation124_spill] sm:$0xff] %v10542_v3  ;;  %v3069_v42 = vpop.f32.mrf.mxu2  ;;  %v3361_v15 = vadd.f32 %v10312_v58, %v3328_v0  ;;  %v2636_v3 = vadd.f32 %v10154_v25, %v14472_v32 }
 0x3f0   : > { %14467 = vst [vmem:[#allocation134_spill] sm:$0xff] %v10546_v1  ;;  %v3459_v33 = vmul.f32 %v3427_v5, %v14469_v19  ;;  %v3070_v56 = vadd.f32 %v3069_v42, %v2835_v43  ;;  %v3234_v40 = vpop.f32.mrf.mxu3  ;;  %v10557_v55 = vand.u32 4294901760, %v10546_v1  ;;  %v14475_v42 = vld [vmem:[#allocation50_spill] sm:$0xff] }
 0x3f2   : > { %14470 = vst [vmem:[#allocation130_spill] sm:$0xff] %v10557_v55  ;;  %v3491_v44 = vadd.f32 %v3459_v33, %v3361_v15  ;;  %v3231_v20 = vadd.f32 %v3230_v27, %v3070_v56  ;;  %v3646_v49 = vsub.f32 %v10546_v1, %v10557_v55  ;;  %v2841_v27 = vadd.f32 %v10143_v12, %v2636_v3  ;;  %v14477_v33 = vld [vmem:[#allocation101_spill] sm:$0xff] }
 0x3f4   : > { %v10565_v37 = vand.u32 4294901760, %v3491_v44  ;;  %v3329_v0 = vmul.f32 %v10297_v18, %v3231_v20  ;;  %v3395_v5 = vmul.f32 %v10299_v35, %v3231_v20  ;;  %3136 = vmatmul.f32.gmra.mxu2 %v14466_v14  ;;  %v10570_v43 = vand.u32 4294901760, %v3646_v49  ;;  %v10591_v3 = vpop.f32.mrf.mxu1 }
 0x3f5   : > { %3301 = vmatmul.f32.gmra.mxu3 %v14475_v42  ;;  %14481 = vst [vmem:[#allocation6_spill] sm:$0xff] %v10591_v3 }
 0x3f6   : > { %14473 = vst [vmem:[#allocation51_spill] sm:$0xff] %v10565_v37  ;;  %v10574_v19 = vsub.f32 %v3491_v44, %v10565_v37  ;;  %v3428_v25 = vadd.f32 %v10306_v29, %v3395_v5  ;;  %3648 = vmatmul.f32.gmra.mxu0 %v10570_v43  ;;  %3969 = vmatmul.f32.gmra.mxu1 %v10565_v37  ;;  %v10585_v44 = vpop.f32.mrf.mxu0 }
 0x3f7   : > { %14474 = vst [vmem:[#allocation135_spill] sm:$0xff] %v10570_v43  ;;  %v3073_v15 = vpop.f32.mrf.mxu2  ;;  %v3362_v20 = vadd.f32 %v10312_v58, %v3329_v0  ;;  %v2641_v5 = vadd.f32 %v10181_v24, %v14480_v26  ;;  %v14486_v26 = vld [vmem:[#allocation144_spill] sm:$0xff] }
 0x3f8   : > { %14476 = vst [vmem:[#allocation143_spill] sm:$0xff] %v10574_v19  ;;  %v3460_v14 = vmul.f32 %v3428_v25, %v14477_v33  ;;  %v3074_v56 = vadd.f32 %v3073_v15, %v2841_v27  ;;  %v3238_v32 = vpop.f32.mrf.mxu3  ;;  %v10583_v49 = vand.u32 4294901760, %v10574_v19  ;;  %v14484_v33 = vld [vmem:[#allocation54_spill] sm:$0xff] }
 0x3f9   : > { %14479 = vst [vmem:[#allocation140_spill] sm:$0xff] %v10585_v44  ;;  %v14490_v44 = vld [vmem:[#allocation132_spill] sm:$0xff] }
 0x3fa   : > { %14478 = vst [vmem:[#allocation55_spill] sm:$0xff] %v10583_v49  ;;  %v3492_v43 = vadd.f32 %v3460_v14, %v3362_v20  ;;  %v3235_v17 = vadd.f32 %v3234_v40, %v3074_v56  ;;  %v3654_v12 = vsub.f32 %v10574_v19, %v10583_v49  ;;  %v2847_v20 = vadd.f32 %v14486_v26, %v2641_v5  ;;  %v14487_v56 = vld [vmem:[#allocation113_spill] sm:$0xff] }
 0x3fc   : > { %v10593_v0 = vand.u32 4294901760, %v3492_v43  ;;  %v3330_v25 = vmul.f32 %v10297_v18, %v3235_v17  ;;  %v3396_v27 = vmul.f32 %v10299_v35, %v3235_v17  ;;  %3140 = vmatmul.f32.gmra.mxu2 %v14475_v42  ;;  %v10598_v15 = vand.u32 4294901760, %v3654_v12 }
 0x3fd   : > { %3305 = vmatmul.f32.gmra.mxu3 %v14484_v33 }
 0x3fe   : > { %14482 = vst [vmem:[#allocation60_spill] sm:$0xff] %v10593_v0  ;;  %v10602_v24 = vsub.f32 %v3492_v43, %v10593_v0  ;;  %v3429_v40 = vadd.f32 %v10306_v29, %v3396_v27  ;;  %3656 = vmatmul.f32.gmra.mxu0 %v10598_v15  ;;  %3973 = vmatmul.f32.gmra.mxu1 %v10593_v0  ;;  %v14489_v43 = vld [vmem:[#allocation127_spill] sm:$0xff]  ;;  %v10617_v0 = vpop.f32.mrf.mxu0 }
 0x3ff   : > { %14483 = vst [vmem:[#allocation4_spill] sm:$0xff] %v10598_v15  ;;  %v3077_v14 = vpop.f32.mrf.mxu2  ;;  %v3363_v17 = vadd.f32 %v10312_v58, %v3330_v25  ;;  %v2646_v19 = vadd.f32 %v14490_v44, %v14489_v43  ;;  %v14495_v44 = vld [vmem:[#allocation58_spill] sm:$0xff] }
 0x400   : > { %14485 = vst [vmem:[#allocation9_spill] sm:$0xff] %v10602_v24  ;;  %v3461_v42 = vmul.f32 %v3429_v40, %v14487_v56  ;;  %v3078_v12 = vadd.f32 %v3077_v14, %v2847_v20  ;;  %v3242_v37 = vpop.f32.mrf.mxu3  ;;  %v10611_v3 = vand.u32 4294901760, %v10602_v24  ;;  %v10626_v20 = vpop.f32.mrf.mxu1 }
 0x401   : > { %14491 = vst [vmem:[#allocation5_spill] sm:$0xff] %v10617_v0 }
 0x402   : > { %14488 = vst [vmem:[#allocation67_spill] sm:$0xff] %v10611_v3  ;;  %v3493_v27 = vadd.f32 %v3461_v42, %v3363_v17  ;;  %v3239_v53 = vadd.f32 %v3238_v32, %v3078_v12  ;;  %v3662_v15 = vsub.f32 %v10602_v24, %v10611_v3  ;;  %v14497_v17 = vld [vmem:[#allocation44_spill] sm:$0xff]  ;;  %v14499_v12 = vld [vmem:[#allocation125_spill] sm:$0xff] }
 0x403   : > { %14494 = vst [vmem:[#allocation10_spill] sm:$0xff] %v10626_v20  ;;  %v2853_v56 = vadd.f32 %v14497_v17, %v2646_v19  ;;  %v14502_v17 = vld [vmem:[#allocation103_spill] sm:$0xff] }
 0x404   : > { %v10619_v5 = vand.u32 4294901760, %v3493_v27  ;;  %v3331_v25 = vmul.f32 %v10297_v18, %v3239_v53  ;;  %v3397_v40 = vmul.f32 %v10299_v35, %v3239_v53  ;;  %3144 = vmatmul.f32.gmra.mxu2 %v14484_v33  ;;  %v10624_v26 = vand.u32 4294901760, %v3662_v15  ;;  %v7796_v53 = vld [vmem:[%s13475_s2 + $0x1f8] sm:$0xff] }
 0x405   : > { %3309 = vmatmul.f32.gmra.mxu3 %v14495_v44  ;;  %v10639_v33 = vand.u32 4294901760, %v7796_v53 }
 0x406   : > { %14492 = vst [vmem:[#allocation13_spill] sm:$0xff] %v10619_v5  ;;  %v10630_v32 = vsub.f32 %v3493_v27, %v10619_v5  ;;  %v3430_v14 = vadd.f32 %v10306_v29, %v3397_v40  ;;  %3664 = vmatmul.f32.gmra.mxu0 %v10624_v26  ;;  %3977 = vmatmul.f32.gmra.mxu1 %v10619_v5 }
 0x407   : > { %14493 = vst [vmem:[#allocation73_spill] sm:$0xff] %v10624_v26  ;;  %v3081_v15 = vpop.f32.mrf.mxu2  ;;  %v3364_v42 = vadd.f32 %v10312_v58, %v3331_v25  ;;  %4850 = vmatpush.msrb.mxu2 %v10639_v33  ;;  %v10648_v19 = vsub.f32 %v7796_v53, %v10639_v33  ;;  %5573 = vmatpush.msrb.mxu1 %v10639_v33  ;;  %v14503_v26 = vld [vmem:[#allocation138_spill] sm:$0xff] }
 0x408   : > { %14496 = vst [vmem:[#allocation17_spill] sm:$0xff] %v10630_v32  ;;  %v3462_v43 = vmul.f32 %v3430_v14, %v14499_v12  ;;  %v3082_v27 = vadd.f32 %v3081_v15, %v2853_v56  ;;  %v3246_v20 = vpop.f32.mrf.mxu3  ;;  %v10644_v40 = vand.u32 4294901760, %v10630_v32  ;;  %v2651_v5 = vadd.f32 %v14503_v26, %v14502_v17  ;;  %v10664_v26 = vpop.f32.mrf.mxu0 }
 0x409   : > { %14498 = vst [vmem:[#allocation81_spill] sm:$0xff] %v10639_v33  ;;  %v13741_v14 = vand.u32 4294901760, %v10648_v19  ;;  %5365 = vmatpush.msrb.mxu0 %v10648_v19  ;;  %v10677_v17 = vpop.f32.mrf.mxu1 }
 0x40a   : > { %14500 = vst [vmem:[#allocation14_spill] sm:$0xff] %v10644_v40  ;;  %v3494_v0 = vadd.f32 %v3462_v43, %v3364_v42  ;;  %v3243_v24 = vadd.f32 %v3242_v37, %v3082_v27  ;;  %v3670_v25 = vsub.f32 %v10630_v32, %v10644_v40  ;;  %v14507_v37 = vld [vmem:[#allocation68_spill] sm:$0xff]  ;;  %v14510_v32 = vld [vmem:[#allocation57_spill] sm:$0xff] }
 0x40b   : > { %14501 = vst [vmem:[#allocation21_spill] sm:$0xff] %v10648_v19  ;;  %v5141_v42 = vsub.f32 %v10648_v19, %v13741_v14 }
 0x40c   : > { %v10657_v56 = vand.u32 4294901760, %v3494_v0  ;;  %v3332_v15 = vmul.f32 %v10297_v18, %v3243_v24  ;;  %v3398_v53 = vmul.f32 %v10299_v35, %v3243_v24  ;;  %3148 = vmatmul.f32.gmra.mxu2 %v14495_v44  ;;  %v10662_v12 = vand.u32 4294901760, %v3670_v25  ;;  %14506 = vst [vmem:[#allocation22_spill] sm:$0xff] %v10664_v26  ;;  %v14509_v24 = vld [vmem:[#allocation63_spill] sm:$0xff] }
 0x40d   : > { %3313 = vmatmul.f32.gmra.mxu3 %v14507_v37  ;;  %v2859_v44 = vadd.f32 %v14509_v24, %v2651_v5  ;;  %v5142_v33 = vand.u32 4294901760, %v5141_v42 }
 0x40e   : > { %14504 = vst [vmem:[#allocation18_spill] sm:$0xff] %v10657_v56  ;;  %v10671_v43 = vsub.f32 %v3494_v0, %v10657_v56  ;;  %v3431_v27 = vadd.f32 %v10306_v29, %v3398_v53  ;;  %3672 = vmatmul.f32.gmra.mxu0 %v10662_v12  ;;  %3981 = vmatmul.f32.gmra.mxu1 %v10657_v56  ;;  %v14512_v53 = vld [vmem:[#allocation99_spill] sm:$0xff] }
 0x40f   : > { %14505 = vst [vmem:[#allocation25_spill] sm:$0xff] %v10662_v12  ;;  %v3085_v25 = vpop.f32.mrf.mxu2  ;;  %v3365_v26 = vadd.f32 %v10312_v58, %v3332_v15  ;;  %5143 = vmatpush.msrb.mxu3 %v5142_v33  ;;  %v2656_v12 = vadd.f32 %v10244_v61, %v14512_v53 }
 0x410   : > { %14508 = vst [vmem:[#allocation27_spill] sm:$0xff] %v10671_v43  ;;  %v3463_v40 = vmul.f32 %v3431_v27, %v14510_v32  ;;  %v3086_v14 = vadd.f32 %v3085_v25, %v2859_v44  ;;  %v3250_v19 = vpop.f32.mrf.mxu3  ;;  %v10682_v0 = vand.u32 4294901760, %v10671_v43  ;;  %v14518_v27 = vld [vmem:[#allocation65_spill] sm:$0xff] }
 0x412   : > { %14511 = vst [vmem:[#allocation26_spill] sm:$0xff] %v10682_v0  ;;  %v3495_v56 = vadd.f32 %v3463_v40, %v3365_v26  ;;  %v3247_v3 = vadd.f32 %v3246_v20, %v3086_v14  ;;  %v3678_v5 = vsub.f32 %v10671_v43, %v10682_v0  ;;  %v14516_v20 = vld [vmem:[#allocation62_spill] sm:$0xff]  ;;  %v10706_v14 = vpop.f32.mrf.mxu0 }
 0x413   : > { %v2865_v40 = vadd.f32 %v14516_v20, %v2656_v12  ;;  %v14521_v20 = vld [vmem:[#allocation131_spill] sm:$0xff] }
 0x414   : > { %v10688_v24 = vand.u32 4294901760, %v3495_v56  ;;  %v3333_v15 = vmul.f32 %v10297_v18, %v3247_v3  ;;  %v3399_v32 = vmul.f32 %v10299_v35, %v3247_v3  ;;  %3152 = vmatmul.f32.gmra.mxu2 %v14507_v37  ;;  %v10693_v42 = vand.u32 4294901760, %v3678_v5  ;;  %v7794_v3 = vld [vmem:[%s13475_s2 + $0x1e8] sm:$0xff] }
 0x415   : > { %4305 = vmatmul.f32.vlgmr.msra.gmra.mxu3 %v10349_v54  ;;  %v10708_v37 = vand.u32 4294901760, %v7794_v3  ;;  %v2661_v54 = vadd.f32 %v10266_v63, %v14521_v20 }
 0x416   : > { %14513 = vst [vmem:[#allocation33_spill] sm:$0xff] %v10688_v24  ;;  %v10697_v33 = vsub.f32 %v3495_v56, %v10688_v24  ;;  %v3432_v61 = vadd.f32 %v10306_v29, %v3399_v32  ;;  %3680 = vmatmul.f32.gmra.mxu0 %v10693_v42  ;;  %3985 = vmatmul.f32.gmra.mxu1 %v10688_v24  ;;  %v10715_v32 = vpop.f32.mrf.mxu1 }
 0x417   : > { %14514 = vst [vmem:[#allocation30_spill] sm:$0xff] %v10693_v42  ;;  %v3089_v26 = vpop.f32.mrf.mxu2  ;;  %v3366_v56 = vadd.f32 %v10312_v58, %v3333_v15  ;;  %4852 = vmatpush.msrb.mxu2 %v10708_v37  ;;  %v10719_v12 = vsub.f32 %v7794_v3, %v10708_v37  ;;  %5575 = vmatpush.msrb.mxu1 %v10708_v37 }
 0x418   : > { %14515 = vst [vmem:[#allocation35_spill] sm:$0xff] %v10697_v33  ;;  %v3464_v44 = vmul.f32 %v3432_v61, %v14518_v27  ;;  %v3090_v25 = vadd.f32 %v3089_v26, %v2865_v40  ;;  %v3254_v53 = vpop.f32.mrf.mxu3  ;;  %v10713_v5 = vand.u32 4294901760, %v10697_v33 }
 0x419   : > { %14517 = vst [vmem:[#allocation34_spill] sm:$0xff] %v10708_v37  ;;  %v13755_v40 = vand.u32 4294901760, %v10719_v12  ;;  %5368 = vmatpush.msrb.mxu0 %v10719_v12 }
 0x41a   : > { %14519 = vst [vmem:[#allocation41_spill] sm:$0xff] %v10713_v5  ;;  %v3496_v15 = vadd.f32 %v3464_v44, %v3366_v56  ;;  %v3251_v42 = vadd.f32 %v3250_v19, %v3090_v25  ;;  %v3686_v61 = vsub.f32 %v10697_v33, %v10713_v5 }
 0x41b   : > { %14520 = vst [vmem:[#allocation38_spill] sm:$0xff] %v10719_v12  ;;  %v5147_v63 = vsub.f32 %v10719_v12, %v13755_v40 }
 0x41c   : > { %v10728_v26 = vand.u32 4294901760, %v3496_v15  ;;  %v3334_v27 = vmul.f32 %v10297_v18, %v3251_v42  ;;  %v3400_v3 = vmul.f32 %v10299_v35, %v3251_v42  ;;  %4111 = vmatmul.f32.vlgmr.msra.gmra.mxu2 %v10341_v9  ;;  %v10733_v24 = vand.u32 4294901760, %v3686_v61  ;;  %v14525_v61 = vld [vmem:[#allocation61_spill] sm:$0xff] }
 0x41d   : > { %4311 = vmatmul.f32.gmra.mxu3 %v10375_v30  ;;  %v2871_v42 = vadd.f32 %v10249_v8, %v2661_v54  ;;  %v5148_v25 = vand.u32 4294901760, %v5147_v63 }
 0x41e   : > { %14522 = vst [vmem:[#allocation47_spill] sm:$0xff] %v10728_v26  ;;  %v10740_v19 = vsub.f32 %v3496_v15, %v10728_v26  ;;  %v3433_v56 = vadd.f32 %v10306_v29, %v3400_v3  ;;  %3688 = vmatmul.f32.gmra.mxu0 %v10733_v24  ;;  %3989 = vmatmul.f32.gmra.mxu1 %v10728_v26  ;;  %v10751_v15 = vpop.f32.mrf.mxu0  ;;  %v14527_v3 = vld [vmem:[#allocation110_spill] sm:$0xff]  ;;  %v10757_v54 = vpop.f32.mrf.mxu1 }
 0x41f   : > { %14523 = vst [vmem:[#allocation43_spill] sm:$0xff] %v10733_v24  ;;  %v3093_v44 = vpop.f32.mrf.mxu2  ;;  %v3367_v20 = vadd.f32 %v10312_v58, %v3334_v27  ;;  %5149 = vmatpush.msrb.mxu3 %v5148_v25  ;;  %v2666_v24 = vadd.f32 %v10293_v41, %v14527_v3 }
 0x420   : > { %14524 = vst [vmem:[#allocation52_spill] sm:$0xff] %v10740_v19  ;;  %v3465_v9 = vmul.f32 %v3433_v56, %v14525_v61  ;;  %v3094_v30 = vadd.f32 %v3093_v44, %v2871_v42  ;;  %v3258_v37 = vpop.f32.mrf.mxu3  ;;  %v10749_v40 = vand.u32 4294901760, %v10740_v19 }
 0x422   : > { %14526 = vst [vmem:[#allocation49_spill] sm:$0xff] %v10749_v40  ;;  %v3497_v26 = vadd.f32 %v3465_v9, %v3367_v20  ;;  %v3255_v12 = vadd.f32 %v3254_v53, %v3094_v30  ;;  %v3694_v8 = vsub.f32 %v10740_v19, %v10749_v40  ;;  %v2877_v30 = vadd.f32 %v10272_v21, %v2666_v24  ;;  %v7792_v53 = vld [vmem:[%s13475_s2 + $0x1d8] sm:$0xff]  ;;  %v14532_v20 = vld [vmem:[#allocation75_spill] sm:$0xff]  ;;  %v14535_v24 = vld [vmem:[#allocation106_spill] sm:$0xff] }
 0x423   : > { %v10777_v44 = vand.u32 4294901760, %v7792_v53 }
 0x424   : > { %v10759_v27 = vand.u32 4294901760, %v3497_v26  ;;  %v3335_v63 = vmul.f32 %v10297_v18, %v3255_v12  ;;  %v3401_v56 = vmul.f32 %v10299_v35, %v3255_v12  ;;  %4116 = vmatmul.f32.gmra.mxu2 %v10366_v46  ;;  %v10764_v42 = vand.u32 4294901760, %v3694_v8 }
 0x425   : > { %4317 = vmatmul.f32.gmra.mxu3 %v10401_v34  ;;  %14531 = vst [vmem:[#allocation133_spill] sm:$0xff] %v10777_v44  ;;  %4854 = vmatpush.msrb.mxu2 %v10777_v44  ;;  %v10786_v21 = vsub.f32 %v7792_v53, %v10777_v44 }
 0x426   : > { %14528 = vst [vmem:[#allocation56_spill] sm:$0xff] %v10759_v27  ;;  %v10768_v41 = vsub.f32 %v3497_v26, %v10759_v27  ;;  %v3434_v9 = vadd.f32 %v10306_v29, %v3401_v56  ;;  %3696 = vmatmul.f32.gmra.mxu0 %v10764_v42  ;;  %3993 = vmatmul.f32.gmra.mxu1 %v10759_v27 }
 0x427   : > { %14529 = vst [vmem:[#allocation123_spill] sm:$0xff] %v10764_v42  ;;  %v3097_v12 = vpop.f32.mrf.mxu2  ;;  %v3368_v25 = vadd.f32 %v10312_v58, %v3335_v63  ;;  %5577 = vmatpush.msrb.mxu1 %v10777_v44  ;;  %v2671_v56 = vadd.f32 %v10327_v36, %v14535_v24  ;;  %5371 = vmatpush.msrb.mxu0 %v10786_v21 }
 0x428   : > { %14530 = vst [vmem:[#allocation128_spill] sm:$0xff] %v10768_v41  ;;  %v3466_v26 = vmul.f32 %v3434_v9, %v14532_v20  ;;  %v3098_v61 = vadd.f32 %v3097_v12, %v2877_v30  ;;  %v3262_v3 = vpop.f32.mrf.mxu3  ;;  %v10782_v8 = vand.u32 4294901760, %v10768_v41  ;;  %v10793_v9 = vpop.f32.mrf.mxu0  ;;  %v13768_v12 = vand.u32 4294901760, %v10786_v21 }
 0x429   : > { %14534 = vst [vmem:[#allocation7_spill] sm:$0xff] %v10786_v21 }
 0x42a   : > { %14533 = vst [vmem:[#allocation2_spill] sm:$0xff] %v10782_v8  ;;  %v3498_v46 = vadd.f32 %v3466_v26, %v3368_v25  ;;  %v3259_v34 = vadd.f32 %v3258_v37, %v3098_v61  ;;  %v3702_v63 = vsub.f32 %v10768_v41, %v10782_v8  ;;  %v5153_v37 = vsub.f32 %v10786_v21, %v13768_v12 }
 0x42b   : > { %v10795_v30 = vpop.f32.mrf.mxu1 }
 0x42c   : > { %v10799_v53 = vand.u32 4294901760, %v3498_v46  ;;  %v3336_v20 = vmul.f32 %v10297_v18, %v3259_v34  ;;  %v3402_v42 = vmul.f32 %v10299_v35, %v3259_v34  ;;  %4121 = vmatmul.f32.gmra.mxu2 %v10390_v13  ;;  %v10804_v36 = vand.u32 4294901760, %v3702_v63  ;;  %v14539_v13 = vld [vmem:[#allocation71_spill] sm:$0xff] }
 0x42d   : > { %4323 = vmatmul.f32.gmra.mxu3 %v10425_v50  ;;  %v2883_v34 = vadd.f32 %v10303_v47, %v2671_v56  ;;  %v5154_v24 = vand.u32 4294901760, %v5153_v37 }
 0x42e   : > { %14536 = vst [vmem:[#allocation79_spill] sm:$0xff] %v10799_v53  ;;  %v10811_v25 = vsub.f32 %v3498_v46, %v10799_v53  ;;  %v3435_v26 = vadd.f32 %v10306_v29, %v3402_v42  ;;  %3704 = vmatmul.f32.gmra.mxu0 %v10804_v36  ;;  %3997 = vmatmul.f32.gmra.mxu1 %v10799_v53  ;;  %v14541_v46 = vld [vmem:[#allocation137_spill] sm:$0xff] }
 0x42f   : > { %14537 = vst [vmem:[#allocation11_spill] sm:$0xff] %v10804_v36  ;;  %v3101_v61 = vpop.f32.mrf.mxu2  ;;  %v3369_v63 = vadd.f32 %v10312_v58, %v3336_v20  ;;  %5155 = vmatpush.msrb.mxu3 %v5154_v24  ;;  %v2676_v42 = vadd.f32 %v10353_v11, %v14541_v46 }
 0x430   : > { %14538 = vst [vmem:[#allocation93_spill] sm:$0xff] %v10811_v25  ;;  %v3467_v50 = vmul.f32 %v3435_v26, %v14539_v13  ;;  %v3102_v27 = vadd.f32 %v3101_v61, %v2883_v34  ;;  %v3266_v44 = vpop.f32.mrf.mxu3  ;;  %v10820_v12 = vand.u32 4294901760, %v10811_v25  ;;  %v7790_v34 = vld [vmem:[%s13475_s2 + $0x1c8] sm:$0xff] }
 0x431   : > { %v10848_v61 = vand.u32 4294901760, %v7790_v34 }
 0x432   : > { %14540 = vst [vmem:[#allocation15_spill] sm:$0xff] %v10820_v12  ;;  %v3499_v36 = vadd.f32 %v3467_v50, %v3369_v63  ;;  %v3263_v21 = vadd.f32 %v3262_v3, %v3102_v27  ;;  %v3710_v47 = vsub.f32 %v10811_v25, %v10820_v12  ;;  %v2889_v3 = vadd.f32 %v10330_v45, %v2676_v42  ;;  %v14546_v63 = vld [vmem:[#allocation48_spill] sm:$0xff] }
 0x433   : > { %v10826_v56 = vpop.f32.mrf.mxu0  ;;  %v10828_v37 = vpop.f32.mrf.mxu1  ;;  %14545 = vst [vmem:[#allocation23_spill] sm:$0xff] %v10848_v61  ;;  %4856 = vmatpush.msrb.mxu2 %v10848_v61  ;;  %v10857_v45 = vsub.f32 %v7790_v34, %v10848_v61  ;;  %5579 = vmatpush.msrb.mxu1 %v10848_v61  ;;  %v14549_v42 = vld [vmem:[#allocation116_spill] sm:$0xff] }
 0x434   : > { %v10830_v20 = vand.u32 4294901760, %v3499_v36  ;;  %v3337_v13 = vmul.f32 %v10297_v18, %v3263_v21  ;;  %v3403_v26 = vmul.f32 %v10299_v35, %v3263_v21  ;;  %4126 = vmatmul.f32.gmra.mxu2 %v10414_v51  ;;  %v10836_v11 = vand.u32 4294901760, %v3710_v47 }
 0x435   : > { %4329 = vmatmul.f32.gmra.mxu3 %v10449_v60  ;;  %14548 = vst [vmem:[#allocation28_spill] sm:$0xff] %v10857_v45  ;;  %v2681_v51 = vadd.f32 %v10386_v16, %v14549_v42  ;;  %5374 = vmatpush.msrb.mxu0 %v10857_v45 }
 0x436   : > { %14542 = vst [vmem:[#allocation3_spill] sm:$0xff] %v10830_v20  ;;  %v10839_v50 = vsub.f32 %v3499_v36, %v10830_v20  ;;  %v3436_v27 = vadd.f32 %v10306_v29, %v3403_v26  ;;  %4001 = vmatmul.f32.gmra.mxu1 %v10830_v20  ;;  %3712 = vmatmul.f32.gmra.mxu0 %v10836_v11 }
 0x437   : > { %14543 = vst [vmem:[#allocation19_spill] sm:$0xff] %v10836_v11  ;;  %v3105_v21 = vpop.f32.mrf.mxu2  ;;  %v3370_v24 = vadd.f32 %v10312_v58, %v3337_v13 }
 0x438   : > { %14544 = vst [vmem:[#allocation105_spill] sm:$0xff] %v10839_v50  ;;  %v3468_v36 = vmul.f32 %v3436_v27, %v14546_v63  ;;  %v3106_v46 = vadd.f32 %v3105_v21, %v2889_v3  ;;  %v3270_v47 = vpop.f32.mrf.mxu3  ;;  %v10853_v26 = vand.u32 4294901760, %v10839_v50  ;;  %v13781_v21 = vand.u32 4294901760, %v10857_v45 }
 0x43a   : > { %14547 = vst [vmem:[#allocation64_spill] sm:$0xff] %v10853_v26  ;;  %v3500_v60 = vadd.f32 %v3468_v36, %v3370_v24  ;;  %v3267_v11 = vadd.f32 %v3266_v44, %v3106_v46  ;;  %v3718_v13 = vsub.f32 %v10839_v50, %v10853_v26  ;;  %v5159_v44 = vsub.f32 %v10857_v45, %v13781_v21 }
 0x43b   : > { %v10864_v27 = vpop.f32.mrf.mxu0  ;;  %v10866_v3 = vpop.f32.mrf.mxu1  ;;  %v2895_v46 = vadd.f32 %v10362_v7, %v2681_v51 }
 0x43c   : > { %v10870_v34 = vand.u32 4294901760, %v3500_v60  ;;  %v3338_v63 = vmul.f32 %v10297_v18, %v3267_v11  ;;  %v3404_v20 = vmul.f32 %v10299_v35, %v3267_v11  ;;  %4131 = vmatmul.f32.gmra.mxu2 %v10440_v2  ;;  %v10876_v16 = vand.u32 4294901760, %v3718_v13  ;;  %v14553_v2 = vld [vmem:[#allocation91_spill] sm:$0xff] }
 0x43d   : > { %4335 = vmatmul.f32.gmra.mxu3 %v10475_v4  ;;  %v5160_v42 = vand.u32 4294901760, %v5159_v44 }
 0x43e   : > { %14550 = vst [vmem:[#allocation118_spill] sm:$0xff] %v10870_v34  ;;  %v10882_v24 = vsub.f32 %v3500_v60, %v10870_v34  ;;  %v3437_v36 = vadd.f32 %v10306_v29, %v3404_v20  ;;  %4005 = vmatmul.f32.gmra.mxu1 %v10870_v34  ;;  %3720 = vmatmul.f32.gmra.mxu0 %v10876_v16  ;;  %v14555_v60 = vld [vmem:[#allocation108_spill] sm:$0xff] }
 0x43f   : > { %14551 = vst [vmem:[#allocation31_spill] sm:$0xff] %v10876_v16  ;;  %v3109_v11 = vpop.f32.mrf.mxu2  ;;  %v3371_v13 = vadd.f32 %v10312_v58, %v3338_v63  ;;  %5161 = vmatpush.msrb.mxu3 %v5160_v42  ;;  %v2686_v20 = vadd.f32 %v10419_v52, %v14555_v60 }
 0x440   : > { %14552 = vst [vmem:[#allocation78_spill] sm:$0xff] %v10882_v24  ;;  %v3469_v4 = vmul.f32 %v3437_v36, %v14553_v2  ;;  %v3110_v53 = vadd.f32 %v3109_v11, %v2895_v46  ;;  %v3274_v61 = vpop.f32.mrf.mxu3  ;;  %v10891_v21 = vand.u32 4294901760, %v10882_v24  ;;  %v7788_v46 = vld [vmem:[%s13475_s2 + $0x1b8] sm:$0xff] }
 0x441   : > { %v10919_v11 = vand.u32 4294901760, %v7788_v46 }
 0x442   : > { %14554 = vst [vmem:[#allocation89_spill] sm:$0xff] %v10891_v21  ;;  %v3501_v34 = vadd.f32 %v3469_v4, %v3371_v13  ;;  %v3271_v45 = vadd.f32 %v3270_v47, %v3110_v53  ;;  %v3726_v7 = vsub.f32 %v10882_v24, %v10891_v21  ;;  %v2901_v47 = vadd.f32 %v10395_v38, %v2686_v20  ;;  %v14560_v13 = vld [vmem:[#allocation69_spill] sm:$0xff] }
 0x443   : > { %v10897_v51 = vpop.f32.mrf.mxu0  ;;  %v10899_v44 = vpop.f32.mrf.mxu1  ;;  %14559 = vst [vmem:[#allocation121_spill] sm:$0xff] %v10919_v11  ;;  %4858 = vmatpush.msrb.mxu2 %v10919_v11  ;;  %v10928_v38 = vsub.f32 %v7788_v46, %v10919_v11  ;;  %5581 = vmatpush.msrb.mxu1 %v10919_v11  ;;  %v14563_v20 = vld [vmem:[#allocation141_spill] sm:$0xff] }
 0x444   : > { %v10901_v63 = vand.u32 4294901760, %v3501_v34  ;;  %v3339_v2 = vmul.f32 %v10297_v18, %v3271_v45  ;;  %v3405_v36 = vmul.f32 %v10299_v35, %v3271_v45  ;;  %4136 = vmatmul.f32.gmra.mxu2 %v10466_v57  ;;  %v10907_v52 = vand.u32 4294901760, %v3726_v7 }
 0x445   : > { %4341 = vmatmul.f32.gmra.mxu3 %v10503_v48  ;;  %14562 = vst [vmem:[#allocation59_spill] sm:$0xff] %v10928_v38  ;;  %v2691_v57 = vadd.f32 %v10451_v10, %v14563_v20  ;;  %5377 = vmatpush.msrb.mxu0 %v10928_v38 }
 0x446   : > { %14556 = vst [vmem:[#allocation90_spill] sm:$0xff] %v10901_v63  ;;  %v10910_v4 = vsub.f32 %v3501_v34, %v10901_v63  ;;  %v3438_v53 = vadd.f32 %v10306_v29, %v3405_v36  ;;  %4009 = vmatmul.f32.gmra.mxu1 %v10901_v63  ;;  %3728 = vmatmul.f32.gmra.mxu0 %v10907_v52 }
 0x447   : > { %14557 = vst [vmem:[#allocation40_spill] sm:$0xff] %v10907_v52  ;;  %v3113_v45 = vpop.f32.mrf.mxu2  ;;  %v3372_v42 = vadd.f32 %v10312_v58, %v3339_v2 }
 0x448   : > { %14558 = vst [vmem:[#allocation53_spill] sm:$0xff] %v10910_v4  ;;  %v3470_v34 = vmul.f32 %v3438_v53, %v14560_v13  ;;  %v3114_v60 = vadd.f32 %v3113_v45, %v2901_v47  ;;  %v3278_v7 = vpop.f32.mrf.mxu3  ;;  %v10924_v36 = vand.u32 4294901760, %v10910_v4  ;;  %v13794_v45 = vand.u32 4294901760, %v10928_v38 }
 0x44a   : > { %14561 = vst [vmem:[#allocation45_spill] sm:$0xff] %v10924_v36  ;;  %v3502_v48 = vadd.f32 %v3470_v34, %v3372_v42  ;;  %v3275_v52 = vadd.f32 %v3274_v61, %v3114_v60  ;;  %v3734_v2 = vsub.f32 %v10910_v4, %v10924_v36  ;;  %v5165_v61 = vsub.f32 %v10928_v38, %v13794_v45 }
 0x44b   : > { %v10935_v53 = vpop.f32.mrf.mxu0  ;;  %v10937_v47 = vpop.f32.mrf.mxu1  ;;  %v2907_v60 = vadd.f32 %v10427_v62, %v2691_v57 }
 0x44c   : > { %v10941_v46 = vand.u32 4294901760, %v3502_v48  ;;  %v3340_v13 = vmul.f32 %v10297_v18, %v3275_v52  ;;  %v3406_v16 = vmul.f32 %v10299_v35, %v3275_v52  ;;  %4141 = vmatmul.f32.gmra.mxu2 %v10494_v59  ;;  %v10947_v10 = vand.u32 4294901760, %v3734_v2  ;;  %v14567_v59 = vld [vmem:[#allocation96_spill] sm:$0xff] }
 0x44d   : > { %4347 = vmatmul.f32.gmra.mxu3 %v10531_v28  ;;  %v5166_v20 = vand.u32 4294901760, %v5165_v61 }
 0x44e   : > { %14564 = vst [vmem:[#allocation97_spill] sm:$0xff] %v10941_v46  ;;  %v10953_v42 = vsub.f32 %v3502_v48, %v10941_v46  ;;  %v3439_v34 = vadd.f32 %v10306_v29, %v3406_v16  ;;  %4013 = vmatmul.f32.gmra.mxu1 %v10941_v46  ;;  %3736 = vmatmul.f32.gmra.mxu0 %v10947_v10  ;;  %v14569_v48 = vld [vmem:[#allocation122_spill] sm:$0xff] }
 0x44f   : > { %14565 = vst [vmem:[#allocation50_spill] sm:$0xff] %v10947_v10  ;;  %v3117_v52 = vpop.f32.mrf.mxu2  ;;  %v3373_v2 = vadd.f32 %v10312_v58, %v3340_v13  ;;  %5167 = vmatpush.msrb.mxu3 %v5166_v20  ;;  %v2696_v16 = vadd.f32 %v10481_v39, %v14569_v48 }
 0x450   : > { %14566 = vst [vmem:[#allocation101_spill] sm:$0xff] %v10953_v42  ;;  %v3471_v28 = vmul.f32 %v3439_v34, %v14567_v59  ;;  %v3118_v63 = vadd.f32 %v3117_v52, %v2907_v60  ;;  %v3282_v11 = vpop.f32.mrf.mxu3  ;;  %v10962_v45 = vand.u32 4294901760, %v10953_v42  ;;  %v7786_v60 = vld [vmem:[%s13475_s2 + $0x1a8] sm:$0xff] }
 0x451   : > { %v10990_v52 = vand.u32 4294901760, %v7786_v60 }
 0x452   : > { %14568 = vst [vmem:[#allocation94_spill] sm:$0xff] %v10962_v45  ;;  %v3503_v46 = vadd.f32 %v3471_v28, %v3373_v2  ;;  %v3279_v38 = vadd.f32 %v3278_v7, %v3118_v63  ;;  %v3742_v62 = vsub.f32 %v10953_v42, %v10962_v45  ;;  %v2913_v7 = vadd.f32 %v10455_v22, %v2696_v16  ;;  %v14575_v2 = vld [vmem:[#allocation74_spill] sm:$0xff] }
 0x453   : > { %v10968_v57 = vpop.f32.mrf.mxu0  ;;  %v10970_v61 = vpop.f32.mrf.mxu1  ;;  %14574 = vst [vmem:[#allocation132_spill] sm:$0xff] %v10990_v52  ;;  %4860 = vmatpush.msrb.mxu2 %v10990_v52  ;;  %v10999_v22 = vsub.f32 %v7786_v60, %v10990_v52  ;;  %5583 = vmatpush.msrb.mxu1 %v10990_v52  ;;  %v14578_v16 = vld [vmem:[#allocation114_spill] sm:$0xff] }
 0x454   : > { %14570 = vst [vmem:[#allocation54_spill] sm:$0xff] %v10970_v61  ;;  %v10972_v13 = vand.u32 4294901760, %v3503_v46  ;;  %v3341_v59 = vmul.f32 %v10297_v18, %v3279_v38  ;;  %v3407_v34 = vmul.f32 %v10299_v35, %v3279_v38  ;;  %4146 = vmatmul.f32.gmra.mxu2 %v10520_v6  ;;  %v10978_v39 = vand.u32 4294901760, %v3742_v62 }
 0x455   : > { %4353 = vmatmul.f32.gmra.mxu3 %v10557_v55  ;;  %14577 = vst [vmem:[#allocation44_spill] sm:$0xff] %v10999_v22  ;;  %v2701_v6 = vadd.f32 %v10516_v31, %v14578_v16  ;;  %5380 = vmatpush.msrb.mxu0 %v10999_v22 }
 0x456   : > { %14571 = vst [vmem:[#allocation144_spill] sm:$0xff] %v10972_v13  ;;  %v10981_v28 = vsub.f32 %v3503_v46, %v10972_v13  ;;  %v3440_v63 = vadd.f32 %v10306_v29, %v3407_v34  ;;  %4017 = vmatmul.f32.gmra.mxu1 %v10972_v13  ;;  %3744 = vmatmul.f32.gmra.mxu0 %v10978_v39 }
 0x457   : > { %14572 = vst [vmem:[#allocation113_spill] sm:$0xff] %v10978_v39  ;;  %v3121_v38 = vpop.f32.mrf.mxu2  ;;  %v3374_v20 = vadd.f32 %v10312_v58, %v3341_v59 }
 0x458   : > { %14573 = vst [vmem:[#allocation127_spill] sm:$0xff] %v10981_v28  ;;  %v3472_v46 = vmul.f32 %v3440_v63, %v14575_v2  ;;  %v3122_v48 = vadd.f32 %v3121_v38, %v2913_v7  ;;  %v3286_v62 = vpop.f32.mrf.mxu3  ;;  %v10995_v34 = vand.u32 4294901760, %v10981_v28  ;;  %v13807_v38 = vand.u32 4294901760, %v10999_v22 }
 0x45a   : > { %14576 = vst [vmem:[#allocation58_spill] sm:$0xff] %v10995_v34  ;;  %v3504_v55 = vadd.f32 %v3472_v46, %v3374_v20  ;;  %v3283_v39 = vadd.f32 %v3282_v11, %v3122_v48  ;;  %v3750_v59 = vsub.f32 %v10981_v28, %v10995_v34  ;;  %v5171_v11 = vsub.f32 %v10999_v22, %v13807_v38 }
 0x45b   : > { %v11006_v63 = vpop.f32.mrf.mxu0  ;;  %v11008_v7 = vpop.f32.mrf.mxu1  ;;  %v2919_v48 = vadd.f32 %v10490_v23, %v2701_v6 }
 0x45c   : > { %14579 = vst [vmem:[#allocation125_spill] sm:$0xff] %v11008_v7  ;;  %v11012_v60 = vand.u32 4294901760, %v3504_v55  ;;  %v3342_v2 = vmul.f32 %v10297_v18, %v3283_v39  ;;  %v3408_v10 = vmul.f32 %v10299_v35, %v3283_v39  ;;  %4151 = vmatmul.f32.gmra.mxu2 %v10546_v1  ;;  %v11018_v31 = vand.u32 4294901760, %v3750_v59  ;;  %v14583_v1 = vld [vmem:[#allocation102_spill] sm:$0xff] }
 0x45d   : > { %4359 = vmatmul.f32.gmra.mxu3 %v10583_v49  ;;  %v5172_v16 = vand.u32 4294901760, %v5171_v11 }
 0x45e   : > { %14580 = vst [vmem:[#allocation103_spill] sm:$0xff] %v11012_v60  ;;  %v11024_v20 = vsub.f32 %v3504_v55, %v11012_v60  ;;  %v3441_v46 = vadd.f32 %v10306_v29, %v3408_v10  ;;  %4021 = vmatmul.f32.gmra.mxu1 %v11012_v60  ;;  %3752 = vmatmul.f32.gmra.mxu0 %v11018_v31  ;;  %v14585_v55 = vld [vmem:[#allocation126_spill] sm:$0xff] }
 0x45f   : > { %14581 = vst [vmem:[#allocation138_spill] sm:$0xff] %v11018_v31  ;;  %v3125_v39 = vpop.f32.mrf.mxu2  ;;  %v3375_v59 = vadd.f32 %v10312_v58, %v3342_v2  ;;  %5173 = vmatpush.msrb.mxu3 %v5172_v16  ;;  %v14586_v10 = vld [vmem:[#allocation46_spill] sm:$0xff] }
 0x460   : > { %14582 = vst [vmem:[#allocation68_spill] sm:$0xff] %v11024_v20  ;;  %v3473_v49 = vmul.f32 %v3441_v46, %v14583_v1  ;;  %v3126_v13 = vadd.f32 %v3125_v39, %v2919_v48  ;;  %v3290_v52 = vpop.f32.mrf.mxu3  ;;  %v11033_v38 = vand.u32 4294901760, %v11024_v20  ;;  %v2706_v22 = vadd.f32 %v14586_v10, %v14585_v55  ;;  %v14590_v48 = vld [vmem:[#allocation143_spill] sm:$0xff]  ;;  %v7784_v55 = vld [vmem:[%s13475_s2 + $0x198] sm:$0xff] }
 0x461   : > { %v14591_v39 = vld [vmem:[#allocation67_spill] sm:$0xff]  ;;  %v11061_v10 = vand.u32 4294901760, %v7784_v55 }
 0x462   : > { %14584 = vst [vmem:[#allocation63_spill] sm:$0xff] %v11033_v38  ;;  %v3505_v60 = vadd.f32 %v3473_v49, %v3375_v59  ;;  %v3287_v7 = vadd.f32 %v3286_v62, %v3126_v13  ;;  %v3758_v23 = vsub.f32 %v11024_v20, %v11033_v38  ;;  %v14594_v62 = vld [vmem:[#allocation119_spill] sm:$0xff] }
 0x463   : > { %v11039_v6 = vpop.f32.mrf.mxu0  ;;  %v11041_v11 = vpop.f32.mrf.mxu1  ;;  %v2925_v59 = vadd.f32 %v14594_v62, %v2706_v22  ;;  %14595 = vst [vmem:[#allocation61_spill] sm:$0xff] %v11061_v10  ;;  %4862 = vmatpush.msrb.mxu2 %v11061_v10  ;;  %v11070_v22 = vsub.f32 %v7784_v55, %v11061_v10  ;;  %5585 = vmatpush.msrb.mxu1 %v11061_v10  ;;  %v14599_v62 = vld [vmem:[#allocation146_spill] sm:$0xff] }
 0x464   : > { %14587 = vst [vmem:[#allocation57_spill] sm:$0xff] %v11039_v6  ;;  %v11043_v2 = vand.u32 4294901760, %v3505_v60  ;;  %v3343_v1 = vmul.f32 %v10297_v18, %v3287_v7  ;;  %v3409_v46 = vmul.f32 %v10299_v35, %v3287_v7  ;;  %4156 = vmatmul.f32.gmra.mxu2 %v14590_v48  ;;  %v11049_v16 = vand.u32 4294901760, %v3758_v23  ;;  %v14596_v48 = vld [vmem:[#allocation80_spill] sm:$0xff] }
 0x465   : > { %14588 = vst [vmem:[#allocation99_spill] sm:$0xff] %v11041_v11  ;;  %4365 = vmatmul.f32.gmra.mxu3 %v14591_v39  ;;  %5383 = vmatpush.msrb.mxu0 %v11070_v22 }
 0x466   : > { %14589 = vst [vmem:[#allocation62_spill] sm:$0xff] %v11043_v2  ;;  %v11052_v49 = vsub.f32 %v3505_v60, %v11043_v2  ;;  %v3442_v13 = vadd.f32 %v10306_v29, %v3409_v46  ;;  %4025 = vmatmul.f32.gmra.mxu1 %v11043_v2  ;;  %3760 = vmatmul.f32.gmra.mxu0 %v11049_v16 }
 0x467   : > { %14592 = vst [vmem:[#allocation65_spill] sm:$0xff] %v11049_v16  ;;  %v3129_v7 = vpop.f32.mrf.mxu2  ;;  %v3376_v23 = vadd.f32 %v10312_v58, %v3343_v1  ;;  %v14600_v16 = vld [vmem:[#allocation140_spill] sm:$0xff] }
 0x468   : > { %14593 = vst [vmem:[#allocation131_spill] sm:$0xff] %v11052_v49  ;;  %v3474_v60 = vmul.f32 %v3442_v13, %v14596_v48  ;;  %v3130_v39 = vadd.f32 %v3129_v7, %v2925_v59  ;;  %v3294_v31 = vpop.f32.mrf.mxu3  ;;  %v11066_v46 = vand.u32 4294901760, %v11052_v49  ;;  %v2711_v2 = vadd.f32 %v14600_v16, %v14599_v62  ;;  %v14604_v16 = vld [vmem:[#allocation9_spill] sm:$0xff] }
 0x469   : > { %14598 = vst [vmem:[#allocation75_spill] sm:$0xff] %v11070_v22  ;;  %v13822_v59 = vand.u32 4294901760, %v11070_v22 }
 0x46a   : > { %14597 = vst [vmem:[#allocation110_spill] sm:$0xff] %v11066_v46  ;;  %v3506_v11 = vadd.f32 %v3474_v60, %v3376_v23  ;;  %v3291_v6 = vadd.f32 %v3290_v52, %v3130_v39  ;;  %v3766_v1 = vsub.f32 %v11052_v49, %v11066_v46  ;;  %v14605_v52 = vld [vmem:[#allocation14_spill] sm:$0xff] }
 0x46b   : > { %v11077_v48 = vpop.f32.mrf.mxu0  ;;  %v11079_v13 = vpop.f32.mrf.mxu1  ;;  %v5177_v23 = vsub.f32 %v11070_v22, %v13822_v59 }
 0x46c   : > { %14601 = vst [vmem:[#allocation106_spill] sm:$0xff] %v11077_v48  ;;  %v11083_v55 = vand.u32 4294901760, %v3506_v11  ;;  %v3344_v7 = vmul.f32 %v10297_v18, %v3291_v6  ;;  %v3410_v10 = vmul.f32 %v10299_v35, %v3291_v6  ;;  %4161 = vmatmul.f32.gmra.mxu2 %v14604_v16  ;;  %v11089_v39 = vand.u32 4294901760, %v3766_v1 }
 0x46d   : > { %14602 = vst [vmem:[#allocation71_spill] sm:$0xff] %v11079_v13  ;;  %4371 = vmatmul.f32.gmra.mxu3 %v14605_v52  ;;  %v14608_v13 = vld [vmem:[#allocation139_spill] sm:$0xff]  ;;  %v5178_v16 = vand.u32 4294901760, %v5177_v23  ;;  %v14609_v52 = vld [vmem:[#allocation109_spill] sm:$0xff] }
 0x46e   : > { %14603 = vst [vmem:[#allocation137_spill] sm:$0xff] %v11083_v55  ;;  %v11095_v60 = vsub.f32 %v3506_v11, %v11083_v55  ;;  %v3443_v62 = vadd.f32 %v10306_v29, %v3410_v10  ;;  %4029 = vmatmul.f32.gmra.mxu1 %v11083_v55  ;;  %v2931_v48 = vadd.f32 %v14608_v13, %v2711_v2  ;;  %v14611_v11 = vld [vmem:[#allocation42_spill] sm:$0xff]  ;;  %v14612_v10 = vld [vmem:[#allocation5_spill] sm:$0xff] }
 0x46f   : > { %14606 = vst [vmem:[#allocation48_spill] sm:$0xff] %v11089_v39  ;;  %3768 = vmatmul.f32.gmra.mxu0 %v11089_v39  ;;  %v3133_v6 = vpop.f32.mrf.mxu2  ;;  %v3377_v1 = vadd.f32 %v10312_v58, %v3344_v7  ;;  %5179 = vmatpush.msrb.mxu3 %v5178_v16  ;;  %v2716_v22 = vadd.f32 %v14612_v10, %v14611_v11 }
 0x470   : > { %14607 = vst [vmem:[#allocation116_spill] sm:$0xff] %v11095_v60  ;;  %v3475_v49 = vmul.f32 %v3443_v62, %v14609_v52  ;;  %v3134_v46 = vadd.f32 %v3133_v6, %v2931_v48  ;;  %v3298_v20 = vpop.f32.mrf.mxu3  ;;  %v11104_v59 = vand.u32 4294901760, %v11095_v60  ;;  %v14615_v62 = vld [vmem:[#allocation17_spill] sm:$0xff] }
 0x472   : > { %14610 = vst [vmem:[#allocation91_spill] sm:$0xff] %v11104_v59  ;;  %v3507_v55 = vadd.f32 %v3475_v49, %v3377_v1  ;;  %v3295_v61 = vadd.f32 %v3294_v31, %v3134_v46  ;;  %v3774_v2 = vsub.f32 %v11095_v60, %v11104_v59  ;;  %v14618_v46 = vld [vmem:[#allocation6_spill] sm:$0xff]  ;;  %v7782_v1 = vld [vmem:[%s13475_s2 + $0x188] sm:$0xff] }
 0x473   : > { %v11110_v13 = vpop.f32.mrf.mxu0  ;;  %v11112_v23 = vpop.f32.mrf.mxu1  ;;  %v2937_v6 = vadd.f32 %v14618_v46, %v2716_v22  ;;  %v11132_v11 = vand.u32 4294901760, %v7782_v1  ;;  %v14623_v46 = vld [vmem:[#allocation147_spill] sm:$0xff] }
 0x474   : > { %14613 = vst [vmem:[#allocation108_spill] sm:$0xff] %v11112_v23  ;;  %v11114_v7 = vand.u32 4294901760, %v3507_v55  ;;  %v3345_v48 = vmul.f32 %v10297_v18, %v3295_v61  ;;  %v3411_v52 = vmul.f32 %v10299_v35, %v3295_v61  ;;  %4166 = vmatmul.f32.gmra.mxu2 %v14615_v62  ;;  %v11120_v16 = vand.u32 4294901760, %v3774_v2  ;;  %v14620_v2 = vld [vmem:[#allocation86_spill] sm:$0xff] }
 0x475   : > { %4377 = vmatmul.f32.gmra.mxu3 %v10682_v0  ;;  %14619 = vst [vmem:[#allocation122_spill] sm:$0xff] %v11132_v11  ;;  %4864 = vmatpush.msrb.mxu2 %v11132_v11  ;;  %v11141_v22 = vsub.f32 %v7782_v1, %v11132_v11 }
 0x476   : > { %14614 = vst [vmem:[#allocation69_spill] sm:$0xff] %v11114_v7  ;;  %v11123_v31 = vsub.f32 %v3507_v55, %v11114_v7  ;;  %v3444_v49 = vadd.f32 %v10306_v29, %v3411_v52  ;;  %4033 = vmatmul.f32.gmra.mxu1 %v11114_v7  ;;  %v3378_v10 = vadd.f32 %v10312_v58, %v3345_v48 }
 0x477   : > { %14616 = vst [vmem:[#allocation141_spill] sm:$0xff] %v11120_v16  ;;  %3776 = vmatmul.f32.gmra.mxu0 %v11120_v16  ;;  %v3137_v61 = vpop.f32.mrf.mxu2  ;;  %5587 = vmatpush.msrb.mxu1 %v11132_v11  ;;  %v14624_v16 = vld [vmem:[#allocation22_spill] sm:$0xff] }
 0x478   : > { %14617 = vst [vmem:[#allocation96_spill] sm:$0xff] %v11123_v31  ;;  %v3476_v55 = vmul.f32 %v3444_v49, %v14620_v2  ;;  %v3138_v62 = vadd.f32 %v3137_v61, %v2937_v6  ;;  %v3302_v0 = vpop.f32.mrf.mxu3  ;;  %v11137_v52 = vand.u32 4294901760, %v11123_v31  ;;  %v2721_v39 = vadd.f32 %v14624_v16, %v14623_v46  ;;  %5386 = vmatpush.msrb.mxu0 %v11141_v22 }
 0x479   : > { %14622 = vst [vmem:[#allocation114_spill] sm:$0xff] %v11141_v22  ;;  %v13836_v61 = vand.u32 4294901760, %v11141_v22 }
 0x47a   : > { %14621 = vst [vmem:[#allocation74_spill] sm:$0xff] %v11137_v52  ;;  %v3508_v7 = vadd.f32 %v3476_v55, %v3378_v10  ;;  %v3299_v23 = vadd.f32 %v3298_v20, %v3138_v62  ;;  %v3782_v48 = vsub.f32 %v11123_v31, %v11137_v52  ;;  %v14630_v55 = vld [vmem:[#allocation10_spill] sm:$0xff] }
 0x47b   : > { %v11148_v49 = vpop.f32.mrf.mxu0  ;;  %v11150_v6 = vpop.f32.mrf.mxu1  ;;  %v5183_v62 = vsub.f32 %v11141_v22, %v13836_v61  ;;  %v2943_v46 = vadd.f32 %v14630_v55, %v2721_v39 }
 0x47c   : > { %14625 = vst [vmem:[#allocation102_spill] sm:$0xff] %v11148_v49  ;;  %v11154_v1 = vand.u32 4294901760, %v3508_v7  ;;  %v3346_v2 = vmul.f32 %v10297_v18, %v3299_v23  ;;  %v3412_v11 = vmul.f32 %v10299_v35, %v3299_v23  ;;  %4171 = vmatmul.f32.gmra.mxu2 %v10671_v43  ;;  %v11160_v20 = vand.u32 4294901760, %v3782_v48 }
 0x47d   : > { %14626 = vst [vmem:[#allocation126_spill] sm:$0xff] %v11150_v6  ;;  %4383 = vmatmul.f32.gmra.mxu3 %v10713_v5  ;;  %v5184_v43 = vand.u32 4294901760, %v5183_v62  ;;  %v14631_v5 = vld [vmem:[#allocation36_spill] sm:$0xff] }
 0x47e   : > { %14627 = vst [vmem:[#allocation46_spill] sm:$0xff] %v11154_v1  ;;  %v11166_v16 = vsub.f32 %v3508_v7, %v11154_v1  ;;  %v3445_v10 = vadd.f32 %v10306_v29, %v3412_v11  ;;  %4037 = vmatmul.f32.gmra.mxu1 %v11154_v1  ;;  %v3379_v48 = vadd.f32 %v10312_v58, %v3346_v2  ;;  %v14633_v7 = vld [vmem:[#allocation72_spill] sm:$0xff] }
 0x47f   : > { %14628 = vst [vmem:[#allocation119_spill] sm:$0xff] %v11160_v20  ;;  %3784 = vmatmul.f32.gmra.mxu0 %v11160_v20  ;;  %v3141_v23 = vpop.f32.mrf.mxu2  ;;  %5185 = vmatpush.msrb.mxu3 %v5184_v43  ;;  %v2726_v11 = vadd.f32 %v10706_v14, %v14633_v7 }
 0x480   : > { %14629 = vst [vmem:[#allocation80_spill] sm:$0xff] %v11166_v16  ;;  %v3477_v6 = vmul.f32 %v3445_v10, %v14631_v5  ;;  %v3142_v49 = vadd.f32 %v3141_v23, %v2943_v46  ;;  %v3306_v31 = vpop.f32.mrf.mxu3  ;;  %v11175_v61 = vand.u32 4294901760, %v11166_v16 }
 0x482   : > { %14632 = vst [vmem:[#allocation146_spill] sm:$0xff] %v11175_v61  ;;  %v3509_v1 = vadd.f32 %v3477_v6, %v3379_v48  ;;  %v3303_v22 = vadd.f32 %v3302_v0, %v3142_v49  ;;  %v3790_v39 = vsub.f32 %v11166_v16, %v11175_v61  ;;  %v2949_v49 = vadd.f32 %v10677_v17, %v2726_v11  ;;  %v7780_v6 = vld [vmem:[%s13475_s2 + $0x178] sm:$0xff]  ;;  %v14638_v48 = vld [vmem:[#allocation115_spill] sm:$0xff]  ;;  %v14641_v11 = vld [vmem:[#allocation148_spill] sm:$0xff] }
 0x483   : > { %v11181_v55 = vpop.f32.mrf.mxu0  ;;  %v11183_v62 = vpop.f32.mrf.mxu1  ;;  %v11203_v46 = vand.u32 4294901760, %v7780_v6 }
 0x484   : > { %v11185_v2 = vand.u32 4294901760, %v3509_v1  ;;  %v3347_v5 = vmul.f32 %v10297_v18, %v3303_v22  ;;  %v3413_v10 = vmul.f32 %v10299_v35, %v3303_v22  ;;  %4176 = vmatmul.f32.gmra.mxu2 %v10697_v33  ;;  %v11191_v43 = vand.u32 4294901760, %v3790_v39 }
 0x485   : > { %4389 = vmatmul.f32.gmra.mxu3 %v10749_v40  ;;  %14637 = vst [vmem:[#allocation42_spill] sm:$0xff] %v11203_v46  ;;  %4866 = vmatpush.msrb.mxu2 %v11203_v46  ;;  %v11212_v17 = vsub.f32 %v7780_v6, %v11203_v46  ;;  %v2731_v33 = vadd.f32 %v10751_v15, %v14641_v11 }
 0x486   : > { %14634 = vst [vmem:[#allocation140_spill] sm:$0xff] %v11185_v2  ;;  %v11194_v0 = vsub.f32 %v3509_v1, %v11185_v2  ;;  %v3446_v14 = vadd.f32 %v10306_v29, %v3413_v10  ;;  %4041 = vmatmul.f32.gmra.mxu1 %v11185_v2  ;;  %v3380_v23 = vadd.f32 %v10312_v58, %v3347_v5 }
 0x487   : > { %14635 = vst [vmem:[#allocation139_spill] sm:$0xff] %v11191_v43  ;;  %3792 = vmatmul.f32.gmra.mxu0 %v11191_v43  ;;  %v3145_v22 = vpop.f32.mrf.mxu2  ;;  %5589 = vmatpush.msrb.mxu1 %v11203_v46 }
 0x488   : > { %14636 = vst [vmem:[#allocation109_spill] sm:$0xff] %v11194_v0  ;;  %v3478_v1 = vmul.f32 %v3446_v14, %v14638_v48  ;;  %v3146_v7 = vadd.f32 %v3145_v22, %v2949_v49  ;;  %v3310_v39 = vpop.f32.mrf.mxu3  ;;  %v11208_v10 = vand.u32 4294901760, %v11194_v0  ;;  %v13844_v22 = vand.u32 4294901760, %v11212_v17  ;;  %5389 = vmatpush.msrb.mxu0 %v11212_v17 }
 0x489   : > { %14640 = vst [vmem:[#allocation6_spill] sm:$0xff] %v11212_v17 }
 0x48a   : > { %14639 = vst [vmem:[#allocation5_spill] sm:$0xff] %v11208_v10  ;;  %v3510_v40 = vadd.f32 %v3478_v1, %v3380_v23  ;;  %v3307_v43 = vadd.f32 %v3306_v31, %v3146_v7  ;;  %v3798_v5 = vsub.f32 %v11194_v0, %v11208_v10  ;;  %v5189_v31 = vsub.f32 %v11212_v17, %v13844_v22  ;;  %v7778_v23 = vld [vmem:[%s13475_s2 + $0x168] sm:$0xff] }
 0x48b   : > { %v11219_v14 = vpop.f32.mrf.mxu0  ;;  %v11221_v49 = vpop.f32.mrf.mxu1  ;;  %v11245_v11 = vand.u32 4294901760, %v7778_v23 }
 0x48c   : > { %v11225_v6 = vand.u32 4294901760, %v3510_v40  ;;  %v3348_v48 = vmul.f32 %v10297_v18, %v3307_v43  ;;  %v3414_v20 = vmul.f32 %v10299_v35, %v3307_v43  ;;  %4181 = vmatmul.f32.gmra.mxu2 %v10740_v19  ;;  %v11231_v15 = vand.u32 4294901760, %v3798_v5 }
 0x48d   : > { %4395 = vmatmul.f32.gmra.mxu3 %v10782_v8  ;;  %v2955_v43 = vadd.f32 %v10715_v32, %v2731_v33  ;;  %14645 = vst [vmem:[#allocation10_spill] sm:$0xff] %v11245_v11  ;;  %v5190_v19 = vand.u32 4294901760, %v5189_v31  ;;  %v14646_v8 = vld [vmem:[#allocation151_spill] sm:$0xff]  ;;  %4868 = vmatpush.msrb.mxu2 %v11245_v11  ;;  %v14648_v33 = vld [vmem:[#allocation142_spill] sm:$0xff] }
 0x48e   : > { %14642 = vst [vmem:[#allocation86_spill] sm:$0xff] %v11225_v6  ;;  %v11240_v1 = vsub.f32 %v3510_v40, %v11225_v6  ;;  %v3447_v7 = vadd.f32 %v10306_v29, %v3414_v20  ;;  %4045 = vmatmul.f32.gmra.mxu1 %v11225_v6  ;;  %v3381_v5 = vadd.f32 %v10312_v58, %v3348_v48 }
 0x48f   : > { %14643 = vst [vmem:[#allocation147_spill] sm:$0xff] %v11231_v15  ;;  %3800 = vmatmul.f32.gmra.mxu0 %v11231_v15  ;;  %v3149_v22 = vpop.f32.mrf.mxu2  ;;  %v11255_v20 = vsub.f32 %v7778_v23, %v11245_v11  ;;  %5591 = vmatpush.msrb.mxu1 %v11245_v11  ;;  %v2736_v32 = vadd.f32 %v10793_v9, %v14648_v33 }
 0x490   : > { %14644 = vst [vmem:[#allocation22_spill] sm:$0xff] %v11240_v1  ;;  %v3479_v2 = vmul.f32 %v3447_v7, %v14646_v8  ;;  %v3150_v46 = vadd.f32 %v3149_v22, %v2955_v43  ;;  %v3314_v17 = vpop.f32.mrf.mxu3  ;;  %v11251_v40 = vand.u32 4294901760, %v11240_v1  ;;  %5191 = vmatpush.msrb.mxu3 %v5190_v19 }
 0x491   : > { %v13857_v22 = vand.u32 4294901760, %v11255_v20  ;;  %5392 = vmatpush.msrb.mxu0 %v11255_v20 }
 0x492   : > { %14647 = vst [vmem:[#allocation36_spill] sm:$0xff] %v11251_v40  ;;  %v3511_v48 = vadd.f32 %v3479_v2, %v3381_v5  ;;  %v3311_v31 = vadd.f32 %v3310_v39, %v3150_v46  ;;  %v3806_v8 = vsub.f32 %v11240_v1, %v11251_v40  ;;  %v2961_v5 = vadd.f32 %v10757_v54, %v2736_v32 }
 0x493   : > { %v11264_v7 = vpop.f32.mrf.mxu0  ;;  %v11266_v43 = vpop.f32.mrf.mxu1  ;;  %v5195_v2 = vsub.f32 %v11255_v20, %v13857_v22 }
 0x494   : > { %v11268_v23 = vand.u32 4294901760, %v3511_v48  ;;  %v3349_v15 = vmul.f32 %v10297_v18, %v3311_v31  ;;  %v3415_v9 = vmul.f32 %v10299_v35, %v3311_v31  ;;  %4186 = vmatmul.f32.gmra.mxu2 %v10768_v41  ;;  %v11274_v19 = vand.u32 4294901760, %v3806_v8  ;;  %v14652_v41 = vld [vmem:[#allocation87_spill] sm:$0xff] }
 0x495   : > { %4401 = vmatmul.f32.gmra.mxu3 %v10820_v12  ;;  %v5196_v31 = vand.u32 4294901760, %v5195_v2 }
 0x496   : > { %14649 = vst [vmem:[#allocation72_spill] sm:$0xff] %v11268_v23  ;;  %v11280_v46 = vsub.f32 %v3511_v48, %v11268_v23  ;;  %v3448_v39 = vadd.f32 %v10306_v29, %v3415_v9  ;;  %4049 = vmatmul.f32.gmra.mxu1 %v11268_v23  ;;  %v3382_v8 = vadd.f32 %v10312_v58, %v3349_v15 }
 0x497   : > { %14650 = vst [vmem:[#allocation115_spill] sm:$0xff] %v11274_v19  ;;  %3808 = vmatmul.f32.gmra.mxu0 %v11274_v19  ;;  %v3153_v33 = vpop.f32.mrf.mxu2  ;;  %5197 = vmatpush.msrb.mxu3 %v5196_v31 }
 0x498   : > { %14651 = vst [vmem:[#allocation148_spill] sm:$0xff] %v11280_v46  ;;  %v3480_v12 = vmul.f32 %v3448_v39, %v14652_v41  ;;  %v3154_v6 = vadd.f32 %v3153_v33, %v2961_v5  ;;  %v4306_v11 = vpop.f32.mrf.mxu3  ;;  %v11289_v22 = vand.u32 4294901760, %v11280_v46  ;;  %v14657_v33 = vld [vmem:[#allocation66_spill] sm:$0xff] }
 0x49a   : > { %14653 = vst [vmem:[#allocation151_spill] sm:$0xff] %v11289_v22  ;;  %v3512_v48 = vadd.f32 %v3480_v12, %v3382_v8  ;;  %v3315_v9 = vadd.f32 %v3314_v17, %v3154_v6  ;;  %v3814_v23 = vsub.f32 %v11280_v46, %v11289_v22  ;;  %v7776_v12 = vld [vmem:[%s13475_s2 + $0x158] sm:$0xff]  ;;  %v3935_v17 = vadd.f32 %v10795_v30, %v10826_v56 }
 0x49b   : > { %v11293_v54 = vpop.f32.mrf.mxu0  ;;  %v11295_v32 = vpop.f32.mrf.mxu1 }
 0x49c   : > { %v11297_v2 = vand.u32 4294901760, %v3512_v48  ;;  %v3350_v15 = vmul.f32 %v10297_v18, %v3315_v9  ;;  %v3416_v41 = vmul.f32 %v10299_v35, %v3315_v9  ;;  %4191 = vmatmul.f32.gmra.mxu2 %v10811_v25  ;;  %v11303_v39 = vand.u32 4294901760, %v3814_v23 }
 0x49d   : > { %4407 = vmatmul.f32.gmra.mxu3 %v10853_v26  ;;  %v11315_v35 = vand.u32 4294901760, %v7776_v12 }
 0x49e   : > { %14654 = vst [vmem:[#allocation142_spill] sm:$0xff] %v11297_v2  ;;  %v11311_v6 = vsub.f32 %v3512_v48, %v11297_v2  ;;  %v3449_v18 = vadd.f32 %v10306_v29, %v3416_v41  ;;  %4053 = vmatmul.f32.gmra.mxu1 %v11297_v2  ;;  %v3383_v5 = vadd.f32 %v10312_v58, %v3350_v15 }
 0x49f   : > { %14655 = vst [vmem:[#allocation87_spill] sm:$0xff] %v11303_v39  ;;  %3816 = vmatmul.f32.gmra.mxu0 %v11303_v39  ;;  %v4112_v23 = vpop.f32.mrf.mxu2  ;;  %4870 = vmatpush.msrb.mxu2 %v11315_v35  ;;  %v11325_v29 = vsub.f32 %v7776_v12, %v11315_v35 }
 0x4a0   : > { %14656 = vst [vmem:[#allocation152_spill] sm:$0xff] %v11311_v6  ;;  %v3481_v31 = vmul.f32 %v3449_v18, %v14657_v33  ;;  %v4113_v8 = vadd.f32 %v4112_v23, %v3935_v17  ;;  %v4312_v9 = vpop.f32.mrf.mxu3  ;;  %v11321_v30 = vand.u32 4294901760, %v11311_v6  ;;  %5593 = vmatpush.msrb.mxu1 %v11315_v35 }
 0x4a1   : > { %v13861_v48 = vand.u32 4294901760, %v11325_v29  ;;  %5395 = vmatpush.msrb.mxu0 %v11325_v29 }
 0x4a2   : > { %14658 = vst [vmem:[#allocation66_spill] sm:$0xff] %v11321_v30  ;;  %v3513_v56 = vadd.f32 %v3481_v31, %v3383_v5  ;;  %v3822_v58 = vsub.f32 %v11311_v6, %v11321_v30  ;;  %v11331_v15 = vadd.f32 %v4306_v11, %v4113_v8  ;;  %v3939_v11 = vadd.f32 %v10828_v37, %v10864_v27 }
 0x4a3   : > { %v11334_v41 = vpop.f32.mrf.mxu0  ;;  %v11336_v17 = vpop.f32.mrf.mxu1  ;;  %v5201_v5 = vsub.f32 %v11325_v29, %v13861_v48 }
 0x4a4   : > { %v11338_v18 = vand.u32 4294901760, %v3513_v56  ;;  %4196 = vmatmul.f32.gmra.mxu2 %v10839_v50  ;;  %v11341_v12 = vand.u32 4294901760, %v3822_v58 }
 0x4a5   : > { %4413 = vmatmul.f32.gmra.mxu3 %v10891_v21  ;;  %v5202_v33 = vand.u32 4294901760, %v5201_v5  ;;  %v7774_v5 = vld [vmem:[%s13475_s2 + $0x148] sm:$0xff] }
 0x4a6   : > { %14659 = vst [vmem:[#allocation153_spill] sm:$0xff] %v11338_v18  ;;  %v11350_v23 = vsub.f32 %v3513_v56, %v11338_v18  ;;  %4057 = vmatmul.f32.gmra.mxu1 %v11338_v18 }
 0x4a7   : > { %14660 = vst [vmem:[#allocation154_spill] sm:$0xff] %v11341_v12  ;;  %3824 = vmatmul.f32.gmra.mxu0 %v11341_v12  ;;  %v4117_v31 = vpop.f32.mrf.mxu2  ;;  %5203 = vmatpush.msrb.mxu3 %v5202_v33  ;;  %v14665_v33 = vld [vmem:[#allocation70_spill] sm:$0xff] }
 0x4a8   : > { %14661 = vst [vmem:[#allocation155_spill] sm:$0xff] %v11350_v23  ;;  %v4118_v8 = vadd.f32 %v4117_v31, %v3939_v11  ;;  %v4318_v58 = vpop.f32.mrf.mxu3  ;;  %v11355_v50 = vand.u32 4294901760, %v11350_v23  ;;  %v3943_v11 = vadd.f32 %v10866_v3, %v10897_v51 }
 0x4aa   : > { %14662 = vst [vmem:[#allocation156_spill] sm:$0xff] %v11355_v50  ;;  %v3830_v48 = vsub.f32 %v11350_v23, %v11355_v50  ;;  %v11359_v21 = vadd.f32 %v4312_v9, %v4118_v8  ;;  %v11375_v9 = vand.u32 4294901760, %v7774_v5 }
 0x4ab   : > { %v11361_v37 = vpop.f32.mrf.mxu0  ;;  %v11363_v27 = vpop.f32.mrf.mxu1 }
 0x4ac   : > { %14663 = vst [vmem:[#allocation157_spill] sm:$0xff] %v11359_v21  ;;  %4201 = vmatmul.f32.gmra.mxu2 %v10882_v24  ;;  %v11366_v56 = vand.u32 4294901760, %v3830_v48  ;;  %v11380_v48 = vsub.f32 %v7774_v5, %v11375_v9  ;;  %5595 = vmatpush.msrb.mxu1 %v11375_v9  ;;  %v3947_v5 = vadd.f32 %v10899_v44, %v10935_v53  ;;  %v7772_v44 = vld [vmem:[%s13475_s2 + $0x138] sm:$0xff] }
 0x4ad   : > { %4419 = vmatmul.f32.gmra.mxu3 %v10924_v36  ;;  %4872 = vmatpush.msrb.mxu2 %v11375_v9  ;;  %v3951_v53 = vadd.f32 %v10937_v47, %v10968_v57 }
 0x4ae   : > { %14664 = vst [vmem:[#allocation158_spill] sm:$0xff] %v11366_v56  ;;  %4721 = vmatmul.f32.vlgmr.msra.gmra.mxu1 %v14665_v33  ;;  %v13871_v36 = vand.u32 4294901760, %v11380_v48  ;;  %5398 = vmatpush.msrb.mxu0 %v11380_v48 }
 0x4af   : > { %3832 = vmatmul.f32.gmra.mxu0 %v11366_v56  ;;  %v4122_v31 = vpop.f32.mrf.mxu2 }
 0x4b0   : > { %v4123_v8 = vadd.f32 %v4122_v31, %v3943_v11  ;;  %v4324_v24 = vpop.f32.mrf.mxu3  ;;  %v5207_v11 = vsub.f32 %v11380_v48, %v13871_v36  ;;  %v14667_v31 = vld [vmem:[#allocation149_spill] sm:$0xff] }
 0x4b2   : > { %v11384_v25 = vadd.f32 %v4318_v58, %v4123_v8  ;;  %v5208_v58 = vand.u32 4294901760, %v5207_v11  ;;  %v14669_v11 = vld [vmem:[#allocation150_spill] sm:$0xff] }
 0x4b3   : > { %v11387_v3 = vpop.f32.mrf.mxu1  ;;  %v11389_v51 = vpop.f32.mrf.mxu0 }
 0x4b4   : > { %14666 = vst [vmem:[#allocation70_spill] sm:$0xff] %v11384_v25  ;;  %4206 = vmatmul.f32.gmra.mxu2 %v10910_v4  ;;  %5209 = vmatpush.msrb.mxu3 %v5208_v58 }
 0x4b5   : > { %4425 = vmatmul.f32.gmra.mxu3 %v10962_v45 }
 0x4b6   : > { %4725 = vmatmul.f32.gmra.mxu1 %v14667_v31 }
 0x4b7   : > { %4560 = vmatmul.f32.vlgmr.msra.gmra.mxu0 %v14665_v33  ;;  %v4127_v8 = vpop.f32.mrf.mxu2 }
 0x4b8   : > { %v4128_v26 = vadd.f32 %v4127_v8, %v3947_v5  ;;  %v4330_v56 = vpop.f32.mrf.mxu3  ;;  %v11414_v5 = vand.u32 4294901760, %v7772_v44 }
 0x4ba   : > { %v11400_v12 = vadd.f32 %v4324_v24, %v4128_v26  ;;  %4874 = vmatpush.msrb.mxu2 %v11414_v5  ;;  %v11419_v8 = vsub.f32 %v7772_v44, %v11414_v5  ;;  %5597 = vmatpush.msrb.mxu1 %v11414_v5  ;;  %v14671_v44 = vld [vmem:[#allocation54_spill] sm:$0xff] }
 0x4bb   : > { %v11402_v4 = vpop.f32.mrf.mxu1  ;;  %v11404_v39 = vpop.f32.mrf.mxu0 }
 0x4bc   : > { %14668 = vst [vmem:[#allocation149_spill] sm:$0xff] %v11400_v12  ;;  %4211 = vmatmul.f32.gmra.mxu2 %v10953_v42  ;;  %v13881_v36 = vand.u32 4294901760, %v11419_v8  ;;  %5401 = vmatpush.msrb.mxu0 %v11419_v8  ;;  %v14683_v12 = vld [vmem:[#allocation131_spill] sm:$0xff] }
 0x4bd   : > { %4431 = vmatmul.f32.gmra.mxu3 %v10995_v34  ;;  %v14672_v34 = vld [vmem:[#allocation12_spill] sm:$0xff] }
 0x4be   : > { %4729 = vmatmul.f32.gmra.mxu1 %v14669_v11 }
 0x4bf   : > { %4564 = vmatmul.f32.gmra.mxu0 %v14667_v31  ;;  %v4132_v26 = vpop.f32.mrf.mxu2 }
 0x4c0   : > { %v4133_v24 = vadd.f32 %v4132_v26, %v3951_v53  ;;  %v4336_v58 = vpop.f32.mrf.mxu3  ;;  %v5213_v53 = vsub.f32 %v11419_v8, %v13881_v36  ;;  %v3955_v26 = vadd.f32 %v14671_v44, %v11006_v63  ;;  %v14675_v36 = vld [vmem:[#allocation68_spill] sm:$0xff]  ;;  %v7770_v63 = vld [vmem:[%s13475_s2 + $0x128] sm:$0xff]  ;;  %v14678_v44 = vld [vmem:[#allocation125_spill] sm:$0xff] }
 0x4c2   : > { %v11423_v42 = vadd.f32 %v4330_v56, %v4133_v24  ;;  %v5214_v56 = vand.u32 4294901760, %v5213_v53  ;;  %v14677_v53 = vld [vmem:[#allocation57_spill] sm:$0xff] }
 0x4c3   : > { %v11426_v47 = vpop.f32.mrf.mxu1  ;;  %v11428_v57 = vpop.f32.mrf.mxu0 }
 0x4c4   : > { %14670 = vst [vmem:[#allocation150_spill] sm:$0xff] %v11423_v42  ;;  %4216 = vmatmul.f32.gmra.mxu2 %v10981_v28  ;;  %5215 = vmatpush.msrb.mxu3 %v5214_v56  ;;  %v3959_v42 = vadd.f32 %v14678_v44, %v14677_v53  ;;  %v11453_v56 = vand.u32 4294901760, %v7770_v63 }
 0x4c5   : > { %4437 = vmatmul.f32.gmra.mxu3 %v11033_v38  ;;  %v14676_v38 = vld [vmem:[#allocation110_spill] sm:$0xff] }
 0x4c6   : > { %4733 = vmatmul.f32.gmra.mxu1 %v14672_v34  ;;  %4876 = vmatpush.msrb.mxu2 %v11453_v56 }
 0x4c7   : > { %4568 = vmatmul.f32.gmra.mxu0 %v14669_v11  ;;  %v4137_v24 = vpop.f32.mrf.mxu2  ;;  %5599 = vmatpush.msrb.mxu1 %v11453_v56 }
 0x4c8   : > { %v4138_v45 = vadd.f32 %v4137_v24, %v3955_v26  ;;  %v4342_v19 = vpop.f32.mrf.mxu3  ;;  %v14679_v26 = vld [vmem:[#allocation88_spill] sm:$0xff] }
 0x4ca   : > { %v11439_v18 = vadd.f32 %v4336_v58, %v4138_v45 }
 0x4cb   : > { %v11441_v28 = vpop.f32.mrf.mxu1  ;;  %v11443_v2 = vpop.f32.mrf.mxu0 }
 0x4cc   : > { %14673 = vst [vmem:[#allocation54_spill] sm:$0xff] %v11439_v18  ;;  %4221 = vmatmul.f32.gmra.mxu2 %v14675_v36  ;;  %v11458_v36 = vsub.f32 %v7770_v63, %v11453_v56  ;;  %v14684_v63 = vld [vmem:[#allocation106_spill] sm:$0xff] }
 0x4cd   : > { %14674 = vst [vmem:[#allocation12_spill] sm:$0xff] %v11441_v28  ;;  %4443 = vmatmul.f32.gmra.mxu3 %v14676_v38  ;;  %v14686_v28 = vld [vmem:[#allocation104_spill] sm:$0xff] }
 0x4ce   : > { %4737 = vmatmul.f32.gmra.mxu1 %v14679_v26  ;;  %v13883_v38 = vand.u32 4294901760, %v11458_v36  ;;  %5404 = vmatpush.msrb.mxu0 %v11458_v36 }
 0x4cf   : > { %4572 = vmatmul.f32.gmra.mxu0 %v14672_v34  ;;  %v4142_v45 = vpop.f32.mrf.mxu2 }
 0x4d0   : > { %v4143_v58 = vadd.f32 %v4142_v45, %v3959_v42  ;;  %v4348_v24 = vpop.f32.mrf.mxu3  ;;  %v5219_v42 = vsub.f32 %v11458_v36, %v13883_v38  ;;  %v14685_v45 = vld [vmem:[#allocation99_spill] sm:$0xff] }
 0x4d1   : > { %v3963_v25 = vadd.f32 %v14685_v45, %v14684_v63  ;;  %v14690_v63 = vld [vmem:[#allocation71_spill] sm:$0xff] }
 0x4d2   : > { %v11462_v18 = vadd.f32 %v4342_v19, %v4143_v58  ;;  %v5220_v19 = vand.u32 4294901760, %v5219_v42  ;;  %v7768_v42 = vld [vmem:[%s13475_s2 + $0x118] sm:$0xff]  ;;  %v3967_v45 = vadd.f32 %v14690_v63, %v11110_v13 }
 0x4d3   : > { %v11465_v53 = vpop.f32.mrf.mxu1  ;;  %v11467_v44 = vpop.f32.mrf.mxu0 }
 0x4d4   : > { %14680 = vst [vmem:[#allocation57_spill] sm:$0xff] %v11462_v18  ;;  %4226 = vmatmul.f32.gmra.mxu2 %v14683_v12  ;;  %5221 = vmatpush.msrb.mxu3 %v5220_v19  ;;  %v11492_v19 = vand.u32 4294901760, %v7768_v42 }
 0x4d5   : > { %14681 = vst [vmem:[#allocation125_spill] sm:$0xff] %v11465_v53  ;;  %4449 = vmatmul.f32.gmra.mxu3 %v11104_v59  ;;  %v14695_v59 = vld [vmem:[#allocation96_spill] sm:$0xff] }
 0x4d6   : > { %14682 = vst [vmem:[#allocation88_spill] sm:$0xff] %v11467_v44  ;;  %4741 = vmatmul.f32.gmra.mxu1 %v14686_v28  ;;  %4878 = vmatpush.msrb.mxu2 %v11492_v19  ;;  %v11497_v38 = vsub.f32 %v7768_v42, %v11492_v19  ;;  %v14696_v42 = vld [vmem:[#allocation102_spill] sm:$0xff] }
 0x4d7   : > { %4576 = vmatmul.f32.gmra.mxu0 %v14679_v26  ;;  %v4147_v58 = vpop.f32.mrf.mxu2  ;;  %5601 = vmatpush.msrb.mxu1 %v11492_v19 }
 0x4d8   : > { %v4148_v18 = vadd.f32 %v4147_v58, %v3963_v25  ;;  %v4354_v53 = vpop.f32.mrf.mxu3  ;;  %v14691_v25 = vld [vmem:[#allocation29_spill] sm:$0xff]  ;;  %5407 = vmatpush.msrb.mxu0 %v11497_v38 }
 0x4da   : > { %v11478_v44 = vadd.f32 %v4348_v24, %v4148_v18 }
 0x4db   : > { %v11480_v12 = vpop.f32.mrf.mxu1  ;;  %v11482_v21 = vpop.f32.mrf.mxu0 }
 0x4dc   : > { %14687 = vst [vmem:[#allocation106_spill] sm:$0xff] %v11478_v44  ;;  %4231 = vmatmul.f32.gmra.mxu2 %v11095_v60  ;;  %v13887_v60 = vand.u32 4294901760, %v11497_v38 }
 0x4dd   : > { %14688 = vst [vmem:[#allocation99_spill] sm:$0xff] %v11480_v12  ;;  %4455 = vmatmul.f32.gmra.mxu3 %v11137_v52  ;;  %v14698_v12 = vld [vmem:[#allocation112_spill] sm:$0xff] }
 0x4de   : > { %14689 = vst [vmem:[#allocation104_spill] sm:$0xff] %v11482_v21  ;;  %4745 = vmatmul.f32.gmra.mxu1 %v14691_v25 }
 0x4df   : > { %4580 = vmatmul.f32.gmra.mxu0 %v14686_v28  ;;  %v4152_v18 = vpop.f32.mrf.mxu2 }
 0x4e0   : > { %v4153_v24 = vadd.f32 %v4152_v18, %v3967_v45  ;;  %v4360_v58 = vpop.f32.mrf.mxu3  ;;  %v5225_v45 = vsub.f32 %v11497_v38, %v13887_v60  ;;  %v14697_v18 = vld [vmem:[#allocation108_spill] sm:$0xff] }
 0x4e1   : > { %v3971_v44 = vadd.f32 %v14697_v18, %v14696_v42 }
 0x4e2   : > { %v11501_v52 = vadd.f32 %v4354_v53, %v4153_v24  ;;  %v5226_v53 = vand.u32 4294901760, %v5225_v45 }
 0x4e3   : > { %v11504_v13 = vpop.f32.mrf.mxu1  ;;  %v11506_v63 = vpop.f32.mrf.mxu0 }
 0x4e4   : > { %14692 = vst [vmem:[#allocation71_spill] sm:$0xff] %v11501_v52  ;;  %4236 = vmatmul.f32.gmra.mxu2 %v14695_v59  ;;  %5227 = vmatpush.msrb.mxu3 %v5226_v53  ;;  %v7766_v59 = vld [vmem:[%s13475_s2 + $0x108] sm:$0xff]  ;;  %v14704_v53 = vld [vmem:[#allocation21_spill] sm:$0xff] }
 0x4e5   : > { %14693 = vst [vmem:[#allocation159_spill] sm:$0xff] %v11504_v13  ;;  %4461 = vmatmul.f32.gmra.mxu3 %v11175_v61 }
 0x4e6   : > { %14694 = vst [vmem:[#allocation160_spill] sm:$0xff] %v11506_v63  ;;  %4749 = vmatmul.f32.gmra.mxu1 %v14698_v12  ;;  %v11520_v63 = vand.u32 4294901760, %v7766_v59 }
 0x4e7   : > { %4584 = vmatmul.f32.gmra.mxu0 %v14691_v25  ;;  %v4157_v24 = vpop.f32.mrf.mxu2 }
 0x4e8   : > { %v4158_v52 = vadd.f32 %v4157_v24, %v3971_v44  ;;  %v4366_v13 = vpop.f32.mrf.mxu3  ;;  %v11530_v45 = vsub.f32 %v7766_v59, %v11520_v63  ;;  %5603 = vmatpush.msrb.mxu1 %v11520_v63  ;;  %4880 = vmatpush.msrb.mxu2 %v11520_v63  ;;  %v14702_v44 = vld [vmem:[#allocation126_spill] sm:$0xff]  ;;  %v14705_v24 = vand.u32 4294901760, %v14704_v53 }
 0x4e9   : > { %v3975_v18 = vadd.f32 %v14702_v44, %v11181_v55  ;;  %v14708_v44 = vld [vmem:[#allocation7_spill] sm:$0xff] }
 0x4ea   : > { %v11522_v60 = vadd.f32 %v4360_v58, %v4158_v52  ;;  %v14703_v52 = vld [vmem:[#allocation39_spill] sm:$0xff]  ;;  %v13892_v58 = vand.u32 4294901760, %v11530_v45  ;;  %5800 = vmatpush.msra.mxu2 %v14705_v24  ;;  %5410 = vmatpush.msrb.mxu0 %v11530_v45  ;;  %v14709_v21 = vand.u32 4294901760, %v14708_v44 }
 0x4eb   : > { %v11524_v61 = vpop.f32.mrf.mxu1 }
 0x4ec   : > { %14699 = vst [vmem:[#allocation102_spill] sm:$0xff] %v11522_v60  ;;  %v11526_v42 = vpop.f32.mrf.mxu0  ;;  %4241 = vmatmul.f32.gmra.mxu2 %v11166_v16 }
 0x4ed   : > { %14700 = vst [vmem:[#allocation108_spill] sm:$0xff] %v11524_v61  ;;  %4467 = vmatmul.f32.gmra.mxu3 %v11208_v10  ;;  %v5231_v10 = vsub.f32 %v11530_v45, %v13892_v58  ;;  %v14706_v61 = vld [vmem:[#allocation38_spill] sm:$0xff] }
 0x4ee   : > { %14701 = vst [vmem:[#allocation161_spill] sm:$0xff] %v11526_v42  ;;  %4753 = vmatmul.f32.gmra.mxu1 %v14703_v52  ;;  %v14707_v42 = vand.u32 4294901760, %v14706_v61  ;;  %v14717_v58 = vld [vmem:[#allocation34_spill] sm:$0xff] }
 0x4ef   : > { %4588 = vmatmul.f32.gmra.mxu0 %v14698_v12  ;;  %v4162_v59 = vpop.f32.mrf.mxu2  ;;  %v5232_v55 = vand.u32 4294901760, %v5231_v10  ;;  %v3979_v10 = vadd.f32 %v11183_v62, %v11219_v14 }
 0x4f0   : > { %v4163_v16 = vadd.f32 %v4162_v59, %v3975_v18  ;;  %v4372_v60 = vpop.f32.mrf.mxu3  ;;  %5804 = vmatpush.msra.mxu2 %v14707_v42  ;;  %v14711_v18 = vld [vmem:[#allocation28_spill] sm:$0xff]  ;;  %v14713_v42 = vld [vmem:[#allocation51_spill] sm:$0xff] }
 0x4f1   : > { %5233 = vmatpush.msrb.mxu3 %v5232_v55  ;;  %v14712_v61 = vand.u32 4294901760, %v14711_v18 }
 0x4f2   : > { %5808 = vmatpush.msra.mxu2 %v14709_v21  ;;  %v11550_v53 = vadd.f32 %v4366_v13, %v4163_v16  ;;  %v14714_v21 = vld [vmem:[#allocation81_spill] sm:$0xff]  ;;  %v14715_v13 = vld [vmem:[#allocation59_spill] sm:$0xff] }
 0x4f3   : > { %v11552_v24 = vpop.f32.mrf.mxu1  ;;  %5991 = vmatpush.msra.mxu3 %v14714_v21  ;;  %v14716_v59 = vand.u32 4294901760, %v14715_v13  ;;  %v14721_v21 = vld [vmem:[#allocation75_spill] sm:$0xff]  ;;  %v14727_v13 = vld [vmem:[#allocation121_spill] sm:$0xff] }
 0x4f4   : > { %14710 = vst [vmem:[#allocation126_spill] sm:$0xff] %v11550_v53  ;;  %v11554_v12 = vpop.f32.mrf.mxu0  ;;  %4246 = vmatmul.f32.gmra.mxu2 %v11194_v0  ;;  %v14718_v0 = vld [vmem:[#allocation44_spill] sm:$0xff] }
 0x4f5   : > { %4473 = vmatmul.f32.gmra.mxu3 %v11251_v40  ;;  %5812 = vmatpush.msra.mxu2 %v14712_v61  ;;  %v14719_v18 = vand.u32 4294901760, %v14718_v0  ;;  %v14720_v61 = vld [vmem:[#allocation133_spill] sm:$0xff]  ;;  %v14722_v40 = vand.u32 4294901760, %v14721_v21  ;;  %v14730_v21 = vld [vmem:[#allocation132_spill] sm:$0xff] }
 0x4f6   : > { %4757 = vmatmul.f32.gmra.mxu1 %v14713_v42  ;;  %5993 = vmatpush.msra.mxu3 %v14717_v58  ;;  %v14724_v58 = vld [vmem:[#allocation114_spill] sm:$0xff] }
 0x4f7   : > { %4592 = vmatmul.f32.gmra.mxu0 %v14703_v52  ;;  %v4167_v16 = vpop.f32.mrf.mxu2  ;;  %5816 = vmatpush.msra.mxu2 %v14716_v59  ;;  %v14725_v0 = vand.u32 4294901760, %v14724_v58  ;;  %v14728_v59 = vld [vmem:[#allocation6_spill] sm:$0xff]  ;;  %v14732_v58 = vld [vmem:[#allocation61_spill] sm:$0xff] }
 0x4f8   : > { %v4168_v44 = vadd.f32 %v4167_v16, %v3979_v10  ;;  %v4378_v55 = vpop.f32.mrf.mxu3  ;;  %5995 = vmatpush.msra.mxu3 %v14720_v61  ;;  %v14723_v10 = vld [vmem:[#allocation23_spill] sm:$0xff]  ;;  %v14726_v16 = vld [vmem:[#allocation60_spill] sm:$0xff] }
 0x4f9   : > { %5820 = vmatpush.msra.mxu2 %v14719_v18 }
 0x4fa   : > { %v11571_v62 = vadd.f32 %v4372_v60, %v4168_v44  ;;  %5997 = vmatpush.msra.mxu3 %v14723_v10  ;;  %v3983_v60 = vadd.f32 %v11221_v49, %v11264_v7  ;;  %v14729_v44 = vand.u32 4294901760, %v14728_v59  ;;  %v14731_v10 = vand.u32 4294901760, %v11255_v20  ;;  %v14737_v59 = vld [vmem:[#allocation42_spill] sm:$0xff] }
 0x4fb   : > { %v11573_v14 = vpop.f32.mrf.mxu1  ;;  %5824 = vmatpush.msra.mxu2 %v14722_v40  ;;  %v14735_v20 = vand.u32 4294901760, %v11380_v48  ;;  %v14740_v48 = vand.u32 4294901760, %v11458_v36  ;;  %v14742_v36 = vand.u32 4294901760, %v11530_v45 }
 0x4fc   : > { %v11577_v53 = vpop.f32.mrf.mxu0  ;;  %4251 = vmatmul.f32.gmra.mxu2 %v11240_v1  ;;  %5999 = vmatpush.msra.mxu3 %v14727_v13 }
 0x4fd   : > { %4479 = vmatmul.f32.gmra.mxu3 %v11289_v22  ;;  %5828 = vmatpush.msra.mxu2 %v14725_v0  ;;  %v14733_v0 = vand.u32 4294901760, %v11325_v29  ;;  %v14773_v22 = vld [vmem:[#allocation124_spill] sm:$0xff] }
 0x4fe   : > { %4761 = vmatmul.f32.gmra.mxu1 %v14726_v16  ;;  %6001 = vmatpush.msra.mxu3 %v14730_v21 }
 0x4ff   : > { %4596 = vmatmul.f32.gmra.mxu0 %v14713_v42  ;;  %v4172_v40 = vpop.f32.mrf.mxu2  ;;  %5832 = vmatpush.msra.mxu2 %v14729_v44  ;;  %v14738_v44 = vand.u32 4294901760, %v11419_v8  ;;  %v3991_v8 = vadd.f32 %v11295_v32, %v11334_v41  ;;  %v3995_v32 = vadd.f32 %v11336_v17, %v11361_v37  ;;  %v14744_v41 = vld [vmem:[#allocation33_spill] sm:$0xff]  ;;  %v3999_v17 = vadd.f32 %v11363_v27, %v11389_v51  ;;  %v14746_v37 = vld [vmem:[#allocation47_spill] sm:$0xff]  ;;  %v14748_v51 = vld [vmem:[#allocation56_spill] sm:$0xff] }
 0x500   : > { %v4173_v18 = vadd.f32 %v4172_v40, %v3983_v60  ;;  %v4384_v61 = vpop.f32.mrf.mxu3  ;;  %6003 = vmatpush.msra.mxu3 %v14732_v58  ;;  %v14734_v60 = vld [vmem:[#allocation122_spill] sm:$0xff]  ;;  %v14736_v40 = vld [vmem:[#allocation13_spill] sm:$0xff]  ;;  %v4003_v27 = vadd.f32 %v11387_v3, %v11404_v39  ;;  %v14750_v39 = vld [vmem:[#allocation79_spill] sm:$0xff] }
 0x501   : > { %5836 = vmatpush.msra.mxu2 %v14731_v10  ;;  %v14739_v10 = vld [vmem:[#allocation10_spill] sm:$0xff] }
 0x502   : > { %v11595_v49 = vadd.f32 %v4378_v55, %v4173_v18  ;;  %6005 = vmatpush.msra.mxu3 %v14734_v60  ;;  %v3987_v55 = vadd.f32 %v11266_v43, %v11293_v54  ;;  %v14741_v54 = vand.u32 4294901760, %v11497_v38 }
 0x503   : > { %v11597_v7 = vpop.f32.mrf.mxu1  ;;  %5840 = vmatpush.msra.mxu2 %v14733_v0 }
 0x504   : > { %v11601_v13 = vpop.f32.mrf.mxu0  ;;  %4256 = vmatmul.f32.gmra.mxu2 %v11280_v46  ;;  %6007 = vmatpush.msra.mxu3 %v14737_v59  ;;  %v14766_v46 = vld [vmem:[#allocation120_spill] sm:$0xff] }
 0x505   : > { %4485 = vmatmul.f32.gmra.mxu3 %v11321_v30  ;;  %5844 = vmatpush.msra.mxu2 %v14735_v20  ;;  %v14768_v30 = vld [vmem:[#allocation112_spill] sm:$0xff] }
 0x506   : > { %4765 = vmatmul.f32.gmra.mxu1 %v14736_v40  ;;  %6009 = vmatpush.msra.mxu3 %v14739_v10 }
 0x507   : > { %4600 = vmatmul.f32.gmra.mxu0 %v14726_v16  ;;  %v4177_v29 = vpop.f32.mrf.mxu2  ;;  %5848 = vmatpush.msra.mxu2 %v14738_v44  ;;  %v14745_v44 = vld [vmem:[#allocation145_spill] sm:$0xff] }
 0x508   : > { %v4178_v18 = vadd.f32 %v4177_v29, %v3987_v55  ;;  %v4390_v21 = vpop.f32.mrf.mxu3  ;;  %6011 = vmatpush.msra.mxu3 %v11315_v35  ;;  %v14743_v35 = vld [vmem:[#allocation18_spill] sm:$0xff] }
 0x509   : > { %5852 = vmatpush.msra.mxu2 %v14740_v48 }
 0x50a   : > { %v11618_v58 = vadd.f32 %v4384_v61, %v4178_v18  ;;  %6013 = vmatpush.msra.mxu3 %v11375_v9 }
 0x50b   : > { %v11621_v43 = vpop.f32.mrf.mxu1  ;;  %5856 = vmatpush.msra.mxu2 %v14741_v54 }
 0x50c   : > { %v11625_v0 = vpop.f32.mrf.mxu0  ;;  %4261 = vmatmul.f32.gmra.mxu2 %v11311_v6  ;;  %6015 = vmatpush.msra.mxu3 %v11414_v5  ;;  %v14760_v6 = vld [vmem:[#allocation107_spill] sm:$0xff] }
 0x50d   : > { %4491 = vmatmul.f32.gmra.mxu3 %v11355_v50  ;;  %5860 = vmatpush.msra.mxu2 %v14742_v36  ;;  %v14747_v36 = vld [vmem:[#allocation8_spill] sm:$0xff] }
 0x50e   : > { %4769 = vmatmul.f32.gmra.mxu1 %v14743_v35  ;;  %6017 = vmatpush.msra.mxu3 %v11453_v56 }
 0x50f   : > { %4604 = vmatmul.f32.gmra.mxu0 %v14736_v40  ;;  %v4182_v38 = vpop.f32.mrf.mxu2 }
 0x510   : > { %v4183_v61 = vadd.f32 %v4182_v38, %v3991_v8  ;;  %v4396_v60 = vpop.f32.mrf.mxu3  ;;  %6019 = vmatpush.msra.mxu3 %v11492_v19 }
 0x512   : > { %v11638_v9 = vadd.f32 %v4390_v21, %v4183_v61  ;;  %6021 = vmatpush.msra.mxu3 %v11520_v63 }
 0x513   : > { %v11641_v45 = vpop.f32.mrf.mxu1 }
 0x514   : > { %v11643_v20 = vpop.f32.mrf.mxu0  ;;  %4266 = vmatmul.f32.gmra.mxu2 %v11350_v23 }
 0x515   : > { %5235 = vmatmul.f32.vlgmr.msrb.gmra.mxu3 %v14665_v33 }
 0x516   : > { %4773 = vmatmul.f32.gmra.mxu1 %v14744_v41 }
 0x517   : > { %4608 = vmatmul.f32.gmra.mxu0 %v14743_v35  ;;  %v4187_v5 = vpop.f32.mrf.mxu2 }
 0x518   : > { %v4188_v56 = vadd.f32 %v4187_v5, %v3995_v32  ;;  %v4402_v19 = vpop.f32.mrf.mxu3 }
 0x51a   : > { %v11652_v55 = vadd.f32 %v4396_v60, %v4188_v56  ;;  %v14749_v56 = vld [vmem:[#allocation82_spill] sm:$0xff] }
 0x51b   : > { %v11654_v59 = vpop.f32.mrf.mxu1 }
 0x51c   : > { %v11656_v29 = vpop.f32.mrf.mxu0  ;;  %4886 = vmatmul.f32.vlgmr.msrb.gmra.mxu2 %v14745_v44 }
 0x51d   : > { %5239 = vmatmul.f32.gmra.mxu3 %v14667_v31 }
 0x51e   : > { %4777 = vmatmul.f32.gmra.mxu1 %v14746_v37 }
 0x51f   : > { %4612 = vmatmul.f32.gmra.mxu0 %v14744_v41  ;;  %v4192_v63 = vpop.f32.mrf.mxu2 }
 0x520   : > { %v4193_v18 = vadd.f32 %v4192_v63, %v3999_v17  ;;  %v4408_v21 = vpop.f32.mrf.mxu3 }
 0x522   : > { %v11664_v10 = vadd.f32 %v4402_v19, %v4193_v18  ;;  %v4007_v19 = vadd.f32 %v11402_v4, %v11428_v57  ;;  %v4011_v4 = vadd.f32 %v11426_v47, %v11443_v2  ;;  %v14752_v57 = vld [vmem:[#allocation3_spill] sm:$0xff]  ;;  %v14756_v2 = vld [vmem:[#allocation88_spill] sm:$0xff] }
 0x523   : > { %v11666_v48 = vpop.f32.mrf.mxu1  ;;  %v14757_v47 = vld [vmem:[#allocation12_spill] sm:$0xff] }
 0x524   : > { %v11668_v54 = vpop.f32.mrf.mxu0  ;;  %4894 = vmatmul.f32.gmra.mxu2 %v14747_v36  ;;  %v14751_v36 = vld [vmem:[#allocation98_spill] sm:$0xff]  ;;  %v4015_v23 = vadd.f32 %v14757_v47, %v14756_v2  ;;  %v14762_v2 = vld [vmem:[#allocation104_spill] sm:$0xff]  ;;  %v14763_v47 = vld [vmem:[#allocation125_spill] sm:$0xff] }
 0x525   : > { %5243 = vmatmul.f32.gmra.mxu3 %v14669_v11  ;;  %v4019_v50 = vadd.f32 %v14763_v47, %v14762_v2  ;;  %v14769_v2 = vld [vmem:[#allocation160_spill] sm:$0xff]  ;;  %v14770_v47 = vld [vmem:[#allocation99_spill] sm:$0xff] }
 0x526   : > { %4781 = vmatmul.f32.gmra.mxu1 %v14748_v51  ;;  %v4023_v1 = vadd.f32 %v14770_v47, %v14769_v2  ;;  %v14775_v2 = vld [vmem:[#allocation161_spill] sm:$0xff]  ;;  %v14776_v47 = vld [vmem:[#allocation159_spill] sm:$0xff] }
 0x527   : > { %4616 = vmatmul.f32.gmra.mxu0 %v14746_v37  ;;  %v4197_v8 = vpop.f32.mrf.mxu2 }
 0x528   : > { %v4198_v38 = vadd.f32 %v4197_v8, %v4003_v27  ;;  %v4414_v61 = vpop.f32.mrf.mxu3 }
 0x52a   : > { %v11676_v60 = vadd.f32 %v4408_v21, %v4198_v38 }
 0x52b   : > { %v4722_v32 = vpop.f32.mrf.mxu1 }
 0x52c   : > { %v11678_v5 = vpop.f32.mrf.mxu0  ;;  %4902 = vmatmul.f32.gmra.mxu2 %v14749_v56 }
 0x52d   : > { %5247 = vmatmul.f32.gmra.mxu3 %v14672_v34 }
 0x52e   : > { %4785 = vmatmul.f32.gmra.mxu1 %v14750_v39 }
 0x52f   : > { %4620 = vmatmul.f32.gmra.mxu0 %v14748_v51  ;;  %v4202_v3 = vpop.f32.mrf.mxu2 }
 0x530   : > { %v4203_v44 = vadd.f32 %v4202_v3, %v4007_v19  ;;  %v4420_v17 = vpop.f32.mrf.mxu3 }
 0x532   : > { %v11686_v63 = vadd.f32 %v4414_v61, %v4203_v44 }
 0x533   : > { %v4726_v18 = vpop.f32.mrf.mxu1 }
 0x534   : > { %v4561_v21 = vpop.f32.mrf.mxu0  ;;  %4910 = vmatmul.f32.gmra.mxu2 %v14751_v36  ;;  %v14754_v36 = vld [vmem:[#allocation24_spill] sm:$0xff] }
 0x535   : > { %v4562_v27 = vadd.f32 %v4561_v21, %v11331_v15  ;;  %5251 = vmatmul.f32.gmra.mxu3 %v14679_v26  ;;  %v14755_v15 = vld [vmem:[#allocation157_spill] sm:$0xff] }
 0x536   : > { %4789 = vmatmul.f32.gmra.mxu1 %v14752_v57 }
 0x537   : > { %v11694_v8 = vadd.f32 %v4722_v32, %v4562_v27  ;;  %4624 = vmatmul.f32.gmra.mxu0 %v14750_v39  ;;  %v4207_v38 = vpop.f32.mrf.mxu2  ;;  %v14758_v32 = vld [vmem:[#allocation118_spill] sm:$0xff] }
 0x538   : > { %v4208_v61 = vadd.f32 %v4207_v38, %v4011_v4  ;;  %v4426_v56 = vpop.f32.mrf.mxu3 }
 0x539   : > { %14753 = vst [vmem:[#allocation21_spill] sm:$0xff] %v11694_v8 }
 0x53a   : > { %v11697_v19 = vadd.f32 %v4420_v17, %v4208_v61 }
 0x53b   : > { %v4730_v3 = vpop.f32.mrf.mxu1 }
 0x53c   : > { %v4565_v44 = vpop.f32.mrf.mxu0  ;;  %4918 = vmatmul.f32.gmra.mxu2 %v14754_v36 }
 0x53d   : > { %v4566_v21 = vadd.f32 %v4565_v44, %v14755_v15  ;;  %5255 = vmatmul.f32.gmra.mxu3 %v14686_v28  ;;  %v14761_v44 = vld [vmem:[#allocation70_spill] sm:$0xff] }
 0x53e   : > { %4793 = vmatmul.f32.gmra.mxu1 %v14758_v32 }
 0x53f   : > { %v11705_v27 = vadd.f32 %v4726_v18, %v4566_v21  ;;  %4628 = vmatmul.f32.gmra.mxu0 %v14752_v57  ;;  %v4212_v4 = vpop.f32.mrf.mxu2  ;;  %v14764_v18 = vld [vmem:[#allocation90_spill] sm:$0xff] }
 0x540   : > { %v4213_v17 = vadd.f32 %v4212_v4, %v4015_v23  ;;  %v4432_v38 = vpop.f32.mrf.mxu3 }
 0x541   : > { %14759 = vst [vmem:[#allocation38_spill] sm:$0xff] %v11705_v27 }
 0x542   : > { %v11708_v61 = vadd.f32 %v4426_v56, %v4213_v17 }
 0x543   : > { %v4734_v8 = vpop.f32.mrf.mxu1 }
 0x544   : > { %v4569_v36 = vpop.f32.mrf.mxu0  ;;  %4926 = vmatmul.f32.gmra.mxu2 %v14760_v6 }
 0x545   : > { %v4570_v15 = vadd.f32 %v4569_v36, %v14761_v44  ;;  %5259 = vmatmul.f32.gmra.mxu3 %v14691_v25  ;;  %v14767_v36 = vld [vmem:[#allocation149_spill] sm:$0xff]  ;;  %v14779_v25 = vld [vmem:[#allocation135_spill] sm:$0xff] }
 0x546   : > { %4797 = vmatmul.f32.gmra.mxu1 %v14764_v18 }
 0x547   : > { %v11716_v21 = vadd.f32 %v4730_v3, %v4570_v15  ;;  %4632 = vmatmul.f32.gmra.mxu0 %v14758_v32  ;;  %v4217_v23 = vpop.f32.mrf.mxu2  ;;  %v14771_v3 = vld [vmem:[#allocation97_spill] sm:$0xff] }
 0x548   : > { %v4218_v56 = vadd.f32 %v4217_v23, %v4019_v50  ;;  %v4438_v4 = vpop.f32.mrf.mxu3 }
 0x549   : > { %14765 = vst [vmem:[#allocation7_spill] sm:$0xff] %v11716_v21 }
 0x54a   : > { %v11719_v17 = vadd.f32 %v4432_v38, %v4218_v56 }
 0x54b   : > { %v4738_v27 = vpop.f32.mrf.mxu1 }
 0x54c   : > { %v4573_v6 = vpop.f32.mrf.mxu0  ;;  %4934 = vmatmul.f32.gmra.mxu2 %v14766_v46 }
 0x54d   : > { %v4574_v44 = vadd.f32 %v4573_v6, %v14767_v36  ;;  %5263 = vmatmul.f32.gmra.mxu3 %v14768_v30  ;;  %v14774_v6 = vld [vmem:[#allocation150_spill] sm:$0xff]  ;;  %v4027_v30 = vadd.f32 %v14776_v47, %v14775_v2  ;;  %v14781_v2 = vld [vmem:[#allocation108_spill] sm:$0xff] }
 0x54e   : > { %4801 = vmatmul.f32.gmra.mxu1 %v14771_v3  ;;  %v4031_v47 = vadd.f32 %v14781_v2, %v11554_v12  ;;  %v4035_v12 = vadd.f32 %v11552_v24, %v11577_v53  ;;  %v4039_v53 = vadd.f32 %v11573_v14, %v11601_v13  ;;  %v14790_v24 = vld [vmem:[#allocation137_spill] sm:$0xff]  ;;  %v4043_v14 = vadd.f32 %v11597_v7, %v11625_v0  ;;  %v14798_v0 = vld [vmem:[#allocation46_spill] sm:$0xff] }
 0x54f   : > { %v11727_v15 = vadd.f32 %v4734_v8, %v4574_v44  ;;  %4636 = vmatmul.f32.gmra.mxu0 %v14764_v18  ;;  %v4222_v50 = vpop.f32.mrf.mxu2  ;;  %v14777_v8 = vld [vmem:[#allocation144_spill] sm:$0xff]  ;;  %v14794_v13 = vld [vmem:[#allocation69_spill] sm:$0xff]  ;;  %v4047_v7 = vadd.f32 %v11621_v43, %v11643_v20  ;;  %v4051_v43 = vadd.f32 %v11641_v45, %v11656_v29  ;;  %v4055_v45 = vadd.f32 %v11654_v59, %v11668_v54  ;;  %v14805_v29 = vld [vmem:[#allocation86_spill] sm:$0xff] }
 0x550   : > { %v4223_v38 = vadd.f32 %v4222_v50, %v4023_v1  ;;  %v4444_v23 = vpop.f32.mrf.mxu3  ;;  %v14802_v20 = vld [vmem:[#allocation140_spill] sm:$0xff]  ;;  %v4059_v59 = vadd.f32 %v11666_v48, %v11678_v5 }
 0x551   : > { %14772 = vst [vmem:[#allocation28_spill] sm:$0xff] %v11727_v15  ;;  %v14808_v54 = vld [vmem:[#allocation72_spill] sm:$0xff] }
 0x552   : > { %v11730_v56 = vadd.f32 %v4438_v4, %v4223_v38 }
 0x553   : > { %v4742_v21 = vpop.f32.mrf.mxu1 }
 0x554   : > { %v4577_v46 = vpop.f32.mrf.mxu0  ;;  %4942 = vmatmul.f32.gmra.mxu2 %v14773_v22 }
 0x555   : > { %v4578_v36 = vadd.f32 %v4577_v46, %v14774_v6  ;;  %5267 = vmatmul.f32.gmra.mxu3 %v14703_v52  ;;  %v14780_v46 = vld [vmem:[#allocation54_spill] sm:$0xff]  ;;  %v14784_v52 = vld [vmem:[#allocation4_spill] sm:$0xff] }
 0x556   : > { %4805 = vmatmul.f32.gmra.mxu1 %v14777_v8 }
 0x557   : > { %v11738_v44 = vadd.f32 %v4738_v27, %v4578_v36  ;;  %4640 = vmatmul.f32.gmra.mxu0 %v14771_v3  ;;  %v4227_v1 = vpop.f32.mrf.mxu2  ;;  %v14782_v27 = vld [vmem:[#allocation103_spill] sm:$0xff] }
 0x558   : > { %v4228_v4 = vadd.f32 %v4227_v1, %v4027_v30  ;;  %v4450_v50 = vpop.f32.mrf.mxu3 }
 0x559   : > { %14778 = vst [vmem:[#allocation51_spill] sm:$0xff] %v11738_v44 }
 0x55a   : > { %v11741_v38 = vadd.f32 %v4444_v23, %v4228_v4 }
 0x55b   : > { %v4746_v15 = vpop.f32.mrf.mxu1 }
 0x55c   : > { %v4581_v22 = vpop.f32.mrf.mxu0  ;;  %4950 = vmatmul.f32.gmra.mxu2 %v14779_v25 }
 0x55d   : > { %v4582_v6 = vadd.f32 %v4581_v22, %v14780_v46  ;;  %5271 = vmatmul.f32.gmra.mxu3 %v14713_v42  ;;  %v14785_v22 = vld [vmem:[#allocation57_spill] sm:$0xff] }
 0x55e   : > { %4809 = vmatmul.f32.gmra.mxu1 %v14782_v27 }
 0x55f   : > { %v11749_v36 = vadd.f32 %v4742_v21, %v4582_v6  ;;  %4644 = vmatmul.f32.gmra.mxu0 %v14777_v8  ;;  %v4232_v30 = vpop.f32.mrf.mxu2  ;;  %v14786_v21 = vld [vmem:[#allocation62_spill] sm:$0xff] }
 0x560   : > { %v4233_v23 = vadd.f32 %v4232_v30, %v4031_v47  ;;  %v4456_v1 = vpop.f32.mrf.mxu3 }
 0x561   : > { %14783 = vst [vmem:[#allocation81_spill] sm:$0xff] %v11749_v36  ;;  %v14788_v36 = vld [vmem:[#allocation73_spill] sm:$0xff] }
 0x562   : > { %v11752_v4 = vadd.f32 %v4450_v50, %v4233_v23 }
 0x563   : > { %v4750_v44 = vpop.f32.mrf.mxu1 }
 0x564   : > { %v4585_v25 = vpop.f32.mrf.mxu0  ;;  %4958 = vmatmul.f32.gmra.mxu2 %v14784_v52 }
 0x565   : > { %v4586_v46 = vadd.f32 %v4585_v25, %v14785_v22  ;;  %5275 = vmatmul.f32.gmra.mxu3 %v14726_v16  ;;  %v14789_v25 = vld [vmem:[#allocation106_spill] sm:$0xff] }
 0x566   : > { %4813 = vmatmul.f32.gmra.mxu1 %v14786_v21 }
 0x567   : > { %v11760_v6 = vadd.f32 %v4746_v15, %v4586_v46  ;;  %4648 = vmatmul.f32.gmra.mxu0 %v14782_v27  ;;  %v4237_v2 = vpop.f32.mrf.mxu2 }
 0x568   : > { %v4238_v50 = vadd.f32 %v4237_v2, %v4035_v12  ;;  %v4462_v47 = vpop.f32.mrf.mxu3 }
 0x569   : > { %14787 = vst [vmem:[#allocation59_spill] sm:$0xff] %v11760_v6  ;;  %v14792_v6 = vld [vmem:[#allocation25_spill] sm:$0xff] }
 0x56a   : > { %v11763_v30 = vadd.f32 %v4456_v1, %v4238_v50 }
 0x56b   : > { %v4754_v23 = vpop.f32.mrf.mxu1 }
 0x56c   : > { %v4589_v52 = vpop.f32.mrf.mxu0  ;;  %4966 = vmatmul.f32.gmra.mxu2 %v14788_v36 }
 0x56d   : > { %v4590_v22 = vadd.f32 %v4589_v52, %v14789_v25  ;;  %5279 = vmatmul.f32.gmra.mxu3 %v14736_v40  ;;  %v14793_v52 = vld [vmem:[#allocation71_spill] sm:$0xff] }
 0x56e   : > { %4817 = vmatmul.f32.gmra.mxu1 %v14790_v24 }
 0x56f   : > { %v11771_v15 = vadd.f32 %v4750_v44, %v4590_v22  ;;  %4652 = vmatmul.f32.gmra.mxu0 %v14786_v21  ;;  %v4242_v46 = vpop.f32.mrf.mxu2 }
 0x570   : > { %v4243_v1 = vadd.f32 %v4242_v46, %v4039_v53  ;;  %v4468_v12 = vpop.f32.mrf.mxu3 }
 0x571   : > { %14791 = vst [vmem:[#allocation34_spill] sm:$0xff] %v11771_v15  ;;  %v14796_v15 = vld [vmem:[#allocation30_spill] sm:$0xff] }
 0x572   : > { %v11774_v2 = vadd.f32 %v4462_v47, %v4243_v1 }
 0x573   : > { %v4758_v50 = vpop.f32.mrf.mxu1 }
 0x574   : > { %v4593_v36 = vpop.f32.mrf.mxu0  ;;  %4974 = vmatmul.f32.gmra.mxu2 %v14792_v6 }
 0x575   : > { %v4594_v25 = vadd.f32 %v4593_v36, %v14793_v52  ;;  %5283 = vmatmul.f32.gmra.mxu3 %v14743_v35  ;;  %v14797_v36 = vld [vmem:[#allocation102_spill] sm:$0xff] }
 0x576   : > { %4821 = vmatmul.f32.gmra.mxu1 %v14794_v13 }
 0x577   : > { %v11782_v44 = vadd.f32 %v4754_v23, %v4594_v25  ;;  %4656 = vmatmul.f32.gmra.mxu0 %v14790_v24  ;;  %v4247_v22 = vpop.f32.mrf.mxu2 }
 0x578   : > { %v4248_v47 = vadd.f32 %v4247_v22, %v4043_v14  ;;  %v4474_v53 = vpop.f32.mrf.mxu3 }
 0x579   : > { %14795 = vst [vmem:[#allocation44_spill] sm:$0xff] %v11782_v44  ;;  %v14800_v44 = vld [vmem:[#allocation43_spill] sm:$0xff] }
 0x57a   : > { %v11785_v46 = vadd.f32 %v4468_v12, %v4248_v47 }
 0x57b   : > { %v4762_v1 = vpop.f32.mrf.mxu1 }
 0x57c   : > { %v4597_v6 = vpop.f32.mrf.mxu0  ;;  %4982 = vmatmul.f32.gmra.mxu2 %v14796_v15 }
 0x57d   : > { %v4598_v52 = vadd.f32 %v4597_v6, %v14797_v36  ;;  %5287 = vmatmul.f32.gmra.mxu3 %v14744_v41  ;;  %v14801_v6 = vld [vmem:[#allocation126_spill] sm:$0xff] }
 0x57e   : > { %4825 = vmatmul.f32.gmra.mxu1 %v14798_v0 }
 0x57f   : > { %v11793_v23 = vadd.f32 %v4758_v50, %v4598_v52  ;;  %4660 = vmatmul.f32.gmra.mxu0 %v14794_v13  ;;  %v4252_v25 = vpop.f32.mrf.mxu2 }
 0x580   : > { %v4253_v12 = vadd.f32 %v4252_v25, %v4047_v7  ;;  %v4480_v14 = vpop.f32.mrf.mxu3 }
 0x581   : > { %14799 = vst [vmem:[#allocation133_spill] sm:$0xff] %v11793_v23  ;;  %v14804_v23 = vld [vmem:[#allocation123_spill] sm:$0xff] }
 0x582   : > { %v11796_v22 = vadd.f32 %v4474_v53, %v4253_v12 }
 0x583   : > { %v4766_v47 = vpop.f32.mrf.mxu1 }
 0x584   : > { %v4601_v15 = vpop.f32.mrf.mxu0  ;;  %4990 = vmatmul.f32.gmra.mxu2 %v14800_v44 }
 0x585   : > { %v4602_v36 = vadd.f32 %v4601_v15, %v14801_v6  ;;  %5291 = vmatmul.f32.gmra.mxu3 %v14746_v37 }
 0x586   : > { %4829 = vmatmul.f32.gmra.mxu1 %v14802_v20 }
 0x587   : > { %v11804_v50 = vadd.f32 %v4762_v1, %v4602_v36  ;;  %4664 = vmatmul.f32.gmra.mxu0 %v14798_v0  ;;  %v4257_v52 = vpop.f32.mrf.mxu2 }
 0x588   : > { %v4258_v53 = vadd.f32 %v4257_v52, %v4051_v43  ;;  %v4486_v7 = vpop.f32.mrf.mxu3 }
 0x589   : > { %14803 = vst [vmem:[#allocation75_spill] sm:$0xff] %v11804_v50  ;;  %v14814_v50 = vld [vmem:[#allocation153_spill] sm:$0xff] }
 0x58a   : > { %v11807_v25 = vadd.f32 %v4480_v14, %v4258_v53  ;;  %v14807_v53 = vld [vmem:[#allocation11_spill] sm:$0xff] }
 0x58b   : > { %v4770_v12 = vpop.f32.mrf.mxu1 }
 0x58c   : > { %v4605_v44 = vpop.f32.mrf.mxu0  ;;  %4998 = vmatmul.f32.gmra.mxu2 %v14804_v23 }
 0x58d   : > { %v4606_v15 = vadd.f32 %v4605_v44, %v11571_v62  ;;  %5295 = vmatmul.f32.gmra.mxu3 %v14748_v51 }
 0x58e   : > { %4833 = vmatmul.f32.gmra.mxu1 %v14805_v29 }
 0x58f   : > { %v11815_v1 = vadd.f32 %v4766_v47, %v4606_v15  ;;  %4668 = vmatmul.f32.gmra.mxu0 %v14802_v20  ;;  %v4262_v6 = vpop.f32.mrf.mxu2 }
 0x590   : > { %v4263_v14 = vadd.f32 %v4262_v6, %v4055_v45  ;;  %v4492_v36 = vpop.f32.mrf.mxu3 }
 0x591   : > { %14806 = vst [vmem:[#allocation23_spill] sm:$0xff] %v11815_v1 }
 0x592   : > { %v11818_v43 = vadd.f32 %v4486_v7, %v4263_v14  ;;  %v6364_v7 = vld [vmem:[%s13477_s4 + $0x78] sm:$0xff]  ;;  %v14810_v14 = vld [vmem:[#allocation19_spill] sm:$0xff] }
 0x593   : > { %v4774_v52 = vpop.f32.mrf.mxu1  ;;  %v11832_v6 = vand.u32 4294901760, %v6364_v7 }
 0x594   : > { %v4609_v23 = vpop.f32.mrf.mxu0  ;;  %5006 = vmatmul.f32.gmra.mxu2 %v14807_v53 }
 0x595   : > { %v4610_v62 = vadd.f32 %v4609_v23, %v11595_v49  ;;  %5299 = vmatmul.f32.gmra.mxu3 %v14750_v39  ;;  %6366 = vmatpush.msra.mxu0 %v11832_v6  ;;  %v11836_v49 = vsub.f32 %v6364_v7, %v11832_v6  ;;  %v14828_v39 = vld [vmem:[#allocation16_spill] sm:$0xff] }
 0x596   : > { %4837 = vmatmul.f32.gmra.mxu1 %v14808_v54  ;;  %7089 = vmatpush.msrb.mxu3 %v11832_v6 }
 0x597   : > { %v11826_v47 = vadd.f32 %v4770_v12, %v4610_v62  ;;  %4672 = vmatmul.f32.gmra.mxu0 %v14805_v29  ;;  %v4267_v44 = vpop.f32.mrf.mxu2  ;;  %v13904_v23 = vand.u32 4294901760, %v11836_v49  ;;  %6881 = vmatpush.msrb.mxu2 %v11836_v49  ;;  %v14811_v62 = vld [vmem:[#allocation142_spill] sm:$0xff] }
 0x598   : > { %v4268_v15 = vadd.f32 %v4267_v44, %v4059_v59  ;;  %v5236_v45 = vpop.f32.mrf.mxu3 }
 0x599   : > { %14809 = vst [vmem:[#allocation114_spill] sm:$0xff] %v11826_v47  ;;  %v14813_v47 = vld [vmem:[#allocation31_spill] sm:$0xff] }
 0x59a   : > { %v11838_v48 = vadd.f32 %v4492_v36, %v4268_v15  ;;  %v6657_v36 = vsub.f32 %v11836_v49, %v13904_v23 }
 0x59b   : > { %v4778_v5 = vpop.f32.mrf.mxu1 }
 0x59c   : > { %v4613_v12 = vpop.f32.mrf.mxu0  ;;  %5014 = vmatmul.f32.gmra.mxu2 %v14810_v14  ;;  %v6658_v14 = vand.u32 4294901760, %v6657_v36 }
 0x59d   : > { %v4614_v53 = vadd.f32 %v4613_v12, %v11618_v58  ;;  %5303 = vmatmul.f32.gmra.mxu3 %v14752_v57  ;;  %v14820_v57 = vld [vmem:[#allocation84_spill] sm:$0xff] }
 0x59e   : > { %4841 = vmatmul.f32.gmra.mxu1 %v14811_v62 }
 0x59f   : > { %v11850_v59 = vadd.f32 %v4774_v52, %v4614_v53  ;;  %4676 = vmatmul.f32.gmra.mxu0 %v14808_v54  ;;  %v4887_v44 = vpop.f32.mrf.mxu2  ;;  %6659 = vmatpush.msra.mxu1 %v6658_v14 }
 0x5a0   : > { %v11853_v7 = vadd.f32 %v5236_v45, %v4887_v44  ;;  %v5240_v15 = vpop.f32.mrf.mxu3  ;;  %v6363_v45 = vld [vmem:[%s13477_s4 + $0x70] sm:$0xff] }
 0x5a1   : > { %14812 = vst [vmem:[#allocation60_spill] sm:$0xff] %v11850_v59  ;;  %v11867_v14 = vand.u32 4294901760, %v6363_v45 }
 0x5a3   : > { %v4782_v58 = vpop.f32.mrf.mxu1  ;;  %6368 = vmatpush.msra.mxu0 %v11867_v14  ;;  %7091 = vmatpush.msrb.mxu3 %v11867_v14 }
 0x5a4   : > { %v4617_v12 = vpop.f32.mrf.mxu0  ;;  %5022 = vmatmul.f32.gmra.mxu2 %v14813_v47 }
 0x5a5   : > { %v4618_v1 = vadd.f32 %v4617_v12, %v11638_v9  ;;  %5307 = vmatmul.f32.gmra.mxu3 %v14758_v32  ;;  %v11871_v9 = vsub.f32 %v6363_v45, %v11867_v14 }
 0x5a6   : > { %4845 = vmatmul.f32.gmra.mxu1 %v14814_v50 }
 0x5a7   : > { %v11859_v52 = vadd.f32 %v4778_v5, %v4618_v1  ;;  %4680 = vmatmul.f32.gmra.mxu0 %v14811_v62  ;;  %v4895_v53 = vpop.f32.mrf.mxu2  ;;  %v14816_v5 = vld [vmem:[#allocation40_spill] sm:$0xff]  ;;  %v13908_v12 = vand.u32 4294901760, %v11871_v9  ;;  %6884 = vmatpush.msrb.mxu2 %v11871_v9 }
 0x5a8   : > { %v11865_v36 = vadd.f32 %v5240_v15, %v4895_v53  ;;  %v5244_v44 = vpop.f32.mrf.mxu3  ;;  %v14817_v15 = vld [vmem:[#allocation77_spill] sm:$0xff] }
 0x5a9   : > { %14815 = vst [vmem:[#allocation121_spill] sm:$0xff] %v11859_v52  ;;  %v6663_v53 = vsub.f32 %v11871_v9, %v13908_v12 }
 0x5ab   : > { %v4786_v1 = vpop.f32.mrf.mxu1  ;;  %v6664_v32 = vand.u32 4294901760, %v6663_v53 }
 0x5ac   : > { %v4621_v47 = vpop.f32.mrf.mxu0  ;;  %5030 = vmatmul.f32.gmra.mxu2 %v14816_v5 }
 0x5ad   : > { %v4622_v23 = vadd.f32 %v4621_v47, %v11652_v55  ;;  %5311 = vmatmul.f32.gmra.mxu3 %v14764_v18  ;;  %6665 = vmatpush.msra.mxu1 %v6664_v32  ;;  %v14819_v18 = vld [vmem:[#allocation50_spill] sm:$0xff] }
 0x5ae   : > { %5607 = vmatmul.f32.vlgmr.msrb.gmra.mxu1 %v14817_v15 }
 0x5af   : > { %v11883_v45 = vadd.f32 %v4782_v58, %v4622_v23  ;;  %4684 = vmatmul.f32.gmra.mxu0 %v14814_v50  ;;  %v4903_v52 = vpop.f32.mrf.mxu2  ;;  %v14822_v58 = vld [vmem:[#allocation136_spill] sm:$0xff] }
 0x5b0   : > { %v11886_v5 = vadd.f32 %v5244_v44, %v4903_v52  ;;  %v5248_v59 = vpop.f32.mrf.mxu3  ;;  %v6362_v52 = vld [vmem:[%s13477_s4 + $0x68] sm:$0xff] }
 0x5b1   : > { %14818 = vst [vmem:[#allocation6_spill] sm:$0xff] %v11883_v45  ;;  %v11900_v53 = vand.u32 4294901760, %v6362_v52 }
 0x5b3   : > { %v4790_v55 = vpop.f32.mrf.mxu1  ;;  %6370 = vmatpush.msra.mxu0 %v11900_v53  ;;  %7093 = vmatpush.msrb.mxu3 %v11900_v53 }
 0x5b4   : > { %v4625_v47 = vpop.f32.mrf.mxu0  ;;  %5038 = vmatmul.f32.gmra.mxu2 %v14819_v18 }
 0x5b5   : > { %v4626_v15 = vadd.f32 %v4625_v47, %v11664_v10  ;;  %5315 = vmatmul.f32.gmra.mxu3 %v14771_v3  ;;  %v11904_v10 = vsub.f32 %v6362_v52, %v11900_v53  ;;  %v14826_v52 = vld [vmem:[#allocation76_spill] sm:$0xff] }
 0x5b6   : > { %5613 = vmatmul.f32.gmra.mxu1 %v14820_v57 }
 0x5b7   : > { %v11892_v23 = vadd.f32 %v4786_v1, %v4626_v15  ;;  %5413 = vmatmul.f32.vlgmr.msrb.gmra.mxu0 %v14822_v58  ;;  %v4911_v12 = vpop.f32.mrf.mxu2  ;;  %v14823_v1 = vld [vmem:[#allocation113_spill] sm:$0xff]  ;;  %v13912_v47 = vand.u32 4294901760, %v11904_v10  ;;  %6887 = vmatpush.msrb.mxu2 %v11904_v10 }
 0x5b8   : > { %v11898_v32 = vadd.f32 %v5248_v59, %v4911_v12  ;;  %v5252_v44 = vpop.f32.mrf.mxu3  ;;  %v14824_v59 = vld [vmem:[#allocation85_spill] sm:$0xff] }
 0x5b9   : > { %14821 = vst [vmem:[#allocation132_spill] sm:$0xff] %v11892_v23  ;;  %v6669_v12 = vsub.f32 %v11904_v10, %v13912_v47 }
 0x5bb   : > { %v4794_v57 = vpop.f32.mrf.mxu1  ;;  %v6670_v3 = vand.u32 4294901760, %v6669_v12 }
 0x5bc   : > { %v4629_v18 = vpop.f32.mrf.mxu0  ;;  %5046 = vmatmul.f32.gmra.mxu2 %v14823_v1 }
 0x5bd   : > { %v4630_v15 = vadd.f32 %v4629_v18, %v11676_v60  ;;  %5319 = vmatmul.f32.gmra.mxu3 %v14777_v8  ;;  %6671 = vmatpush.msra.mxu1 %v6670_v3  ;;  %v14827_v8 = vld [vmem:[#allocation138_spill] sm:$0xff] }
 0x5be   : > { %5619 = vmatmul.f32.gmra.mxu1 %v14824_v59 }
 0x5bf   : > { %v11916_v58 = vadd.f32 %v4790_v55, %v4630_v15  ;;  %5418 = vmatmul.f32.gmra.mxu0 %v14826_v52  ;;  %v4919_v23 = vpop.f32.mrf.mxu2  ;;  %v14830_v15 = vld [vmem:[#allocation83_spill] sm:$0xff] }
 0x5c0   : > { %v11919_v1 = vadd.f32 %v5252_v44, %v4919_v23  ;;  %v5256_v45 = vpop.f32.mrf.mxu3  ;;  %v6361_v23 = vld [vmem:[%s13477_s4 + $0x60] sm:$0xff] }
 0x5c1   : > { %14825 = vst [vmem:[#allocation61_spill] sm:$0xff] %v11916_v58  ;;  %v11933_v12 = vand.u32 4294901760, %v6361_v23 }
 0x5c3   : > { %v4798_v60 = vpop.f32.mrf.mxu1  ;;  %6372 = vmatpush.msra.mxu0 %v11933_v12  ;;  %7095 = vmatpush.msrb.mxu3 %v11933_v12 }
 0x5c4   : > { %v4633_v18 = vpop.f32.mrf.mxu0  ;;  %5054 = vmatmul.f32.gmra.mxu2 %v14827_v8 }
 0x5c5   : > { %v4634_v59 = vadd.f32 %v4633_v18, %v11686_v63  ;;  %5323 = vmatmul.f32.gmra.mxu3 %v14782_v27  ;;  %v11937_v63 = vsub.f32 %v6361_v23, %v11933_v12  ;;  %v14834_v23 = vld [vmem:[#allocation92_spill] sm:$0xff]  ;;  %v14836_v27 = vld [vmem:[#allocation111_spill] sm:$0xff] }
 0x5c6   : > { %5625 = vmatmul.f32.gmra.mxu1 %v14828_v39 }
 0x5c7   : > { %v11925_v55 = vadd.f32 %v4794_v57, %v4634_v59  ;;  %5423 = vmatmul.f32.gmra.mxu0 %v14830_v15  ;;  %v4927_v52 = vpop.f32.mrf.mxu2  ;;  %v14831_v57 = vld [vmem:[#allocation65_spill] sm:$0xff]  ;;  %v13915_v18 = vand.u32 4294901760, %v11937_v63  ;;  %6890 = vmatpush.msrb.mxu2 %v11937_v63 }
 0x5c8   : > { %v11931_v3 = vadd.f32 %v5256_v45, %v4927_v52  ;;  %v5260_v44 = vpop.f32.mrf.mxu3  ;;  %v14832_v45 = vld [vmem:[#allocation95_spill] sm:$0xff] }
 0x5c9   : > { %14829 = vst [vmem:[#allocation122_spill] sm:$0xff] %v11925_v55  ;;  %v6675_v15 = vsub.f32 %v11937_v63, %v13915_v18 }
 0x5cb   : > { %v4802_v39 = vpop.f32.mrf.mxu1  ;;  %v6676_v58 = vand.u32 4294901760, %v6675_v15 }
 0x5cc   : > { %v4637_v8 = vpop.f32.mrf.mxu0  ;;  %5062 = vmatmul.f32.gmra.mxu2 %v14831_v57 }
 0x5cd   : > { %v4638_v59 = vadd.f32 %v4637_v8, %v11697_v19  ;;  %5327 = vmatmul.f32.gmra.mxu3 %v14786_v21  ;;  %6677 = vmatpush.msra.mxu1 %v6676_v58  ;;  %v14835_v21 = vld [vmem:[#allocation48_spill] sm:$0xff] }
 0x5ce   : > { %5631 = vmatmul.f32.gmra.mxu1 %v14832_v45 }
 0x5cf   : > { %v11949_v52 = vadd.f32 %v4798_v60, %v4638_v59  ;;  %5428 = vmatmul.f32.gmra.mxu0 %v14834_v23  ;;  %v4935_v47 = vpop.f32.mrf.mxu2  ;;  %v14838_v59 = vld [vmem:[#allocation20_spill] sm:$0xff] }
 0x5d0   : > { %v11952_v57 = vadd.f32 %v5260_v44, %v4935_v47  ;;  %v5264_v55 = vpop.f32.mrf.mxu3  ;;  %v6360_v47 = vld [vmem:[%s13477_s4 + $0x58] sm:$0xff] }
 0x5d1   : > { %14833 = vst [vmem:[#allocation13_spill] sm:$0xff] %v11949_v52  ;;  %v11966_v15 = vand.u32 4294901760, %v6360_v47 }
 0x5d3   : > { %v4806_v19 = vpop.f32.mrf.mxu1  ;;  %6374 = vmatpush.msra.mxu0 %v11966_v15  ;;  %7097 = vmatpush.msrb.mxu3 %v11966_v15 }
 0x5d4   : > { %v4641_v8 = vpop.f32.mrf.mxu0  ;;  %5070 = vmatmul.f32.gmra.mxu2 %v14835_v21 }
 0x5d5   : > { %v4642_v45 = vadd.f32 %v4641_v8, %v11708_v61  ;;  %5331 = vmatmul.f32.gmra.mxu3 %v14790_v24  ;;  %v11970_v61 = vsub.f32 %v6360_v47, %v11966_v15  ;;  %v14842_v47 = vld [vmem:[#allocation100_spill] sm:$0xff]  ;;  %v14844_v24 = vld [vmem:[#allocation129_spill] sm:$0xff] }
 0x5d6   : > { %5637 = vmatmul.f32.gmra.mxu1 %v14836_v27 }
 0x5d7   : > { %v11958_v60 = vadd.f32 %v4802_v39, %v4642_v45  ;;  %5433 = vmatmul.f32.gmra.mxu0 %v14838_v59  ;;  %v4943_v23 = vpop.f32.mrf.mxu2  ;;  %v14839_v39 = vld [vmem:[#allocation141_spill] sm:$0xff]  ;;  %v13918_v8 = vand.u32 4294901760, %v11970_v61  ;;  %6893 = vmatpush.msrb.mxu2 %v11970_v61 }
 0x5d8   : > { %v11964_v58 = vadd.f32 %v5264_v55, %v4943_v23  ;;  %v5268_v44 = vpop.f32.mrf.mxu3  ;;  %v14840_v55 = vld [vmem:[#allocation32_spill] sm:$0xff] }
 0x5d9   : > { %14837 = vst [vmem:[#allocation42_spill] sm:$0xff] %v11958_v60  ;;  %v6681_v59 = vsub.f32 %v11970_v61, %v13918_v8 }
 0x5db   : > { %v4810_v27 = vpop.f32.mrf.mxu1  ;;  %v6682_v52 = vand.u32 4294901760, %v6681_v59 }
 0x5dc   : > { %v4645_v21 = vpop.f32.mrf.mxu0  ;;  %5078 = vmatmul.f32.gmra.mxu2 %v14839_v39 }
 0x5dd   : > { %v4646_v45 = vadd.f32 %v4645_v21, %v11719_v17  ;;  %5335 = vmatmul.f32.gmra.mxu3 %v14794_v13  ;;  %6683 = vmatpush.msra.mxu1 %v6682_v52  ;;  %v14843_v13 = vld [vmem:[#allocation119_spill] sm:$0xff] }
 0x5de   : > { %5643 = vmatmul.f32.gmra.mxu1 %v14840_v55 }
 0x5df   : > { %v11982_v23 = vadd.f32 %v4806_v19, %v4646_v45  ;;  %5438 = vmatmul.f32.gmra.mxu0 %v14842_v47  ;;  %v4951_v18 = vpop.f32.mrf.mxu2  ;;  %v14846_v45 = vld [vmem:[#allocation117_spill] sm:$0xff] }
 0x5e0   : > { %v11985_v39 = vadd.f32 %v5268_v44, %v4951_v18  ;;  %v5272_v60 = vpop.f32.mrf.mxu3  ;;  %v6359_v18 = vld [vmem:[%s13477_s4 + $0x50] sm:$0xff] }
 0x5e1   : > { %14841 = vst [vmem:[#allocation10_spill] sm:$0xff] %v11982_v23  ;;  %v11999_v59 = vand.u32 4294901760, %v6359_v18 }
 0x5e3   : > { %v4814_v17 = vpop.f32.mrf.mxu1  ;;  %6376 = vmatpush.msra.mxu0 %v11999_v59  ;;  %7099 = vmatpush.msrb.mxu3 %v11999_v59 }
 0x5e4   : > { %v4649_v21 = vpop.f32.mrf.mxu0  ;;  %5086 = vmatmul.f32.gmra.mxu2 %v14843_v13 }
 0x5e5   : > { %v4650_v55 = vadd.f32 %v4649_v21, %v11730_v56  ;;  %5339 = vmatmul.f32.gmra.mxu3 %v14798_v0  ;;  %v12003_v56 = vsub.f32 %v6359_v18, %v11999_v59  ;;  %v14850_v18 = vld [vmem:[#allocation37_spill] sm:$0xff]  ;;  %v14852_v0 = vld [vmem:[#allocation55_spill] sm:$0xff] }
 0x5e6   : > { %5649 = vmatmul.f32.gmra.mxu1 %v14844_v24 }
 0x5e7   : > { %v11991_v19 = vadd.f32 %v4810_v27, %v4650_v55  ;;  %5443 = vmatmul.f32.gmra.mxu0 %v14846_v45  ;;  %v4959_v47 = vpop.f32.mrf.mxu2  ;;  %v14847_v27 = vld [vmem:[#allocation139_spill] sm:$0xff]  ;;  %v13921_v21 = vand.u32 4294901760, %v12003_v56  ;;  %6896 = vmatpush.msrb.mxu2 %v12003_v56 }
 0x5e8   : > { %v11997_v52 = vadd.f32 %v5272_v60, %v4959_v47  ;;  %v5276_v44 = vpop.f32.mrf.mxu3  ;;  %v14848_v60 = vld [vmem:[#allocation130_spill] sm:$0xff] }
 0x5e9   : > { %14845 = vst [vmem:[#allocation18_spill] sm:$0xff] %v11991_v19  ;;  %v6687_v45 = vsub.f32 %v12003_v56, %v13921_v21 }
 0x5eb   : > { %v4818_v24 = vpop.f32.mrf.mxu1  ;;  %v6688_v23 = vand.u32 4294901760, %v6687_v45 }
 0x5ec   : > { %v4653_v13 = vpop.f32.mrf.mxu0  ;;  %5094 = vmatmul.f32.gmra.mxu2 %v14847_v27 }
 0x5ed   : > { %v4654_v55 = vadd.f32 %v4653_v13, %v11741_v38  ;;  %5343 = vmatmul.f32.gmra.mxu3 %v14802_v20  ;;  %6689 = vmatpush.msra.mxu1 %v6688_v23  ;;  %v14851_v20 = vld [vmem:[#allocation147_spill] sm:$0xff] }
 0x5ee   : > { %5655 = vmatmul.f32.gmra.mxu1 %v14848_v60 }
 0x5ef   : > { %v12015_v47 = vadd.f32 %v4814_v17, %v4654_v55  ;;  %5448 = vmatmul.f32.gmra.mxu0 %v14850_v18  ;;  %v4967_v8 = vpop.f32.mrf.mxu2  ;;  %v14854_v55 = vld [vmem:[#allocation134_spill] sm:$0xff] }
 0x5f0   : > { %v12018_v27 = vadd.f32 %v5276_v44, %v4967_v8  ;;  %v5280_v19 = vpop.f32.mrf.mxu3  ;;  %v6358_v8 = vld [vmem:[%s13477_s4 + $0x48] sm:$0xff] }
 0x5f1   : > { %14849 = vst [vmem:[#allocation33_spill] sm:$0xff] %v12015_v47  ;;  %v12032_v45 = vand.u32 4294901760, %v6358_v8 }
 0x5f3   : > { %v4822_v38 = vpop.f32.mrf.mxu1  ;;  %6378 = vmatpush.msra.mxu0 %v12032_v45  ;;  %7101 = vmatpush.msrb.mxu3 %v12032_v45 }
 0x5f4   : > { %v4657_v13 = vpop.f32.mrf.mxu0  ;;  %5102 = vmatmul.f32.gmra.mxu2 %v14851_v20 }
 0x5f5   : > { %v4658_v60 = vadd.f32 %v4657_v13, %v11752_v4  ;;  %5347 = vmatmul.f32.gmra.mxu3 %v14805_v29  ;;  %v12036_v4 = vsub.f32 %v6358_v8, %v12032_v45  ;;  %v14858_v8 = vld [vmem:[#allocation143_spill] sm:$0xff]  ;;  %v14860_v29 = vld [vmem:[#allocation14_spill] sm:$0xff] }
 0x5f6   : > { %5661 = vmatmul.f32.gmra.mxu1 %v14852_v0 }
 0x5f7   : > { %v12024_v17 = vadd.f32 %v4818_v24, %v4658_v60  ;;  %5453 = vmatmul.f32.gmra.mxu0 %v14854_v55  ;;  %v4975_v18 = vpop.f32.mrf.mxu2  ;;  %v14855_v24 = vld [vmem:[#allocation115_spill] sm:$0xff]  ;;  %v13924_v13 = vand.u32 4294901760, %v12036_v4  ;;  %6899 = vmatpush.msrb.mxu2 %v12036_v4 }
 0x5f8   : > { %v12030_v23 = vadd.f32 %v5280_v19, %v4975_v18  ;;  %v5284_v44 = vpop.f32.mrf.mxu3  ;;  %v14856_v19 = vld [vmem:[#allocation67_spill] sm:$0xff] }
 0x5f9   : > { %14853 = vst [vmem:[#allocation145_spill] sm:$0xff] %v12024_v17  ;;  %v6693_v55 = vsub.f32 %v12036_v4, %v13924_v13 }
 0x5fb   : > { %v4826_v0 = vpop.f32.mrf.mxu1  ;;  %v6694_v47 = vand.u32 4294901760, %v6693_v55 }
 0x5fc   : > { %v4661_v20 = vpop.f32.mrf.mxu0  ;;  %5110 = vmatmul.f32.gmra.mxu2 %v14855_v24 }
 0x5fd   : > { %v4662_v60 = vadd.f32 %v4661_v20, %v11763_v30  ;;  %5351 = vmatmul.f32.gmra.mxu3 %v14808_v54  ;;  %6695 = vmatpush.msra.mxu1 %v6694_v47  ;;  %v14859_v54 = vld [vmem:[#allocation87_spill] sm:$0xff] }
 0x5fe   : > { %5667 = vmatmul.f32.gmra.mxu1 %v14856_v19 }
 0x5ff   : > { %v12048_v18 = vadd.f32 %v4822_v38, %v4662_v60  ;;  %5458 = vmatmul.f32.gmra.mxu0 %v14858_v8  ;;  %v4983_v21 = vpop.f32.mrf.mxu2  ;;  %v14862_v60 = vld [vmem:[#allocation9_spill] sm:$0xff] }
 0x600   : > { %v12051_v24 = vadd.f32 %v5284_v44, %v4983_v21  ;;  %v5288_v17 = vpop.f32.mrf.mxu3  ;;  %v6357_v21 = vld [vmem:[%s13477_s4 + $0x40] sm:$0xff] }
 0x601   : > { %14857 = vst [vmem:[#allocation47_spill] sm:$0xff] %v12048_v18  ;;  %v12065_v55 = vand.u32 4294901760, %v6357_v21 }
 0x603   : > { %v4830_v30 = vpop.f32.mrf.mxu1  ;;  %6380 = vmatpush.msra.mxu0 %v12065_v55  ;;  %7103 = vmatpush.msrb.mxu3 %v12065_v55 }
 0x604   : > { %v4665_v20 = vpop.f32.mrf.mxu0  ;;  %5118 = vmatmul.f32.gmra.mxu2 %v14859_v54 }
 0x605   : > { %v4666_v19 = vadd.f32 %v4665_v20, %v11774_v2  ;;  %5355 = vmatmul.f32.gmra.mxu3 %v14811_v62  ;;  %v12069_v2 = vsub.f32 %v6357_v21, %v12065_v55  ;;  %v14866_v21 = vld [vmem:[#allocation17_spill] sm:$0xff] }
 0x606   : > { %5673 = vmatmul.f32.gmra.mxu1 %v14860_v29  ;;  %v14868_v62 = vld [vmem:[#allocation41_spill] sm:$0xff] }
 0x607   : > { %v12057_v38 = vadd.f32 %v4826_v0, %v4666_v19  ;;  %5463 = vmatmul.f32.gmra.mxu0 %v14862_v60  ;;  %v4991_v8 = vpop.f32.mrf.mxu2  ;;  %v14863_v0 = vld [vmem:[#allocation154_spill] sm:$0xff]  ;;  %v13927_v20 = vand.u32 4294901760, %v12069_v2  ;;  %6902 = vmatpush.msrb.mxu2 %v12069_v2 }
 0x608   : > { %v12063_v47 = vadd.f32 %v5288_v17, %v4991_v8  ;;  %v5292_v44 = vpop.f32.mrf.mxu3  ;;  %v14864_v17 = vld [vmem:[#allocation26_spill] sm:$0xff] }
 0x609   : > { %14861 = vst [vmem:[#allocation8_spill] sm:$0xff] %v12057_v38  ;;  %v6699_v60 = vsub.f32 %v12069_v2, %v13927_v20 }
 0x60b   : > { %v4834_v29 = vpop.f32.mrf.mxu1  ;;  %v6700_v18 = vand.u32 4294901760, %v6699_v60 }
 0x60c   : > { %v4669_v54 = vpop.f32.mrf.mxu0  ;;  %5126 = vmatmul.f32.gmra.mxu2 %v14863_v0 }
 0x60d   : > { %v4670_v19 = vadd.f32 %v4669_v54, %v11785_v46  ;;  %5359 = vmatmul.f32.gmra.mxu3 %v14814_v50  ;;  %6701 = vmatpush.msra.mxu1 %v6700_v18  ;;  %v14867_v50 = vld [vmem:[#allocation158_spill] sm:$0xff] }
 0x60e   : > { %5679 = vmatmul.f32.gmra.mxu1 %v14864_v17 }
 0x60f   : > { %v12081_v8 = vadd.f32 %v4830_v30, %v4670_v19  ;;  %5468 = vmatmul.f32.gmra.mxu0 %v14866_v21  ;;  %v4999_v13 = vpop.f32.mrf.mxu2  ;;  %v14870_v19 = vld [vmem:[#allocation27_spill] sm:$0xff] }
 0x610   : > { %v12084_v0 = vadd.f32 %v5292_v44, %v4999_v13  ;;  %v5296_v38 = vpop.f32.mrf.mxu3  ;;  %v6356_v13 = vld [vmem:[%s13477_s4 + $0x38] sm:$0xff] }
 0x611   : > { %14865 = vst [vmem:[#allocation56_spill] sm:$0xff] %v12081_v8  ;;  %v12098_v60 = vand.u32 4294901760, %v6356_v13  ;;  %v14875_v8 = vld [vmem:[#allocation2_spill] sm:$0xff] }
 0x613   : > { %v4838_v46 = vpop.f32.mrf.mxu1  ;;  %6382 = vmatpush.msra.mxu0 %v12098_v60  ;;  %7105 = vmatpush.msrb.mxu3 %v12098_v60 }
 0x614   : > { %v4673_v54 = vpop.f32.mrf.mxu0  ;;  %5134 = vmatmul.f32.gmra.mxu2 %v14867_v50 }
 0x615   : > { %v4674_v17 = vadd.f32 %v4673_v54, %v11796_v22  ;;  %6023 = vmatmul.f32.vlgmr.msra.gmra.mxu3 %v14665_v33  ;;  %v12102_v22 = vsub.f32 %v6356_v13, %v12098_v60 }
 0x616   : > { %5685 = vmatmul.f32.gmra.mxu1 %v14868_v62 }
 0x617   : > { %v12090_v30 = vadd.f32 %v4834_v29, %v4674_v17  ;;  %5473 = vmatmul.f32.gmra.mxu0 %v14870_v19  ;;  %v5007_v21 = vpop.f32.mrf.mxu2  ;;  %v13928_v29 = vand.u32 4294901760, %v12102_v22  ;;  %6905 = vmatpush.msrb.mxu2 %v12102_v22 }
 0x618   : > { %v12096_v18 = vadd.f32 %v5296_v38, %v5007_v21  ;;  %v5300_v44 = vpop.f32.mrf.mxu3  ;;  %v14871_v38 = vld [vmem:[#allocation49_spill] sm:$0xff]  ;;  %v14873_v21 = vld [vmem:[#allocation35_spill] sm:$0xff] }
 0x619   : > { %14869 = vst [vmem:[#allocation82_spill] sm:$0xff] %v12090_v30  ;;  %v6705_v17 = vsub.f32 %v12102_v22, %v13928_v29 }
 0x61b   : > { %v4842_v50 = vpop.f32.mrf.mxu1  ;;  %v6706_v30 = vand.u32 4294901760, %v6705_v17 }
 0x61c   : > { %v4677_v62 = vpop.f32.mrf.mxu0  ;;  %5862 = vmatmul.f32.vlgmr.msra.gmra.mxu2 %v14665_v33 }
 0x61d   : > { %v4678_v54 = vadd.f32 %v4677_v62, %v11807_v25  ;;  %6027 = vmatmul.f32.gmra.mxu3 %v14667_v31  ;;  %6707 = vmatpush.msra.mxu1 %v6706_v30 }
 0x61e   : > { %5691 = vmatmul.f32.gmra.mxu1 %v14871_v38 }
 0x61f   : > { %v12114_v19 = vadd.f32 %v4838_v46, %v4678_v54  ;;  %5478 = vmatmul.f32.gmra.mxu0 %v14873_v21  ;;  %v5015_v13 = vpop.f32.mrf.mxu2  ;;  %v14877_v54 = vld [vmem:[#allocation52_spill] sm:$0xff] }
 0x620   : > { %v12117_v33 = vadd.f32 %v5300_v44, %v5015_v13  ;;  %v5304_v20 = vpop.f32.mrf.mxu3  ;;  %v6355_v44 = vld [vmem:[%s13477_s4 + $0x30] sm:$0xff] }
 0x621   : > { %14872 = vst [vmem:[#allocation98_spill] sm:$0xff] %v12114_v19  ;;  %v12131_v13 = vand.u32 4294901760, %v6355_v44  ;;  %v14883_v19 = vld [vmem:[#allocation64_spill] sm:$0xff] }
 0x622   : > { %14874 = vst [vmem:[#allocation24_spill] sm:$0xff] %v12117_v33  ;;  %v14898_v33 = vld [vmem:[#allocation58_spill] sm:$0xff] }
 0x623   : > { %v4846_v25 = vpop.f32.mrf.mxu1  ;;  %6384 = vmatpush.msra.mxu0 %v12131_v13  ;;  %7107 = vmatpush.msrb.mxu3 %v12131_v13 }
 0x624   : > { %v4681_v62 = vpop.f32.mrf.mxu0  ;;  %5866 = vmatmul.f32.gmra.mxu2 %v14667_v31  ;;  %v12135_v31 = vsub.f32 %v6355_v44, %v12131_v13 }
 0x625   : > { %v4682_v38 = vadd.f32 %v4681_v62, %v11818_v43  ;;  %6031 = vmatmul.f32.gmra.mxu3 %v14669_v11 }
 0x626   : > { %5697 = vmatmul.f32.gmra.mxu1 %v14875_v8  ;;  %6908 = vmatpush.msrb.mxu2 %v12135_v31 }
 0x627   : > { %v12123_v46 = vadd.f32 %v4842_v50, %v4682_v38  ;;  %5483 = vmatmul.f32.gmra.mxu0 %v14877_v54  ;;  %v5023_v21 = vpop.f32.mrf.mxu2  ;;  %v13929_v50 = vand.u32 4294901760, %v12135_v31 }
 0x628   : > { %v12129_v30 = vadd.f32 %v5304_v20, %v5023_v21  ;;  %v5308_v17 = vpop.f32.mrf.mxu3  ;;  %v14879_v20 = vld [vmem:[#allocation15_spill] sm:$0xff]  ;;  %v14881_v21 = vld [vmem:[#allocation128_spill] sm:$0xff] }
 0x629   : > { %14876 = vst [vmem:[#allocation157_spill] sm:$0xff] %v12123_v46  ;;  %v6711_v38 = vsub.f32 %v12135_v31, %v13929_v50 }
 0x62a   : > { %14878 = vst [vmem:[#allocation88_spill] sm:$0xff] %v12129_v30  ;;  %v14897_v30 = vld [vmem:[#allocation39_spill] sm:$0xff] }
 0x62b   : > { %v5608_v43 = vpop.f32.mrf.mxu1  ;;  %v6712_v46 = vand.u32 4294901760, %v6711_v38 }
 0x62c   : > { %v4685_v8 = vpop.f32.mrf.mxu0  ;;  %5870 = vmatmul.f32.gmra.mxu2 %v14669_v11 }
 0x62d   : > { %v4686_v62 = vadd.f32 %v4685_v8, %v11838_v48  ;;  %6035 = vmatmul.f32.gmra.mxu3 %v14672_v34  ;;  %6713 = vmatpush.msra.mxu1 %v6712_v46 }
 0x62e   : > { %5703 = vmatmul.f32.gmra.mxu1 %v14879_v20 }
 0x62f   : > { %v12147_v54 = vadd.f32 %v4846_v25, %v4686_v62  ;;  %5488 = vmatmul.f32.gmra.mxu0 %v14881_v21  ;;  %v5031_v44 = vpop.f32.mrf.mxu2  ;;  %v14884_v25 = vld [vmem:[#allocation93_spill] sm:$0xff] }
 0x630   : > { %v12150_v11 = vadd.f32 %v5308_v17, %v5031_v44  ;;  %v5312_v29 = vpop.f32.mrf.mxu3  ;;  %v6354_v17 = vld [vmem:[%s13477_s4 + $0x28] sm:$0xff] }
 0x631   : > { %14880 = vst [vmem:[#allocation12_spill] sm:$0xff] %v12147_v54  ;;  %v12164_v44 = vand.u32 4294901760, %v6354_v17 }
 0x632   : > { %14882 = vst [vmem:[#allocation107_spill] sm:$0xff] %v12150_v11  ;;  %v14890_v11 = vld [vmem:[#allocation45_spill] sm:$0xff] }
 0x633   : > { %v5614_v48 = vpop.f32.mrf.mxu1  ;;  %6386 = vmatpush.msra.mxu0 %v12164_v44  ;;  %7109 = vmatpush.msrb.mxu3 %v12164_v44 }
 0x634   : > { %v5414_v8 = vpop.f32.mrf.mxu0  ;;  %5874 = vmatmul.f32.gmra.mxu2 %v14672_v34  ;;  %v12168_v34 = vsub.f32 %v6354_v17, %v12164_v44 }
 0x635   : > { %v5415_v20 = vadd.f32 %v5414_v8, %v11853_v7  ;;  %6039 = vmatmul.f32.gmra.mxu3 %v14679_v26 }
 0x636   : > { %5709 = vmatmul.f32.gmra.mxu1 %v14883_v19  ;;  %v13930_v8 = vand.u32 4294901760, %v12168_v34  ;;  %6911 = vmatpush.msrb.mxu2 %v12168_v34 }
 0x637   : > { %5493 = vmatmul.f32.gmra.mxu0 %v14884_v25  ;;  %v5039_v62 = vpop.f32.mrf.mxu2  ;;  %v12160_v21 = vadd.f32 %v5608_v43, %v5415_v20  ;;  %v14887_v25 = vld [vmem:[#allocation105_spill] sm:$0xff] }
 0x638   : > { %v12162_v46 = vadd.f32 %v5312_v29, %v5039_v62  ;;  %v5316_v38 = vpop.f32.mrf.mxu3  ;;  %v14886_v29 = vld [vmem:[#allocation89_spill] sm:$0xff]  ;;  %v6717_v20 = vsub.f32 %v12168_v34, %v13930_v8  ;;  %v14891_v8 = vld [vmem:[#allocation78_spill] sm:$0xff] }
 0x63a   : > { %14885 = vst [vmem:[#allocation70_spill] sm:$0xff] %v12162_v46  ;;  %v6718_v54 = vand.u32 4294901760, %v6717_v20  ;;  %v14889_v46 = vld [vmem:[#allocation29_spill] sm:$0xff] }
 0x63b   : > { %v5620_v7 = vpop.f32.mrf.mxu1 }
 0x63c   : > { %v5419_v19 = vpop.f32.mrf.mxu0  ;;  %5878 = vmatmul.f32.gmra.mxu2 %v14679_v26  ;;  %6719 = vmatpush.msra.mxu1 %v6718_v54 }
 0x63d   : > { %v5420_v43 = vadd.f32 %v5419_v19, %v11865_v36  ;;  %6043 = vmatmul.f32.gmra.mxu3 %v14686_v28 }
 0x63e   : > { %5715 = vmatmul.f32.gmra.mxu1 %v14886_v29 }
 0x63f   : > { %5498 = vmatmul.f32.gmra.mxu0 %v14887_v25  ;;  %v5047_v62 = vpop.f32.mrf.mxu2  ;;  %v12181_v17 = vadd.f32 %v5614_v48, %v5420_v43  ;;  %v6353_v48 = vld [vmem:[%s13477_s4 + $0x20] sm:$0xff] }
 0x640   : > { %v12183_v26 = vadd.f32 %v5316_v38, %v5047_v62  ;;  %v5320_v50 = vpop.f32.mrf.mxu3  ;;  %v12197_v20 = vand.u32 4294901760, %v6353_v48  ;;  %v14894_v62 = vld [vmem:[#allocation94_spill] sm:$0xff] }
 0x642   : > { %14888 = vst [vmem:[#allocation104_spill] sm:$0xff] %v12183_v26  ;;  %6388 = vmatpush.msra.mxu0 %v12197_v20  ;;  %7111 = vmatpush.msrb.mxu3 %v12197_v20 }
 0x643   : > { %v5626_v36 = vpop.f32.mrf.mxu1 }
 0x644   : > { %v5424_v19 = vpop.f32.mrf.mxu0  ;;  %5882 = vmatmul.f32.gmra.mxu2 %v14686_v28  ;;  %v12201_v28 = vsub.f32 %v6353_v48, %v12197_v20 }
 0x645   : > { %v5425_v29 = vadd.f32 %v5424_v19, %v11886_v5  ;;  %6047 = vmatmul.f32.gmra.mxu3 %v14889_v46 }
 0x646   : > { %5721 = vmatmul.f32.gmra.mxu1 %v14890_v11  ;;  %6914 = vmatpush.msrb.mxu2 %v12201_v28 }
 0x647   : > { %5503 = vmatmul.f32.gmra.mxu0 %v14891_v8  ;;  %v5055_v25 = vpop.f32.mrf.mxu2  ;;  %v12193_v38 = vadd.f32 %v5620_v7, %v5425_v29  ;;  %v13931_v8 = vand.u32 4294901760, %v12201_v28  ;;  %v14895_v29 = vld [vmem:[#allocation53_spill] sm:$0xff] }
 0x648   : > { %v12195_v54 = vadd.f32 %v5320_v50, %v5055_v25  ;;  %v5324_v43 = vpop.f32.mrf.mxu3  ;;  %v14893_v50 = vld [vmem:[#allocation112_spill] sm:$0xff] }
 0x649   : > { %v6723_v19 = vsub.f32 %v12201_v28, %v13931_v8  ;;  %v14899_v8 = vld [vmem:[#allocation101_spill] sm:$0xff] }
 0x64a   : > { %14892 = vst [vmem:[#allocation125_spill] sm:$0xff] %v12195_v54 }
 0x64b   : > { %v5632_v5 = vpop.f32.mrf.mxu1  ;;  %v6724_v26 = vand.u32 4294901760, %v6723_v19 }
 0x64c   : > { %v5429_v11 = vpop.f32.mrf.mxu0  ;;  %5886 = vmatmul.f32.gmra.mxu2 %v14889_v46 }
 0x64d   : > { %v5430_v7 = vadd.f32 %v5429_v11, %v11898_v32  ;;  %6051 = vmatmul.f32.gmra.mxu3 %v14893_v50  ;;  %6725 = vmatpush.msra.mxu1 %v6724_v26 }
 0x64e   : > { %5727 = vmatmul.f32.gmra.mxu1 %v14894_v62 }
 0x64f   : > { %5508 = vmatmul.f32.gmra.mxu0 %v14895_v29  ;;  %v5063_v25 = vpop.f32.mrf.mxu2  ;;  %v12214_v48 = vadd.f32 %v5626_v36, %v5430_v7  ;;  %v6352_v36 = vld [vmem:[%s13477_s4 + $0x18] sm:$0xff] }
 0x650   : > { %v12216_v46 = vadd.f32 %v5324_v43, %v5063_v25  ;;  %v5328_v54 = vpop.f32.mrf.mxu3  ;;  %v12230_v19 = vand.u32 4294901760, %v6352_v36 }
 0x652   : > { %14896 = vst [vmem:[#allocation120_spill] sm:$0xff] %v12216_v46  ;;  %6390 = vmatpush.msra.mxu0 %v12230_v19  ;;  %7113 = vmatpush.msrb.mxu3 %v12230_v19  ;;  %v14904_v46 = vld [vmem:[#allocation110_spill] sm:$0xff] }
 0x653   : > { %v5638_v32 = vpop.f32.mrf.mxu1 }
 0x654   : > { %v5434_v11 = vpop.f32.mrf.mxu0  ;;  %5890 = vmatmul.f32.gmra.mxu2 %v14893_v50 }
 0x655   : > { %v5435_v62 = vadd.f32 %v5434_v11, %v11919_v1  ;;  %6055 = vmatmul.f32.gmra.mxu3 %v14897_v30  ;;  %v12234_v1 = vsub.f32 %v6352_v36, %v12230_v19  ;;  %v14902_v11 = vld [vmem:[#allocation127_spill] sm:$0xff] }
 0x656   : > { %5733 = vmatmul.f32.gmra.mxu1 %v14898_v33 }
 0x657   : > { %5513 = vmatmul.f32.gmra.mxu0 %v14899_v8  ;;  %v5071_v29 = vpop.f32.mrf.mxu2  ;;  %v12226_v43 = vadd.f32 %v5632_v5, %v5435_v62  ;;  %v13932_v50 = vand.u32 4294901760, %v12234_v1  ;;  %6917 = vmatpush.msrb.mxu2 %v12234_v1 }
 0x658   : > { %v12228_v26 = vadd.f32 %v5328_v54, %v5071_v29  ;;  %v5332_v7 = vpop.f32.mrf.mxu3  ;;  %v14901_v54 = vld [vmem:[#allocation63_spill] sm:$0xff] }
 0x659   : > { %v6729_v25 = vsub.f32 %v12234_v1, %v13932_v50  ;;  %v14905_v50 = vld [vmem:[#allocation68_spill] sm:$0xff] }
 0x65a   : > { %14900 = vst [vmem:[#allocation149_spill] sm:$0xff] %v12228_v26 }
 0x65b   : > { %v5644_v33 = vpop.f32.mrf.mxu1  ;;  %v6730_v26 = vand.u32 4294901760, %v6729_v25 }
 0x65c   : > { %v5439_v8 = vpop.f32.mrf.mxu0  ;;  %5894 = vmatmul.f32.gmra.mxu2 %v14897_v30 }
 0x65d   : > { %v5440_v5 = vadd.f32 %v5439_v8, %v11931_v3  ;;  %6059 = vmatmul.f32.gmra.mxu3 %v14713_v42  ;;  %6731 = vmatpush.msra.mxu1 %v6730_v26 }
 0x65e   : > { %5739 = vmatmul.f32.gmra.mxu1 %v14901_v54 }
 0x65f   : > { %5518 = vmatmul.f32.gmra.mxu0 %v14902_v11  ;;  %v5079_v62 = vpop.f32.mrf.mxu2  ;;  %v12247_v29 = vadd.f32 %v5638_v32, %v5440_v5  ;;  %v6351_v32 = vld [vmem:[%s13477_s4 + $0x10] sm:$0xff] }
 0x660   : > { %v12249_v30 = vadd.f32 %v5332_v7, %v5079_v62  ;;  %v5336_v36 = vpop.f32.mrf.mxu3  ;;  %v12263_v25 = vand.u32 4294901760, %v6351_v32  ;;  %v14907_v62 = vld [vmem:[#allocation91_spill] sm:$0xff] }
 0x662   : > { %14903 = vst [vmem:[#allocation160_spill] sm:$0xff] %v12249_v30  ;;  %6392 = vmatpush.msra.mxu0 %v12263_v25  ;;  %7115 = vmatpush.msrb.mxu3 %v12263_v25  ;;  %v14910_v30 = vld [vmem:[#allocation74_spill] sm:$0xff] }
 0x663   : > { %v5650_v3 = vpop.f32.mrf.mxu1 }
 0x664   : > { %v5444_v8 = vpop.f32.mrf.mxu0  ;;  %5898 = vmatmul.f32.gmra.mxu2 %v14713_v42  ;;  %v12267_v42 = vsub.f32 %v6351_v32, %v12263_v25 }
 0x665   : > { %v5445_v54 = vadd.f32 %v5444_v8, %v11952_v57  ;;  %6063 = vmatmul.f32.gmra.mxu3 %v14726_v16  ;;  %v14908_v8 = vld [vmem:[#allocation131_spill] sm:$0xff] }
 0x666   : > { %5745 = vmatmul.f32.gmra.mxu1 %v14904_v46  ;;  %6920 = vmatpush.msrb.mxu2 %v12267_v42 }
 0x667   : > { %5523 = vmatmul.f32.gmra.mxu0 %v14905_v50  ;;  %v5087_v11 = vpop.f32.mrf.mxu2  ;;  %v12259_v7 = vadd.f32 %v5644_v33, %v5445_v54  ;;  %v13933_v50 = vand.u32 4294901760, %v12267_v42 }
 0x668   : > { %v12261_v26 = vadd.f32 %v5336_v36, %v5087_v11  ;;  %v5340_v5 = vpop.f32.mrf.mxu3 }
 0x669   : > { %v6735_v36 = vsub.f32 %v12267_v42, %v13933_v50  ;;  %v14911_v50 = vld [vmem:[#allocation116_spill] sm:$0xff] }
 0x66a   : > { %14906 = vst [vmem:[#allocation99_spill] sm:$0xff] %v12261_v26 }
 0x66b   : > { %v5656_v57 = vpop.f32.mrf.mxu1  ;;  %v6736_v26 = vand.u32 4294901760, %v6735_v36 }
 0x66c   : > { %v5449_v46 = vpop.f32.mrf.mxu0  ;;  %5902 = vmatmul.f32.gmra.mxu2 %v14726_v16 }
 0x66d   : > { %v5450_v33 = vadd.f32 %v5449_v46, %v11964_v58  ;;  %6067 = vmatmul.f32.gmra.mxu3 %v14736_v40  ;;  %6737 = vmatpush.msra.mxu1 %v6736_v26 }
 0x66e   : > { %5751 = vmatmul.f32.gmra.mxu1 %v14907_v62 }
 0x66f   : > { %5528 = vmatmul.f32.gmra.mxu0 %v14908_v8  ;;  %v5095_v54 = vpop.f32.mrf.mxu2  ;;  %v12280_v11 = vadd.f32 %v5650_v3, %v5450_v33  ;;  %v6350_v3 = vld [vmem:[%s13477_s4 + $0x8] sm:$0xff] }
 0x670   : > { %v12282_v16 = vadd.f32 %v5340_v5, %v5095_v54  ;;  %v5344_v32 = vpop.f32.mrf.mxu3  ;;  %v12296_v36 = vand.u32 4294901760, %v6350_v3  ;;  %v14913_v54 = vld [vmem:[#allocation146_spill] sm:$0xff] }
 0x672   : > { %14909 = vst [vmem:[#allocation124_spill] sm:$0xff] %v12282_v16  ;;  %6394 = vmatpush.msra.mxu0 %v12296_v36  ;;  %7117 = vmatpush.msrb.mxu3 %v12296_v36 }
 0x673   : > { %v5662_v58 = vpop.f32.mrf.mxu1 }
 0x674   : > { %v5454_v46 = vpop.f32.mrf.mxu0  ;;  %5906 = vmatmul.f32.gmra.mxu2 %v14736_v40  ;;  %v12300_v40 = vsub.f32 %v6350_v3, %v12296_v36 }
 0x675   : > { %v5455_v62 = vadd.f32 %v5454_v46, %v11985_v39  ;;  %6071 = vmatmul.f32.gmra.mxu3 %v14743_v35  ;;  %v14914_v46 = vld [vmem:[#allocation96_spill] sm:$0xff] }
 0x676   : > { %5757 = vmatmul.f32.gmra.mxu1 %v14910_v30  ;;  %6923 = vmatpush.msrb.mxu2 %v12300_v40 }
 0x677   : > { %5533 = vmatmul.f32.gmra.mxu0 %v14911_v50  ;;  %v5103_v8 = vpop.f32.mrf.mxu2  ;;  %v12292_v5 = vadd.f32 %v5656_v57, %v5455_v62  ;;  %v6740_v50 = vand.u32 4294901760, %v12300_v40 }
 0x678   : > { %v12294_v26 = vadd.f32 %v5344_v32, %v5103_v8  ;;  %v5348_v33 = vpop.f32.mrf.mxu3 }
 0x679   : > { %v6741_v32 = vsub.f32 %v12300_v40, %v6740_v50 }
 0x67a   : > { %14912 = vst [vmem:[#allocation150_spill] sm:$0xff] %v12294_v26 }
 0x67b   : > { %v5668_v39 = vpop.f32.mrf.mxu1  ;;  %v6742_v26 = vand.u32 4294901760, %v6741_v32 }
 0x67c   : > { %v5459_v30 = vpop.f32.mrf.mxu0  ;;  %5910 = vmatmul.f32.gmra.mxu2 %v14743_v35 }
 0x67d   : > { %v5460_v57 = vadd.f32 %v5459_v30, %v11997_v52  ;;  %6075 = vmatmul.f32.gmra.mxu3 %v14744_v41  ;;  %6743 = vmatpush.msra.mxu1 %v6742_v26  ;;  %v6349_v30 = vld [vmem:[%s13477_s4] sm:$0xff] }
 0x67e   : > { %5763 = vmatmul.f32.gmra.mxu1 %v14913_v54  ;;  %v12321_v16 = vand.u32 4294901760, %v6349_v30 }
 0x67f   : > { %5538 = vmatmul.f32.gmra.mxu0 %v14914_v46  ;;  %v5111_v62 = vpop.f32.mrf.mxu2  ;;  %v12313_v8 = vadd.f32 %v5662_v58, %v5460_v57  ;;  %v14915_v58 = vld [vmem:[#allocation5_spill] sm:$0xff] }
 0x680   : > { %v12315_v35 = vadd.f32 %v5348_v33, %v5111_v62  ;;  %v5352_v3 = vpop.f32.mrf.mxu3  ;;  %6396 = vmatpush.msra.mxu0 %v12321_v16  ;;  %v12328_v26 = vsub.f32 %v6349_v30, %v12321_v16  ;;  %v14916_v33 = vld [vmem:[#allocation80_spill] sm:$0xff]  ;;  %7119 = vmatpush.msrb.mxu3 %v12321_v16 }
 0x682   : > { %6926 = vmatpush.msrb.mxu2 %v12328_v26 }
 0x683   : > { %v5674_v52 = vpop.f32.mrf.mxu1 }
 0x684   : > { %v5464_v54 = vpop.f32.mrf.mxu0  ;;  %5914 = vmatmul.f32.gmra.mxu2 %v14744_v41 }
 0x685   : > { %v5465_v46 = vadd.f32 %v5464_v54, %v12018_v27  ;;  %6079 = vmatmul.f32.gmra.mxu3 %v14746_v37  ;;  %v13934_v27 = vand.u32 4294901760, %v12328_v26  ;;  %v14917_v54 = vand.u32 4294901760, %v11836_v49 }
 0x686   : > { %5769 = vmatmul.f32.gmra.mxu1 %v14915_v58  ;;  %v14918_v58 = vand.u32 4294901760, %v11871_v9 }
 0x687   : > { %5543 = vmatmul.f32.gmra.mxu0 %v14916_v33  ;;  %v5119_v57 = vpop.f32.mrf.mxu2  ;;  %v12331_v32 = vadd.f32 %v5668_v39, %v5465_v46  ;;  %v6747_v30 = vsub.f32 %v12328_v26, %v13934_v27  ;;  %v14919_v33 = vand.u32 4294901760, %v11904_v10  ;;  %v14922_v27 = vld [vmem:[#allocation109_spill] sm:$0xff]  ;;  %v14923_v10 = vand.u32 4294901760, %v11970_v61  ;;  %v14927_v61 = vld [vmem:[#allocation151_spill] sm:$0xff] }
 0x688   : > { %v12334_v41 = vadd.f32 %v5352_v3, %v5119_v57  ;;  %v5356_v62 = vpop.f32.mrf.mxu3  ;;  %7316 = vmatpush.msrb.mxu0 %v14917_v54  ;;  %v14920_v57 = vld [vmem:[#allocation36_spill] sm:$0xff]  ;;  %v14921_v54 = vand.u32 4294901760, %v11937_v63 }
 0x689   : > { %v6748_v3 = vand.u32 4294901760, %v6747_v30 }
 0x68a   : > { %7320 = vmatpush.msrb.mxu0 %v14918_v58 }
 0x68b   : > { %v5680_v39 = vpop.f32.mrf.mxu1  ;;  %6749 = vmatpush.msra.mxu1 %v6748_v3 }
 0x68c   : > { %v5469_v46 = vpop.f32.mrf.mxu0  ;;  %5918 = vmatmul.f32.gmra.mxu2 %v14746_v37  ;;  %7324 = vmatpush.msrb.mxu0 %v14919_v33 }
 0x68d   : > { %v5470_v49 = vadd.f32 %v5469_v46, %v12030_v23  ;;  %6083 = vmatmul.f32.gmra.mxu3 %v14748_v51  ;;  %7507 = vmatpush.msrb.mxu1 %v11832_v6  ;;  %v14924_v23 = vand.u32 4294901760, %v12003_v56  ;;  %v14926_v6 = vand.u32 4294901760, %v12036_v4  ;;  %v14930_v4 = vand.u32 4294901760, %v12102_v22  ;;  %v14935_v22 = vld [vmem:[#allocation148_spill] sm:$0xff] }
 0x68e   : > { %5775 = vmatmul.f32.gmra.mxu1 %v14920_v57  ;;  %7328 = vmatpush.msrb.mxu0 %v14921_v54 }
 0x68f   : > { %5548 = vmatmul.f32.gmra.mxu0 %v14922_v27  ;;  %v5127_v9 = vpop.f32.mrf.mxu2  ;;  %v12354_v58 = vadd.f32 %v5674_v52, %v5470_v49  ;;  %7509 = vmatpush.msrb.mxu1 %v11867_v14  ;;  %v14928_v27 = vld [vmem:[#allocation22_spill] sm:$0xff]  ;;  %v14932_v49 = vld [vmem:[#allocation3_spill] sm:$0xff] }
 0x690   : > { %v12356_v37 = vadd.f32 %v5356_v62, %v5127_v9  ;;  %v5360_v30 = vpop.f32.mrf.mxu3  ;;  %7332 = vmatpush.msrb.mxu0 %v14923_v10  ;;  %v14925_v62 = vld [vmem:[#allocation79_spill] sm:$0xff] }
 0x691   : > { %7511 = vmatpush.msrb.mxu1 %v11900_v53  ;;  %v14929_v53 = vand.u32 4294901760, %v12069_v2  ;;  %v14933_v2 = vld [vmem:[#allocation66_spill] sm:$0xff] }
 0x692   : > { %7336 = vmatpush.msrb.mxu0 %v14924_v23  ;;  %v14937_v23 = vand.u32 4294901760, %v12234_v1  ;;  %v14940_v1 = vld [vmem:[#allocation156_spill] sm:$0xff] }
 0x693   : > { %v5686_v63 = vpop.f32.mrf.mxu1  ;;  %7513 = vmatpush.msrb.mxu1 %v11933_v12  ;;  %v14931_v12 = vand.u32 4294901760, %v12135_v31 }
 0x694   : > { %v5474_v46 = vpop.f32.mrf.mxu0  ;;  %5922 = vmatmul.f32.gmra.mxu2 %v14748_v51  ;;  %7340 = vmatpush.msrb.mxu0 %v14926_v6  ;;  %v14941_v6 = vld [vmem:[#allocation152_spill] sm:$0xff] }
 0x695   : > { %v5475_v52 = vadd.f32 %v5474_v46, %v12051_v24  ;;  %6087 = vmatmul.f32.gmra.mxu3 %v14925_v62  ;;  %7515 = vmatpush.msrb.mxu1 %v11966_v15  ;;  %v7797_v15 = vld [vmem:[%s13476_s3 + $0x4] sm:$0xf] }
 0x696   : > { %5781 = vmatmul.f32.gmra.mxu1 %v14927_v61  ;;  %7344 = vmatpush.msrb.mxu0 %v14929_v53  ;;  %v12400_v54 = vperm.slane %v7797_v15, 2  ;;  %v12402_v9 = vperm.slane %v7797_v15, 3  ;;  %v12407_v10 = vperm.slane %v7797_v15, 1  ;;  %v14943_v53 = vand.u32 4294901760, %v12328_v26  ;;  %v14944_v26 = vld [vmem:[#allocation90_spill] sm:$0xff] }
 0x697   : > { %5553 = vmatmul.f32.gmra.mxu0 %v14928_v27  ;;  %v5135_v14 = vpop.f32.mrf.mxu2  ;;  %v12373_v56 = vadd.f32 %v5680_v39, %v5475_v52  ;;  %7517 = vmatpush.msrb.mxu1 %v11999_v59  ;;  %v14934_v59 = vand.u32 4294901760, %v12168_v34 }
 0x698   : > { %v12375_v3 = vadd.f32 %v5360_v30, %v5135_v14  ;;  %v6024_v51 = vpop.f32.mrf.mxu3  ;;  %7348 = vmatpush.msrb.mxu0 %v14930_v4 }
 0x699   : > { %7519 = vmatpush.msrb.mxu1 %v12032_v45  ;;  %v14936_v45 = vand.u32 4294901760, %v12201_v28 }
 0x69a   : > { %7352 = vmatpush.msrb.mxu0 %v14931_v12 }
 0x69b   : > { %v5692_v24 = vpop.f32.mrf.mxu1  ;;  %7521 = vmatpush.msrb.mxu1 %v12065_v55 }
 0x69c   : > { %v5479_v33 = vpop.f32.mrf.mxu0  ;;  %5926 = vmatmul.f32.gmra.mxu2 %v14925_v62  ;;  %7356 = vmatpush.msrb.mxu0 %v14934_v59  ;;  %v14939_v62 = vld [vmem:[#allocation118_spill] sm:$0xff] }
 0x69d   : > { %v5480_v39 = vadd.f32 %v5479_v33, %v12063_v47  ;;  %6091 = vmatmul.f32.gmra.mxu3 %v14932_v49  ;;  %7523 = vmatpush.msrb.mxu1 %v12098_v60  ;;  %v14938_v60 = vand.u32 4294901760, %v12267_v42  ;;  %v14942_v42 = vld [vmem:[#allocation21_spill] sm:$0xff] }
 0x69e   : > { %5787 = vmatmul.f32.gmra.mxu1 %v14933_v2  ;;  %7360 = vmatpush.msrb.mxu0 %v14936_v45  ;;  %v14946_v2 = vld [vmem:[#allocation38_spill] sm:$0xff] }
 0x69f   : > { %5558 = vmatmul.f32.gmra.mxu0 %v14935_v22  ;;  %v5863_v57 = vpop.f32.mrf.mxu2  ;;  %v12396_v31 = vadd.f32 %v5686_v63, %v5480_v39  ;;  %7525 = vmatpush.msrb.mxu1 %v12131_v13  ;;  %v14945_v39 = vld [vmem:[#allocation155_spill] sm:$0xff] }
 0x6a0   : > { %v5864_v47 = vadd.f32 %v5863_v57, %v12160_v21  ;;  %v6028_v30 = vpop.f32.mrf.mxu3  ;;  %7364 = vmatpush.msrb.mxu0 %v14937_v23  ;;  %v12413_v21 = vperm.slane %v7797_v15, 0 }
 0x6a1   : > { %7527 = vmatpush.msrb.mxu1 %v12164_v44 }
 0x6a2   : > { %v6025_v34 = vadd.f32 %v6024_v51, %v5864_v47  ;;  %7368 = vmatpush.msrb.mxu0 %v14938_v60  ;;  %v14948_v60 = vld [vmem:[#allocation97_spill] sm:$0xff] }
 0x6a3   : > { %v5698_v63 = vpop.f32.mrf.mxu1  ;;  %7529 = vmatpush.msrb.mxu1 %v12197_v20 }
 0x6a4   : > { %v6154_v55 = vmul.f32 %v12400_v54, %v6025_v34  ;;  %v6220_v46 = vmul.f32 %v12402_v9, %v6025_v34  ;;  %v5484_v52 = vpop.f32.mrf.mxu0  ;;  %5930 = vmatmul.f32.gmra.mxu2 %v14932_v49  ;;  %7372 = vmatpush.msrb.mxu0 %v6740_v50 }
 0x6a5   : > { %v5485_v28 = vadd.f32 %v5484_v52, %v12084_v0  ;;  %6095 = vmatmul.f32.gmra.mxu3 %v14939_v62  ;;  %7531 = vmatpush.msrb.mxu1 %v12230_v19 }
 0x6a6   : > { %v6253_v13 = vadd.f32 %v12407_v10, %v6220_v46  ;;  %5793 = vmatmul.f32.gmra.mxu1 %v14940_v1  ;;  %v6187_v0 = vadd.f32 %v12413_v21, %v6154_v55  ;;  %7376 = vmatpush.msrb.mxu0 %v14943_v53 }
 0x6a7   : > { %5563 = vmatmul.f32.gmra.mxu0 %v14941_v6  ;;  %v5867_v61 = vpop.f32.mrf.mxu2  ;;  %v12427_v27 = vadd.f32 %v5692_v24, %v5485_v28  ;;  %7533 = vmatpush.msrb.mxu1 %v12263_v25 }
 0x6a8   : > { %v6285_v14 = vmul.f32 %v6253_v13, %v14942_v42  ;;  %v5868_v44 = vadd.f32 %v5867_v61, %v12181_v17  ;;  %v6032_v51 = vpop.f32.mrf.mxu3  ;;  %v14949_v61 = vld [vmem:[#allocation7_spill] sm:$0xff] }
 0x6a9   : > { %7535 = vmatpush.msrb.mxu1 %v12296_v36 }
 0x6aa   : > { %v6317_v40 = vadd.f32 %v6285_v14, %v6187_v0  ;;  %v6029_v50 = vadd.f32 %v6028_v30, %v5868_v44 }
 0x6ab   : > { %v5704_v4 = vpop.f32.mrf.mxu1  ;;  %7537 = vmatpush.msrb.mxu1 %v12321_v16 }
 0x6ac   : > { %v12437_v24 = vand.u32 4294901760, %v6317_v40  ;;  %v6155_v20 = vmul.f32 %v12400_v54, %v6029_v50  ;;  %v6221_v33 = vmul.f32 %v12402_v9, %v6029_v50  ;;  %v5489_v12 = vpop.f32.mrf.mxu0  ;;  %5934 = vmatmul.f32.gmra.mxu2 %v14939_v62 }
 0x6ad   : > { %v5490_v17 = vadd.f32 %v5489_v12, %v12096_v18  ;;  %6099 = vmatmul.f32.gmra.mxu3 %v14944_v26 }
 0x6ae   : > { %v12446_v19 = vsub.f32 %v6317_v40, %v12437_v24  ;;  %v6254_v25 = vadd.f32 %v12407_v10, %v6221_v33  ;;  %6751 = vmatmul.f32.vlgmr.msra.gmra.mxu1 %v12437_v24  ;;  %v6188_v18 = vadd.f32 %v12413_v21, %v6155_v20 }
 0x6af   : > { %5568 = vmatmul.f32.gmra.mxu0 %v14945_v39  ;;  %v5871_v49 = vpop.f32.mrf.mxu2  ;;  %v12451_v15 = vadd.f32 %v5698_v63, %v5490_v17 }
 0x6b0   : > { %v6286_v59 = vmul.f32 %v6254_v25, %v14946_v2  ;;  %v5872_v36 = vadd.f32 %v5871_v49, %v12193_v38  ;;  %v6036_v22 = vpop.f32.mrf.mxu3  ;;  %v13945_v57 = vand.u32 4294901760, %v12446_v19  ;;  %v14947_v38 = vld [vmem:[#allocation24_spill] sm:$0xff] }
 0x6b1   : > { %v14951_v25 = vld [vmem:[#allocation144_spill] sm:$0xff] }
 0x6b2   : > { %v6033_v47 = vadd.f32 %v6032_v51, %v5872_v36  ;;  %v6400_v30 = vsub.f32 %v12446_v19, %v13945_v57  ;;  %v6318_v45 = vadd.f32 %v6286_v59, %v6188_v18  ;;  %v14952_v36 = vld [vmem:[#allocation28_spill] sm:$0xff] }
 0x6b3   : > { %v5710_v34 = vpop.f32.mrf.mxu1 }
 0x6b4   : > { %v6156_v23 = vmul.f32 %v12400_v54, %v6033_v47  ;;  %v6222_v16 = vmul.f32 %v12402_v9, %v6033_v47  ;;  %v5494_v63 = vpop.f32.mrf.mxu0  ;;  %5938 = vmatmul.f32.gmra.mxu2 %v14944_v26  ;;  %v6401_v55 = vand.u32 4294901760, %v6400_v30  ;;  %v12464_v46 = vand.u32 4294901760, %v6318_v45 }
 0x6b5   : > { %v5495_v52 = vadd.f32 %v5494_v63, %v14947_v38  ;;  %6103 = vmatmul.f32.gmra.mxu3 %v14948_v60 }
 0x6b6   : > { %v6255_v28 = vadd.f32 %v12407_v10, %v6222_v16  ;;  %6755 = vmatmul.f32.gmra.mxu1 %v12464_v46  ;;  %v12471_v62 = vsub.f32 %v6318_v45, %v12464_v46  ;;  %v6189_v6 = vadd.f32 %v12413_v21, %v6156_v23 }
 0x6b7   : > { %6402 = vmatmul.f32.vlgmr.msra.gmra.mxu0 %v6401_v55  ;;  %v5875_v13 = vpop.f32.mrf.mxu2  ;;  %v12473_v1 = vadd.f32 %v5704_v4, %v5495_v52 }
 0x6b8   : > { %v6287_v0 = vmul.f32 %v6255_v28, %v14949_v61  ;;  %v5876_v42 = vadd.f32 %v5875_v13, %v12214_v48  ;;  %v6040_v14 = vpop.f32.mrf.mxu3  ;;  %v13943_v44 = vand.u32 4294901760, %v12471_v62  ;;  %v14950_v48 = vld [vmem:[#allocation88_spill] sm:$0xff] }
 0x6ba   : > { %v6037_v51 = vadd.f32 %v6036_v22, %v5876_v42  ;;  %v6408_v53 = vsub.f32 %v12471_v62, %v13943_v44  ;;  %v6319_v40 = vadd.f32 %v6287_v0, %v6189_v6  ;;  %v14954_v6 = vld [vmem:[#allocation103_spill] sm:$0xff] }
 0x6bb   : > { %v5716_v50 = vpop.f32.mrf.mxu1 }
 0x6bc   : > { %v6157_v20 = vmul.f32 %v12400_v54, %v6037_v51  ;;  %v6223_v4 = vmul.f32 %v12402_v9, %v6037_v51  ;;  %v5499_v33 = vpop.f32.mrf.mxu0  ;;  %5942 = vmatmul.f32.gmra.mxu2 %v14948_v60  ;;  %v6409_v12 = vand.u32 4294901760, %v6408_v53  ;;  %v12485_v17 = vand.u32 4294901760, %v6319_v40  ;;  %v14955_v53 = vld [vmem:[#allocation51_spill] sm:$0xff] }
 0x6bd   : > { %v5500_v26 = vadd.f32 %v5499_v33, %v14950_v48  ;;  %6107 = vmatmul.f32.gmra.mxu3 %v14951_v25 }
 0x6be   : > { %v6256_v39 = vadd.f32 %v12407_v10, %v6223_v4  ;;  %6759 = vmatmul.f32.gmra.mxu1 %v12485_v17  ;;  %v12492_v49 = vsub.f32 %v6319_v40, %v12485_v17  ;;  %v6190_v59 = vadd.f32 %v12413_v21, %v6157_v20 }
 0x6bf   : > { %6410 = vmatmul.f32.gmra.mxu0 %v6409_v12  ;;  %v5879_v18 = vpop.f32.mrf.mxu2  ;;  %v12494_v2 = vadd.f32 %v5710_v34, %v5500_v26 }
 0x6c0   : > { %v6288_v22 = vmul.f32 %v6256_v39, %v14952_v36  ;;  %v5880_v47 = vadd.f32 %v5879_v18, %v12226_v43  ;;  %v6044_v30 = vpop.f32.mrf.mxu3  ;;  %v13942_v45 = vand.u32 4294901760, %v12492_v49  ;;  %v14953_v43 = vld [vmem:[#allocation107_spill] sm:$0xff] }
 0x6c2   : > { %v6041_v23 = vadd.f32 %v6040_v14, %v5880_v47  ;;  %v6416_v16 = vsub.f32 %v12492_v49, %v13942_v45  ;;  %v6320_v63 = vadd.f32 %v6288_v22, %v6190_v59  ;;  %v14957_v47 = vld [vmem:[#allocation62_spill] sm:$0xff] }
 0x6c3   : > { %v5722_v55 = vpop.f32.mrf.mxu1 }
 0x6c4   : > { %v6158_v38 = vmul.f32 %v12400_v54, %v6041_v23  ;;  %v6224_v34 = vmul.f32 %v12402_v9, %v6041_v23  ;;  %v5504_v52 = vpop.f32.mrf.mxu0  ;;  %5946 = vmatmul.f32.gmra.mxu2 %v14951_v25  ;;  %v6417_v60 = vand.u32 4294901760, %v6416_v16  ;;  %v12506_v28 = vand.u32 4294901760, %v6320_v63 }
 0x6c5   : > { %v5505_v13 = vadd.f32 %v5504_v52, %v14953_v43  ;;  %6111 = vmatmul.f32.gmra.mxu3 %v14954_v6 }
 0x6c6   : > { %v6257_v61 = vadd.f32 %v12407_v10, %v6224_v34  ;;  %6763 = vmatmul.f32.gmra.mxu1 %v12506_v28  ;;  %v12513_v0 = vsub.f32 %v6320_v63, %v12506_v28  ;;  %v6191_v51 = vadd.f32 %v12413_v21, %v6158_v38  ;;  %v14958_v34 = vld [vmem:[#allocation81_spill] sm:$0xff] }
 0x6c7   : > { %6418 = vmatmul.f32.gmra.mxu0 %v6417_v60  ;;  %v5883_v42 = vpop.f32.mrf.mxu2  ;;  %v12515_v14 = vadd.f32 %v5716_v50, %v5505_v13 }
 0x6c8   : > { %v6289_v40 = vmul.f32 %v6257_v61, %v14955_v53  ;;  %v5884_v20 = vadd.f32 %v5883_v42, %v12247_v29  ;;  %v6048_v4 = vpop.f32.mrf.mxu3  ;;  %v13940_v33 = vand.u32 4294901760, %v12513_v0  ;;  %v14956_v29 = vld [vmem:[#allocation70_spill] sm:$0xff] }
 0x6ca   : > { %v6045_v12 = vadd.f32 %v6044_v30, %v5884_v20  ;;  %v6424_v48 = vsub.f32 %v12513_v0, %v13940_v33  ;;  %v6321_v26 = vadd.f32 %v6289_v40, %v6191_v51 }
 0x6cb   : > { %v5728_v25 = vpop.f32.mrf.mxu1 }
 0x6cc   : > { %v6159_v39 = vmul.f32 %v12400_v54, %v6045_v12  ;;  %v6225_v50 = vmul.f32 %v12402_v9, %v6045_v12  ;;  %v5509_v18 = vpop.f32.mrf.mxu0  ;;  %5950 = vmatmul.f32.gmra.mxu2 %v14954_v6  ;;  %v6425_v59 = vand.u32 4294901760, %v6424_v48  ;;  %v12527_v36 = vand.u32 4294901760, %v6321_v26 }
 0x6cd   : > { %v5510_v22 = vadd.f32 %v5509_v18, %v14956_v29  ;;  %6115 = vmatmul.f32.gmra.mxu3 %v14957_v47  ;;  %v14961_v29 = vld [vmem:[#allocation59_spill] sm:$0xff] }
 0x6ce   : > { %v6258_v30 = vadd.f32 %v12407_v10, %v6225_v50  ;;  %6767 = vmatmul.f32.gmra.mxu1 %v12527_v36  ;;  %v12534_v23 = vsub.f32 %v6321_v26, %v12527_v36  ;;  %v6192_v38 = vadd.f32 %v12413_v21, %v6159_v39  ;;  %v14960_v26 = vld [vmem:[#allocation137_spill] sm:$0xff] }
 0x6cf   : > { %6426 = vmatmul.f32.gmra.mxu0 %v6425_v59  ;;  %v5887_v16 = vpop.f32.mrf.mxu2  ;;  %v12536_v63 = vadd.f32 %v5722_v55, %v5510_v22 }
 0x6d0   : > { %v6290_v52 = vmul.f32 %v6258_v30, %v14958_v34  ;;  %v5888_v60 = vadd.f32 %v5887_v16, %v12259_v7  ;;  %v6052_v43 = vpop.f32.mrf.mxu3  ;;  %v13939_v13 = vand.u32 4294901760, %v12534_v23  ;;  %v14959_v7 = vld [vmem:[#allocation104_spill] sm:$0xff] }
 0x6d2   : > { %v6049_v6 = vadd.f32 %v6048_v4, %v5888_v60  ;;  %v6432_v61 = vsub.f32 %v12534_v23, %v13939_v13  ;;  %v6322_v42 = vadd.f32 %v6290_v52, %v6192_v38 }
 0x6d3   : > { %v5734_v51 = vpop.f32.mrf.mxu1 }
 0x6d4   : > { %v6160_v53 = vmul.f32 %v12400_v54, %v6049_v6  ;;  %v6226_v55 = vmul.f32 %v12402_v9, %v6049_v6  ;;  %v5514_v40 = vpop.f32.mrf.mxu0  ;;  %5954 = vmatmul.f32.gmra.mxu2 %v14957_v47  ;;  %v6433_v20 = vand.u32 4294901760, %v6432_v61  ;;  %v12548_v12 = vand.u32 4294901760, %v6322_v42 }
 0x6d5   : > { %v5515_v48 = vadd.f32 %v5514_v40, %v14959_v7  ;;  %6119 = vmatmul.f32.gmra.mxu3 %v14960_v26  ;;  %v14963_v40 = vld [vmem:[#allocation69_spill] sm:$0xff] }
 0x6d6   : > { %v6259_v4 = vadd.f32 %v12407_v10, %v6226_v55  ;;  %6771 = vmatmul.f32.gmra.mxu1 %v12548_v12  ;;  %v12555_v39 = vsub.f32 %v6322_v42, %v12548_v12  ;;  %v6193_v59 = vadd.f32 %v12413_v21, %v6160_v53 }
 0x6d7   : > { %6434 = vmatmul.f32.gmra.mxu0 %v6433_v20  ;;  %v5891_v50 = vpop.f32.mrf.mxu2  ;;  %v12557_v18 = vadd.f32 %v5728_v25, %v5515_v48 }
 0x6d8   : > { %v6291_v22 = vmul.f32 %v6259_v4, %v14961_v29  ;;  %v5892_v47 = vadd.f32 %v5891_v50, %v12280_v11  ;;  %v6056_v30 = vpop.f32.mrf.mxu3  ;;  %v13937_v16 = vand.u32 4294901760, %v12555_v39  ;;  %v14962_v11 = vld [vmem:[#allocation125_spill] sm:$0xff]  ;;  %v14964_v4 = vld [vmem:[#allocation34_spill] sm:$0xff] }
 0x6da   : > { %v6053_v38 = vadd.f32 %v6052_v43, %v5892_v47  ;;  %v6440_v34 = vsub.f32 %v12555_v39, %v13937_v16  ;;  %v6323_v52 = vadd.f32 %v6291_v22, %v6193_v59 }
 0x6db   : > { %v5740_v60 = vpop.f32.mrf.mxu1 }
 0x6dc   : > { %v6161_v6 = vmul.f32 %v12400_v54, %v6053_v38  ;;  %v6227_v25 = vmul.f32 %v12402_v9, %v6053_v38  ;;  %v5519_v61 = vpop.f32.mrf.mxu0  ;;  %5958 = vmatmul.f32.gmra.mxu2 %v14960_v26  ;;  %v6441_v42 = vand.u32 4294901760, %v6440_v34  ;;  %v12569_v53 = vand.u32 4294901760, %v6323_v52 }
 0x6dd   : > { %v5520_v55 = vadd.f32 %v5519_v61, %v14962_v11  ;;  %6123 = vmatmul.f32.gmra.mxu3 %v14963_v40 }
 0x6de   : > { %v6260_v43 = vadd.f32 %v12407_v10, %v6227_v25  ;;  %6775 = vmatmul.f32.gmra.mxu1 %v12569_v53  ;;  %v12576_v20 = vsub.f32 %v6323_v52, %v12569_v53  ;;  %v6194_v26 = vadd.f32 %v12413_v21, %v6161_v6 }
 0x6df   : > { %6442 = vmatmul.f32.gmra.mxu0 %v6441_v42  ;;  %v5895_v7 = vpop.f32.mrf.mxu2  ;;  %v12578_v48 = vadd.f32 %v5734_v51, %v5520_v55  ;;  %v14967_v55 = vld [vmem:[#allocation46_spill] sm:$0xff] }
 0x6e0   : > { %v6292_v50 = vmul.f32 %v6260_v43, %v14964_v4  ;;  %v5896_v59 = vadd.f32 %v5895_v7, %v12292_v5  ;;  %v6060_v29 = vpop.f32.mrf.mxu3  ;;  %v13936_v22 = vand.u32 4294901760, %v12576_v20  ;;  %v14966_v5 = vld [vmem:[#allocation120_spill] sm:$0xff] }
 0x6e1   : > { %v14968_v4 = vld [vmem:[#allocation44_spill] sm:$0xff] }
 0x6e2   : > { %v6057_v47 = vadd.f32 %v6056_v30, %v5896_v59  ;;  %v6448_v38 = vsub.f32 %v12576_v20, %v13936_v22  ;;  %v6324_v34 = vadd.f32 %v6292_v50, %v6194_v26 }
 0x6e3   : > { %v5746_v52 = vpop.f32.mrf.mxu1 }
 0x6e4   : > { %v6162_v25 = vmul.f32 %v12400_v54, %v6057_v47  ;;  %v6228_v51 = vmul.f32 %v12402_v9, %v6057_v47  ;;  %v5524_v61 = vpop.f32.mrf.mxu0  ;;  %5962 = vmatmul.f32.gmra.mxu2 %v14963_v40  ;;  %v6449_v6 = vand.u32 4294901760, %v6448_v38  ;;  %v12590_v42 = vand.u32 4294901760, %v6324_v34 }
 0x6e5   : > { %v5525_v11 = vadd.f32 %v5524_v61, %v14966_v5  ;;  %6127 = vmatmul.f32.gmra.mxu3 %v14967_v55 }
 0x6e6   : > { %14965 = vst [vmem:[#allocation161_spill] sm:$0xff] %v12590_v42  ;;  %v6261_v30 = vadd.f32 %v12407_v10, %v6228_v51  ;;  %6779 = vmatmul.f32.gmra.mxu1 %v12590_v42  ;;  %v12597_v43 = vsub.f32 %v6324_v34, %v12590_v42  ;;  %v6195_v40 = vadd.f32 %v12413_v21, %v6162_v25 }
 0x6e7   : > { %6450 = vmatmul.f32.gmra.mxu0 %v6449_v6  ;;  %v5899_v7 = vpop.f32.mrf.mxu2  ;;  %v12599_v26 = vadd.f32 %v5740_v60, %v5525_v11 }
 0x6e8   : > { %v6293_v50 = vmul.f32 %v6261_v30, %v14968_v4  ;;  %v5900_v59 = vadd.f32 %v5899_v7, %v12313_v8  ;;  %v6064_v47 = vpop.f32.mrf.mxu3  ;;  %v13935_v38 = vand.u32 4294901760, %v12597_v43  ;;  %v14970_v8 = vld [vmem:[#allocation149_spill] sm:$0xff]  ;;  %v14971_v4 = vld [vmem:[#allocation140_spill] sm:$0xff] }
 0x6ea   : > { %v6061_v61 = vadd.f32 %v6060_v29, %v5900_v59  ;;  %v6456_v51 = vsub.f32 %v12597_v43, %v13935_v38  ;;  %v6325_v34 = vadd.f32 %v6293_v50, %v6195_v40 }
 0x6eb   : > { %v5752_v5 = vpop.f32.mrf.mxu1 }
 0x6ec   : > { %v6163_v6 = vmul.f32 %v12400_v54, %v6061_v61  ;;  %v6229_v60 = vmul.f32 %v12402_v9, %v6061_v61  ;;  %v5529_v11 = vpop.f32.mrf.mxu0  ;;  %5966 = vmatmul.f32.gmra.mxu2 %v14967_v55  ;;  %v6457_v25 = vand.u32 4294901760, %v6456_v51  ;;  %v12611_v30 = vand.u32 4294901760, %v6325_v34  ;;  %v14972_v61 = vld [vmem:[#allocation133_spill] sm:$0xff] }
 0x6ed   : > { %v5530_v7 = vadd.f32 %v5529_v11, %v14970_v8  ;;  %6131 = vmatmul.f32.gmra.mxu3 %v14971_v4 }
 0x6ee   : > { %14969 = vst [vmem:[#allocation159_spill] sm:$0xff] %v12611_v30  ;;  %v6262_v29 = vadd.f32 %v12407_v10, %v6229_v60  ;;  %6783 = vmatmul.f32.gmra.mxu1 %v12611_v30  ;;  %v12618_v40 = vsub.f32 %v6325_v34, %v12611_v30  ;;  %v6196_v55 = vadd.f32 %v12413_v21, %v6163_v6 }
 0x6ef   : > { %6458 = vmatmul.f32.gmra.mxu0 %v6457_v25  ;;  %v5903_v50 = vpop.f32.mrf.mxu2  ;;  %v12620_v59 = vadd.f32 %v5746_v52, %v5530_v7 }
 0x6f0   : > { %v6294_v51 = vmul.f32 %v6262_v29, %v14972_v61  ;;  %v5904_v38 = vadd.f32 %v5903_v50, %v12331_v32  ;;  %v6068_v11 = vpop.f32.mrf.mxu3  ;;  %v13938_v8 = vand.u32 4294901760, %v12618_v40  ;;  %v14974_v32 = vld [vmem:[#allocation160_spill] sm:$0xff]  ;;  %v14975_v61 = vld [vmem:[#allocation86_spill] sm:$0xff] }
 0x6f2   : > { %v6065_v22 = vadd.f32 %v6064_v47, %v5904_v38  ;;  %v6464_v60 = vsub.f32 %v12618_v40, %v13938_v8  ;;  %v6326_v34 = vadd.f32 %v6294_v51, %v6196_v55  ;;  %v14976_v51 = vld [vmem:[#allocation75_spill] sm:$0xff] }
 0x6f3   : > { %v5758_v16 = vpop.f32.mrf.mxu1 }
 0x6f4   : > { %v6164_v25 = vmul.f32 %v12400_v54, %v6065_v22  ;;  %v6230_v52 = vmul.f32 %v12402_v9, %v6065_v22  ;;  %v5534_v7 = vpop.f32.mrf.mxu0  ;;  %5970 = vmatmul.f32.gmra.mxu2 %v14971_v4  ;;  %v6465_v6 = vand.u32 4294901760, %v6464_v60  ;;  %v12632_v29 = vand.u32 4294901760, %v6326_v34 }
 0x6f5   : > { %v5535_v50 = vadd.f32 %v5534_v7, %v14974_v32  ;;  %6135 = vmatmul.f32.gmra.mxu3 %v14975_v61 }
 0x6f6   : > { %14973 = vst [vmem:[#allocation135_spill] sm:$0xff] %v12632_v29  ;;  %v6263_v47 = vadd.f32 %v12407_v10, %v6230_v52  ;;  %6787 = vmatmul.f32.gmra.mxu1 %v12632_v29  ;;  %v12639_v38 = vsub.f32 %v6326_v34, %v12632_v29  ;;  %v6197_v4 = vadd.f32 %v12413_v21, %v6164_v25 }
 0x6f7   : > { %6466 = vmatmul.f32.gmra.mxu0 %v6465_v6  ;;  %v5907_v55 = vpop.f32.mrf.mxu2  ;;  %v12641_v22 = vadd.f32 %v5752_v5, %v5535_v50 }
 0x6f8   : > { %v6295_v60 = vmul.f32 %v6263_v47, %v14976_v51  ;;  %v5908_v8 = vadd.f32 %v5907_v55, %v12354_v58  ;;  %v6072_v7 = vpop.f32.mrf.mxu3  ;;  %v13941_v32 = vand.u32 4294901760, %v12639_v38  ;;  %v14978_v58 = vld [vmem:[#allocation99_spill] sm:$0xff]  ;;  %v14979_v51 = vld [vmem:[#allocation72_spill] sm:$0xff] }
 0x6fa   : > { %v6069_v13 = vadd.f32 %v6068_v11, %v5908_v8  ;;  %v6472_v52 = vsub.f32 %v12639_v38, %v13941_v32  ;;  %v6327_v34 = vadd.f32 %v6295_v60, %v6197_v4  ;;  %v14980_v60 = vld [vmem:[#allocation23_spill] sm:$0xff] }
 0x6fb   : > { %v5764_v33 = vpop.f32.mrf.mxu1 }
 0x6fc   : > { %v6165_v6 = vmul.f32 %v12400_v54, %v6069_v13  ;;  %v6231_v5 = vmul.f32 %v12402_v9, %v6069_v13  ;;  %v5539_v50 = vpop.f32.mrf.mxu0  ;;  %5974 = vmatmul.f32.gmra.mxu2 %v14975_v61  ;;  %v6473_v25 = vand.u32 4294901760, %v6472_v52  ;;  %v12653_v47 = vand.u32 4294901760, %v6327_v34 }
 0x6fd   : > { %v5540_v55 = vadd.f32 %v5539_v50, %v14978_v58  ;;  %6139 = vmatmul.f32.gmra.mxu3 %v14979_v51 }
 0x6fe   : > { %14977 = vst [vmem:[#allocation54_spill] sm:$0xff] %v12653_v47  ;;  %v6264_v11 = vadd.f32 %v12407_v10, %v6231_v5  ;;  %6791 = vmatmul.f32.gmra.mxu1 %v12653_v47  ;;  %v12660_v8 = vsub.f32 %v6327_v34, %v12653_v47  ;;  %v6198_v61 = vadd.f32 %v12413_v21, %v6165_v6 }
 0x6ff   : > { %6474 = vmatmul.f32.gmra.mxu0 %v6473_v25  ;;  %v5911_v4 = vpop.f32.mrf.mxu2  ;;  %v12662_v13 = vadd.f32 %v5758_v16, %v5540_v55 }
 0x700   : > { %v6296_v52 = vmul.f32 %v6264_v11, %v14980_v60  ;;  %v5912_v32 = vadd.f32 %v5911_v4, %v12373_v56  ;;  %v6076_v50 = vpop.f32.mrf.mxu3  ;;  %v13944_v58 = vand.u32 4294901760, %v12660_v8  ;;  %v14982_v56 = vld [vmem:[#allocation124_spill] sm:$0xff]  ;;  %v14983_v60 = vld [vmem:[#allocation142_spill] sm:$0xff] }
 0x702   : > { %v6073_v45 = vadd.f32 %v6072_v7, %v5912_v32  ;;  %v6480_v5 = vsub.f32 %v12660_v8, %v13944_v58  ;;  %v6328_v34 = vadd.f32 %v6296_v52, %v6198_v61  ;;  %v14984_v52 = vld [vmem:[#allocation114_spill] sm:$0xff] }
 0x703   : > { %v5770_v44 = vpop.f32.mrf.mxu1 }
 0x704   : > { %v6166_v25 = vmul.f32 %v12400_v54, %v6073_v45  ;;  %v6232_v16 = vmul.f32 %v12402_v9, %v6073_v45  ;;  %v5544_v55 = vpop.f32.mrf.mxu0  ;;  %5978 = vmatmul.f32.gmra.mxu2 %v14979_v51  ;;  %v6481_v6 = vand.u32 4294901760, %v6480_v5  ;;  %v12674_v11 = vand.u32 4294901760, %v6328_v34 }
 0x705   : > { %v5545_v4 = vadd.f32 %v5544_v55, %v14982_v56  ;;  %6143 = vmatmul.f32.gmra.mxu3 %v14983_v60 }
 0x706   : > { %14981 = vst [vmem:[#allocation108_spill] sm:$0xff] %v12674_v11  ;;  %v6265_v7 = vadd.f32 %v12407_v10, %v6232_v16  ;;  %6795 = vmatmul.f32.gmra.mxu1 %v12674_v11  ;;  %v12681_v32 = vsub.f32 %v6328_v34, %v12674_v11  ;;  %v6199_v51 = vadd.f32 %v12413_v21, %v6166_v25 }
 0x707   : > { %6482 = vmatmul.f32.gmra.mxu0 %v6481_v6  ;;  %v5915_v61 = vpop.f32.mrf.mxu2  ;;  %v12683_v45 = vadd.f32 %v5764_v33, %v5545_v4 }
 0x708   : > { %v6297_v5 = vmul.f32 %v6265_v7, %v14984_v52  ;;  %v5916_v58 = vadd.f32 %v5915_v61, %v12396_v31  ;;  %v6080_v55 = vpop.f32.mrf.mxu3  ;;  %v13948_v56 = vand.u32 4294901760, %v12681_v32  ;;  %v14986_v31 = vld [vmem:[#allocation150_spill] sm:$0xff]  ;;  %v14987_v52 = vld [vmem:[#allocation153_spill] sm:$0xff] }
 0x70a   : > { %v6077_v57 = vadd.f32 %v6076_v50, %v5916_v58  ;;  %v6488_v16 = vsub.f32 %v12681_v32, %v13948_v56  ;;  %v6329_v34 = vadd.f32 %v6297_v5, %v6199_v51  ;;  %v14988_v5 = vld [vmem:[#allocation60_spill] sm:$0xff] }
 0x70b   : > { %v5776_v11 = vpop.f32.mrf.mxu1 }
 0x70c   : > { %v6167_v6 = vmul.f32 %v12400_v54, %v6077_v57  ;;  %v6233_v33 = vmul.f32 %v12402_v9, %v6077_v57  ;;  %v5549_v4 = vpop.f32.mrf.mxu0  ;;  %5982 = vmatmul.f32.gmra.mxu2 %v14983_v60  ;;  %v6489_v25 = vand.u32 4294901760, %v6488_v16  ;;  %v12695_v7 = vand.u32 4294901760, %v6329_v34 }
 0x70d   : > { %v5550_v61 = vadd.f32 %v5549_v4, %v14986_v31  ;;  %6147 = vmatmul.f32.gmra.mxu3 %v14987_v52 }
 0x70e   : > { %14985 = vst [vmem:[#allocation4_spill] sm:$0xff] %v12695_v7  ;;  %v6266_v50 = vadd.f32 %v12407_v10, %v6233_v33  ;;  %6799 = vmatmul.f32.gmra.mxu1 %v12695_v7  ;;  %v12702_v58 = vsub.f32 %v6329_v34, %v12695_v7  ;;  %v6200_v60 = vadd.f32 %v12413_v21, %v6167_v6 }
 0x70f   : > { %6490 = vmatmul.f32.gmra.mxu0 %v6489_v25  ;;  %v5919_v51 = vpop.f32.mrf.mxu2  ;;  %v12704_v57 = vadd.f32 %v5770_v44, %v5550_v61 }
 0x710   : > { %v6298_v16 = vmul.f32 %v6266_v50, %v14988_v5  ;;  %v5920_v56 = vadd.f32 %v5919_v51, %v12427_v27  ;;  %v6084_v4 = vpop.f32.mrf.mxu3  ;;  %v13953_v31 = vand.u32 4294901760, %v12702_v58  ;;  %v14991_v5 = vld [vmem:[#allocation121_spill] sm:$0xff] }
 0x712   : > { %v6081_v47 = vadd.f32 %v6080_v55, %v5920_v56  ;;  %v6496_v33 = vsub.f32 %v12702_v58, %v13953_v31  ;;  %v6330_v34 = vadd.f32 %v6298_v16, %v6200_v60  ;;  %v14990_v55 = vand.u32 4294901760, %v12446_v19 }
 0x713   : > { %v5782_v7 = vpop.f32.mrf.mxu1 }
 0x714   : > { %v6168_v25 = vmul.f32 %v12400_v54, %v6081_v47  ;;  %v6234_v44 = vmul.f32 %v12402_v9, %v6081_v47  ;;  %v5554_v61 = vpop.f32.mrf.mxu0  ;;  %5986 = vmatmul.f32.gmra.mxu2 %v14987_v52  ;;  %v6497_v6 = vand.u32 4294901760, %v6496_v33  ;;  %v12716_v50 = vand.u32 4294901760, %v6330_v34 }
 0x715   : > { %v5555_v27 = vadd.f32 %v5554_v61, %v12315_v35  ;;  %7123 = vmatmul.f32.vlgmr.msrb.gmra.mxu3 %v14990_v55 }
 0x716   : > { %14989 = vst [vmem:[#allocation57_spill] sm:$0xff] %v12716_v50  ;;  %v6267_v56 = vadd.f32 %v12407_v10, %v6234_v44  ;;  %6803 = vmatmul.f32.gmra.mxu1 %v12716_v50  ;;  %v12724_v51 = vsub.f32 %v6330_v34, %v12716_v50  ;;  %v6201_v52 = vadd.f32 %v12413_v21, %v6168_v25 }
 0x717   : > { %6498 = vmatmul.f32.gmra.mxu0 %v6497_v6  ;;  %v5923_v47 = vpop.f32.mrf.mxu2  ;;  %v12726_v60 = vadd.f32 %v5776_v11, %v5555_v27 }
 0x718   : > { %v6299_v16 = vmul.f32 %v6267_v56, %v14991_v5  ;;  %v5924_v35 = vadd.f32 %v5923_v47, %v12451_v15  ;;  %v6088_v33 = vpop.f32.mrf.mxu3  ;;  %v13954_v61 = vand.u32 4294901760, %v12724_v51 }
 0x71a   : > { %v6085_v55 = vadd.f32 %v6084_v4, %v5924_v35  ;;  %v6504_v44 = vsub.f32 %v12724_v51, %v13954_v61  ;;  %v6331_v34 = vadd.f32 %v6299_v16, %v6201_v52  ;;  %v14993_v4 = vand.u32 4294901760, %v12471_v62  ;;  %v14994_v35 = vld [vmem:[#allocation6_spill] sm:$0xff] }
 0x71b   : > { %v5788_v31 = vpop.f32.mrf.mxu1 }
 0x71c   : > { %v6169_v6 = vmul.f32 %v12400_v54, %v6085_v55  ;;  %v6235_v11 = vmul.f32 %v12402_v9, %v6085_v55  ;;  %v5559_v27 = vpop.f32.mrf.mxu0  ;;  %6929 = vmatmul.f32.vlgmr.msrb.gmra.mxu2 %v12446_v19  ;;  %v6505_v25 = vand.u32 4294901760, %v6504_v44  ;;  %v12738_v56 = vand.u32 4294901760, %v6331_v34 }
 0x71d   : > { %v5560_v15 = vadd.f32 %v5559_v27, %v12334_v41  ;;  %7129 = vmatmul.f32.gmra.mxu3 %v14993_v4 }
 0x71e   : > { %14992 = vst [vmem:[#allocation73_spill] sm:$0xff] %v12738_v56  ;;  %v6268_v47 = vadd.f32 %v12407_v10, %v6235_v11  ;;  %6807 = vmatmul.f32.gmra.mxu1 %v12738_v56  ;;  %v12746_v52 = vsub.f32 %v6331_v34, %v12738_v56  ;;  %v6202_v19 = vadd.f32 %v12413_v21, %v6169_v6 }
 0x71f   : > { %6506 = vmatmul.f32.gmra.mxu0 %v6505_v25  ;;  %v5927_v5 = vpop.f32.mrf.mxu2  ;;  %v12748_v16 = vadd.f32 %v5782_v7, %v5560_v15 }
 0x720   : > { %v6300_v55 = vmul.f32 %v6268_v47, %v14994_v35  ;;  %v5928_v41 = vadd.f32 %v5927_v5, %v12473_v1  ;;  %v6092_v44 = vpop.f32.mrf.mxu3  ;;  %v13955_v27 = vand.u32 4294901760, %v12746_v52 }
 0x722   : > { %v6089_v4 = vadd.f32 %v6088_v33, %v5928_v41  ;;  %v6512_v11 = vsub.f32 %v12746_v52, %v13955_v27  ;;  %v6332_v34 = vadd.f32 %v6300_v55, %v6202_v19  ;;  %v14996_v33 = vand.u32 4294901760, %v12492_v49  ;;  %v14997_v41 = vld [vmem:[#allocation132_spill] sm:$0xff] }
 0x723   : > { %v5794_v61 = vpop.f32.mrf.mxu1 }
 0x724   : > { %v6170_v25 = vmul.f32 %v12400_v54, %v6089_v4  ;;  %v6236_v7 = vmul.f32 %v12402_v9, %v6089_v4  ;;  %v5564_v15 = vpop.f32.mrf.mxu0  ;;  %6934 = vmatmul.f32.gmra.mxu2 %v12471_v62  ;;  %v6513_v6 = vand.u32 4294901760, %v6512_v11  ;;  %v12760_v47 = vand.u32 4294901760, %v6332_v34 }
 0x725   : > { %v5565_v1 = vadd.f32 %v5564_v15, %v12356_v37  ;;  %7135 = vmatmul.f32.gmra.mxu3 %v14996_v33 }
 0x726   : > { %14995 = vst [vmem:[#allocation106_spill] sm:$0xff] %v12760_v47  ;;  %v6269_v5 = vadd.f32 %v12407_v10, %v6236_v7  ;;  %6811 = vmatmul.f32.gmra.mxu1 %v12760_v47  ;;  %v12768_v19 = vsub.f32 %v6332_v34, %v12760_v47  ;;  %v6203_v62 = vadd.f32 %v12413_v21, %v6170_v25 }
 0x727   : > { %6514 = vmatmul.f32.gmra.mxu0 %v6513_v6  ;;  %v5931_v35 = vpop.f32.mrf.mxu2  ;;  %v12770_v55 = vadd.f32 %v5788_v31, %v5565_v1 }
 0x728   : > { %v6301_v4 = vmul.f32 %v6269_v5, %v14997_v41  ;;  %v5932_v37 = vadd.f32 %v5931_v35, %v12494_v2  ;;  %v6096_v11 = vpop.f32.mrf.mxu3  ;;  %v13956_v15 = vand.u32 4294901760, %v12768_v19 }
 0x72a   : > { %v6093_v33 = vadd.f32 %v6092_v44, %v5932_v37  ;;  %v6520_v7 = vsub.f32 %v12768_v19, %v13956_v15  ;;  %v6333_v34 = vadd.f32 %v6301_v4, %v6203_v62  ;;  %v14999_v44 = vand.u32 4294901760, %v12513_v0  ;;  %v15000_v37 = vld [vmem:[#allocation61_spill] sm:$0xff] }
 0x72b   : > { %v12779_v27 = vpop.f32.mrf.mxu1 }
 0x72c   : > { %v6171_v31 = vmul.f32 %v12400_v54, %v6093_v33  ;;  %v6237_v6 = vmul.f32 %v12402_v9, %v6093_v33  ;;  %v5569_v25 = vpop.f32.mrf.mxu0  ;;  %6939 = vmatmul.f32.gmra.mxu2 %v12492_v49  ;;  %v6521_v1 = vand.u32 4294901760, %v6520_v7  ;;  %v12784_v2 = vand.u32 4294901760, %v6333_v34 }
 0x72d   : > { %v5570_v5 = vadd.f32 %v5569_v25, %v12375_v3  ;;  %7141 = vmatmul.f32.gmra.mxu3 %v14999_v44 }
 0x72e   : > { %14998 = vst [vmem:[#allocation25_spill] sm:$0xff] %v12784_v2  ;;  %v6270_v35 = vadd.f32 %v12407_v10, %v6237_v6  ;;  %6815 = vmatmul.f32.gmra.mxu1 %v12784_v2  ;;  %v12792_v62 = vsub.f32 %v6333_v34, %v12784_v2  ;;  %v6204_v49 = vadd.f32 %v12413_v21, %v6171_v31 }
 0x72f   : > { %6522 = vmatmul.f32.gmra.mxu0 %v6521_v1  ;;  %v5935_v41 = vpop.f32.mrf.mxu2  ;;  %v12794_v4 = vadd.f32 %v5794_v61, %v5570_v5 }
 0x730   : > { %v6302_v33 = vmul.f32 %v6270_v35, %v15000_v37  ;;  %v5936_v3 = vadd.f32 %v5935_v41, %v12515_v14  ;;  %v6100_v7 = vpop.f32.mrf.mxu3  ;;  %v13957_v25 = vand.u32 4294901760, %v12792_v62 }
 0x732   : > { %v6097_v44 = vadd.f32 %v6096_v11, %v5936_v3  ;;  %v6528_v6 = vsub.f32 %v12792_v62, %v13957_v25  ;;  %v6334_v34 = vadd.f32 %v6302_v33, %v6204_v49  ;;  %v15002_v11 = vand.u32 4294901760, %v12534_v23  ;;  %v15003_v33 = vld [vmem:[#allocation122_spill] sm:$0xff] }
 0x733   : > { %v12803_v15 = vpop.f32.mrf.mxu1 }
 0x734   : > { %v6172_v61 = vmul.f32 %v12400_v54, %v6097_v44  ;;  %v6238_v1 = vmul.f32 %v12402_v9, %v6097_v44  ;;  %v12807_v31 = vpop.f32.mrf.mxu0  ;;  %6944 = vmatmul.f32.gmra.mxu2 %v12513_v0  ;;  %v6529_v14 = vand.u32 4294901760, %v6528_v6  ;;  %v12810_v5 = vand.u32 4294901760, %v6334_v34 }
 0x735   : > { %7147 = vmatmul.f32.gmra.mxu3 %v15002_v11 }
 0x736   : > { %15001 = vst [vmem:[#allocation71_spill] sm:$0xff] %v12810_v5  ;;  %v6271_v35 = vadd.f32 %v12407_v10, %v6238_v1  ;;  %6819 = vmatmul.f32.gmra.mxu1 %v12810_v5  ;;  %v12817_v41 = vsub.f32 %v6334_v34, %v12810_v5  ;;  %v6205_v37 = vadd.f32 %v12413_v21, %v6172_v61 }
 0x737   : > { %6530 = vmatmul.f32.gmra.mxu0 %v6529_v14  ;;  %v5939_v49 = vpop.f32.mrf.mxu2 }
 0x738   : > { %v6303_v3 = vmul.f32 %v6271_v35, %v15003_v33  ;;  %v5940_v0 = vadd.f32 %v5939_v49, %v12536_v63  ;;  %v6104_v44 = vpop.f32.mrf.mxu3  ;;  %v13960_v6 = vand.u32 4294901760, %v12817_v41 }
 0x73a   : > { %v6101_v25 = vadd.f32 %v6100_v7, %v5940_v0  ;;  %v6536_v1 = vsub.f32 %v12817_v41, %v13960_v6  ;;  %v6335_v11 = vadd.f32 %v6303_v3, %v6205_v37  ;;  %v15005_v7 = vand.u32 4294901760, %v12555_v39  ;;  %v15006_v3 = vld [vmem:[#allocation13_spill] sm:$0xff] }
 0x73b   : > { %v12826_v2 = vpop.f32.mrf.mxu1 }
 0x73c   : > { %v6173_v34 = vmul.f32 %v12400_v54, %v6101_v25  ;;  %v6239_v14 = vmul.f32 %v12402_v9, %v6101_v25  ;;  %v12830_v61 = vpop.f32.mrf.mxu0  ;;  %6949 = vmatmul.f32.gmra.mxu2 %v12534_v23  ;;  %v6537_v63 = vand.u32 4294901760, %v6536_v1  ;;  %v12833_v35 = vand.u32 4294901760, %v6335_v11 }
 0x73d   : > { %7153 = vmatmul.f32.gmra.mxu3 %v15005_v7 }
 0x73e   : > { %15004 = vst [vmem:[#allocation30_spill] sm:$0xff] %v12833_v35  ;;  %v6272_v49 = vadd.f32 %v12407_v10, %v6239_v14  ;;  %6823 = vmatmul.f32.gmra.mxu1 %v12833_v35  ;;  %v12840_v37 = vsub.f32 %v6335_v11, %v12833_v35  ;;  %v6206_v25 = vadd.f32 %v12413_v21, %v6173_v34 }
 0x73f   : > { %6538 = vmatmul.f32.gmra.mxu0 %v6537_v63  ;;  %v5943_v33 = vpop.f32.mrf.mxu2 }
 0x740   : > { %v6304_v0 = vmul.f32 %v6272_v49, %v15006_v3  ;;  %v5944_v23 = vadd.f32 %v5943_v33, %v12557_v18  ;;  %v6108_v1 = vpop.f32.mrf.mxu3  ;;  %v13965_v6 = vand.u32 4294901760, %v12840_v37 }
 0x742   : > { %v6105_v5 = vadd.f32 %v6104_v44, %v5944_v23  ;;  %v6544_v14 = vsub.f32 %v12840_v37, %v13965_v6  ;;  %v6336_v7 = vadd.f32 %v6304_v0, %v6206_v25  ;;  %v15008_v44 = vand.u32 4294901760, %v12576_v20  ;;  %v15009_v0 = vld [vmem:[#allocation42_spill] sm:$0xff] }
 0x743   : > { %v12849_v47 = vpop.f32.mrf.mxu1 }
 0x744   : > { %v6174_v11 = vmul.f32 %v12400_v54, %v6105_v5  ;;  %v6240_v63 = vmul.f32 %v12402_v9, %v6105_v5  ;;  %v12853_v34 = vpop.f32.mrf.mxu0  ;;  %6954 = vmatmul.f32.gmra.mxu2 %v12555_v39  ;;  %v6545_v18 = vand.u32 4294901760, %v6544_v14  ;;  %v12856_v49 = vand.u32 4294901760, %v6336_v7 }
 0x745   : > { %7159 = vmatmul.f32.gmra.mxu3 %v15008_v44 }
 0x746   : > { %15007 = vst [vmem:[#allocation102_spill] sm:$0xff] %v12856_v49  ;;  %v6273_v33 = vadd.f32 %v12407_v10, %v6240_v63  ;;  %6827 = vmatmul.f32.gmra.mxu1 %v12856_v49  ;;  %v12863_v25 = vsub.f32 %v6336_v7, %v12856_v49  ;;  %v6207_v5 = vadd.f32 %v12413_v21, %v6174_v11 }
 0x747   : > { %6546 = vmatmul.f32.gmra.mxu0 %v6545_v18  ;;  %v5947_v3 = vpop.f32.mrf.mxu2 }
 0x748   : > { %v6305_v23 = vmul.f32 %v6273_v33, %v15009_v0  ;;  %v5948_v39 = vadd.f32 %v5947_v3, %v12578_v48  ;;  %v6112_v14 = vpop.f32.mrf.mxu3  ;;  %v13970_v6 = vand.u32 4294901760, %v12863_v25 }
 0x74a   : > { %v6109_v35 = vadd.f32 %v6108_v1, %v5948_v39  ;;  %v6552_v63 = vsub.f32 %v12863_v25, %v13970_v6  ;;  %v6337_v44 = vadd.f32 %v6305_v23, %v6207_v5  ;;  %v15011_v1 = vand.u32 4294901760, %v12597_v43  ;;  %v15012_v23 = vld [vmem:[#allocation10_spill] sm:$0xff] }
 0x74b   : > { %v12872_v56 = vpop.f32.mrf.mxu1 }
 0x74c   : > { %v6175_v7 = vmul.f32 %v12400_v54, %v6109_v35  ;;  %v6241_v18 = vmul.f32 %v12402_v9, %v6109_v35  ;;  %v12876_v11 = vpop.f32.mrf.mxu0  ;;  %6959 = vmatmul.f32.gmra.mxu2 %v12576_v20  ;;  %v6553_v48 = vand.u32 4294901760, %v6552_v63  ;;  %v12879_v33 = vand.u32 4294901760, %v6337_v44 }
 0x74d   : > { %7165 = vmatmul.f32.gmra.mxu3 %v15011_v1 }
 0x74e   : > { %15010 = vst [vmem:[#allocation43_spill] sm:$0xff] %v12879_v33  ;;  %v6274_v3 = vadd.f32 %v12407_v10, %v6241_v18  ;;  %6831 = vmatmul.f32.gmra.mxu1 %v12879_v33  ;;  %v12886_v5 = vsub.f32 %v6337_v44, %v12879_v33  ;;  %v6208_v35 = vadd.f32 %v12413_v21, %v6175_v7 }
 0x74f   : > { %6554 = vmatmul.f32.gmra.mxu0 %v6553_v48  ;;  %v5951_v0 = vpop.f32.mrf.mxu2 }
 0x750   : > { %v6306_v39 = vmul.f32 %v6274_v3, %v15012_v23  ;;  %v5952_v20 = vadd.f32 %v5951_v0, %v12599_v26  ;;  %v6116_v63 = vpop.f32.mrf.mxu3  ;;  %v13975_v6 = vand.u32 4294901760, %v12886_v5 }
 0x752   : > { %v6113_v49 = vadd.f32 %v6112_v14, %v5952_v20  ;;  %v6560_v18 = vsub.f32 %v12886_v5, %v13975_v6  ;;  %v6338_v1 = vadd.f32 %v6306_v39, %v6208_v35  ;;  %v15014_v14 = vand.u32 4294901760, %v12618_v40  ;;  %v15015_v39 = vld [vmem:[#allocation18_spill] sm:$0xff] }
 0x753   : > { %v12895_v50 = vpop.f32.mrf.mxu1 }
 0x754   : > { %v6176_v44 = vmul.f32 %v12400_v54, %v6113_v49  ;;  %v6242_v48 = vmul.f32 %v12402_v9, %v6113_v49  ;;  %v12899_v7 = vpop.f32.mrf.mxu0  ;;  %6964 = vmatmul.f32.gmra.mxu2 %v12597_v43  ;;  %v6561_v26 = vand.u32 4294901760, %v6560_v18  ;;  %v12902_v3 = vand.u32 4294901760, %v6338_v1 }
 0x755   : > { %7171 = vmatmul.f32.gmra.mxu3 %v15014_v14 }
 0x756   : > { %15013 = vst [vmem:[#allocation126_spill] sm:$0xff] %v12902_v3  ;;  %v6275_v0 = vadd.f32 %v12407_v10, %v6242_v48  ;;  %6835 = vmatmul.f32.gmra.mxu1 %v12902_v3  ;;  %v12909_v35 = vsub.f32 %v6338_v1, %v12902_v3  ;;  %v6209_v49 = vadd.f32 %v12413_v21, %v6176_v44 }
 0x757   : > { %6562 = vmatmul.f32.gmra.mxu0 %v6561_v26  ;;  %v5955_v23 = vpop.f32.mrf.mxu2 }
 0x758   : > { %v6307_v20 = vmul.f32 %v6275_v0, %v15015_v39  ;;  %v5956_v43 = vadd.f32 %v5955_v23, %v12620_v59  ;;  %v6120_v18 = vpop.f32.mrf.mxu3  ;;  %v13980_v6 = vand.u32 4294901760, %v12909_v35 }
 0x75a   : > { %v6117_v33 = vadd.f32 %v6116_v63, %v5956_v43  ;;  %v6568_v48 = vsub.f32 %v12909_v35, %v13980_v6  ;;  %v6339_v14 = vadd.f32 %v6307_v20, %v6209_v49  ;;  %v15017_v63 = vand.u32 4294901760, %v12639_v38  ;;  %v15018_v20 = vld [vmem:[#allocation33_spill] sm:$0xff] }
 0x75b   : > { %v12918_v29 = vpop.f32.mrf.mxu1 }
 0x75c   : > { %v6177_v1 = vmul.f32 %v12400_v54, %v6117_v33  ;;  %v6243_v26 = vmul.f32 %v12402_v9, %v6117_v33  ;;  %v12922_v44 = vpop.f32.mrf.mxu0  ;;  %6969 = vmatmul.f32.gmra.mxu2 %v12618_v40  ;;  %v6569_v59 = vand.u32 4294901760, %v6568_v48  ;;  %v12925_v0 = vand.u32 4294901760, %v6339_v14 }
 0x75d   : > { %7177 = vmatmul.f32.gmra.mxu3 %v15017_v63 }
 0x75e   : > { %15016 = vst [vmem:[#allocation123_spill] sm:$0xff] %v12925_v0  ;;  %v6276_v23 = vadd.f32 %v12407_v10, %v6243_v26  ;;  %6839 = vmatmul.f32.gmra.mxu1 %v12925_v0  ;;  %v12932_v49 = vsub.f32 %v6339_v14, %v12925_v0  ;;  %v6210_v33 = vadd.f32 %v12413_v21, %v6177_v1 }
 0x75f   : > { %6570 = vmatmul.f32.gmra.mxu0 %v6569_v59  ;;  %v5959_v39 = vpop.f32.mrf.mxu2 }
 0x760   : > { %v6308_v43 = vmul.f32 %v6276_v23, %v15018_v20  ;;  %v5960_v40 = vadd.f32 %v5959_v39, %v12641_v22  ;;  %v6124_v48 = vpop.f32.mrf.mxu3  ;;  %v13985_v6 = vand.u32 4294901760, %v12932_v49 }
 0x762   : > { %v6121_v3 = vadd.f32 %v6120_v18, %v5960_v40  ;;  %v6576_v26 = vsub.f32 %v12932_v49, %v13985_v6  ;;  %v6340_v63 = vadd.f32 %v6308_v43, %v6210_v33  ;;  %v15020_v18 = vand.u32 4294901760, %v12660_v8  ;;  %v15021_v43 = vld [vmem:[#allocation145_spill] sm:$0xff] }
 0x763   : > { %v12941_v30 = vpop.f32.mrf.mxu1 }
 0x764   : > { %v6178_v14 = vmul.f32 %v12400_v54, %v6121_v3  ;;  %v6244_v59 = vmul.f32 %v12402_v9, %v6121_v3  ;;  %v12945_v1 = vpop.f32.mrf.mxu0  ;;  %6974 = vmatmul.f32.gmra.mxu2 %v12639_v38  ;;  %v6577_v22 = vand.u32 4294901760, %v6576_v26  ;;  %v12948_v23 = vand.u32 4294901760, %v6340_v63 }
 0x765   : > { %7183 = vmatmul.f32.gmra.mxu3 %v15020_v18 }
 0x766   : > { %15019 = vst [vmem:[#allocation11_spill] sm:$0xff] %v12948_v23  ;;  %v6277_v39 = vadd.f32 %v12407_v10, %v6244_v59  ;;  %6843 = vmatmul.f32.gmra.mxu1 %v12948_v23  ;;  %v12955_v33 = vsub.f32 %v6340_v63, %v12948_v23  ;;  %v6211_v3 = vadd.f32 %v12413_v21, %v6178_v14 }
 0x767   : > { %6578 = vmatmul.f32.gmra.mxu0 %v6577_v22  ;;  %v5963_v20 = vpop.f32.mrf.mxu2 }
 0x768   : > { %v6309_v40 = vmul.f32 %v6277_v39, %v15021_v43  ;;  %v5964_v38 = vadd.f32 %v5963_v20, %v12662_v13  ;;  %v6128_v26 = vpop.f32.mrf.mxu3  ;;  %v13990_v6 = vand.u32 4294901760, %v12955_v33 }
 0x76a   : > { %v6125_v0 = vadd.f32 %v6124_v48, %v5964_v38  ;;  %v6584_v59 = vsub.f32 %v12955_v33, %v13990_v6  ;;  %v6341_v18 = vadd.f32 %v6309_v40, %v6211_v3  ;;  %v15024_v48 = vand.u32 4294901760, %v12681_v32  ;;  %v15025_v40 = vld [vmem:[#allocation47_spill] sm:$0xff] }
 0x76b   : > { %v12964_v42 = vpop.f32.mrf.mxu1 }
 0x76c   : > { %15022 = vst [vmem:[#allocation19_spill] sm:$0xff] %v12964_v42  ;;  %v6179_v63 = vmul.f32 %v12400_v54, %v6125_v0  ;;  %v6245_v22 = vmul.f32 %v12402_v9, %v6125_v0  ;;  %v12968_v14 = vpop.f32.mrf.mxu0  ;;  %6979 = vmatmul.f32.gmra.mxu2 %v12660_v8  ;;  %v6585_v13 = vand.u32 4294901760, %v6584_v59  ;;  %v12971_v39 = vand.u32 4294901760, %v6341_v18 }
 0x76d   : > { %7189 = vmatmul.f32.gmra.mxu3 %v15024_v48 }
 0x76e   : > { %15023 = vst [vmem:[#allocation31_spill] sm:$0xff] %v12971_v39  ;;  %v6278_v20 = vadd.f32 %v12407_v10, %v6245_v22  ;;  %6847 = vmatmul.f32.gmra.mxu1 %v12971_v39  ;;  %v12978_v3 = vsub.f32 %v6341_v18, %v12971_v39  ;;  %v6212_v0 = vadd.f32 %v12413_v21, %v6179_v63 }
 0x76f   : > { %6586 = vmatmul.f32.gmra.mxu0 %v6585_v13  ;;  %v5967_v43 = vpop.f32.mrf.mxu2 }
 0x770   : > { %v6310_v38 = vmul.f32 %v6278_v20, %v15025_v40  ;;  %v5968_v8 = vadd.f32 %v5967_v43, %v12683_v45  ;;  %v6132_v59 = vpop.f32.mrf.mxu3  ;;  %v13993_v6 = vand.u32 4294901760, %v12978_v3 }
 0x772   : > { %v6129_v42 = vadd.f32 %v6128_v26, %v5968_v8  ;;  %v6592_v22 = vsub.f32 %v12978_v3, %v13993_v6  ;;  %v6342_v48 = vadd.f32 %v6310_v38, %v6212_v0  ;;  %v15028_v26 = vand.u32 4294901760, %v12702_v58  ;;  %v15029_v38 = vld [vmem:[#allocation8_spill] sm:$0xff] }
 0x773   : > { %v12987_v23 = vpop.f32.mrf.mxu1 }
 0x774   : > { %15026 = vst [vmem:[#allocation40_spill] sm:$0xff] %v12987_v23  ;;  %v6180_v18 = vmul.f32 %v12400_v54, %v6129_v42  ;;  %v6246_v13 = vmul.f32 %v12402_v9, %v6129_v42  ;;  %v12991_v63 = vpop.f32.mrf.mxu0  ;;  %6984 = vmatmul.f32.gmra.mxu2 %v12681_v32  ;;  %v6593_v45 = vand.u32 4294901760, %v6592_v22  ;;  %v12994_v20 = vand.u32 4294901760, %v6342_v48 }
 0x775   : > { %7195 = vmatmul.f32.gmra.mxu3 %v15028_v26 }
 0x776   : > { %15027 = vst [vmem:[#allocation77_spill] sm:$0xff] %v12994_v20  ;;  %v6279_v43 = vadd.f32 %v12407_v10, %v6246_v13  ;;  %6851 = vmatmul.f32.gmra.mxu1 %v12994_v20  ;;  %v13001_v0 = vsub.f32 %v6342_v48, %v12994_v20  ;;  %v6213_v42 = vadd.f32 %v12413_v21, %v6180_v18 }
 0x777   : > { %6594 = vmatmul.f32.gmra.mxu0 %v6593_v45  ;;  %v5971_v40 = vpop.f32.mrf.mxu2 }
 0x778   : > { %v6311_v8 = vmul.f32 %v6279_v43, %v15029_v38  ;;  %v5972_v32 = vadd.f32 %v5971_v40, %v12704_v57  ;;  %v6136_v22 = vpop.f32.mrf.mxu3  ;;  %v13996_v6 = vand.u32 4294901760, %v13001_v0 }
 0x77a   : > { %v6133_v23 = vadd.f32 %v6132_v59, %v5972_v32  ;;  %v6600_v13 = vsub.f32 %v13001_v0, %v13996_v6  ;;  %v6343_v26 = vadd.f32 %v6311_v8, %v6213_v42  ;;  %v15032_v59 = vand.u32 4294901760, %v12724_v51  ;;  %v15033_v8 = vld [vmem:[#allocation56_spill] sm:$0xff] }
 0x77b   : > { %v13010_v39 = vpop.f32.mrf.mxu1 }
 0x77c   : > { %15030 = vst [vmem:[#allocation50_spill] sm:$0xff] %v13010_v39  ;;  %v6181_v48 = vmul.f32 %v12400_v54, %v6133_v23  ;;  %v6247_v45 = vmul.f32 %v12402_v9, %v6133_v23  ;;  %v13014_v18 = vpop.f32.mrf.mxu0  ;;  %6989 = vmatmul.f32.gmra.mxu2 %v12702_v58  ;;  %v6601_v57 = vand.u32 4294901760, %v6600_v13  ;;  %v13017_v43 = vand.u32 4294901760, %v6343_v26 }
 0x77d   : > { %7201 = vmatmul.f32.gmra.mxu3 %v15032_v59 }
 0x77e   : > { %15031 = vst [vmem:[#allocation84_spill] sm:$0xff] %v13017_v43  ;;  %v6280_v40 = vadd.f32 %v12407_v10, %v6247_v45  ;;  %6855 = vmatmul.f32.gmra.mxu1 %v13017_v43  ;;  %v13024_v42 = vsub.f32 %v6343_v26, %v13017_v43  ;;  %v6214_v23 = vadd.f32 %v12413_v21, %v6181_v48 }
 0x77f   : > { %6602 = vmatmul.f32.gmra.mxu0 %v6601_v57  ;;  %v5975_v38 = vpop.f32.mrf.mxu2 }
 0x780   : > { %v6312_v32 = vmul.f32 %v6280_v40, %v15033_v8  ;;  %v5976_v58 = vadd.f32 %v5975_v38, %v12726_v60  ;;  %v6140_v13 = vpop.f32.mrf.mxu3  ;;  %v13999_v6 = vand.u32 4294901760, %v13024_v42 }
 0x782   : > { %v6137_v39 = vadd.f32 %v6136_v22, %v5976_v58  ;;  %v6608_v45 = vsub.f32 %v13024_v42, %v13999_v6  ;;  %v6344_v59 = vadd.f32 %v6312_v32, %v6214_v23  ;;  %v15036_v22 = vand.u32 4294901760, %v12746_v52  ;;  %v15037_v32 = vld [vmem:[#allocation82_spill] sm:$0xff] }
 0x783   : > { %v13033_v20 = vpop.f32.mrf.mxu1 }
 0x784   : > { %15034 = vst [vmem:[#allocation136_spill] sm:$0xff] %v13033_v20  ;;  %v6182_v26 = vmul.f32 %v12400_v54, %v6137_v39  ;;  %v6248_v57 = vmul.f32 %v12402_v9, %v6137_v39  ;;  %v13037_v48 = vpop.f32.mrf.mxu0  ;;  %6994 = vmatmul.f32.gmra.mxu2 %v12724_v51  ;;  %v6609_v60 = vand.u32 4294901760, %v6608_v45  ;;  %v13040_v40 = vand.u32 4294901760, %v6344_v59 }
 0x785   : > { %7207 = vmatmul.f32.gmra.mxu3 %v15036_v22 }
 0x786   : > { %15035 = vst [vmem:[#allocation113_spill] sm:$0xff] %v13040_v40  ;;  %v6281_v38 = vadd.f32 %v12407_v10, %v6248_v57  ;;  %6859 = vmatmul.f32.gmra.mxu1 %v13040_v40  ;;  %v13047_v23 = vsub.f32 %v6344_v59, %v13040_v40  ;;  %v6215_v39 = vadd.f32 %v12413_v21, %v6182_v26 }
 0x787   : > { %6610 = vmatmul.f32.gmra.mxu0 %v6609_v60  ;;  %v5979_v8 = vpop.f32.mrf.mxu2 }
 0x788   : > { %v6313_v58 = vmul.f32 %v6281_v38, %v15037_v32  ;;  %v5980_v51 = vadd.f32 %v5979_v8, %v12748_v16  ;;  %v6144_v45 = vpop.f32.mrf.mxu3  ;;  %v14002_v6 = vand.u32 4294901760, %v13047_v23 }
 0x78a   : > { %v6141_v20 = vadd.f32 %v6140_v13, %v5980_v51  ;;  %v6616_v57 = vsub.f32 %v13047_v23, %v14002_v6  ;;  %v6345_v22 = vadd.f32 %v6313_v58, %v6215_v39  ;;  %v15040_v13 = vand.u32 4294901760, %v12768_v19  ;;  %v15041_v58 = vld [vmem:[#allocation98_spill] sm:$0xff] }
 0x78b   : > { %v13056_v43 = vpop.f32.mrf.mxu1 }
 0x78c   : > { %15038 = vst [vmem:[#allocation85_spill] sm:$0xff] %v13056_v43  ;;  %v6183_v59 = vmul.f32 %v12400_v54, %v6141_v20  ;;  %v6249_v60 = vmul.f32 %v12402_v9, %v6141_v20  ;;  %v13060_v26 = vpop.f32.mrf.mxu0  ;;  %6999 = vmatmul.f32.gmra.mxu2 %v12746_v52  ;;  %v6617_v16 = vand.u32 4294901760, %v6616_v57  ;;  %v13063_v38 = vand.u32 4294901760, %v6345_v22 }
 0x78d   : > { %7213 = vmatmul.f32.gmra.mxu3 %v15040_v13 }
 0x78e   : > { %15039 = vst [vmem:[#allocation76_spill] sm:$0xff] %v13063_v38  ;;  %v6282_v8 = vadd.f32 %v12407_v10, %v6249_v60  ;;  %6863 = vmatmul.f32.gmra.mxu1 %v13063_v38  ;;  %v13070_v39 = vsub.f32 %v6345_v22, %v13063_v38  ;;  %v6216_v20 = vadd.f32 %v12413_v21, %v6183_v59 }
 0x78f   : > { %6618 = vmatmul.f32.gmra.mxu0 %v6617_v16  ;;  %v5983_v32 = vpop.f32.mrf.mxu2 }
 0x790   : > { %v6314_v51 = vmul.f32 %v6282_v8, %v15041_v58  ;;  %v5984_v52 = vadd.f32 %v5983_v32, %v12770_v55  ;;  %v6148_v57 = vpop.f32.mrf.mxu3  ;;  %v14005_v6 = vand.u32 4294901760, %v13070_v39 }
 0x792   : > { %v6145_v43 = vadd.f32 %v6144_v45, %v5984_v52  ;;  %v6624_v60 = vsub.f32 %v13070_v39, %v14005_v6  ;;  %v6346_v13 = vadd.f32 %v6314_v51, %v6216_v20  ;;  %v15043_v45 = vand.u32 4294901760, %v12792_v62  ;;  %v15044_v51 = vld [vmem:[#allocation157_spill] sm:$0xff] }
 0x793   : > { %v13079_v40 = vpop.f32.mrf.mxu1 }
 0x794   : > { %15042 = vst [vmem:[#allocation138_spill] sm:$0xff] %v13079_v40  ;;  %v6184_v22 = vmul.f32 %v12400_v54, %v6145_v43  ;;  %v6250_v16 = vmul.f32 %v12402_v9, %v6145_v43  ;;  %v13083_v59 = vpop.f32.mrf.mxu0  ;;  %7004 = vmatmul.f32.gmra.mxu2 %v12768_v19  ;;  %v6625_v55 = vand.u32 4294901760, %v6624_v60  ;;  %v13086_v8 = vand.u32 4294901760, %v6346_v13 }
 0x795   : > { %7219 = vmatmul.f32.gmra.mxu3 %v15043_v45 }
 0x796   : > { %v6283_v32 = vadd.f32 %v12407_v10, %v6250_v16  ;;  %6867 = vmatmul.f32.gmra.mxu1 %v13086_v8  ;;  %v13093_v20 = vsub.f32 %v6346_v13, %v13086_v8  ;;  %v6217_v43 = vadd.f32 %v12413_v21, %v6184_v22 }
 0x797   : > { %6626 = vmatmul.f32.gmra.mxu0 %v6625_v55  ;;  %v5987_v58 = vpop.f32.mrf.mxu2 }
 0x798   : > { %v6315_v52 = vmul.f32 %v6283_v32, %v15044_v51  ;;  %v5988_v19 = vadd.f32 %v5987_v58, %v12794_v4  ;;  %v7124_v60 = vpop.f32.mrf.mxu3  ;;  %v6631_v6 = vand.u32 4294901760, %v13093_v20  ;;  %v6753_v58 = vadd.f32 %v12779_v27, %v12807_v31 }
 0x79a   : > { %v6149_v40 = vadd.f32 %v6148_v57, %v5988_v19  ;;  %v6632_v16 = vsub.f32 %v13093_v20, %v6631_v6  ;;  %v6347_v45 = vadd.f32 %v6315_v52, %v6217_v43  ;;  %v15045_v57 = vand.u32 4294901760, %v12817_v41 }
 0x79b   : > { %v13102_v38 = vpop.f32.mrf.mxu1 }
 0x79c   : > { %v6185_v13 = vmul.f32 %v12400_v54, %v6149_v40  ;;  %v6251_v55 = vmul.f32 %v12402_v9, %v6149_v40  ;;  %v13106_v22 = vpop.f32.mrf.mxu0  ;;  %7009 = vmatmul.f32.gmra.mxu2 %v12792_v62  ;;  %v6633_v4 = vand.u32 4294901760, %v6632_v16  ;;  %v13109_v32 = vand.u32 4294901760, %v6347_v45  ;;  %v15046_v40 = vld [vmem:[#allocation12_spill] sm:$0xff] }
 0x79d   : > { %7225 = vmatmul.f32.gmra.mxu3 %v15045_v57  ;;  %v6757_v57 = vadd.f32 %v12803_v15, %v12830_v61 }
 0x79e   : > { %v6284_v43 = vadd.f32 %v12407_v10, %v6251_v55  ;;  %6871 = vmatmul.f32.gmra.mxu1 %v13109_v32  ;;  %v13118_v54 = vsub.f32 %v6347_v45, %v13109_v32  ;;  %v6218_v62 = vadd.f32 %v12413_v21, %v6185_v13 }
 0x79f   : > { %6634 = vmatmul.f32.gmra.mxu0 %v6633_v4  ;;  %v6930_v9 = vpop.f32.mrf.mxu2  ;;  %v15047_v4 = vand.u32 4294901760, %v12840_v37 }
 0x7a0   : > { %v6316_v51 = vmul.f32 %v6284_v43, %v15046_v40  ;;  %v6931_v52 = vadd.f32 %v6930_v9, %v6753_v58  ;;  %v7130_v19 = vpop.f32.mrf.mxu3  ;;  %v6639_v16 = vand.u32 4294901760, %v13118_v54 }
 0x7a2   : > { %v6640_v27 = vsub.f32 %v13118_v54, %v6639_v16  ;;  %v6348_v10 = vadd.f32 %v6316_v51, %v6218_v62  ;;  %v13126_v31 = vadd.f32 %v7124_v60, %v6931_v52  ;;  %v15048_v52 = vand.u32 4294901760, %v12863_v25 }
 0x7a3   : > { %v13128_v55 = vpop.f32.mrf.mxu1 }
 0x7a4   : > { %v13130_v45 = vpop.f32.mrf.mxu0  ;;  %7014 = vmatmul.f32.gmra.mxu2 %v12817_v41  ;;  %v6641_v21 = vand.u32 4294901760, %v6640_v27  ;;  %v13133_v13 = vand.u32 4294901760, %v6348_v10  ;;  %v6761_v27 = vadd.f32 %v12826_v2, %v12853_v34  ;;  %v6765_v2 = vadd.f32 %v12849_v47, %v12876_v11 }
 0x7a5   : > { %7231 = vmatmul.f32.gmra.mxu3 %v15047_v4  ;;  %v6769_v47 = vadd.f32 %v12872_v56, %v12899_v7  ;;  %v6773_v56 = vadd.f32 %v12895_v50, %v12922_v44  ;;  %v6777_v50 = vadd.f32 %v12918_v29, %v12945_v1  ;;  %v6781_v29 = vadd.f32 %v12941_v30, %v12968_v14 }
 0x7a6   : > { %6875 = vmatmul.f32.gmra.mxu1 %v13133_v13  ;;  %v13141_v60 = vsub.f32 %v6348_v10, %v13133_v13  ;;  %v15055_v14 = vand.u32 4294901760, %v13024_v42 }
 0x7a7   : > { %6642 = vmatmul.f32.gmra.mxu0 %v6641_v21  ;;  %v6935_v58 = vpop.f32.mrf.mxu2 }
 0x7a8   : > { %v6936_v43 = vadd.f32 %v6935_v58, %v6757_v57  ;;  %v7136_v9 = vpop.f32.mrf.mxu3  ;;  %v6647_v41 = vand.u32 4294901760, %v13141_v60 }
 0x7aa   : > { %v6648_v62 = vsub.f32 %v13141_v60, %v6647_v41  ;;  %v13147_v40 = vadd.f32 %v7130_v19, %v6936_v43 }
 0x7ab   : > { %v13149_v51 = vpop.f32.mrf.mxu1 }
 0x7ac   : > { %v13151_v15 = vpop.f32.mrf.mxu0  ;;  %7019 = vmatmul.f32.gmra.mxu2 %v12840_v37  ;;  %v6649_v61 = vand.u32 4294901760, %v6648_v62  ;;  %v15049_v37 = vand.u32 4294901760, %v12886_v5 }
 0x7ad   : > { %7237 = vmatmul.f32.gmra.mxu3 %v15048_v52 }
 0x7ae   : > { %7539 = vmatmul.f32.vlgmr.msrb.gmra.mxu1 %v12437_v24 }
 0x7af   : > { %6650 = vmatmul.f32.gmra.mxu0 %v6649_v61  ;;  %v6940_v10 = vpop.f32.mrf.mxu2 }
 0x7b0   : > { %v6941_v21 = vadd.f32 %v6940_v10, %v6761_v27  ;;  %v7142_v19 = vpop.f32.mrf.mxu3 }
 0x7b2   : > { %v13159_v4 = vadd.f32 %v7136_v9, %v6941_v21 }
 0x7b3   : > { %v13161_v57 = vpop.f32.mrf.mxu1 }
 0x7b4   : > { %v13163_v58 = vpop.f32.mrf.mxu0  ;;  %7024 = vmatmul.f32.gmra.mxu2 %v12863_v25  ;;  %v15050_v25 = vand.u32 4294901760, %v12909_v35 }
 0x7b5   : > { %7243 = vmatmul.f32.gmra.mxu3 %v15049_v37 }
 0x7b6   : > { %7543 = vmatmul.f32.gmra.mxu1 %v12464_v46 }
 0x7b7   : > { %7378 = vmatmul.f32.vlgmr.msrb.gmra.mxu0 %v12437_v24  ;;  %v6945_v34 = vpop.f32.mrf.mxu2 }
 0x7b8   : > { %v6946_v43 = vadd.f32 %v6945_v34, %v6765_v2  ;;  %v7148_v62 = vpop.f32.mrf.mxu3 }
 0x7ba   : > { %v13172_v9 = vadd.f32 %v7142_v19, %v6946_v43  ;;  %v15051_v19 = vand.u32 4294901760, %v12932_v49 }
 0x7bb   : > { %v13174_v61 = vpop.f32.mrf.mxu1 }
 0x7bc   : > { %v13176_v52 = vpop.f32.mrf.mxu0  ;;  %7029 = vmatmul.f32.gmra.mxu2 %v12886_v5 }
 0x7bd   : > { %7249 = vmatmul.f32.gmra.mxu3 %v15050_v25 }
 0x7be   : > { %7547 = vmatmul.f32.gmra.mxu1 %v12485_v17 }
 0x7bf   : > { %7382 = vmatmul.f32.gmra.mxu0 %v12464_v46  ;;  %v6950_v24 = vpop.f32.mrf.mxu2 }
 0x7c0   : > { %v6951_v11 = vadd.f32 %v6950_v24, %v6769_v47  ;;  %v7154_v5 = vpop.f32.mrf.mxu3 }
 0x7c2   : > { %v13185_v27 = vadd.f32 %v7148_v62, %v6951_v11 }
 0x7c3   : > { %v13187_v10 = vpop.f32.mrf.mxu1 }
 0x7c4   : > { %v13189_v21 = vpop.f32.mrf.mxu0  ;;  %7034 = vmatmul.f32.gmra.mxu2 %v12909_v35  ;;  %v15052_v35 = vand.u32 4294901760, %v12955_v33 }
 0x7c5   : > { %7255 = vmatmul.f32.gmra.mxu3 %v15051_v19 }
 0x7c6   : > { %7551 = vmatmul.f32.gmra.mxu1 %v12506_v28 }
 0x7c7   : > { %7386 = vmatmul.f32.gmra.mxu0 %v12485_v17  ;;  %v6955_v46 = vpop.f32.mrf.mxu2 }
 0x7c8   : > { %v6956_v7 = vadd.f32 %v6955_v46, %v6773_v56  ;;  %v7160_v44 = vpop.f32.mrf.mxu3  ;;  %v15056_v56 = vld [vmem:[#allocation161_spill] sm:$0xff] }
 0x7ca   : > { %v13198_v37 = vadd.f32 %v7154_v5, %v6956_v7  ;;  %v15058_v7 = vld [vmem:[#allocation159_spill] sm:$0xff] }
 0x7cb   : > { %v13200_v2 = vpop.f32.mrf.mxu1 }
 0x7cc   : > { %v13202_v34 = vpop.f32.mrf.mxu0  ;;  %7039 = vmatmul.f32.gmra.mxu2 %v12932_v49  ;;  %v15053_v49 = vand.u32 4294901760, %v12978_v3 }
 0x7cd   : > { %7261 = vmatmul.f32.gmra.mxu3 %v15052_v35 }
 0x7ce   : > { %7555 = vmatmul.f32.gmra.mxu1 %v12527_v36 }
 0x7cf   : > { %7390 = vmatmul.f32.gmra.mxu0 %v12506_v28  ;;  %v6960_v17 = vpop.f32.mrf.mxu2 }
 0x7d0   : > { %v6961_v43 = vadd.f32 %v6960_v17, %v6777_v50  ;;  %v7166_v24 = vpop.f32.mrf.mxu3  ;;  %v15060_v50 = vld [vmem:[#allocation135_spill] sm:$0xff]  ;;  %v15061_v17 = vld [vmem:[#allocation54_spill] sm:$0xff] }
 0x7d2   : > { %v13211_v62 = vadd.f32 %v7160_v44, %v6961_v43 }
 0x7d3   : > { %v13213_v25 = vpop.f32.mrf.mxu1 }
 0x7d4   : > { %v13215_v47 = vpop.f32.mrf.mxu0  ;;  %7044 = vmatmul.f32.gmra.mxu2 %v12955_v33  ;;  %v15054_v33 = vand.u32 4294901760, %v13001_v0 }
 0x7d5   : > { %7267 = vmatmul.f32.gmra.mxu3 %v15053_v49  ;;  %v15063_v49 = vld [vmem:[#allocation108_spill] sm:$0xff] }
 0x7d6   : > { %7559 = vmatmul.f32.gmra.mxu1 %v12548_v12 }
 0x7d7   : > { %7394 = vmatmul.f32.gmra.mxu0 %v12527_v36  ;;  %v6965_v28 = vpop.f32.mrf.mxu2 }
 0x7d8   : > { %v6966_v1 = vadd.f32 %v6965_v28, %v6781_v29  ;;  %v15065_v29 = vld [vmem:[#allocation4_spill] sm:$0xff]  ;;  %v15068_v28 = vld [vmem:[#allocation57_spill] sm:$0xff] }
 0x7da   : > { %v13224_v11 = vadd.f32 %v7166_v24, %v6966_v1 }
 0x7db   : > { %v13226_v5 = vpop.f32.mrf.mxu1 }
 0x7dc   : > { %v13228_v19 = vpop.f32.mrf.mxu0  ;;  %7049 = vmatmul.f32.gmra.mxu2 %v12978_v3 }
 0x7dd   : > { %7273 = vmatmul.f32.gmra.mxu3 %v15054_v33 }
 0x7de   : > { %7563 = vmatmul.f32.gmra.mxu1 %v12569_v53 }
 0x7df   : > { %7398 = vmatmul.f32.gmra.mxu0 %v12548_v12  ;;  %v15057_v12 = vand.u32 4294901760, %v13047_v23 }
 0x7e3   : > { %v13235_v30 = vpop.f32.mrf.mxu1 }
 0x7e4   : > { %v13237_v36 = vpop.f32.mrf.mxu0  ;;  %7054 = vmatmul.f32.gmra.mxu2 %v13001_v0 }
 0x7e5   : > { %7279 = vmatmul.f32.gmra.mxu3 %v15055_v14  ;;  %v15074_v14 = vld [vmem:[#allocation106_spill] sm:$0xff] }
 0x7e6   : > { %7567 = vmatmul.f32.gmra.mxu1 %v15056_v56 }
 0x7e7   : > { %7402 = vmatmul.f32.gmra.mxu0 %v12569_v53  ;;  %v15059_v53 = vand.u32 4294901760, %v13070_v39 }
 0x7eb   : > { %v13244_v3 = vpop.f32.mrf.mxu1 }
 0x7ec   : > { %v13246_v46 = vpop.f32.mrf.mxu0  ;;  %7059 = vmatmul.f32.gmra.mxu2 %v13024_v42 }
 0x7ed   : > { %7285 = vmatmul.f32.gmra.mxu3 %v15057_v12  ;;  %v15076_v12 = vld [vmem:[#allocation25_spill] sm:$0xff] }
 0x7ee   : > { %7571 = vmatmul.f32.gmra.mxu1 %v15058_v7 }
 0x7ef   : > { %7406 = vmatmul.f32.gmra.mxu0 %v15056_v56 }
 0x7f3   : > { %v13253_v0 = vpop.f32.mrf.mxu1 }
 0x7f4   : > { %v13255_v35 = vpop.f32.mrf.mxu0  ;;  %7064 = vmatmul.f32.gmra.mxu2 %v13047_v23 }
 0x7f5   : > { %7291 = vmatmul.f32.gmra.mxu3 %v15059_v53 }
 0x7f6   : > { %7575 = vmatmul.f32.gmra.mxu1 %v15060_v50 }
 0x7f7   : > { %7410 = vmatmul.f32.gmra.mxu0 %v15058_v7 }
 0x7fb   : > { %v13262_v42 = vpop.f32.mrf.mxu1 }
 0x7fc   : > { %v13264_v44 = vpop.f32.mrf.mxu0  ;;  %7069 = vmatmul.f32.gmra.mxu2 %v13070_v39 }
 0x7fd   : > { %7297 = vmatmul.f32.gmra.mxu3 %v6631_v6 }
 0x7fe   : > { %7579 = vmatmul.f32.gmra.mxu1 %v15061_v17 }
 0x7ff   : > { %7414 = vmatmul.f32.gmra.mxu0 %v15060_v50 }
 0x803   : > { %v13271_v23 = vpop.f32.mrf.mxu1 }
 0x804   : > { %15062 = vst [vmem:[#allocation16_spill] sm:$0xff] %v13271_v23  ;;  %v13273_v43 = vpop.f32.mrf.mxu0  ;;  %7074 = vmatmul.f32.gmra.mxu2 %v13093_v20 }
 0x805   : > { %7303 = vmatmul.f32.gmra.mxu3 %v6639_v16 }
 0x806   : > { %7583 = vmatmul.f32.gmra.mxu1 %v15063_v49 }
 0x807   : > { %7418 = vmatmul.f32.gmra.mxu0 %v15061_v17  ;;  %v15077_v17 = vld [vmem:[#allocation71_spill] sm:$0xff] }
 0x80b   : > { %v13280_v39 = vpop.f32.mrf.mxu1 }
 0x80c   : > { %15064 = vst [vmem:[#allocation83_spill] sm:$0xff] %v13280_v39  ;;  %v13282_v6 = vpop.f32.mrf.mxu0  ;;  %7079 = vmatmul.f32.gmra.mxu2 %v13118_v54 }
 0x80d   : > { %7309 = vmatmul.f32.gmra.mxu3 %v6647_v41  ;;  %v15071_v41 = vld [vmem:[#allocation73_spill] sm:$0xff] }
 0x80e   : > { %7587 = vmatmul.f32.gmra.mxu1 %v15065_v29 }
 0x80f   : > { %7422 = vmatmul.f32.gmra.mxu0 %v15063_v49 }
 0x813   : > { %v13289_v20 = vpop.f32.mrf.mxu1 }
 0x814   : > { %15066 = vst [vmem:[#allocation65_spill] sm:$0xff] %v13289_v20  ;;  %v13291_v16 = vpop.f32.mrf.mxu0  ;;  %7084 = vmatmul.f32.gmra.mxu2 %v13141_v60 }
 0x815   : > { %15067 = vst [vmem:[#allocation95_spill] sm:$0xff] %v13291_v16 }
 0x816   : > { %7591 = vmatmul.f32.gmra.mxu1 %v15068_v28 }
 0x817   : > { %7426 = vmatmul.f32.gmra.mxu0 %v15065_v29 }
 0x81b   : > { %v13296_v1 = vpop.f32.mrf.mxu1 }
 0x81c   : > { %15069 = vst [vmem:[#allocation92_spill] sm:$0xff] %v13296_v1  ;;  %v13298_v54 = vpop.f32.mrf.mxu0 }
 0x81d   : > { %15070 = vst [vmem:[#allocation48_spill] sm:$0xff] %v13298_v54  ;;  %v15085_v54 = vld [vmem:[#allocation31_spill] sm:$0xff] }
 0x81e   : > { %7595 = vmatmul.f32.gmra.mxu1 %v15071_v41 }
 0x81f   : > { %7430 = vmatmul.f32.gmra.mxu0 %v15068_v28 }
 0x823   : > { %v13302_v24 = vpop.f32.mrf.mxu1 }
 0x824   : > { %15072 = vst [vmem:[#allocation111_spill] sm:$0xff] %v13302_v24  ;;  %v13304_v33 = vpop.f32.mrf.mxu0 }
 0x825   : > { %15073 = vst [vmem:[#allocation20_spill] sm:$0xff] %v13304_v33 }
 0x826   : > { %7599 = vmatmul.f32.gmra.mxu1 %v15074_v14 }
 0x827   : > { %7434 = vmatmul.f32.gmra.mxu0 %v15071_v41 }
 0x82b   : > { %v7540_v60 = vpop.f32.mrf.mxu1 }
 0x82c   : > { %v13308_v56 = vpop.f32.mrf.mxu0 }
 0x82d   : > { %15075 = vst [vmem:[#allocation141_spill] sm:$0xff] %v13308_v56  ;;  %v7172_v56 = vpop.f32.mrf.mxu3 }
 0x82e   : > { %7603 = vmatmul.f32.gmra.mxu1 %v15076_v12 }
 0x82f   : > { %7438 = vmatmul.f32.gmra.mxu0 %v15074_v14  ;;  %v15078_v14 = vld [vmem:[#allocation30_spill] sm:$0xff] }
 0x833   : > { %v7544_v7 = vpop.f32.mrf.mxu1 }
 0x834   : > { %v7379_v53 = vpop.f32.mrf.mxu0 }
 0x835   : > { %v7380_v50 = vadd.f32 %v7379_v53, %v13126_v31  ;;  %v6970_v31 = vpop.f32.mrf.mxu2 }
 0x836   : > { %7607 = vmatmul.f32.gmra.mxu1 %v15077_v17 }
 0x837   : > { %v7541_v49 = vadd.f32 %v7540_v60, %v7380_v50  ;;  %7442 = vmatmul.f32.gmra.mxu0 %v15076_v12  ;;  %v15079_v50 = vld [vmem:[#allocation102_spill] sm:$0xff] }
 0x839   : > { %7668 = vst.msk [vmem:[%s13318_s14] sm:$0xff] %vm7667_vm0, %v7541_v49 }
 0x83b   : > { %v7548_v29 = vpop.f32.mrf.mxu1 }
 0x83c   : > { %v7383_v28 = vpop.f32.mrf.mxu0 }
 0x83d   : > { %v7384_v41 = vadd.f32 %v7383_v28, %v13147_v40  ;;  %v6975_v49 = vpop.f32.mrf.mxu2  ;;  %v7178_v28 = vpop.f32.mrf.mxu3 }
 0x83e   : > { %7611 = vmatmul.f32.gmra.mxu1 %v15078_v14 }
 0x83f   : > { %v7545_v53 = vadd.f32 %v7544_v7, %v7384_v41  ;;  %7446 = vmatmul.f32.gmra.mxu0 %v15077_v17  ;;  %v15080_v41 = vld [vmem:[#allocation43_spill] sm:$0xff] }
 0x841   : > { %7669 = vst.msk [vmem:[%s13318_s14 + $0x8] sm:$0xff] %vm7667_vm0, %v7545_v53 }
 0x843   : > { %v7552_v24 = vpop.f32.mrf.mxu1 }
 0x844   : > { %v7387_v60 = vpop.f32.mrf.mxu0 }
 0x845   : > { %v7388_v12 = vadd.f32 %v7387_v60, %v13159_v4  ;;  %v6980_v4 = vpop.f32.mrf.mxu2 }
 0x846   : > { %7615 = vmatmul.f32.gmra.mxu1 %v15079_v50 }
 0x847   : > { %v7549_v1 = vadd.f32 %v7548_v29, %v7388_v12  ;;  %7450 = vmatmul.f32.gmra.mxu0 %v15078_v14 }
 0x849   : > { %7670 = vst.msk [vmem:[%s13318_s14 + $0x10] sm:$0xff] %vm7667_vm0, %v7549_v1  ;;  %v15081_v1 = vld [vmem:[#allocation126_spill] sm:$0xff] }
 0x84b   : > { %v7556_v40 = vpop.f32.mrf.mxu1 }
 0x84c   : > { %v7391_v7 = vpop.f32.mrf.mxu0 }
 0x84d   : > { %v7392_v17 = vadd.f32 %v7391_v7, %v13172_v9  ;;  %v7184_v9 = vpop.f32.mrf.mxu3  ;;  %v6985_v7 = vpop.f32.mrf.mxu2 }
 0x84e   : > { %7619 = vmatmul.f32.gmra.mxu1 %v15080_v41 }
 0x84f   : > { %v7553_v53 = vadd.f32 %v7552_v24, %v7392_v17  ;;  %7454 = vmatmul.f32.gmra.mxu0 %v15079_v50 }
 0x851   : > { %7671 = vst.msk [vmem:[%s13318_s14 + $0x18] sm:$0xff] %vm7667_vm0, %v7553_v53  ;;  %v15082_v53 = vld [vmem:[#allocation123_spill] sm:$0xff] }
 0x853   : > { %v7560_v29 = vpop.f32.mrf.mxu1 }
 0x854   : > { %v7395_v60 = vpop.f32.mrf.mxu0 }
 0x855   : > { %v7396_v14 = vadd.f32 %v7395_v60, %v13185_v27  ;;  %v7190_v27 = vpop.f32.mrf.mxu3 }
 0x856   : > { %7623 = vmatmul.f32.gmra.mxu1 %v15081_v1 }
 0x857   : > { %v7557_v12 = vadd.f32 %v7556_v40, %v7396_v14  ;;  %7458 = vmatmul.f32.gmra.mxu0 %v15080_v41  ;;  %v6990_v41 = vpop.f32.mrf.mxu2 }
 0x859   : > { %7672 = vst.msk [vmem:[%s13318_s14 + $0x20] sm:$0xff] %vm7667_vm0, %v7557_v12  ;;  %v15083_v12 = vld [vmem:[#allocation11_spill] sm:$0xff] }
 0x85b   : > { %v7564_v24 = vpop.f32.mrf.mxu1 }
 0x85c   : > { %v7399_v50 = vpop.f32.mrf.mxu0 }
 0x85d   : > { %v7400_v17 = vadd.f32 %v7399_v50, %v13198_v37 }
 0x85e   : > { %7627 = vmatmul.f32.gmra.mxu1 %v15082_v53 }
 0x85f   : > { %v7561_v33 = vadd.f32 %v7560_v29, %v7400_v17  ;;  %7462 = vmatmul.f32.gmra.mxu0 %v15081_v1  ;;  %v7196_v29 = vpop.f32.mrf.mxu3  ;;  %v15084_v1 = vld [vmem:[#allocation19_spill] sm:$0xff] }
 0x861   : > { %7673 = vst.msk [vmem:[%s13318_s14 + $0x28] sm:$0xff] %vm7667_vm0, %v7561_v33  ;;  %v6785_v33 = vadd.f32 %v15084_v1, %v12991_v63  ;;  %v15087_v1 = vld [vmem:[#allocation77_spill] sm:$0xff] }
 0x863   : > { %v7568_v40 = vpop.f32.mrf.mxu1  ;;  %v6971_v39 = vadd.f32 %v6970_v31, %v6785_v33 }
 0x864   : > { %v7403_v60 = vpop.f32.mrf.mxu0 }
 0x865   : > { %v7404_v14 = vadd.f32 %v7403_v60, %v13211_v62  ;;  %v6995_v62 = vpop.f32.mrf.mxu2 }
 0x866   : > { %7631 = vmatmul.f32.gmra.mxu1 %v15083_v12 }
 0x867   : > { %v7565_v20 = vadd.f32 %v7564_v24, %v7404_v14  ;;  %7466 = vmatmul.f32.gmra.mxu0 %v15082_v53  ;;  %v7173_v24 = vadd.f32 %v7172_v56, %v6971_v39  ;;  %v15086_v14 = vld [vmem:[#allocation40_spill] sm:$0xff]  ;;  %v7202_v63 = vpop.f32.mrf.mxu3  ;;  %v15088_v56 = vld [vmem:[#allocation50_spill] sm:$0xff] }
 0x868   : > { %v6789_v16 = vadd.f32 %v15086_v14, %v13014_v18  ;;  %v6793_v33 = vadd.f32 %v15088_v56, %v13037_v48  ;;  %v15089_v18 = vld [vmem:[#allocation84_spill] sm:$0xff]  ;;  %v15091_v48 = vld [vmem:[#allocation113_spill] sm:$0xff] }
 0x869   : > { %7674 = vst.msk [vmem:[%s13318_s14 + $0x30] sm:$0xff] %vm7667_vm0, %v7565_v20 }
 0x86b   : > { %v7572_v37 = vpop.f32.mrf.mxu1 }
 0x86c   : > { %v7407_v50 = vpop.f32.mrf.mxu0 }
 0x86d   : > { %v7408_v17 = vadd.f32 %v7407_v50, %v13224_v11  ;;  %v6976_v11 = vadd.f32 %v6975_v49, %v6789_v16 }
 0x86e   : > { %7635 = vmatmul.f32.gmra.mxu1 %v15085_v54 }
 0x86f   : > { %v7569_v60 = vadd.f32 %v7568_v40, %v7408_v17  ;;  %7470 = vmatmul.f32.gmra.mxu0 %v15083_v12  ;;  %v7000_v40 = vpop.f32.mrf.mxu2  ;;  %v7179_v12 = vadd.f32 %v7178_v28, %v6976_v11 }
 0x871   : > { %7675 = vst.msk [vmem:[%s13318_s14 + $0x38] sm:$0xff] %vm7667_vm0, %v7569_v60  ;;  %v6981_v60 = vadd.f32 %v6980_v4, %v6793_v33 }
 0x873   : > { %v7576_v20 = vpop.f32.mrf.mxu1 }
 0x874   : > { %v7411_v53 = vpop.f32.mrf.mxu0 }
 0x875   : > { %v7412_v23 = vadd.f32 %v7411_v53, %v7173_v24 }
 0x876   : > { %7639 = vmatmul.f32.gmra.mxu1 %v15087_v1 }
 0x877   : > { %v7573_v31 = vadd.f32 %v7572_v37, %v7412_v23  ;;  %7474 = vmatmul.f32.gmra.mxu0 %v15085_v54  ;;  %v7208_v23 = vpop.f32.mrf.mxu3  ;;  %v7005_v16 = vpop.f32.mrf.mxu2  ;;  %v7185_v54 = vadd.f32 %v7184_v9, %v6981_v60  ;;  %v15090_v37 = vld [vmem:[#allocation136_spill] sm:$0xff]  ;;  %v15092_v9 = vld [vmem:[#allocation85_spill] sm:$0xff] }
 0x878   : > { %v6797_v53 = vadd.f32 %v15090_v37, %v13060_v26  ;;  %v15093_v26 = vld [vmem:[#allocation76_spill] sm:$0xff] }
 0x879   : > { %7676 = vst.msk [vmem:[%s13318_s14 + $0x40] sm:$0xff] %vm7667_vm0, %v7573_v31 }
 0x87a   : > { %v6986_v11 = vadd.f32 %v6985_v7, %v6797_v53 }
 0x87b   : > { %v7580_v50 = vpop.f32.mrf.mxu1 }
 0x87c   : > { %v7415_v39 = vpop.f32.mrf.mxu0 }
 0x87d   : > { %v7416_v17 = vadd.f32 %v7415_v39, %v7179_v12  ;;  %v6801_v39 = vadd.f32 %v15092_v9, %v13083_v59 }
 0x87e   : > { %7643 = vmatmul.f32.gmra.mxu1 %v15089_v18 }
 0x87f   : > { %v7577_v24 = vadd.f32 %v7576_v20, %v7416_v17  ;;  %7478 = vmatmul.f32.gmra.mxu0 %v15087_v1  ;;  %v7214_v4 = vpop.f32.mrf.mxu3  ;;  %v7191_v20 = vadd.f32 %v7190_v27, %v6986_v11  ;;  %v7010_v56 = vpop.f32.mrf.mxu2  ;;  %v6991_v17 = vadd.f32 %v6990_v41, %v6801_v39 }
 0x881   : > { %7677 = vst.msk [vmem:[%s13318_s14 + $0x48] sm:$0xff] %vm7667_vm0, %v7577_v24  ;;  %v7197_v7 = vadd.f32 %v7196_v29, %v6991_v17  ;;  %v15094_v24 = vld [vmem:[#allocation138_spill] sm:$0xff] }
 0x883   : > { %v7584_v49 = vpop.f32.mrf.mxu1 }
 0x884   : > { %v7419_v28 = vpop.f32.mrf.mxu0 }
 0x885   : > { %v7420_v14 = vadd.f32 %v7419_v28, %v7185_v54  ;;  %v6805_v54 = vadd.f32 %v15094_v24, %v13106_v22 }
 0x886   : > { %7647 = vmatmul.f32.gmra.mxu1 %v15091_v48 }
 0x887   : > { %v7581_v31 = vadd.f32 %v7580_v50, %v7420_v14  ;;  %7482 = vmatmul.f32.gmra.mxu0 %v15089_v18  ;;  %v7220_v18 = vpop.f32.mrf.mxu3  ;;  %v6996_v59 = vadd.f32 %v6995_v62, %v6805_v54  ;;  %v7015_v37 = vpop.f32.mrf.mxu2  ;;  %v6809_v14 = vadd.f32 %v13102_v38, %v13130_v45 }
 0x889   : > { %7678 = vst.msk [vmem:[%s13318_s14 + $0x50] sm:$0xff] %vm7667_vm0, %v7581_v31  ;;  %v7203_v41 = vadd.f32 %v7202_v63, %v6996_v59  ;;  %v7001_v22 = vadd.f32 %v7000_v40, %v6809_v14 }
 0x88b   : > { %v7588_v1 = vpop.f32.mrf.mxu1 }
 0x88c   : > { %v7423_v12 = vpop.f32.mrf.mxu0 }
 0x88d   : > { %v7424_v33 = vadd.f32 %v7423_v12, %v7191_v20  ;;  %v7209_v20 = vadd.f32 %v7208_v23, %v7001_v22  ;;  %v6813_v12 = vadd.f32 %v13128_v55, %v13151_v15 }
 0x88e   : > { %7651 = vmatmul.f32.gmra.mxu1 %v15093_v26 }
 0x88f   : > { %v7585_v60 = vadd.f32 %v7584_v49, %v7424_v33  ;;  %7486 = vmatmul.f32.gmra.mxu0 %v15091_v48  ;;  %v7226_v11 = vpop.f32.mrf.mxu3  ;;  %v7020_v31 = vpop.f32.mrf.mxu2  ;;  %v7006_v38 = vadd.f32 %v7005_v16, %v6813_v12 }
 0x891   : > { %7679 = vst.msk [vmem:[%s13318_s14 + $0x58] sm:$0xff] %vm7667_vm0, %v7585_v60  ;;  %v7215_v39 = vadd.f32 %v7214_v4, %v7006_v38  ;;  %v6821_v4 = vadd.f32 %v13161_v57, %v13176_v52 }
 0x893   : > { %v7592_v50 = vpop.f32.mrf.mxu1  ;;  %v7016_v24 = vadd.f32 %v7015_v37, %v6821_v4 }
 0x894   : > { %v7427_v27 = vpop.f32.mrf.mxu0 }
 0x895   : > { %v7428_v28 = vadd.f32 %v7427_v27, %v7197_v7 }
 0x896   : > { %7655 = vmatmul.f32.gmra.mxu1 %v13086_v8 }
 0x897   : > { %v7589_v53 = vadd.f32 %v7588_v1, %v7428_v28  ;;  %7490 = vmatmul.f32.gmra.mxu0 %v15093_v26  ;;  %v7232_v40 = vpop.f32.mrf.mxu3  ;;  %v6817_v26 = vadd.f32 %v13149_v51, %v13163_v58  ;;  %v7227_v51 = vadd.f32 %v7226_v11, %v7016_v24 }
 0x899   : > { %7680 = vst.msk [vmem:[%s13318_s14 + $0x60] sm:$0xff] %vm7667_vm0, %v7589_v53  ;;  %v7011_v15 = vadd.f32 %v7010_v56, %v6817_v26  ;;  %v6841_v26 = vadd.f32 %v13226_v5, %v13237_v36 }
 0x89b   : > { %v7596_v49 = vpop.f32.mrf.mxu1 }
 0x89c   : > { %v7431_v29 = vpop.f32.mrf.mxu0 }
 0x89d   : > { %v7432_v48 = vadd.f32 %v7431_v29, %v7203_v41 }
 0x89e   : > { %7659 = vmatmul.f32.gmra.mxu1 %v13109_v32 }
 0x89f   : > { %v7593_v62 = vadd.f32 %v7592_v50, %v7432_v48  ;;  %7494 = vmatmul.f32.gmra.mxu0 %v13086_v8  ;;  %v7025_v8 = vpop.f32.mrf.mxu2  ;;  %v7238_v16 = vpop.f32.mrf.mxu3 }
 0x8a1   : > { %7681 = vst.msk [vmem:[%s13318_s14 + $0x68] sm:$0xff] %vm7667_vm0, %v7593_v62 }
 0x8a3   : > { %v7600_v1 = vpop.f32.mrf.mxu1 }
 0x8a4   : > { %v7435_v63 = vpop.f32.mrf.mxu0 }
 0x8a5   : > { %v7436_v9 = vadd.f32 %v7435_v63, %v7209_v20 }
 0x8a6   : > { %7663 = vmatmul.f32.gmra.mxu1 %v13133_v13 }
 0x8a7   : > { %v7597_v45 = vadd.f32 %v7596_v49, %v7436_v9  ;;  %7498 = vmatmul.f32.gmra.mxu0 %v13109_v32  ;;  %v7221_v32 = vadd.f32 %v7220_v18, %v7011_v15  ;;  %v7030_v50 = vpop.f32.mrf.mxu2  ;;  %v7244_v56 = vpop.f32.mrf.mxu3  ;;  %v6825_v18 = vadd.f32 %v13174_v61, %v13189_v21  ;;  %v6829_v49 = vadd.f32 %v13187_v10, %v13202_v34 }
 0x8a9   : > { %7682 = vst.msk [vmem:[%s13318_s14 + $0x70] sm:$0xff] %vm7667_vm0, %v7597_v45  ;;  %v7021_v59 = vadd.f32 %v7020_v31, %v6825_v18  ;;  %v7026_v48 = vadd.f32 %v7025_v8, %v6829_v49  ;;  %v6833_v31 = vadd.f32 %v13200_v2, %v13215_v47  ;;  %v6837_v45 = vadd.f32 %v13213_v25, %v13228_v19 }
 0x8ab   : > { %v7604_v33 = vpop.f32.mrf.mxu1  ;;  %v7233_v57 = vadd.f32 %v7232_v40, %v7021_v59  ;;  %v7239_v61 = vadd.f32 %v7238_v16, %v7026_v48 }
 0x8ac   : > { %v7439_v23 = vpop.f32.mrf.mxu0 }
 0x8ad   : > { %v7440_v55 = vadd.f32 %v7439_v23, %v7215_v39 }
 0x8af   : > { %v7601_v17 = vadd.f32 %v7600_v1, %v7440_v55  ;;  %7502 = vmatmul.f32.gmra.mxu0 %v13133_v13  ;;  %v7035_v53 = vpop.f32.mrf.mxu2  ;;  %v7250_v14 = vpop.f32.mrf.mxu3  ;;  %v7031_v1 = vadd.f32 %v7030_v50, %v6833_v31 }
 0x8b0   : > { %v7036_v8 = vadd.f32 %v7035_v53, %v6837_v45  ;;  %v6853_v53 = vadd.f32 %v13253_v0, %v13264_v44 }
 0x8b1   : > { %7683 = vst.msk [vmem:[%s13318_s14 + $0x78] sm:$0xff] %vm7667_vm0, %v7601_v17  ;;  %v7245_v34 = vadd.f32 %v7244_v56, %v7031_v1 }
 0x8b2   : > { %v7251_v47 = vadd.f32 %v7250_v14, %v7036_v8  ;;  %v6857_v14 = vadd.f32 %v13262_v42, %v13273_v43 }
 0x8b3   : > { %v7608_v60 = vpop.f32.mrf.mxu1 }
 0x8b4   : > { %v7443_v7 = vpop.f32.mrf.mxu0 }
 0x8b5   : > { %v7444_v27 = vadd.f32 %v7443_v7, %v7221_v32  ;;  %v6845_v7 = vadd.f32 %v13235_v30, %v13246_v46 }
 0x8b7   : > { %v7605_v54 = vadd.f32 %v7604_v33, %v7444_v27  ;;  %v7040_v22 = vpop.f32.mrf.mxu2  ;;  %v7256_v12 = vpop.f32.mrf.mxu3 }
 0x8b8   : > { %v7041_v17 = vadd.f32 %v7040_v22, %v6841_v26 }
 0x8b9   : > { %7684 = vst.msk [vmem:[%s13318_s14 + $0x80] sm:$0xff] %vm7667_vm0, %v7605_v54 }
 0x8ba   : > { %v7257_v25 = vadd.f32 %v7256_v12, %v7041_v17 }
 0x8bb   : > { %v7612_v58 = vpop.f32.mrf.mxu1 }
 0x8bc   : > { %v7447_v13 = vpop.f32.mrf.mxu0 }
 0x8bd   : > { %v7448_v28 = vadd.f32 %v7447_v13, %v7227_v51  ;;  %v6849_v51 = vadd.f32 %v13244_v3, %v13255_v35 }
 0x8bf   : > { %v7609_v41 = vadd.f32 %v7608_v60, %v7448_v28  ;;  %v7045_v10 = vpop.f32.mrf.mxu2  ;;  %v7262_v2 = vpop.f32.mrf.mxu3 }
 0x8c0   : > { %v7046_v50 = vadd.f32 %v7045_v10, %v6845_v7  ;;  %v15100_v7 = vld [vmem:[#allocation20_spill] sm:$0xff] }
 0x8c1   : > { %7685 = vst.msk [vmem:[%s13318_s14 + $0x88] sm:$0xff] %vm7667_vm0, %v7609_v41 }
 0x8c2   : > { %v7263_v5 = vadd.f32 %v7262_v2, %v7046_v50 }
 0x8c3   : > { %v7616_v52 = vpop.f32.mrf.mxu1 }
 0x8c4   : > { %v7451_v37 = vpop.f32.mrf.mxu0 }
 0x8c5   : > { %v7452_v29 = vadd.f32 %v7451_v37, %v7233_v57 }
 0x8c7   : > { %v7613_v11 = vadd.f32 %v7612_v58, %v7452_v29  ;;  %v7050_v55 = vpop.f32.mrf.mxu2  ;;  %v7268_v32 = vpop.f32.mrf.mxu3 }
 0x8c8   : > { %v7051_v13 = vadd.f32 %v7050_v55, %v6849_v51 }
 0x8c9   : > { %7686 = vst.msk [vmem:[%s13318_s14 + $0x90] sm:$0xff] %vm7667_vm0, %v7613_v11 }
 0x8ca   : > { %v7269_v30 = vadd.f32 %v7268_v32, %v7051_v13  ;;  %v15102_v13 = vld [vmem:[#allocation141_spill] sm:$0xff] }
 0x8cb   : > { %v7620_v21 = vpop.f32.mrf.mxu1 }
 0x8cc   : > { %v7455_v62 = vpop.f32.mrf.mxu0 }
 0x8cd   : > { %v7456_v20 = vadd.f32 %v7455_v62, %v7239_v61 }
 0x8cf   : > { %v7617_v63 = vadd.f32 %v7616_v52, %v7456_v20  ;;  %v7055_v27 = vpop.f32.mrf.mxu2  ;;  %v7274_v56 = vpop.f32.mrf.mxu3 }
 0x8d0   : > { %v7056_v57 = vadd.f32 %v7055_v27, %v6853_v53 }
 0x8d1   : > { %7687 = vst.msk [vmem:[%s13318_s14 + $0x98] sm:$0xff] %vm7667_vm0, %v7617_v63 }
 0x8d2   : > { %v7275_v35 = vadd.f32 %v7274_v56, %v7056_v57 }
 0x8d3   : > { %v7624_v9 = vpop.f32.mrf.mxu1 }
 0x8d4   : > { %v7459_v38 = vpop.f32.mrf.mxu0 }
 0x8d5   : > { %v7460_v40 = vadd.f32 %v7459_v38, %v7245_v34  ;;  %v15096_v34 = vld [vmem:[#allocation95_spill] sm:$0xff] }
 0x8d7   : > { %v7621_v39 = vadd.f32 %v7620_v21, %v7460_v40  ;;  %v7060_v28 = vpop.f32.mrf.mxu2  ;;  %v7280_v37 = vpop.f32.mrf.mxu3  ;;  %v15095_v21 = vld [vmem:[#allocation16_spill] sm:$0xff] }
 0x8d8   : > { %v7061_v11 = vadd.f32 %v7060_v28, %v6857_v14  ;;  %v6861_v62 = vadd.f32 %v15095_v21, %v13282_v6 }
 0x8d9   : > { %7688 = vst.msk [vmem:[%s13318_s14 + $0xa0] sm:$0xff] %vm7667_vm0, %v7621_v39 }
 0x8da   : > { %v7281_v44 = vadd.f32 %v7280_v37, %v7061_v11 }
 0x8db   : > { %v7628_v33 = vpop.f32.mrf.mxu1 }
 0x8dc   : > { %v7463_v23 = vpop.f32.mrf.mxu0 }
 0x8dd   : > { %v7464_v15 = vadd.f32 %v7463_v23, %v7251_v47  ;;  %v15099_v23 = vld [vmem:[#allocation65_spill] sm:$0xff] }
 0x8df   : > { %v7625_v16 = vadd.f32 %v7624_v9, %v7464_v15  ;;  %v7065_v3 = vpop.f32.mrf.mxu2  ;;  %v7286_v0 = vpop.f32.mrf.mxu3  ;;  %v15097_v9 = vld [vmem:[#allocation83_spill] sm:$0xff] }
 0x8e0   : > { %v7066_v63 = vadd.f32 %v7065_v3, %v6861_v62  ;;  %v6865_v38 = vadd.f32 %v15097_v9, %v15096_v34 }
 0x8e1   : > { %7689 = vst.msk [vmem:[%s13318_s14 + $0xa8] sm:$0xff] %vm7667_vm0, %v7625_v16 }
 0x8e2   : > { %v7287_v42 = vadd.f32 %v7286_v0, %v7066_v63 }
 0x8e3   : > { %v7632_v19 = vpop.f32.mrf.mxu1 }
 0x8e4   : > { %v7467_v60 = vpop.f32.mrf.mxu0 }
 0x8e5   : > { %v7468_v4 = vadd.f32 %v7467_v60, %v7257_v25 }
 0x8e7   : > { %v7629_v24 = vadd.f32 %v7628_v33, %v7468_v4  ;;  %v7070_v31 = vpop.f32.mrf.mxu2  ;;  %v7292_v43 = vpop.f32.mrf.mxu3  ;;  %v15098_v33 = vld [vmem:[#allocation48_spill] sm:$0xff] }
 0x8e8   : > { %v7071_v40 = vadd.f32 %v7070_v31, %v6865_v38  ;;  %v6869_v26 = vadd.f32 %v15099_v23, %v15098_v33  ;;  %v15101_v4 = vld [vmem:[#allocation92_spill] sm:$0xff] }
 0x8e9   : > { %7690 = vst.msk [vmem:[%s13318_s14 + $0xb0] sm:$0xff] %vm7667_vm0, %v7629_v24  ;;  %v6873_v50 = vadd.f32 %v15101_v4, %v15100_v7 }
 0x8ea   : > { %v7293_v2 = vadd.f32 %v7292_v43, %v7071_v40 }
 0x8eb   : > { %v7636_v36 = vpop.f32.mrf.mxu1 }
 0x8ec   : > { %v7471_v54 = vpop.f32.mrf.mxu0 }
 0x8ed   : > { %v7472_v58 = vadd.f32 %v7471_v54, %v7263_v5 }
 0x8ef   : > { %v7633_v18 = vadd.f32 %v7632_v19, %v7472_v58  ;;  %v7075_v8 = vpop.f32.mrf.mxu2  ;;  %v7298_v15 = vpop.f32.mrf.mxu3 }
 0x8f0   : > { %v7076_v17 = vadd.f32 %v7075_v8, %v6869_v26 }
 0x8f1   : > { %7691 = vst.msk [vmem:[%s13318_s14 + $0xb8] sm:$0xff] %vm7667_vm0, %v7633_v18  ;;  %v15103_v18 = vld [vmem:[#allocation111_spill] sm:$0xff] }
 0x8f2   : > { %v7299_v32 = vadd.f32 %v7298_v15, %v7076_v17  ;;  %v6877_v28 = vadd.f32 %v15103_v18, %v15102_v13 }
 0x8f3   : > { %v7640_v46 = vpop.f32.mrf.mxu1 }
 0x8f4   : > { %v7475_v59 = vpop.f32.mrf.mxu0 }
 0x8f5   : > { %v7476_v41 = vadd.f32 %v7475_v59, %v7269_v30 }
 0x8f7   : > { %v7637_v52 = vadd.f32 %v7636_v36, %v7476_v41  ;;  %v7080_v25 = vpop.f32.mrf.mxu2  ;;  %v7304_v36 = vpop.f32.mrf.mxu3 }
 0x8f8   : > { %v7081_v24 = vadd.f32 %v7080_v25, %v6873_v50 }
 0x8f9   : > { %7692 = vst.msk [vmem:[%s13318_s14 + $0xc0] sm:$0xff] %vm7667_vm0, %v7637_v52 }
 0x8fa   : > { %v7305_v51 = vadd.f32 %v7304_v36, %v7081_v24 }
 0x8fb   : > { %v7644_v29 = vpop.f32.mrf.mxu1 }
 0x8fc   : > { %v7479_v49 = vpop.f32.mrf.mxu0 }
 0x8fd   : > { %v7480_v48 = vadd.f32 %v7479_v49, %v7275_v35 }
 0x8ff   : > { %v7641_v22 = vadd.f32 %v7640_v46, %v7480_v48  ;;  %v7085_v54 = vpop.f32.mrf.mxu2  ;;  %v7310_v53 = vpop.f32.mrf.mxu3 }
 0x900   : > { %v7086_v46 = vadd.f32 %v7085_v54, %v6877_v28 }
 0x901   : > { %7693 = vst.msk [vmem:[%s13318_s14 + $0xc8] sm:$0xff] %vm7667_vm0, %v7641_v22 }
 0x902   : > { %v7311_v41 = vadd.f32 %v7310_v53, %v7086_v46 }
 0x903   : > { %v7648_v1 = vpop.f32.mrf.mxu1 }
 0x904   : > { %v7483_v61 = vpop.f32.mrf.mxu0 }
 0x905   : > { %v7484_v20 = vadd.f32 %v7483_v61, %v7281_v44 }
 0x907   : > { %v7645_v12 = vadd.f32 %v7644_v29, %v7484_v20 }
 0x909   : > { %7694 = vst.msk [vmem:[%s13318_s14 + $0xd0] sm:$0xff] %vm7667_vm0, %v7645_v12 }
 0x90b   : > { %v7652_v6 = vpop.f32.mrf.mxu1 }
 0x90c   : > { %v7487_v10 = vpop.f32.mrf.mxu0 }
 0x90d   : > { %v7488_v45 = vadd.f32 %v7487_v10, %v7287_v42 }
 0x90f   : > { %v7649_v39 = vadd.f32 %v7648_v1, %v7488_v45 }
 0x911   : > { %7695 = vst.msk [vmem:[%s13318_s14 + $0xd8] sm:$0xff] %vm7667_vm0, %v7649_v39 }
 0x913   : > { %v7656_v19 = vpop.f32.mrf.mxu1 }
 0x914   : > { %v7491_v47 = vpop.f32.mrf.mxu0 }
 0x915   : > { %v7492_v55 = vadd.f32 %v7491_v47, %v7293_v2 }
 0x917   : > { %v7653_v16 = vadd.f32 %v7652_v6, %v7492_v55 }
 0x919   : > { %7696 = vst.msk [vmem:[%s13318_s14 + $0xe0] sm:$0xff] %vm7667_vm0, %v7653_v16 }
 0x91b   : > { %v7660_v58 = vpop.f32.mrf.mxu1 }
 0x91c   : > { %v7495_v60 = vpop.f32.mrf.mxu0 }
 0x91d   : > { %v7496_v27 = vadd.f32 %v7495_v60, %v7299_v32 }
 0x91f   : > { %v7657_v5 = vadd.f32 %v7656_v19, %v7496_v27 }
 0x921   : > { %7697 = vst.msk [vmem:[%s13318_s14 + $0xe8] sm:$0xff] %vm7667_vm0, %v7657_v5 }
 0x923   : > { %v7664_v37 = vpop.f32.mrf.mxu1 }
 0x924   : > { %v7499_v56 = vpop.f32.mrf.mxu0 }
 0x925   : > { %v7500_v30 = vadd.f32 %v7499_v56, %v7305_v51 }
 0x927   : > { %v7661_v59 = vadd.f32 %v7660_v58, %v7500_v30 }
 0x929   : > { %7698 = vst.msk [vmem:[%s13318_s14 + $0xf0] sm:$0xff] %vm7667_vm0, %v7661_v59 }
 0x92c   : > { %v7503_v57 = vpop.f32.mrf.mxu0 }
 0x92d   : > { %v7504_v52 = vadd.f32 %v7503_v57, %v7311_v41 }
 0x92f   : > { %v7665_v3 = vadd.f32 %v7664_v37, %v7504_v52 }
 0x931   : > { %7699 = vst.msk [vmem:[%s13318_s14 + $0xf8] sm:$0xff] %vm7667_vm0, %v7665_v3 }
 0x932 PF: > { %s15_s18 = sadd.s32 1, %s7889_s18  }
 0x933   : > { %p12_p4 = scmp.ge.s32.totalorder %s15_s18, 4  }
 0x935   :  { %14 = sbr.rel (!%p12_p4) target bundleno = 1 (0x1), region = 72 }

</bundles_post_ra>
